<compile_context>
chip_gen: v7x
topology: tpu7x:2x2x1
jax: 0.10.0
libtpu: 0.0.40
codegen_flags: <defaults>
</compile_context>

<pallas_src>
import functools

import numpy as np
import jax
import jax.numpy as jnp
from jax.experimental import pallas as pl
from jax.experimental.pallas import tpu as pltpu


CPAD = 128          # lane-dense channel padding for every activation / weight


# ----------------------------------------------------------------- kernel ----

def _silu(y):
    # y * sigmoid(y); single EUP transcendental, f32.
    return y * (0.5 * (jnp.tanh(0.5 * y) + 1.0))


def _pw(x, w_bf16, bias_f32):
    """Pointwise 1x1 conv (+ folded BN) + SiLU as a bf16 MXU matmul, f32 acc."""
    y = jnp.dot(x.astype(jnp.bfloat16), w_bf16,
                preferred_element_type=jnp.float32)
    return _silu(y + bias_f32)


def _dw(x, g_ref, kdw, bias_f32):
    """Depthwise 3x3 (+ folded BN) + SiLU.  Stride / zero padding are encoded
    in the 0/1 operator G: out = G @ concat_t(x * k_t).  g_ref is None for
    1x1 spatial maps (only the centre tap survives)."""
    if g_ref is None:
        return _silu(x * kdw[4] + bias_f32)
    xk = jnp.concatenate([x * kdw[t] for t in range(9)], axis=0)
    y = jnp.dot(g_ref[...], xk.astype(jnp.bfloat16),
                preferred_element_type=jnp.float32)
    return _silu(y + bias_f32)


def _net_kernel(x_ref, w_ref, b_ref, k_ref, *rest, plan, cls_idx, n_g):
    """Entire yolov5_cls_dw forward for ONE image (one grid step)."""
    g_refs = rest[:n_g]
    o_ref = rest[n_g]

    x = x_ref[...]                                   # (H*W, 128) f32
    for kind, gi, widx, bidx, ki in plan:
        g = g_refs[gi] if gi >= 0 else None
        kdw = k_ref[ki]                              # (9, 128) f32
        if kind == "conv":                           # Conv_dw: dw s2 -> pw
            h1 = _dw(x, g, kdw, b_ref[bidx[0]])
            x = _pw(h1, w_ref[widx[0]], b_ref[bidx[1]])
        else:                                        # C3_dw
            w1, w2, wb1, wb2, w3a, w3b = widx
            b1, b2, bb1, bdw, bb2, b3 = bidx
            y1 = _pw(x, w_ref[w1], b_ref[b1])        # cv1
            y2 = _pw(x, w_ref[w2], b_ref[b2])        # cv2
            t1 = _pw(y1, w_ref[wb1], b_ref[bb1])     # bottleneck pw1
            t2 = _dw(t1, g, kdw, b_ref[bdw])         # bottleneck dw 3x3 s1
            t3 = y1 + _pw(t2, w_ref[wb2], b_ref[bb2])  # bottleneck pw2 + shortcut
            # cv3 on concat([t3, y2]) == t3 @ W3a + y2 @ W3b  (pre-split weight)
            x = _silu(jnp.dot(t3.astype(jnp.bfloat16), w_ref[w3a],
                              preferred_element_type=jnp.float32)
                      + jnp.dot(y2.astype(jnp.bfloat16), w_ref[w3b],
                                preferred_element_type=jnp.float32)
                      + b_ref[b3])

    # Classify_dw: 1x1 conv + BN + SiLU -> global average pool -> Linear
    wc, wl, bc, bl = cls_idx
    hc = _pw(x, w_ref[wc], b_ref[bc])
    pooled = jnp.mean(hc, axis=0, keepdims=True)     # (1, 128)
    logits = jnp.dot(pooled.astype(jnp.bfloat16), w_ref[wl],
                     preferred_element_type=jnp.float32) + b_ref[bl]
    o_ref[...] = jnp.broadcast_to(logits[None], o_ref.shape)


# ------------------------------------------------ depthwise shift operator ----

def _dw_shift_operator(h, w, stride):
    """0/1 matrix G of shape (ho*wo, 9*h*w): row m gathers, for each tap t,
    the input pixel feeding output position m (zero row-chunk when the tap
    falls in the zero padding).  dw_out = G @ concat_t(x * k_t)."""
    ho = (h - 1) // stride + 1
    wo = (w - 1) // stride + 1
    g = np.zeros((ho * wo, 9 * h * w), np.float32)
    for oi in range(ho):
        for oj in range(wo):
            for di in range(3):
                for dj in range(3):
                    ii = oi * stride + di - 1
                    jj = oj * stride + dj - 1
                    if 0 <= ii < h and 0 <= jj < w:
                        t = di * 3 + dj
                        g[oi * wo + oj, t * h * w + ii * w + jj] = 1.0
    return g, ho, wo


# -------------------------------------------------------------- parameters ----

def _keygen(key):
    while True:
        key, sub = jax.random.split(key)
        yield sub


def _bn(kg, c):
    s = 1.0 + 0.05 * jax.random.normal(next(kg), (c,), jnp.float32)
    b = 0.05 * jax.random.normal(next(kg), (c,), jnp.float32)
    return s, b


def _pw_padded(kg, cin, cout):
    w = jax.random.normal(next(kg), (cin, cout), jnp.float32) / jnp.sqrt(float(cin))
    s, b = _bn(kg, cout)                   # BN (eval) folded into weight / bias
    wp = jnp.zeros((CPAD, CPAD), jnp.float32).at[:cin, :cout].set(w * s[None, :])
    bp = jnp.zeros((CPAD,), jnp.float32).at[:cout].set(b)
    return wp, bp


def _dw_padded(kg, c):
    w = jax.random.normal(next(kg), (9, c), jnp.float32) / 3.0
    s, b = _bn(kg, c)
    kp = jnp.zeros((9, CPAD), jnp.float32).at[:, :c].set(w * s[None, :])
    bp = jnp.zeros((CPAD,), jnp.float32).at[:c].set(b)
    return kp, bp


def _adder(lst):
    def add(a):
        lst.append(a)
        return len(lst) - 1
    return add


CFG = {
    "feature_map": [
        [[1], [3, 8, 3, 2]],     # Conv_dw(3, 8, k=3, s=2)
        [[1], [8, 16, 3, 2]],    # Conv_dw(8, 16, 3, 2)
        [[1], [16, 16, 1]],      # C3_dw(16, 16, n=1) x1
        [[1], [16, 32, 3, 2]],   # Conv_dw(16, 32, 3, 2)
        [[1], [32, 32, 1]],      # C3_dw x1
        [[1], [32, 64, 3, 2]],   # Conv_dw(32, 64, 3, 2)
        [[1], [64, 64, 1]],      # C3_dw x1
        [[1], [64, 64, 3, 2]],   # Conv_dw(64, 64, 3, 2)
        [[1], [64, 64, 1]],      # C3_dw x1
    ],
    "classify": {"1": [64, 10]},  # Classify_dw(64, num_classes=10)
}


def build_model(cfg, key, h, w, hidden=128):
    """Random BN-folded, 128-padded weights packed into stacked tensors plus a
    static per-layer index plan and the per-layer depthwise shift operators."""
    kg = _keygen(key)
    Ws, Bs, Ks, Gs = [], [], [], []
    add_w, add_b, add_k, add_g = _adder(Ws), _adder(Bs), _adder(Ks), _adder(Gs)

    plan = []
    cur_h, cur_w = h, w

    def add_conv(args):
        nonlocal cur_h, cur_w
        c1, c2, k, s = args
        assert k == 3 and s == 2            # kernels specialized for 3x3 / s=2
        if cur_h * cur_w == 1:
            gi, ho, wo = -1, 1, 1
        else:
            g, ho, wo = _dw_shift_operator(cur_h, cur_w, 2)
            gi = add_g(g)
        kdw, bdw = _dw_padded(kg, c1)
        wpw, bpw = _pw_padded(kg, c1, c2)
        plan.append(("conv", gi, (add_w(wpw),), (add_b(bdw), add_b(bpw)),
                     add_k(kdw)))
        cur_h, cur_w = ho, wo

    def add_c3(reps, args):
        c1, c2 = args[0], args[1]
        c_ = c2 // 2                        # e = 0.5
        w1, b1 = _pw_padded(kg, c1, c_)
        w2, b2 = _pw_padded(kg, c1, c_)
        wb1, bb1 = _pw_padded(kg, c_, c_)
        kdw, bdw = _dw_padded(kg, c_)
        wb2, bb2 = _pw_padded(kg, c_, c_)
        # cv3 acts on concat([bottleneck_out, cv2_out]); pre-split its weight
        w3 = jax.random.normal(next(kg), (2 * c_, c2), jnp.float32) / jnp.sqrt(2.0 * c_)
        s3, b3 = _bn(kg, c2)
        w3 = w3 * s3[None, :]
        w3a = jnp.zeros((CPAD, CPAD), jnp.float32).at[:c_, :c2].set(w3[:c_])
        w3b = jnp.zeros((CPAD, CPAD), jnp.float32).at[:c_, :c2].set(w3[c_:])
        b3p = jnp.zeros((CPAD,), jnp.float32).at[:c2].set(b3)
        if cur_h * cur_w == 1:
            gi = -1
        else:
            g, _, _ = _dw_shift_operator(cur_h, cur_w, 1)
            gi = add_g(g)
        entry = ("c3", gi,
                 (add_w(w1), add_w(w2), add_w(wb1), add_w(wb2),
                  add_w(w3a), add_w(w3b)),
                 (add_b(b1), add_b(b2), add_b(bb1), add_b(bdw),
                  add_b(bb2), add_b(b3p)),
                 add_k(kdw))
        for _ in range(reps):               # [C3_dw(...)] * n shares ONE instance
            plan.append(entry)

    fm = cfg["feature_map"]
    add_conv(fm[0][1])
    add_conv(fm[1][1])
    add_c3(fm[2][0][0], fm[2][1])
    add_conv(fm[3][1])
    add_c3(fm[4][0][0], fm[4][1])
    add_conv(fm[5][1])
    add_c3(fm[6][0][0], fm[6][1])
    add_conv(fm[7][1])
    add_c3(fm[8][0][0], fm[8][1])

    c1_cls, nc = cfg["classify"]["1"]
    wc, bc = _pw_padded(kg, c1_cls, hidden)
    wl = jax.random.normal(next(kg), (hidden, nc), jnp.float32) / jnp.sqrt(float(hidden))
    wlp = jnp.zeros((CPAD, CPAD), jnp.float32).at[:hidden, :nc].set(wl)
    blp = jnp.zeros((CPAD,), jnp.float32).at[:nc].set(
        0.05 * jax.random.normal(next(kg), (nc,), jnp.float32))
    cls_idx = (add_w(wc), add_w(wlp), add_b(bc), add_b(blp))

    arrays = dict(
        W=jnp.stack(Ws).astype(jnp.bfloat16),                 # (nw, 128, 128)
        B=jnp.stack(Bs),                                      # (nb, 128) f32
        K=jnp.stack(Ks),                                      # (nk, 9, 128) f32
        G=tuple(jnp.asarray(g, jnp.bfloat16) for g in Gs),    # shift operators
    )
    return arrays, tuple(plan), cls_idx, nc


# ---------------------------------------------------------------- wrapper ----

def make_forward(arrays, plan, cls_idx, n, h, w, nc):
    m1 = h * w
    gs = arrays["G"]
    n_g = len(gs)

    def const_spec(a):
        nd = a.ndim
        return pl.BlockSpec(a.shape, lambda i, _nd=nd: (0,) * _nd)

    in_specs = ([pl.BlockSpec((m1, CPAD), lambda i: (i, 0))]     # one image / step
                + [const_spec(arrays["W"]), const_spec(arrays["B"]),
                   const_spec(arrays["K"])]
                + [const_spec(g) for g in gs])
    out_spec = pl.BlockSpec((1, 8, CPAD), lambda i: (i, 0, 0))   # lane-dense out

    call = pl.pallas_call(
        functools.partial(_net_kernel, plan=plan, cls_idx=cls_idx, n_g=n_g),
        out_shape=jax.ShapeDtypeStruct((n, 8, CPAD), jnp.float32),
        grid_spec=pltpu.PrefetchScalarGridSpec(
            num_scalar_prefetch=0, grid=(n,),
            in_specs=in_specs, out_specs=out_spec),
        compiler_params=pltpu.CompilerParams(
            dimension_semantics=("parallel",)),                 # batch on v7x cores
    )

    def forward(x_nchw, W, B, K, G):
        xh = jnp.transpose(x_nchw, (0, 2, 3, 1)).astype(jnp.float32)   # NHWC
        c_in = xh.shape[-1]
        xh = jnp.pad(xh, ((0, 0), (0, 0), (0, 0), (0, CPAD - c_in)))   # -> 128 ch
        x2 = xh.reshape(n * m1, CPAD)
        out = call(x2, W, B, K, *G)
        return out[:, 0, :nc]

    return forward


# -------------------------------------------------------------------- main ----

if __name__ == "__main__":
    N, C_IN, H, W = 2, 3, 16, 16
    root = jax.random.PRNGKey(0)
    kx, kp = jax.random.split(root)
    x = jax.random.normal(kx, (N, C_IN, H, W), jnp.float32)     # NCHW, like PyTorch

    arrays, plan, cls_idx, nc = build_model(CFG, kp, H, W)
    fwd = jax.jit(make_forward(arrays, plan, cls_idx, N, H, W, nc))

    out = jax.block_until_ready(
        fwd(x, arrays["W"], arrays["B"], arrays["K"], arrays["G"]))
    assert out.shape == (N, nc) and out.dtype == jnp.float32
    print("KERNEL_OK")
</pallas_src>

<mosaic_0001>
module attributes {stable_mosaic.version = 11 : i64} {
  func.func @_net_kernel(%arg0: i32, %arg1: memref<256x128xf32, #tpu.memory_space<vmem>>, %arg2: memref<31x128x128xbf16, #tpu.memory_space<vmem>>, %arg3: memref<36x128xf32, #tpu.memory_space<vmem>>, %arg4: memref<9x9x128xf32, #tpu.memory_space<vmem>>, %arg5: memref<64x2304xbf16, #tpu.memory_space<vmem>>, %arg6: memref<16x576xbf16, #tpu.memory_space<vmem>>, %arg7: memref<16x144xbf16, #tpu.memory_space<vmem>>, %arg8: memref<4x144xbf16, #tpu.memory_space<vmem>>, %arg9: memref<4x36xbf16, #tpu.memory_space<vmem>>, %arg10: memref<1x36xbf16, #tpu.memory_space<vmem>>, %arg11: memref<1x8x128xf32, #tpu.memory_space<vmem>>) attributes {dimension_semantics = [#tpu.dimension_semantics<parallel>], iteration_bounds = array<i64: 2>, scalar_prefetch = 0 : i64, scratch_operands = 0 : i64, tpu.core_type = #tpu.core_type<tc>, window_params = [{transform_indices = @transform_0, window_bounds = array<i64: 256, 128>}, {pipeline_mode = #tpu.pipeline_mode<synchronous>, transform_indices = @transform_1, window_bounds = array<i64: 31, 128, 128>}, {pipeline_mode = #tpu.pipeline_mode<synchronous>, transform_indices = @transform_2, window_bounds = array<i64: 36, 128>}, {pipeline_mode = #tpu.pipeline_mode<synchronous>, transform_indices = @transform_3, window_bounds = array<i64: 9, 9, 128>}, {pipeline_mode = #tpu.pipeline_mode<synchronous>, transform_indices = @transform_4, window_bounds = array<i64: 64, 2304>}, {pipeline_mode = #tpu.pipeline_mode<synchronous>, transform_indices = @transform_5, window_bounds = array<i64: 16, 576>}, {pipeline_mode = #tpu.pipeline_mode<synchronous>, transform_indices = @transform_6, window_bounds = array<i64: 16, 144>}, {pipeline_mode = #tpu.pipeline_mode<synchronous>, transform_indices = @transform_7, window_bounds = array<i64: 4, 144>}, {pipeline_mode = #tpu.pipeline_mode<synchronous>, transform_indices = @transform_8, window_bounds = array<i64: 4, 36>}, {pipeline_mode = #tpu.pipeline_mode<synchronous>, transform_indices = @transform_9, window_bounds = array<i64: 1, 36>}, {transform_indices = @transform_10, window_bounds = array<i64: 1, 8, 128>}]} {
    %c0 = arith.constant 0 : index
    %c0_0 = arith.constant 0 : index
    %0 = vector.load %arg1[%c0, %c0_0] : memref<256x128xf32, #tpu.memory_space<vmem>>, vector<256x128xf32>
    %c0_1 = arith.constant 0 : index
    %c0_2 = arith.constant 0 : index
    %c0_3 = arith.constant 0 : index
    %1 = vector.load %arg4[%c0_1, %c0_2, %c0_3] : memref<9x9x128xf32, #tpu.memory_space<vmem>>, vector<1x9x128xf32>
    %2 = vector.shape_cast %1 : vector<1x9x128xf32> to vector<9x128xf32>
    %c0_4 = arith.constant 0 : index
    %c0_5 = arith.constant 0 : index
    %3 = vector.load %arg3[%c0_4, %c0_5] : memref<36x128xf32, #tpu.memory_space<vmem>>, vector<1x128xf32>
    %4 = vector.shape_cast %3 : vector<1x128xf32> to vector<128xf32>
    %5 = vector.extract_strided_slice %2 {offsets = [0, 0], sizes = [1, 128], strides = [1, 1]} : vector<9x128xf32> to vector<1x128xf32>
    %6 = vector.shape_cast %5 : vector<1x128xf32> to vector<128xf32>
    %7 = vector.shape_cast %6 : vector<128xf32> to vector<1x128xf32>
    %8 = vector.broadcast %7 : vector<1x128xf32> to vector<256x128xf32>
    %9 = arith.mulf %0, %8 : vector<256x128xf32>
    %10 = vector.extract_strided_slice %2 {offsets = [1, 0], sizes = [1, 128], strides = [1, 1]} : vector<9x128xf32> to vector<1x128xf32>
    %11 = vector.shape_cast %10 : vector<1x128xf32> to vector<128xf32>
    %12 = vector.shape_cast %11 : vector<128xf32> to vector<1x128xf32>
    %13 = vector.broadcast %12 : vector<1x128xf32> to vector<256x128xf32>
    %14 = arith.mulf %0, %13 : vector<256x128xf32>
    %15 = vector.extract_strided_slice %2 {offsets = [2, 0], sizes = [1, 128], strides = [1, 1]} : vector<9x128xf32> to vector<1x128xf32>
    %16 = vector.shape_cast %15 : vector<1x128xf32> to vector<128xf32>
    %17 = vector.shape_cast %16 : vector<128xf32> to vector<1x128xf32>
    %18 = vector.broadcast %17 : vector<1x128xf32> to vector<256x128xf32>
    %19 = arith.mulf %0, %18 : vector<256x128xf32>
    %20 = vector.extract_strided_slice %2 {offsets = [3, 0], sizes = [1, 128], strides = [1, 1]} : vector<9x128xf32> to vector<1x128xf32>
    %21 = vector.shape_cast %20 : vector<1x128xf32> to vector<128xf32>
    %22 = vector.shape_cast %21 : vector<128xf32> to vector<1x128xf32>
    %23 = vector.broadcast %22 : vector<1x128xf32> to vector<256x128xf32>
    %24 = arith.mulf %0, %23 : vector<256x128xf32>
    %25 = vector.extract_strided_slice %2 {offsets = [4, 0], sizes = [1, 128], strides = [1, 1]} : vector<9x128xf32> to vector<1x128xf32>
    %26 = vector.shape_cast %25 : vector<1x128xf32> to vector<128xf32>
    %27 = vector.shape_cast %26 : vector<128xf32> to vector<1x128xf32>
    %28 = vector.broadcast %27 : vector<1x128xf32> to vector<256x128xf32>
    %29 = arith.mulf %0, %28 : vector<256x128xf32>
    %30 = vector.extract_strided_slice %2 {offsets = [5, 0], sizes = [1, 128], strides = [1, 1]} : vector<9x128xf32> to vector<1x128xf32>
    %31 = vector.shape_cast %30 : vector<1x128xf32> to vector<128xf32>
    %32 = vector.shape_cast %31 : vector<128xf32> to vector<1x128xf32>
    %33 = vector.broadcast %32 : vector<1x128xf32> to vector<256x128xf32>
    %34 = arith.mulf %0, %33 : vector<256x128xf32>
    %35 = vector.extract_strided_slice %2 {offsets = [6, 0], sizes = [1, 128], strides = [1, 1]} : vector<9x128xf32> to vector<1x128xf32>
    %36 = vector.shape_cast %35 : vector<1x128xf32> to vector<128xf32>
    %37 = vector.shape_cast %36 : vector<128xf32> to vector<1x128xf32>
    %38 = vector.broadcast %37 : vector<1x128xf32> to vector<256x128xf32>
    %39 = arith.mulf %0, %38 : vector<256x128xf32>
    %40 = vector.extract_strided_slice %2 {offsets = [7, 0], sizes = [1, 128], strides = [1, 1]} : vector<9x128xf32> to vector<1x128xf32>
    %41 = vector.shape_cast %40 : vector<1x128xf32> to vector<128xf32>
    %42 = vector.shape_cast %41 : vector<128xf32> to vector<1x128xf32>
    %43 = vector.broadcast %42 : vector<1x128xf32> to vector<256x128xf32>
    %44 = arith.mulf %0, %43 : vector<256x128xf32>
    %45 = vector.extract_strided_slice %2 {offsets = [8, 0], sizes = [1, 128], strides = [1, 1]} : vector<9x128xf32> to vector<1x128xf32>
    %46 = vector.shape_cast %45 : vector<1x128xf32> to vector<128xf32>
    %47 = vector.shape_cast %46 : vector<128xf32> to vector<1x128xf32>
    %48 = vector.broadcast %47 : vector<1x128xf32> to vector<256x128xf32>
    %49 = arith.mulf %0, %48 : vector<256x128xf32>
    %50 = tpu.concatenate %9, %14, %19, %24, %29, %34, %39, %44, %49 in 0 : vector<256x128xf32>, vector<256x128xf32>, vector<256x128xf32>, vector<256x128xf32>, vector<256x128xf32>, vector<256x128xf32>, vector<256x128xf32>, vector<256x128xf32>, vector<256x128xf32> -> vector<2304x128xf32>
    %c0_6 = arith.constant 0 : index
    %c0_7 = arith.constant 0 : index
    %51 = vector.load %arg5[%c0_6, %c0_7] : memref<64x2304xbf16, #tpu.memory_space<vmem>>, vector<64x2304xbf16>
    %52 = arith.truncf %50 : vector<2304x128xf32> to vector<2304x128xbf16>
    %cst = arith.constant dense<0.000000e+00> : vector<64x128xf32>
    %53 = tpu.matmul %51, %52, %cst {dimension_numbers = #tpu.dot_dimension_numbers<[1], [0], [0], [1], [0, 0, 1, 1], [], []>} : vector<64x2304xbf16>, vector<2304x128xbf16>, vector<64x128xf32> -> vector<64x128xf32>
    %54 = vector.shape_cast %4 : vector<128xf32> to vector<1x128xf32>
    %55 = vector.broadcast %54 : vector<1x128xf32> to vector<64x128xf32>
    %56 = arith.addf %53, %55 : vector<64x128xf32>
    %cst_8 = arith.constant 5.000000e-01 : f32
    %57 = vector.broadcast %cst_8 : f32 to vector<64x128xf32>
    %58 = arith.mulf %57, %56 : vector<64x128xf32>
    %59 = math.tanh %58 : vector<64x128xf32>
    %cst_9 = arith.constant 1.000000e+00 : f32
    %60 = vector.broadcast %cst_9 : f32 to vector<64x128xf32>
    %61 = arith.addf %59, %60 : vector<64x128xf32>
    %cst_10 = arith.constant 5.000000e-01 : f32
    %62 = vector.broadcast %cst_10 : f32 to vector<64x128xf32>
    %63 = arith.mulf %62, %61 : vector<64x128xf32>
    %64 = arith.mulf %56, %63 : vector<64x128xf32>
    %c0_11 = arith.constant 0 : index
    %c0_12 = arith.constant 0 : index
    %c0_13 = arith.constant 0 : index
    %65 = vector.load %arg2[%c0_11, %c0_12, %c0_13] : memref<31x128x128xbf16, #tpu.memory_space<vmem>>, vector<1x128x128xbf16>
    %66 = vector.shape_cast %65 : vector<1x128x128xbf16> to vector<128x128xbf16>
    %c1 = arith.constant 1 : index
    %c0_14 = arith.constant 0 : index
    %67 = vector.load %arg3[%c1, %c0_14] : memref<36x128xf32, #tpu.memory_space<vmem>>, vector<1x128xf32>
    %68 = vector.shape_cast %67 : vector<1x128xf32> to vector<128xf32>
    %69 = arith.truncf %64 : vector<64x128xf32> to vector<64x128xbf16>
    %cst_15 = arith.constant dense<0.000000e+00> : vector<64x128xf32>
    %70 = tpu.matmul %69, %66, %cst_15 {dimension_numbers = #tpu.dot_dimension_numbers<[1], [0], [0], [1], [0, 0, 1, 1], [], []>} : vector<64x128xbf16>, vector<128x128xbf16>, vector<64x128xf32> -> vector<64x128xf32>
    %71 = vector.shape_cast %68 : vector<128xf32> to vector<1x128xf32>
    %72 = vector.broadcast %71 : vector<1x128xf32> to vector<64x128xf32>
    %73 = arith.addf %70, %72 : vector<64x128xf32>
    %cst_16 = arith.constant 5.000000e-01 : f32
    %74 = vector.broadcast %cst_16 : f32 to vector<64x128xf32>
    %75 = arith.mulf %74, %73 : vector<64x128xf32>
    %76 = math.tanh %75 : vector<64x128xf32>
    %cst_17 = arith.constant 1.000000e+00 : f32
    %77 = vector.broadcast %cst_17 : f32 to vector<64x128xf32>
    %78 = arith.addf %76, %77 : vector<64x128xf32>
    %cst_18 = arith.constant 5.000000e-01 : f32
    %79 = vector.broadcast %cst_18 : f32 to vector<64x128xf32>
    %80 = arith.mulf %79, %78 : vector<64x128xf32>
    %81 = arith.mulf %73, %80 : vector<64x128xf32>
    %c1_19 = arith.constant 1 : index
    %c0_20 = arith.constant 0 : index
    %c0_21 = arith.constant 0 : index
    %82 = vector.load %arg4[%c1_19, %c0_20, %c0_21] : memref<9x9x128xf32, #tpu.memory_space<vmem>>, vector<1x9x128xf32>
    %83 = vector.shape_cast %82 : vector<1x9x128xf32> to vector<9x128xf32>
    %c2 = arith.constant 2 : index
    %c0_22 = arith.constant 0 : index
    %84 = vector.load %arg3[%c2, %c0_22] : memref<36x128xf32, #tpu.memory_space<vmem>>, vector<1x128xf32>
    %85 = vector.shape_cast %84 : vector<1x128xf32> to vector<128xf32>
    %86 = vector.extract_strided_slice %83 {offsets = [0, 0], sizes = [1, 128], strides = [1, 1]} : vector<9x128xf32> to vector<1x128xf32>
    %87 = vector.shape_cast %86 : vector<1x128xf32> to vector<128xf32>
    %88 = vector.shape_cast %87 : vector<128xf32> to vector<1x128xf32>
    %89 = vector.broadcast %88 : vector<1x128xf32> to vector<64x128xf32>
    %90 = arith.mulf %81, %89 : vector<64x128xf32>
    %91 = vector.extract_strided_slice %83 {offsets = [1, 0], sizes = [1, 128], strides = [1, 1]} : vector<9x128xf32> to vector<1x128xf32>
    %92 = vector.shape_cast %91 : vector<1x128xf32> to vector<128xf32>
    %93 = vector.shape_cast %92 : vector<128xf32> to vector<1x128xf32>
    %94 = vector.broadcast %93 : vector<1x128xf32> to vector<64x128xf32>
    %95 = arith.mulf %81, %94 : vector<64x128xf32>
    %96 = vector.extract_strided_slice %83 {offsets = [2, 0], sizes = [1, 128], strides = [1, 1]} : vector<9x128xf32> to vector<1x128xf32>
    %97 = vector.shape_cast %96 : vector<1x128xf32> to vector<128xf32>
    %98 = vector.shape_cast %97 : vector<128xf32> to vector<1x128xf32>
    %99 = vector.broadcast %98 : vector<1x128xf32> to vector<64x128xf32>
    %100 = arith.mulf %81, %99 : vector<64x128xf32>
    %101 = vector.extract_strided_slice %83 {offsets = [3, 0], sizes = [1, 128], strides = [1, 1]} : vector<9x128xf32> to vector<1x128xf32>
    %102 = vector.shape_cast %101 : vector<1x128xf32> to vector<128xf32>
    %103 = vector.shape_cast %102 : vector<128xf32> to vector<1x128xf32>
    %104 = vector.broadcast %103 : vector<1x128xf32> to vector<64x128xf32>
    %105 = arith.mulf %81, %104 : vector<64x128xf32>
    %106 = vector.extract_strided_slice %83 {offsets = [4, 0], sizes = [1, 128], strides = [1, 1]} : vector<9x128xf32> to vector<1x128xf32>
    %107 = vector.shape_cast %106 : vector<1x128xf32> to vector<128xf32>
    %108 = vector.shape_cast %107 : vector<128xf32> to vector<1x128xf32>
    %109 = vector.broadcast %108 : vector<1x128xf32> to vector<64x128xf32>
    %110 = arith.mulf %81, %109 : vector<64x128xf32>
    %111 = vector.extract_strided_slice %83 {offsets = [5, 0], sizes = [1, 128], strides = [1, 1]} : vector<9x128xf32> to vector<1x128xf32>
    %112 = vector.shape_cast %111 : vector<1x128xf32> to vector<128xf32>
    %113 = vector.shape_cast %112 : vector<128xf32> to vector<1x128xf32>
    %114 = vector.broadcast %113 : vector<1x128xf32> to vector<64x128xf32>
    %115 = arith.mulf %81, %114 : vector<64x128xf32>
    %116 = vector.extract_strided_slice %83 {offsets = [6, 0], sizes = [1, 128], strides = [1, 1]} : vector<9x128xf32> to vector<1x128xf32>
    %117 = vector.shape_cast %116 : vector<1x128xf32> to vector<128xf32>
    %118 = vector.shape_cast %117 : vector<128xf32> to vector<1x128xf32>
    %119 = vector.broadcast %118 : vector<1x128xf32> to vector<64x128xf32>
    %120 = arith.mulf %81, %119 : vector<64x128xf32>
    %121 = vector.extract_strided_slice %83 {offsets = [7, 0], sizes = [1, 128], strides = [1, 1]} : vector<9x128xf32> to vector<1x128xf32>
    %122 = vector.shape_cast %121 : vector<1x128xf32> to vector<128xf32>
    %123 = vector.shape_cast %122 : vector<128xf32> to vector<1x128xf32>
    %124 = vector.broadcast %123 : vector<1x128xf32> to vector<64x128xf32>
    %125 = arith.mulf %81, %124 : vector<64x128xf32>
    %126 = vector.extract_strided_slice %83 {offsets = [8, 0], sizes = [1, 128], strides = [1, 1]} : vector<9x128xf32> to vector<1x128xf32>
    %127 = vector.shape_cast %126 : vector<1x128xf32> to vector<128xf32>
    %128 = vector.shape_cast %127 : vector<128xf32> to vector<1x128xf32>
    %129 = vector.broadcast %128 : vector<1x128xf32> to vector<64x128xf32>
    %130 = arith.mulf %81, %129 : vector<64x128xf32>
    %131 = tpu.concatenate %90, %95, %100, %105, %110, %115, %120, %125, %130 in 0 : vector<64x128xf32>, vector<64x128xf32>, vector<64x128xf32>, vector<64x128xf32>, vector<64x128xf32>, vector<64x128xf32>, vector<64x128xf32>, vector<64x128xf32>, vector<64x128xf32> -> vector<576x128xf32>
    %c0_23 = arith.constant 0 : index
    %c0_24 = arith.constant 0 : index
    %132 = vector.load %arg6[%c0_23, %c0_24] : memref<16x576xbf16, #tpu.memory_space<vmem>>, vector<16x576xbf16>
    %133 = arith.truncf %131 : vector<576x128xf32> to vector<576x128xbf16>
    %cst_25 = arith.constant dense<0.000000e+00> : vector<16x128xf32>
    %134 = tpu.matmul %132, %133, %cst_25 {dimension_numbers = #tpu.dot_dimension_numbers<[1], [0], [0], [1], [0, 0, 1, 1], [], []>} : vector<16x576xbf16>, vector<576x128xbf16>, vector<16x128xf32> -> vector<16x128xf32>
    %135 = vector.shape_cast %85 : vector<128xf32> to vector<1x128xf32>
    %136 = vector.broadcast %135 : vector<1x128xf32> to vector<16x128xf32>
    %137 = arith.addf %134, %136 : vector<16x128xf32>
    %cst_26 = arith.constant 5.000000e-01 : f32
    %138 = vector.broadcast %cst_26 : f32 to vector<16x128xf32>
    %139 = arith.mulf %138, %137 : vector<16x128xf32>
    %140 = math.tanh %139 : vector<16x128xf32>
    %cst_27 = arith.constant 1.000000e+00 : f32
    %141 = vector.broadcast %cst_27 : f32 to vector<16x128xf32>
    %142 = arith.addf %140, %141 : vector<16x128xf32>
    %cst_28 = arith.constant 5.000000e-01 : f32
    %143 = vector.broadcast %cst_28 : f32 to vector<16x128xf32>
    %144 = arith.mulf %143, %142 : vector<16x128xf32>
    %145 = arith.mulf %137, %144 : vector<16x128xf32>
    %c1_29 = arith.constant 1 : index
    %c0_30 = arith.constant 0 : index
    %c0_31 = arith.constant 0 : index
    %146 = vector.load %arg2[%c1_29, %c0_30, %c0_31] : memref<31x128x128xbf16, #tpu.memory_space<vmem>>, vector<1x128x128xbf16>
    %147 = vector.shape_cast %146 : vector<1x128x128xbf16> to vector<128x128xbf16>
    %c3 = arith.constant 3 : index
    %c0_32 = arith.constant 0 : index
    %148 = vector.load %arg3[%c3, %c0_32] : memref<36x128xf32, #tpu.memory_space<vmem>>, vector<1x128xf32>
    %149 = vector.shape_cast %148 : vector<1x128xf32> to vector<128xf32>
    %150 = arith.truncf %145 : vector<16x128xf32> to vector<16x128xbf16>
    %cst_33 = arith.constant dense<0.000000e+00> : vector<16x128xf32>
    %151 = tpu.matmul %150, %147, %cst_33 {dimension_numbers = #tpu.dot_dimension_numbers<[1], [0], [0], [1], [0, 0, 1, 1], [], []>} : vector<16x128xbf16>, vector<128x128xbf16>, vector<16x128xf32> -> vector<16x128xf32>
    %152 = vector.shape_cast %149 : vector<128xf32> to vector<1x128xf32>
    %153 = vector.broadcast %152 : vector<1x128xf32> to vector<16x128xf32>
    %154 = arith.addf %151, %153 : vector<16x128xf32>
    %cst_34 = arith.constant 5.000000e-01 : f32
    %155 = vector.broadcast %cst_34 : f32 to vector<16x128xf32>
    %156 = arith.mulf %155, %154 : vector<16x128xf32>
    %157 = math.tanh %156 : vector<16x128xf32>
    %cst_35 = arith.constant 1.000000e+00 : f32
    %158 = vector.broadcast %cst_35 : f32 to vector<16x128xf32>
    %159 = arith.addf %157, %158 : vector<16x128xf32>
    %cst_36 = arith.constant 5.000000e-01 : f32
    %160 = vector.broadcast %cst_36 : f32 to vector<16x128xf32>
    %161 = arith.mulf %160, %159 : vector<16x128xf32>
    %162 = arith.mulf %154, %161 : vector<16x128xf32>
    %c2_37 = arith.constant 2 : index
    %c0_38 = arith.constant 0 : index
    %c0_39 = arith.constant 0 : index
    %163 = vector.load %arg4[%c2_37, %c0_38, %c0_39] : memref<9x9x128xf32, #tpu.memory_space<vmem>>, vector<1x9x128xf32>
    %164 = vector.shape_cast %163 : vector<1x9x128xf32> to vector<9x128xf32>
    %c2_40 = arith.constant 2 : index
    %c0_41 = arith.constant 0 : index
    %c0_42 = arith.constant 0 : index
    %165 = vector.load %arg2[%c2_40, %c0_41, %c0_42] : memref<31x128x128xbf16, #tpu.memory_space<vmem>>, vector<1x128x128xbf16>
    %166 = vector.shape_cast %165 : vector<1x128x128xbf16> to vector<128x128xbf16>
    %c4 = arith.constant 4 : index
    %c0_43 = arith.constant 0 : index
    %167 = vector.load %arg3[%c4, %c0_43] : memref<36x128xf32, #tpu.memory_space<vmem>>, vector<1x128xf32>
    %168 = vector.shape_cast %167 : vector<1x128xf32> to vector<128xf32>
    %169 = arith.truncf %162 : vector<16x128xf32> to vector<16x128xbf16>
    %cst_44 = arith.constant dense<0.000000e+00> : vector<16x128xf32>
    %170 = tpu.matmul %169, %166, %cst_44 {dimension_numbers = #tpu.dot_dimension_numbers<[1], [0], [0], [1], [0, 0, 1, 1], [], []>} : vector<16x128xbf16>, vector<128x128xbf16>, vector<16x128xf32> -> vector<16x128xf32>
    %171 = vector.shape_cast %168 : vector<128xf32> to vector<1x128xf32>
    %172 = vector.broadcast %171 : vector<1x128xf32> to vector<16x128xf32>
    %173 = arith.addf %170, %172 : vector<16x128xf32>
    %cst_45 = arith.constant 5.000000e-01 : f32
    %174 = vector.broadcast %cst_45 : f32 to vector<16x128xf32>
    %175 = arith.mulf %174, %173 : vector<16x128xf32>
    %176 = math.tanh %175 : vector<16x128xf32>
    %cst_46 = arith.constant 1.000000e+00 : f32
    %177 = vector.broadcast %cst_46 : f32 to vector<16x128xf32>
    %178 = arith.addf %176, %177 : vector<16x128xf32>
    %cst_47 = arith.constant 5.000000e-01 : f32
    %179 = vector.broadcast %cst_47 : f32 to vector<16x128xf32>
    %180 = arith.mulf %179, %178 : vector<16x128xf32>
    %181 = arith.mulf %173, %180 : vector<16x128xf32>
    %c3_48 = arith.constant 3 : index
    %c0_49 = arith.constant 0 : index
    %c0_50 = arith.constant 0 : index
    %182 = vector.load %arg2[%c3_48, %c0_49, %c0_50] : memref<31x128x128xbf16, #tpu.memory_space<vmem>>, vector<1x128x128xbf16>
    %183 = vector.shape_cast %182 : vector<1x128x128xbf16> to vector<128x128xbf16>
    %c5 = arith.constant 5 : index
    %c0_51 = arith.constant 0 : index
    %184 = vector.load %arg3[%c5, %c0_51] : memref<36x128xf32, #tpu.memory_space<vmem>>, vector<1x128xf32>
    %185 = vector.shape_cast %184 : vector<1x128xf32> to vector<128xf32>
    %186 = arith.truncf %162 : vector<16x128xf32> to vector<16x128xbf16>
    %cst_52 = arith.constant dense<0.000000e+00> : vector<16x128xf32>
    %187 = tpu.matmul %186, %183, %cst_52 {dimension_numbers = #tpu.dot_dimension_numbers<[1], [0], [0], [1], [0, 0, 1, 1], [], []>} : vector<16x128xbf16>, vector<128x128xbf16>, vector<16x128xf32> -> vector<16x128xf32>
    %188 = vector.shape_cast %185 : vector<128xf32> to vector<1x128xf32>
    %189 = vector.broadcast %188 : vector<1x128xf32> to vector<16x128xf32>
    %190 = arith.addf %187, %189 : vector<16x128xf32>
    %cst_53 = arith.constant 5.000000e-01 : f32
    %191 = vector.broadcast %cst_53 : f32 to vector<16x128xf32>
    %192 = arith.mulf %191, %190 : vector<16x128xf32>
    %193 = math.tanh %192 : vector<16x128xf32>
    %cst_54 = arith.constant 1.000000e+00 : f32
    %194 = vector.broadcast %cst_54 : f32 to vector<16x128xf32>
    %195 = arith.addf %193, %194 : vector<16x128xf32>
    %cst_55 = arith.constant 5.000000e-01 : f32
    %196 = vector.broadcast %cst_55 : f32 to vector<16x128xf32>
    %197 = arith.mulf %196, %195 : vector<16x128xf32>
    %198 = arith.mulf %190, %197 : vector<16x128xf32>
    %c4_56 = arith.constant 4 : index
    %c0_57 = arith.constant 0 : index
    %c0_58 = arith.constant 0 : index
    %199 = vector.load %arg2[%c4_56, %c0_57, %c0_58] : memref<31x128x128xbf16, #tpu.memory_space<vmem>>, vector<1x128x128xbf16>
    %200 = vector.shape_cast %199 : vector<1x128x128xbf16> to vector<128x128xbf16>
    %c6 = arith.constant 6 : index
    %c0_59 = arith.constant 0 : index
    %201 = vector.load %arg3[%c6, %c0_59] : memref<36x128xf32, #tpu.memory_space<vmem>>, vector<1x128xf32>
    %202 = vector.shape_cast %201 : vector<1x128xf32> to vector<128xf32>
    %203 = arith.truncf %181 : vector<16x128xf32> to vector<16x128xbf16>
    %cst_60 = arith.constant dense<0.000000e+00> : vector<16x128xf32>
    %204 = tpu.matmul %203, %200, %cst_60 {dimension_numbers = #tpu.dot_dimension_numbers<[1], [0], [0], [1], [0, 0, 1, 1], [], []>} : vector<16x128xbf16>, vector<128x128xbf16>, vector<16x128xf32> -> vector<16x128xf32>
    %205 = vector.shape_cast %202 : vector<128xf32> to vector<1x128xf32>
    %206 = vector.broadcast %205 : vector<1x128xf32> to vector<16x128xf32>
    %207 = arith.addf %204, %206 : vector<16x128xf32>
    %cst_61 = arith.constant 5.000000e-01 : f32
    %208 = vector.broadcast %cst_61 : f32 to vector<16x128xf32>
    %209 = arith.mulf %208, %207 : vector<16x128xf32>
    %210 = math.tanh %209 : vector<16x128xf32>
    %cst_62 = arith.constant 1.000000e+00 : f32
    %211 = vector.broadcast %cst_62 : f32 to vector<16x128xf32>
    %212 = arith.addf %210, %211 : vector<16x128xf32>
    %cst_63 = arith.constant 5.000000e-01 : f32
    %213 = vector.broadcast %cst_63 : f32 to vector<16x128xf32>
    %214 = arith.mulf %213, %212 : vector<16x128xf32>
    %215 = arith.mulf %207, %214 : vector<16x128xf32>
    %c7 = arith.constant 7 : index
    %c0_64 = arith.constant 0 : index
    %216 = vector.load %arg3[%c7, %c0_64] : memref<36x128xf32, #tpu.memory_space<vmem>>, vector<1x128xf32>
    %217 = vector.shape_cast %216 : vector<1x128xf32> to vector<128xf32>
    %218 = vector.extract_strided_slice %164 {offsets = [0, 0], sizes = [1, 128], strides = [1, 1]} : vector<9x128xf32> to vector<1x128xf32>
    %219 = vector.shape_cast %218 : vector<1x128xf32> to vector<128xf32>
    %220 = vector.shape_cast %219 : vector<128xf32> to vector<1x128xf32>
    %221 = vector.broadcast %220 : vector<1x128xf32> to vector<16x128xf32>
    %222 = arith.mulf %215, %221 : vector<16x128xf32>
    %223 = vector.extract_strided_slice %164 {offsets = [1, 0], sizes = [1, 128], strides = [1, 1]} : vector<9x128xf32> to vector<1x128xf32>
    %224 = vector.shape_cast %223 : vector<1x128xf32> to vector<128xf32>
    %225 = vector.shape_cast %224 : vector<128xf32> to vector<1x128xf32>
    %226 = vector.broadcast %225 : vector<1x128xf32> to vector<16x128xf32>
    %227 = arith.mulf %215, %226 : vector<16x128xf32>
    %228 = vector.extract_strided_slice %164 {offsets = [2, 0], sizes = [1, 128], strides = [1, 1]} : vector<9x128xf32> to vector<1x128xf32>
    %229 = vector.shape_cast %228 : vector<1x128xf32> to vector<128xf32>
    %230 = vector.shape_cast %229 : vector<128xf32> to vector<1x128xf32>
    %231 = vector.broadcast %230 : vector<1x128xf32> to vector<16x128xf32>
    %232 = arith.mulf %215, %231 : vector<16x128xf32>
    %233 = vector.extract_strided_slice %164 {offsets = [3, 0], sizes = [1, 128], strides = [1, 1]} : vector<9x128xf32> to vector<1x128xf32>
    %234 = vector.shape_cast %233 : vector<1x128xf32> to vector<128xf32>
    %235 = vector.shape_cast %234 : vector<128xf32> to vector<1x128xf32>
    %236 = vector.broadcast %235 : vector<1x128xf32> to vector<16x128xf32>
    %237 = arith.mulf %215, %236 : vector<16x128xf32>
    %238 = vector.extract_strided_slice %164 {offsets = [4, 0], sizes = [1, 128], strides = [1, 1]} : vector<9x128xf32> to vector<1x128xf32>
    %239 = vector.shape_cast %238 : vector<1x128xf32> to vector<128xf32>
    %240 = vector.shape_cast %239 : vector<128xf32> to vector<1x128xf32>
    %241 = vector.broadcast %240 : vector<1x128xf32> to vector<16x128xf32>
    %242 = arith.mulf %215, %241 : vector<16x128xf32>
    %243 = vector.extract_strided_slice %164 {offsets = [5, 0], sizes = [1, 128], strides = [1, 1]} : vector<9x128xf32> to vector<1x128xf32>
    %244 = vector.shape_cast %243 : vector<1x128xf32> to vector<128xf32>
    %245 = vector.shape_cast %244 : vector<128xf32> to vector<1x128xf32>
    %246 = vector.broadcast %245 : vector<1x128xf32> to vector<16x128xf32>
    %247 = arith.mulf %215, %246 : vector<16x128xf32>
    %248 = vector.extract_strided_slice %164 {offsets = [6, 0], sizes = [1, 128], strides = [1, 1]} : vector<9x128xf32> to vector<1x128xf32>
    %249 = vector.shape_cast %248 : vector<1x128xf32> to vector<128xf32>
    %250 = vector.shape_cast %249 : vector<128xf32> to vector<1x128xf32>
    %251 = vector.broadcast %250 : vector<1x128xf32> to vector<16x128xf32>
    %252 = arith.mulf %215, %251 : vector<16x128xf32>
    %253 = vector.extract_strided_slice %164 {offsets = [7, 0], sizes = [1, 128], strides = [1, 1]} : vector<9x128xf32> to vector<1x128xf32>
    %254 = vector.shape_cast %253 : vector<1x128xf32> to vector<128xf32>
    %255 = vector.shape_cast %254 : vector<128xf32> to vector<1x128xf32>
    %256 = vector.broadcast %255 : vector<1x128xf32> to vector<16x128xf32>
    %257 = arith.mulf %215, %256 : vector<16x128xf32>
    %258 = vector.extract_strided_slice %164 {offsets = [8, 0], sizes = [1, 128], strides = [1, 1]} : vector<9x128xf32> to vector<1x128xf32>
    %259 = vector.shape_cast %258 : vector<1x128xf32> to vector<128xf32>
    %260 = vector.shape_cast %259 : vector<128xf32> to vector<1x128xf32>
    %261 = vector.broadcast %260 : vector<1x128xf32> to vector<16x128xf32>
    %262 = arith.mulf %215, %261 : vector<16x128xf32>
    %263 = tpu.concatenate %222, %227, %232, %237, %242, %247, %252, %257, %262 in 0 : vector<16x128xf32>, vector<16x128xf32>, vector<16x128xf32>, vector<16x128xf32>, vector<16x128xf32>, vector<16x128xf32>, vector<16x128xf32>, vector<16x128xf32>, vector<16x128xf32> -> vector<144x128xf32>
    %c0_65 = arith.constant 0 : index
    %c0_66 = arith.constant 0 : index
    %264 = vector.load %arg7[%c0_65, %c0_66] : memref<16x144xbf16, #tpu.memory_space<vmem>>, vector<16x144xbf16>
    %265 = arith.truncf %263 : vector<144x128xf32> to vector<144x128xbf16>
    %cst_67 = arith.constant dense<0.000000e+00> : vector<16x128xf32>
    %266 = tpu.matmul %264, %265, %cst_67 {dimension_numbers = #tpu.dot_dimension_numbers<[1], [0], [0], [1], [0, 0, 1, 1], [], []>} : vector<16x144xbf16>, vector<144x128xbf16>, vector<16x128xf32> -> vector<16x128xf32>
    %267 = vector.shape_cast %217 : vector<128xf32> to vector<1x128xf32>
    %268 = vector.broadcast %267 : vector<1x128xf32> to vector<16x128xf32>
    %269 = arith.addf %266, %268 : vector<16x128xf32>
    %cst_68 = arith.constant 5.000000e-01 : f32
    %270 = vector.broadcast %cst_68 : f32 to vector<16x128xf32>
    %271 = arith.mulf %270, %269 : vector<16x128xf32>
    %272 = math.tanh %271 : vector<16x128xf32>
    %cst_69 = arith.constant 1.000000e+00 : f32
    %273 = vector.broadcast %cst_69 : f32 to vector<16x128xf32>
    %274 = arith.addf %272, %273 : vector<16x128xf32>
    %cst_70 = arith.constant 5.000000e-01 : f32
    %275 = vector.broadcast %cst_70 : f32 to vector<16x128xf32>
    %276 = arith.mulf %275, %274 : vector<16x128xf32>
    %277 = arith.mulf %269, %276 : vector<16x128xf32>
    %c5_71 = arith.constant 5 : index
    %c0_72 = arith.constant 0 : index
    %c0_73 = arith.constant 0 : index
    %278 = vector.load %arg2[%c5_71, %c0_72, %c0_73] : memref<31x128x128xbf16, #tpu.memory_space<vmem>>, vector<1x128x128xbf16>
    %279 = vector.shape_cast %278 : vector<1x128x128xbf16> to vector<128x128xbf16>
    %c8 = arith.constant 8 : index
    %c0_74 = arith.constant 0 : index
    %280 = vector.load %arg3[%c8, %c0_74] : memref<36x128xf32, #tpu.memory_space<vmem>>, vector<1x128xf32>
    %281 = vector.shape_cast %280 : vector<1x128xf32> to vector<128xf32>
    %282 = arith.truncf %277 : vector<16x128xf32> to vector<16x128xbf16>
    %cst_75 = arith.constant dense<0.000000e+00> : vector<16x128xf32>
    %283 = tpu.matmul %282, %279, %cst_75 {dimension_numbers = #tpu.dot_dimension_numbers<[1], [0], [0], [1], [0, 0, 1, 1], [], []>} : vector<16x128xbf16>, vector<128x128xbf16>, vector<16x128xf32> -> vector<16x128xf32>
    %284 = vector.shape_cast %281 : vector<128xf32> to vector<1x128xf32>
    %285 = vector.broadcast %284 : vector<1x128xf32> to vector<16x128xf32>
    %286 = arith.addf %283, %285 : vector<16x128xf32>
    %cst_76 = arith.constant 5.000000e-01 : f32
    %287 = vector.broadcast %cst_76 : f32 to vector<16x128xf32>
    %288 = arith.mulf %287, %286 : vector<16x128xf32>
    %289 = math.tanh %288 : vector<16x128xf32>
    %cst_77 = arith.constant 1.000000e+00 : f32
    %290 = vector.broadcast %cst_77 : f32 to vector<16x128xf32>
    %291 = arith.addf %289, %290 : vector<16x128xf32>
    %cst_78 = arith.constant 5.000000e-01 : f32
    %292 = vector.broadcast %cst_78 : f32 to vector<16x128xf32>
    %293 = arith.mulf %292, %291 : vector<16x128xf32>
    %294 = arith.mulf %286, %293 : vector<16x128xf32>
    %295 = arith.addf %181, %294 : vector<16x128xf32>
    %296 = arith.truncf %295 : vector<16x128xf32> to vector<16x128xbf16>
    %c6_79 = arith.constant 6 : index
    %c0_80 = arith.constant 0 : index
    %c0_81 = arith.constant 0 : index
    %297 = vector.load %arg2[%c6_79, %c0_80, %c0_81] : memref<31x128x128xbf16, #tpu.memory_space<vmem>>, vector<1x128x128xbf16>
    %298 = vector.shape_cast %297 : vector<1x128x128xbf16> to vector<128x128xbf16>
    %cst_82 = arith.constant dense<0.000000e+00> : vector<16x128xf32>
    %299 = tpu.matmul %296, %298, %cst_82 {dimension_numbers = #tpu.dot_dimension_numbers<[1], [0], [0], [1], [0, 0, 1, 1], [], []>} : vector<16x128xbf16>, vector<128x128xbf16>, vector<16x128xf32> -> vector<16x128xf32>
    %300 = arith.truncf %198 : vector<16x128xf32> to vector<16x128xbf16>
    %c7_83 = arith.constant 7 : index
    %c0_84 = arith.constant 0 : index
    %c0_85 = arith.constant 0 : index
    %301 = vector.load %arg2[%c7_83, %c0_84, %c0_85] : memref<31x128x128xbf16, #tpu.memory_space<vmem>>, vector<1x128x128xbf16>
    %302 = vector.shape_cast %301 : vector<1x128x128xbf16> to vector<128x128xbf16>
    %cst_86 = arith.constant dense<0.000000e+00> : vector<16x128xf32>
    %303 = tpu.matmul %300, %302, %cst_86 {dimension_numbers = #tpu.dot_dimension_numbers<[1], [0], [0], [1], [0, 0, 1, 1], [], []>} : vector<16x128xbf16>, vector<128x128xbf16>, vector<16x128xf32> -> vector<16x128xf32>
    %304 = arith.addf %299, %303 : vector<16x128xf32>
    %c9 = arith.constant 9 : index
    %c0_87 = arith.constant 0 : index
    %305 = vector.load %arg3[%c9, %c0_87] : memref<36x128xf32, #tpu.memory_space<vmem>>, vector<1x128xf32>
    %306 = vector.shape_cast %305 : vector<1x128xf32> to vector<128xf32>
    %307 = vector.shape_cast %306 : vector<128xf32> to vector<1x128xf32>
    %308 = vector.broadcast %307 : vector<1x128xf32> to vector<16x128xf32>
    %309 = arith.addf %304, %308 : vector<16x128xf32>
    %cst_88 = arith.constant 5.000000e-01 : f32
    %310 = vector.broadcast %cst_88 : f32 to vector<16x128xf32>
    %311 = arith.mulf %310, %309 : vector<16x128xf32>
    %312 = math.tanh %311 : vector<16x128xf32>
    %cst_89 = arith.constant 1.000000e+00 : f32
    %313 = vector.broadcast %cst_89 : f32 to vector<16x128xf32>
    %314 = arith.addf %312, %313 : vector<16x128xf32>
    %cst_90 = arith.constant 5.000000e-01 : f32
    %315 = vector.broadcast %cst_90 : f32 to vector<16x128xf32>
    %316 = arith.mulf %315, %314 : vector<16x128xf32>
    %317 = arith.mulf %309, %316 : vector<16x128xf32>
    %c3_91 = arith.constant 3 : index
    %c0_92 = arith.constant 0 : index
    %c0_93 = arith.constant 0 : index
    %318 = vector.load %arg4[%c3_91, %c0_92, %c0_93] : memref<9x9x128xf32, #tpu.memory_space<vmem>>, vector<1x9x128xf32>
    %319 = vector.shape_cast %318 : vector<1x9x128xf32> to vector<9x128xf32>
    %c10 = arith.constant 10 : index
    %c0_94 = arith.constant 0 : index
    %320 = vector.load %arg3[%c10, %c0_94] : memref<36x128xf32, #tpu.memory_space<vmem>>, vector<1x128xf32>
    %321 = vector.shape_cast %320 : vector<1x128xf32> to vector<128xf32>
    %322 = vector.extract_strided_slice %319 {offsets = [0, 0], sizes = [1, 128], strides = [1, 1]} : vector<9x128xf32> to vector<1x128xf32>
    %323 = vector.shape_cast %322 : vector<1x128xf32> to vector<128xf32>
    %324 = vector.shape_cast %323 : vector<128xf32> to vector<1x128xf32>
    %325 = vector.broadcast %324 : vector<1x128xf32> to vector<16x128xf32>
    %326 = arith.mulf %317, %325 : vector<16x128xf32>
    %327 = vector.extract_strided_slice %319 {offsets = [1, 0], sizes = [1, 128], strides = [1, 1]} : vector<9x128xf32> to vector<1x128xf32>
    %328 = vector.shape_cast %327 : vector<1x128xf32> to vector<128xf32>
    %329 = vector.shape_cast %328 : vector<128xf32> to vector<1x128xf32>
    %330 = vector.broadcast %329 : vector<1x128xf32> to vector<16x128xf32>
    %331 = arith.mulf %317, %330 : vector<16x128xf32>
    %332 = vector.extract_strided_slice %319 {offsets = [2, 0], sizes = [1, 128], strides = [1, 1]} : vector<9x128xf32> to vector<1x128xf32>
    %333 = vector.shape_cast %332 : vector<1x128xf32> to vector<128xf32>
    %334 = vector.shape_cast %333 : vector<128xf32> to vector<1x128xf32>
    %335 = vector.broadcast %334 : vector<1x128xf32> to vector<16x128xf32>
    %336 = arith.mulf %317, %335 : vector<16x128xf32>
    %337 = vector.extract_strided_slice %319 {offsets = [3, 0], sizes = [1, 128], strides = [1, 1]} : vector<9x128xf32> to vector<1x128xf32>
    %338 = vector.shape_cast %337 : vector<1x128xf32> to vector<128xf32>
    %339 = vector.shape_cast %338 : vector<128xf32> to vector<1x128xf32>
    %340 = vector.broadcast %339 : vector<1x128xf32> to vector<16x128xf32>
    %341 = arith.mulf %317, %340 : vector<16x128xf32>
    %342 = vector.extract_strided_slice %319 {offsets = [4, 0], sizes = [1, 128], strides = [1, 1]} : vector<9x128xf32> to vector<1x128xf32>
    %343 = vector.shape_cast %342 : vector<1x128xf32> to vector<128xf32>
    %344 = vector.shape_cast %343 : vector<128xf32> to vector<1x128xf32>
    %345 = vector.broadcast %344 : vector<1x128xf32> to vector<16x128xf32>
    %346 = arith.mulf %317, %345 : vector<16x128xf32>
    %347 = vector.extract_strided_slice %319 {offsets = [5, 0], sizes = [1, 128], strides = [1, 1]} : vector<9x128xf32> to vector<1x128xf32>
    %348 = vector.shape_cast %347 : vector<1x128xf32> to vector<128xf32>
    %349 = vector.shape_cast %348 : vector<128xf32> to vector<1x128xf32>
    %350 = vector.broadcast %349 : vector<1x128xf32> to vector<16x128xf32>
    %351 = arith.mulf %317, %350 : vector<16x128xf32>
    %352 = vector.extract_strided_slice %319 {offsets = [6, 0], sizes = [1, 128], strides = [1, 1]} : vector<9x128xf32> to vector<1x128xf32>
    %353 = vector.shape_cast %352 : vector<1x128xf32> to vector<128xf32>
    %354 = vector.shape_cast %353 : vector<128xf32> to vector<1x128xf32>
    %355 = vector.broadcast %354 : vector<1x128xf32> to vector<16x128xf32>
    %356 = arith.mulf %317, %355 : vector<16x128xf32>
    %357 = vector.extract_strided_slice %319 {offsets = [7, 0], sizes = [1, 128], strides = [1, 1]} : vector<9x128xf32> to vector<1x128xf32>
    %358 = vector.shape_cast %357 : vector<1x128xf32> to vector<128xf32>
    %359 = vector.shape_cast %358 : vector<128xf32> to vector<1x128xf32>
    %360 = vector.broadcast %359 : vector<1x128xf32> to vector<16x128xf32>
    %361 = arith.mulf %317, %360 : vector<16x128xf32>
    %362 = vector.extract_strided_slice %319 {offsets = [8, 0], sizes = [1, 128], strides = [1, 1]} : vector<9x128xf32> to vector<1x128xf32>
    %363 = vector.shape_cast %362 : vector<1x128xf32> to vector<128xf32>
    %364 = vector.shape_cast %363 : vector<128xf32> to vector<1x128xf32>
    %365 = vector.broadcast %364 : vector<1x128xf32> to vector<16x128xf32>
    %366 = arith.mulf %317, %365 : vector<16x128xf32>
    %367 = tpu.concatenate %326, %331, %336, %341, %346, %351, %356, %361, %366 in 0 : vector<16x128xf32>, vector<16x128xf32>, vector<16x128xf32>, vector<16x128xf32>, vector<16x128xf32>, vector<16x128xf32>, vector<16x128xf32>, vector<16x128xf32>, vector<16x128xf32> -> vector<144x128xf32>
    %c0_95 = arith.constant 0 : index
    %c0_96 = arith.constant 0 : index
    %368 = vector.load %arg8[%c0_95, %c0_96] : memref<4x144xbf16, #tpu.memory_space<vmem>>, vector<4x144xbf16>
    %369 = arith.truncf %367 : vector<144x128xf32> to vector<144x128xbf16>
    %cst_97 = arith.constant dense<0.000000e+00> : vector<4x128xf32>
    %370 = tpu.matmul %368, %369, %cst_97 {dimension_numbers = #tpu.dot_dimension_numbers<[1], [0], [0], [1], [0, 0, 1, 1], [], []>} : vector<4x144xbf16>, vector<144x128xbf16>, vector<4x128xf32> -> vector<4x128xf32>
    %371 = vector.shape_cast %321 : vector<128xf32> to vector<1x128xf32>
    %372 = vector.broadcast %371 : vector<1x128xf32> to vector<4x128xf32>
    %373 = arith.addf %370, %372 : vector<4x128xf32>
    %cst_98 = arith.constant 5.000000e-01 : f32
    %374 = vector.broadcast %cst_98 : f32 to vector<4x128xf32>
    %375 = arith.mulf %374, %373 : vector<4x128xf32>
    %376 = math.tanh %375 : vector<4x128xf32>
    %cst_99 = arith.constant 1.000000e+00 : f32
    %377 = vector.broadcast %cst_99 : f32 to vector<4x128xf32>
    %378 = arith.addf %376, %377 : vector<4x128xf32>
    %cst_100 = arith.constant 5.000000e-01 : f32
    %379 = vector.broadcast %cst_100 : f32 to vector<4x128xf32>
    %380 = arith.mulf %379, %378 : vector<4x128xf32>
    %381 = arith.mulf %373, %380 : vector<4x128xf32>
    %c8_101 = arith.constant 8 : index
    %c0_102 = arith.constant 0 : index
    %c0_103 = arith.constant 0 : index
    %382 = vector.load %arg2[%c8_101, %c0_102, %c0_103] : memref<31x128x128xbf16, #tpu.memory_space<vmem>>, vector<1x128x128xbf16>
    %383 = vector.shape_cast %382 : vector<1x128x128xbf16> to vector<128x128xbf16>
    %c11 = arith.constant 11 : index
    %c0_104 = arith.constant 0 : index
    %384 = vector.load %arg3[%c11, %c0_104] : memref<36x128xf32, #tpu.memory_space<vmem>>, vector<1x128xf32>
    %385 = vector.shape_cast %384 : vector<1x128xf32> to vector<128xf32>
    %386 = arith.truncf %381 : vector<4x128xf32> to vector<4x128xbf16>
    %cst_105 = arith.constant dense<0.000000e+00> : vector<4x128xf32>
    %387 = tpu.matmul %386, %383, %cst_105 {dimension_numbers = #tpu.dot_dimension_numbers<[1], [0], [0], [1], [0, 0, 1, 1], [], []>} : vector<4x128xbf16>, vector<128x128xbf16>, vector<4x128xf32> -> vector<4x128xf32>
    %388 = vector.shape_cast %385 : vector<128xf32> to vector<1x128xf32>
    %389 = vector.broadcast %388 : vector<1x128xf32> to vector<4x128xf32>
    %390 = arith.addf %387, %389 : vector<4x128xf32>
    %cst_106 = arith.constant 5.000000e-01 : f32
    %391 = vector.broadcast %cst_106 : f32 to vector<4x128xf32>
    %392 = arith.mulf %391, %390 : vector<4x128xf32>
    %393 = math.tanh %392 : vector<4x128xf32>
    %cst_107 = arith.constant 1.000000e+00 : f32
    %394 = vector.broadcast %cst_107 : f32 to vector<4x128xf32>
    %395 = arith.addf %393, %394 : vector<4x128xf32>
    %cst_108 = arith.constant 5.000000e-01 : f32
    %396 = vector.broadcast %cst_108 : f32 to vector<4x128xf32>
    %397 = arith.mulf %396, %395 : vector<4x128xf32>
    %398 = arith.mulf %390, %397 : vector<4x128xf32>
    %c4_109 = arith.constant 4 : index
    %c0_110 = arith.constant 0 : index
    %c0_111 = arith.constant 0 : index
    %399 = vector.load %arg4[%c4_109, %c0_110, %c0_111] : memref<9x9x128xf32, #tpu.memory_space<vmem>>, vector<1x9x128xf32>
    %400 = vector.shape_cast %399 : vector<1x9x128xf32> to vector<9x128xf32>
    %c9_112 = arith.constant 9 : index
    %c0_113 = arith.constant 0 : index
    %c0_114 = arith.constant 0 : index
    %401 = vector.load %arg2[%c9_112, %c0_113, %c0_114] : memref<31x128x128xbf16, #tpu.memory_space<vmem>>, vector<1x128x128xbf16>
    %402 = vector.shape_cast %401 : vector<1x128x128xbf16> to vector<128x128xbf16>
    %c12 = arith.constant 12 : index
    %c0_115 = arith.constant 0 : index
    %403 = vector.load %arg3[%c12, %c0_115] : memref<36x128xf32, #tpu.memory_space<vmem>>, vector<1x128xf32>
    %404 = vector.shape_cast %403 : vector<1x128xf32> to vector<128xf32>
    %405 = arith.truncf %398 : vector<4x128xf32> to vector<4x128xbf16>
    %cst_116 = arith.constant dense<0.000000e+00> : vector<4x128xf32>
    %406 = tpu.matmul %405, %402, %cst_116 {dimension_numbers = #tpu.dot_dimension_numbers<[1], [0], [0], [1], [0, 0, 1, 1], [], []>} : vector<4x128xbf16>, vector<128x128xbf16>, vector<4x128xf32> -> vector<4x128xf32>
    %407 = vector.shape_cast %404 : vector<128xf32> to vector<1x128xf32>
    %408 = vector.broadcast %407 : vector<1x128xf32> to vector<4x128xf32>
    %409 = arith.addf %406, %408 : vector<4x128xf32>
    %cst_117 = arith.constant 5.000000e-01 : f32
    %410 = vector.broadcast %cst_117 : f32 to vector<4x128xf32>
    %411 = arith.mulf %410, %409 : vector<4x128xf32>
    %412 = math.tanh %411 : vector<4x128xf32>
    %cst_118 = arith.constant 1.000000e+00 : f32
    %413 = vector.broadcast %cst_118 : f32 to vector<4x128xf32>
    %414 = arith.addf %412, %413 : vector<4x128xf32>
    %cst_119 = arith.constant 5.000000e-01 : f32
    %415 = vector.broadcast %cst_119 : f32 to vector<4x128xf32>
    %416 = arith.mulf %415, %414 : vector<4x128xf32>
    %417 = arith.mulf %409, %416 : vector<4x128xf32>
    %c10_120 = arith.constant 10 : index
    %c0_121 = arith.constant 0 : index
    %c0_122 = arith.constant 0 : index
    %418 = vector.load %arg2[%c10_120, %c0_121, %c0_122] : memref<31x128x128xbf16, #tpu.memory_space<vmem>>, vector<1x128x128xbf16>
    %419 = vector.shape_cast %418 : vector<1x128x128xbf16> to vector<128x128xbf16>
    %c13 = arith.constant 13 : index
    %c0_123 = arith.constant 0 : index
    %420 = vector.load %arg3[%c13, %c0_123] : memref<36x128xf32, #tpu.memory_space<vmem>>, vector<1x128xf32>
    %421 = vector.shape_cast %420 : vector<1x128xf32> to vector<128xf32>
    %422 = arith.truncf %398 : vector<4x128xf32> to vector<4x128xbf16>
    %cst_124 = arith.constant dense<0.000000e+00> : vector<4x128xf32>
    %423 = tpu.matmul %422, %419, %cst_124 {dimension_numbers = #tpu.dot_dimension_numbers<[1], [0], [0], [1], [0, 0, 1, 1], [], []>} : vector<4x128xbf16>, vector<128x128xbf16>, vector<4x128xf32> -> vector<4x128xf32>
    %424 = vector.shape_cast %421 : vector<128xf32> to vector<1x128xf32>
    %425 = vector.broadcast %424 : vector<1x128xf32> to vector<4x128xf32>
    %426 = arith.addf %423, %425 : vector<4x128xf32>
    %cst_125 = arith.constant 5.000000e-01 : f32
    %427 = vector.broadcast %cst_125 : f32 to vector<4x128xf32>
    %428 = arith.mulf %427, %426 : vector<4x128xf32>
    %429 = math.tanh %428 : vector<4x128xf32>
    %cst_126 = arith.constant 1.000000e+00 : f32
    %430 = vector.broadcast %cst_126 : f32 to vector<4x128xf32>
    %431 = arith.addf %429, %430 : vector<4x128xf32>
    %cst_127 = arith.constant 5.000000e-01 : f32
    %432 = vector.broadcast %cst_127 : f32 to vector<4x128xf32>
    %433 = arith.mulf %432, %431 : vector<4x128xf32>
    %434 = arith.mulf %426, %433 : vector<4x128xf32>
    %c11_128 = arith.constant 11 : index
    %c0_129 = arith.constant 0 : index
    %c0_130 = arith.constant 0 : index
    %435 = vector.load %arg2[%c11_128, %c0_129, %c0_130] : memref<31x128x128xbf16, #tpu.memory_space<vmem>>, vector<1x128x128xbf16>
    %436 = vector.shape_cast %435 : vector<1x128x128xbf16> to vector<128x128xbf16>
    %c14 = arith.constant 14 : index
    %c0_131 = arith.constant 0 : index
    %437 = vector.load %arg3[%c14, %c0_131] : memref<36x128xf32, #tpu.memory_space<vmem>>, vector<1x128xf32>
    %438 = vector.shape_cast %437 : vector<1x128xf32> to vector<128xf32>
    %439 = arith.truncf %417 : vector<4x128xf32> to vector<4x128xbf16>
    %cst_132 = arith.constant dense<0.000000e+00> : vector<4x128xf32>
    %440 = tpu.matmul %439, %436, %cst_132 {dimension_numbers = #tpu.dot_dimension_numbers<[1], [0], [0], [1], [0, 0, 1, 1], [], []>} : vector<4x128xbf16>, vector<128x128xbf16>, vector<4x128xf32> -> vector<4x128xf32>
    %441 = vector.shape_cast %438 : vector<128xf32> to vector<1x128xf32>
    %442 = vector.broadcast %441 : vector<1x128xf32> to vector<4x128xf32>
    %443 = arith.addf %440, %442 : vector<4x128xf32>
    %cst_133 = arith.constant 5.000000e-01 : f32
    %444 = vector.broadcast %cst_133 : f32 to vector<4x128xf32>
    %445 = arith.mulf %444, %443 : vector<4x128xf32>
    %446 = math.tanh %445 : vector<4x128xf32>
    %cst_134 = arith.constant 1.000000e+00 : f32
    %447 = vector.broadcast %cst_134 : f32 to vector<4x128xf32>
    %448 = arith.addf %446, %447 : vector<4x128xf32>
    %cst_135 = arith.constant 5.000000e-01 : f32
    %449 = vector.broadcast %cst_135 : f32 to vector<4x128xf32>
    %450 = arith.mulf %449, %448 : vector<4x128xf32>
    %451 = arith.mulf %443, %450 : vector<4x128xf32>
    %c15 = arith.constant 15 : index
    %c0_136 = arith.constant 0 : index
    %452 = vector.load %arg3[%c15, %c0_136] : memref<36x128xf32, #tpu.memory_space<vmem>>, vector<1x128xf32>
    %453 = vector.shape_cast %452 : vector<1x128xf32> to vector<128xf32>
    %454 = vector.extract_strided_slice %400 {offsets = [0, 0], sizes = [1, 128], strides = [1, 1]} : vector<9x128xf32> to vector<1x128xf32>
    %455 = vector.shape_cast %454 : vector<1x128xf32> to vector<128xf32>
    %456 = vector.shape_cast %455 : vector<128xf32> to vector<1x128xf32>
    %457 = vector.broadcast %456 : vector<1x128xf32> to vector<4x128xf32>
    %458 = arith.mulf %451, %457 : vector<4x128xf32>
    %459 = vector.extract_strided_slice %400 {offsets = [1, 0], sizes = [1, 128], strides = [1, 1]} : vector<9x128xf32> to vector<1x128xf32>
    %460 = vector.shape_cast %459 : vector<1x128xf32> to vector<128xf32>
    %461 = vector.shape_cast %460 : vector<128xf32> to vector<1x128xf32>
    %462 = vector.broadcast %461 : vector<1x128xf32> to vector<4x128xf32>
    %463 = arith.mulf %451, %462 : vector<4x128xf32>
    %464 = vector.extract_strided_slice %400 {offsets = [2, 0], sizes = [1, 128], strides = [1, 1]} : vector<9x128xf32> to vector<1x128xf32>
    %465 = vector.shape_cast %464 : vector<1x128xf32> to vector<128xf32>
    %466 = vector.shape_cast %465 : vector<128xf32> to vector<1x128xf32>
    %467 = vector.broadcast %466 : vector<1x128xf32> to vector<4x128xf32>
    %468 = arith.mulf %451, %467 : vector<4x128xf32>
    %469 = vector.extract_strided_slice %400 {offsets = [3, 0], sizes = [1, 128], strides = [1, 1]} : vector<9x128xf32> to vector<1x128xf32>
    %470 = vector.shape_cast %469 : vector<1x128xf32> to vector<128xf32>
    %471 = vector.shape_cast %470 : vector<128xf32> to vector<1x128xf32>
    %472 = vector.broadcast %471 : vector<1x128xf32> to vector<4x128xf32>
    %473 = arith.mulf %451, %472 : vector<4x128xf32>
    %474 = vector.extract_strided_slice %400 {offsets = [4, 0], sizes = [1, 128], strides = [1, 1]} : vector<9x128xf32> to vector<1x128xf32>
    %475 = vector.shape_cast %474 : vector<1x128xf32> to vector<128xf32>
    %476 = vector.shape_cast %475 : vector<128xf32> to vector<1x128xf32>
    %477 = vector.broadcast %476 : vector<1x128xf32> to vector<4x128xf32>
    %478 = arith.mulf %451, %477 : vector<4x128xf32>
    %479 = vector.extract_strided_slice %400 {offsets = [5, 0], sizes = [1, 128], strides = [1, 1]} : vector<9x128xf32> to vector<1x128xf32>
    %480 = vector.shape_cast %479 : vector<1x128xf32> to vector<128xf32>
    %481 = vector.shape_cast %480 : vector<128xf32> to vector<1x128xf32>
    %482 = vector.broadcast %481 : vector<1x128xf32> to vector<4x128xf32>
    %483 = arith.mulf %451, %482 : vector<4x128xf32>
    %484 = vector.extract_strided_slice %400 {offsets = [6, 0], sizes = [1, 128], strides = [1, 1]} : vector<9x128xf32> to vector<1x128xf32>
    %485 = vector.shape_cast %484 : vector<1x128xf32> to vector<128xf32>
    %486 = vector.shape_cast %485 : vector<128xf32> to vector<1x128xf32>
    %487 = vector.broadcast %486 : vector<1x128xf32> to vector<4x128xf32>
    %488 = arith.mulf %451, %487 : vector<4x128xf32>
    %489 = vector.extract_strided_slice %400 {offsets = [7, 0], sizes = [1, 128], strides = [1, 1]} : vector<9x128xf32> to vector<1x128xf32>
    %490 = vector.shape_cast %489 : vector<1x128xf32> to vector<128xf32>
    %491 = vector.shape_cast %490 : vector<128xf32> to vector<1x128xf32>
    %492 = vector.broadcast %491 : vector<1x128xf32> to vector<4x128xf32>
    %493 = arith.mulf %451, %492 : vector<4x128xf32>
    %494 = vector.extract_strided_slice %400 {offsets = [8, 0], sizes = [1, 128], strides = [1, 1]} : vector<9x128xf32> to vector<1x128xf32>
    %495 = vector.shape_cast %494 : vector<1x128xf32> to vector<128xf32>
    %496 = vector.shape_cast %495 : vector<128xf32> to vector<1x128xf32>
    %497 = vector.broadcast %496 : vector<1x128xf32> to vector<4x128xf32>
    %498 = arith.mulf %451, %497 : vector<4x128xf32>
    %499 = tpu.concatenate %458, %463, %468, %473, %478, %483, %488, %493, %498 in 0 : vector<4x128xf32>, vector<4x128xf32>, vector<4x128xf32>, vector<4x128xf32>, vector<4x128xf32>, vector<4x128xf32>, vector<4x128xf32>, vector<4x128xf32>, vector<4x128xf32> -> vector<36x128xf32>
    %c0_137 = arith.constant 0 : index
    %c0_138 = arith.constant 0 : index
    %500 = vector.load %arg9[%c0_137, %c0_138] : memref<4x36xbf16, #tpu.memory_space<vmem>>, vector<4x36xbf16>
    %501 = arith.truncf %499 : vector<36x128xf32> to vector<36x128xbf16>
    %cst_139 = arith.constant dense<0.000000e+00> : vector<4x128xf32>
    %502 = tpu.matmul %500, %501, %cst_139 {dimension_numbers = #tpu.dot_dimension_numbers<[1], [0], [0], [1], [0, 0, 1, 1], [], []>} : vector<4x36xbf16>, vector<36x128xbf16>, vector<4x128xf32> -> vector<4x128xf32>
    %503 = vector.shape_cast %453 : vector<128xf32> to vector<1x128xf32>
    %504 = vector.broadcast %503 : vector<1x128xf32> to vector<4x128xf32>
    %505 = arith.addf %502, %504 : vector<4x128xf32>
    %cst_140 = arith.constant 5.000000e-01 : f32
    %506 = vector.broadcast %cst_140 : f32 to vector<4x128xf32>
    %507 = arith.mulf %506, %505 : vector<4x128xf32>
    %508 = math.tanh %507 : vector<4x128xf32>
    %cst_141 = arith.constant 1.000000e+00 : f32
    %509 = vector.broadcast %cst_141 : f32 to vector<4x128xf32>
    %510 = arith.addf %508, %509 : vector<4x128xf32>
    %cst_142 = arith.constant 5.000000e-01 : f32
    %511 = vector.broadcast %cst_142 : f32 to vector<4x128xf32>
    %512 = arith.mulf %511, %510 : vector<4x128xf32>
    %513 = arith.mulf %505, %512 : vector<4x128xf32>
    %c12_143 = arith.constant 12 : index
    %c0_144 = arith.constant 0 : index
    %c0_145 = arith.constant 0 : index
    %514 = vector.load %arg2[%c12_143, %c0_144, %c0_145] : memref<31x128x128xbf16, #tpu.memory_space<vmem>>, vector<1x128x128xbf16>
    %515 = vector.shape_cast %514 : vector<1x128x128xbf16> to vector<128x128xbf16>
    %c16 = arith.constant 16 : index
    %c0_146 = arith.constant 0 : index
    %516 = vector.load %arg3[%c16, %c0_146] : memref<36x128xf32, #tpu.memory_space<vmem>>, vector<1x128xf32>
    %517 = vector.shape_cast %516 : vector<1x128xf32> to vector<128xf32>
    %518 = arith.truncf %513 : vector<4x128xf32> to vector<4x128xbf16>
    %cst_147 = arith.constant dense<0.000000e+00> : vector<4x128xf32>
    %519 = tpu.matmul %518, %515, %cst_147 {dimension_numbers = #tpu.dot_dimension_numbers<[1], [0], [0], [1], [0, 0, 1, 1], [], []>} : vector<4x128xbf16>, vector<128x128xbf16>, vector<4x128xf32> -> vector<4x128xf32>
    %520 = vector.shape_cast %517 : vector<128xf32> to vector<1x128xf32>
    %521 = vector.broadcast %520 : vector<1x128xf32> to vector<4x128xf32>
    %522 = arith.addf %519, %521 : vector<4x128xf32>
    %cst_148 = arith.constant 5.000000e-01 : f32
    %523 = vector.broadcast %cst_148 : f32 to vector<4x128xf32>
    %524 = arith.mulf %523, %522 : vector<4x128xf32>
    %525 = math.tanh %524 : vector<4x128xf32>
    %cst_149 = arith.constant 1.000000e+00 : f32
    %526 = vector.broadcast %cst_149 : f32 to vector<4x128xf32>
    %527 = arith.addf %525, %526 : vector<4x128xf32>
    %cst_150 = arith.constant 5.000000e-01 : f32
    %528 = vector.broadcast %cst_150 : f32 to vector<4x128xf32>
    %529 = arith.mulf %528, %527 : vector<4x128xf32>
    %530 = arith.mulf %522, %529 : vector<4x128xf32>
    %531 = arith.addf %417, %530 : vector<4x128xf32>
    %532 = arith.truncf %531 : vector<4x128xf32> to vector<4x128xbf16>
    %c13_151 = arith.constant 13 : index
    %c0_152 = arith.constant 0 : index
    %c0_153 = arith.constant 0 : index
    %533 = vector.load %arg2[%c13_151, %c0_152, %c0_153] : memref<31x128x128xbf16, #tpu.memory_space<vmem>>, vector<1x128x128xbf16>
    %534 = vector.shape_cast %533 : vector<1x128x128xbf16> to vector<128x128xbf16>
    %cst_154 = arith.constant dense<0.000000e+00> : vector<4x128xf32>
    %535 = tpu.matmul %532, %534, %cst_154 {dimension_numbers = #tpu.dot_dimension_numbers<[1], [0], [0], [1], [0, 0, 1, 1], [], []>} : vector<4x128xbf16>, vector<128x128xbf16>, vector<4x128xf32> -> vector<4x128xf32>
    %536 = arith.truncf %434 : vector<4x128xf32> to vector<4x128xbf16>
    %c14_155 = arith.constant 14 : index
    %c0_156 = arith.constant 0 : index
    %c0_157 = arith.constant 0 : index
    %537 = vector.load %arg2[%c14_155, %c0_156, %c0_157] : memref<31x128x128xbf16, #tpu.memory_space<vmem>>, vector<1x128x128xbf16>
    %538 = vector.shape_cast %537 : vector<1x128x128xbf16> to vector<128x128xbf16>
    %cst_158 = arith.constant dense<0.000000e+00> : vector<4x128xf32>
    %539 = tpu.matmul %536, %538, %cst_158 {dimension_numbers = #tpu.dot_dimension_numbers<[1], [0], [0], [1], [0, 0, 1, 1], [], []>} : vector<4x128xbf16>, vector<128x128xbf16>, vector<4x128xf32> -> vector<4x128xf32>
    %540 = arith.addf %535, %539 : vector<4x128xf32>
    %c17 = arith.constant 17 : index
    %c0_159 = arith.constant 0 : index
    %541 = vector.load %arg3[%c17, %c0_159] : memref<36x128xf32, #tpu.memory_space<vmem>>, vector<1x128xf32>
    %542 = vector.shape_cast %541 : vector<1x128xf32> to vector<128xf32>
    %543 = vector.shape_cast %542 : vector<128xf32> to vector<1x128xf32>
    %544 = vector.broadcast %543 : vector<1x128xf32> to vector<4x128xf32>
    %545 = arith.addf %540, %544 : vector<4x128xf32>
    %cst_160 = arith.constant 5.000000e-01 : f32
    %546 = vector.broadcast %cst_160 : f32 to vector<4x128xf32>
    %547 = arith.mulf %546, %545 : vector<4x128xf32>
    %548 = math.tanh %547 : vector<4x128xf32>
    %cst_161 = arith.constant 1.000000e+00 : f32
    %549 = vector.broadcast %cst_161 : f32 to vector<4x128xf32>
    %550 = arith.addf %548, %549 : vector<4x128xf32>
    %cst_162 = arith.constant 5.000000e-01 : f32
    %551 = vector.broadcast %cst_162 : f32 to vector<4x128xf32>
    %552 = arith.mulf %551, %550 : vector<4x128xf32>
    %553 = arith.mulf %545, %552 : vector<4x128xf32>
    %c5_163 = arith.constant 5 : index
    %c0_164 = arith.constant 0 : index
    %c0_165 = arith.constant 0 : index
    %554 = vector.load %arg4[%c5_163, %c0_164, %c0_165] : memref<9x9x128xf32, #tpu.memory_space<vmem>>, vector<1x9x128xf32>
    %555 = vector.shape_cast %554 : vector<1x9x128xf32> to vector<9x128xf32>
    %c18 = arith.constant 18 : index
    %c0_166 = arith.constant 0 : index
    %556 = vector.load %arg3[%c18, %c0_166] : memref<36x128xf32, #tpu.memory_space<vmem>>, vector<1x128xf32>
    %557 = vector.shape_cast %556 : vector<1x128xf32> to vector<128xf32>
    %558 = vector.extract_strided_slice %555 {offsets = [0, 0], sizes = [1, 128], strides = [1, 1]} : vector<9x128xf32> to vector<1x128xf32>
    %559 = vector.shape_cast %558 : vector<1x128xf32> to vector<128xf32>
    %560 = vector.shape_cast %559 : vector<128xf32> to vector<1x128xf32>
    %561 = vector.broadcast %560 : vector<1x128xf32> to vector<4x128xf32>
    %562 = arith.mulf %553, %561 : vector<4x128xf32>
    %563 = vector.extract_strided_slice %555 {offsets = [1, 0], sizes = [1, 128], strides = [1, 1]} : vector<9x128xf32> to vector<1x128xf32>
    %564 = vector.shape_cast %563 : vector<1x128xf32> to vector<128xf32>
    %565 = vector.shape_cast %564 : vector<128xf32> to vector<1x128xf32>
    %566 = vector.broadcast %565 : vector<1x128xf32> to vector<4x128xf32>
    %567 = arith.mulf %553, %566 : vector<4x128xf32>
    %568 = vector.extract_strided_slice %555 {offsets = [2, 0], sizes = [1, 128], strides = [1, 1]} : vector<9x128xf32> to vector<1x128xf32>
    %569 = vector.shape_cast %568 : vector<1x128xf32> to vector<128xf32>
    %570 = vector.shape_cast %569 : vector<128xf32> to vector<1x128xf32>
    %571 = vector.broadcast %570 : vector<1x128xf32> to vector<4x128xf32>
    %572 = arith.mulf %553, %571 : vector<4x128xf32>
    %573 = vector.extract_strided_slice %555 {offsets = [3, 0], sizes = [1, 128], strides = [1, 1]} : vector<9x128xf32> to vector<1x128xf32>
    %574 = vector.shape_cast %573 : vector<1x128xf32> to vector<128xf32>
    %575 = vector.shape_cast %574 : vector<128xf32> to vector<1x128xf32>
    %576 = vector.broadcast %575 : vector<1x128xf32> to vector<4x128xf32>
    %577 = arith.mulf %553, %576 : vector<4x128xf32>
    %578 = vector.extract_strided_slice %555 {offsets = [4, 0], sizes = [1, 128], strides = [1, 1]} : vector<9x128xf32> to vector<1x128xf32>
    %579 = vector.shape_cast %578 : vector<1x128xf32> to vector<128xf32>
    %580 = vector.shape_cast %579 : vector<128xf32> to vector<1x128xf32>
    %581 = vector.broadcast %580 : vector<1x128xf32> to vector<4x128xf32>
    %582 = arith.mulf %553, %581 : vector<4x128xf32>
    %583 = vector.extract_strided_slice %555 {offsets = [5, 0], sizes = [1, 128], strides = [1, 1]} : vector<9x128xf32> to vector<1x128xf32>
    %584 = vector.shape_cast %583 : vector<1x128xf32> to vector<128xf32>
    %585 = vector.shape_cast %584 : vector<128xf32> to vector<1x128xf32>
    %586 = vector.broadcast %585 : vector<1x128xf32> to vector<4x128xf32>
    %587 = arith.mulf %553, %586 : vector<4x128xf32>
    %588 = vector.extract_strided_slice %555 {offsets = [6, 0], sizes = [1, 128], strides = [1, 1]} : vector<9x128xf32> to vector<1x128xf32>
    %589 = vector.shape_cast %588 : vector<1x128xf32> to vector<128xf32>
    %590 = vector.shape_cast %589 : vector<128xf32> to vector<1x128xf32>
    %591 = vector.broadcast %590 : vector<1x128xf32> to vector<4x128xf32>
    %592 = arith.mulf %553, %591 : vector<4x128xf32>
    %593 = vector.extract_strided_slice %555 {offsets = [7, 0], sizes = [1, 128], strides = [1, 1]} : vector<9x128xf32> to vector<1x128xf32>
    %594 = vector.shape_cast %593 : vector<1x128xf32> to vector<128xf32>
    %595 = vector.shape_cast %594 : vector<128xf32> to vector<1x128xf32>
    %596 = vector.broadcast %595 : vector<1x128xf32> to vector<4x128xf32>
    %597 = arith.mulf %553, %596 : vector<4x128xf32>
    %598 = vector.extract_strided_slice %555 {offsets = [8, 0], sizes = [1, 128], strides = [1, 1]} : vector<9x128xf32> to vector<1x128xf32>
    %599 = vector.shape_cast %598 : vector<1x128xf32> to vector<128xf32>
    %600 = vector.shape_cast %599 : vector<128xf32> to vector<1x128xf32>
    %601 = vector.broadcast %600 : vector<1x128xf32> to vector<4x128xf32>
    %602 = arith.mulf %553, %601 : vector<4x128xf32>
    %603 = tpu.concatenate %562, %567, %572, %577, %582, %587, %592, %597, %602 in 0 : vector<4x128xf32>, vector<4x128xf32>, vector<4x128xf32>, vector<4x128xf32>, vector<4x128xf32>, vector<4x128xf32>, vector<4x128xf32>, vector<4x128xf32>, vector<4x128xf32> -> vector<36x128xf32>
    %c0_167 = arith.constant 0 : index
    %c0_168 = arith.constant 0 : index
    %604 = vector.load %arg10[%c0_167, %c0_168] : memref<1x36xbf16, #tpu.memory_space<vmem>>, vector<1x36xbf16>
    %605 = arith.truncf %603 : vector<36x128xf32> to vector<36x128xbf16>
    %cst_169 = arith.constant dense<0.000000e+00> : vector<1x128xf32>
    %606 = tpu.matmul %604, %605, %cst_169 {dimension_numbers = #tpu.dot_dimension_numbers<[1], [0], [0], [1], [0, 0, 1, 1], [], []>} : vector<1x36xbf16>, vector<36x128xbf16>, vector<1x128xf32> -> vector<1x128xf32>
    %607 = vector.shape_cast %557 : vector<128xf32> to vector<1x128xf32>
    %608 = arith.addf %606, %607 : vector<1x128xf32>
    %cst_170 = arith.constant 5.000000e-01 : f32
    %609 = vector.broadcast %cst_170 : f32 to vector<1x128xf32>
    %610 = arith.mulf %609, %608 : vector<1x128xf32>
    %611 = math.tanh %610 : vector<1x128xf32>
    %cst_171 = arith.constant 1.000000e+00 : f32
    %612 = vector.broadcast %cst_171 : f32 to vector<1x128xf32>
    %613 = arith.addf %611, %612 : vector<1x128xf32>
    %cst_172 = arith.constant 5.000000e-01 : f32
    %614 = vector.broadcast %cst_172 : f32 to vector<1x128xf32>
    %615 = arith.mulf %614, %613 : vector<1x128xf32>
    %616 = arith.mulf %608, %615 : vector<1x128xf32>
    %c15_173 = arith.constant 15 : index
    %c0_174 = arith.constant 0 : index
    %c0_175 = arith.constant 0 : index
    %617 = vector.load %arg2[%c15_173, %c0_174, %c0_175] : memref<31x128x128xbf16, #tpu.memory_space<vmem>>, vector<1x128x128xbf16>
    %618 = vector.shape_cast %617 : vector<1x128x128xbf16> to vector<128x128xbf16>
    %c19 = arith.constant 19 : index
    %c0_176 = arith.constant 0 : index
    %619 = vector.load %arg3[%c19, %c0_176] : memref<36x128xf32, #tpu.memory_space<vmem>>, vector<1x128xf32>
    %620 = vector.shape_cast %619 : vector<1x128xf32> to vector<128xf32>
    %621 = arith.truncf %616 : vector<1x128xf32> to vector<1x128xbf16>
    %cst_177 = arith.constant dense<0.000000e+00> : vector<1x128xf32>
    %622 = tpu.matmul %621, %618, %cst_177 {dimension_numbers = #tpu.dot_dimension_numbers<[1], [0], [0], [1], [0, 0, 1, 1], [], []>} : vector<1x128xbf16>, vector<128x128xbf16>, vector<1x128xf32> -> vector<1x128xf32>
    %623 = vector.shape_cast %620 : vector<128xf32> to vector<1x128xf32>
    %624 = arith.addf %622, %623 : vector<1x128xf32>
    %cst_178 = arith.constant 5.000000e-01 : f32
    %625 = vector.broadcast %cst_178 : f32 to vector<1x128xf32>
    %626 = arith.mulf %625, %624 : vector<1x128xf32>
    %627 = math.tanh %626 : vector<1x128xf32>
    %cst_179 = arith.constant 1.000000e+00 : f32
    %628 = vector.broadcast %cst_179 : f32 to vector<1x128xf32>
    %629 = arith.addf %627, %628 : vector<1x128xf32>
    %cst_180 = arith.constant 5.000000e-01 : f32
    %630 = vector.broadcast %cst_180 : f32 to vector<1x128xf32>
    %631 = arith.mulf %630, %629 : vector<1x128xf32>
    %632 = arith.mulf %624, %631 : vector<1x128xf32>
    %c6_181 = arith.constant 6 : index
    %c0_182 = arith.constant 0 : index
    %c0_183 = arith.constant 0 : index
    %633 = vector.load %arg4[%c6_181, %c0_182, %c0_183] : memref<9x9x128xf32, #tpu.memory_space<vmem>>, vector<1x9x128xf32>
    %634 = vector.shape_cast %633 : vector<1x9x128xf32> to vector<9x128xf32>
    %c16_184 = arith.constant 16 : index
    %c0_185 = arith.constant 0 : index
    %c0_186 = arith.constant 0 : index
    %635 = vector.load %arg2[%c16_184, %c0_185, %c0_186] : memref<31x128x128xbf16, #tpu.memory_space<vmem>>, vector<1x128x128xbf16>
    %636 = vector.shape_cast %635 : vector<1x128x128xbf16> to vector<128x128xbf16>
    %c20 = arith.constant 20 : index
    %c0_187 = arith.constant 0 : index
    %637 = vector.load %arg3[%c20, %c0_187] : memref<36x128xf32, #tpu.memory_space<vmem>>, vector<1x128xf32>
    %638 = vector.shape_cast %637 : vector<1x128xf32> to vector<128xf32>
    %639 = arith.truncf %632 : vector<1x128xf32> to vector<1x128xbf16>
    %cst_188 = arith.constant dense<0.000000e+00> : vector<1x128xf32>
    %640 = tpu.matmul %639, %636, %cst_188 {dimension_numbers = #tpu.dot_dimension_numbers<[1], [0], [0], [1], [0, 0, 1, 1], [], []>} : vector<1x128xbf16>, vector<128x128xbf16>, vector<1x128xf32> -> vector<1x128xf32>
    %641 = vector.shape_cast %638 : vector<128xf32> to vector<1x128xf32>
    %642 = arith.addf %640, %641 : vector<1x128xf32>
    %cst_189 = arith.constant 5.000000e-01 : f32
    %643 = vector.broadcast %cst_189 : f32 to vector<1x128xf32>
    %644 = arith.mulf %643, %642 : vector<1x128xf32>
    %645 = math.tanh %644 : vector<1x128xf32>
    %cst_190 = arith.constant 1.000000e+00 : f32
    %646 = vector.broadcast %cst_190 : f32 to vector<1x128xf32>
    %647 = arith.addf %645, %646 : vector<1x128xf32>
    %cst_191 = arith.constant 5.000000e-01 : f32
    %648 = vector.broadcast %cst_191 : f32 to vector<1x128xf32>
    %649 = arith.mulf %648, %647 : vector<1x128xf32>
    %650 = arith.mulf %642, %649 : vector<1x128xf32>
    %c17_192 = arith.constant 17 : index
    %c0_193 = arith.constant 0 : index
    %c0_194 = arith.constant 0 : index
    %651 = vector.load %arg2[%c17_192, %c0_193, %c0_194] : memref<31x128x128xbf16, #tpu.memory_space<vmem>>, vector<1x128x128xbf16>
    %652 = vector.shape_cast %651 : vector<1x128x128xbf16> to vector<128x128xbf16>
    %c21 = arith.constant 21 : index
    %c0_195 = arith.constant 0 : index
    %653 = vector.load %arg3[%c21, %c0_195] : memref<36x128xf32, #tpu.memory_space<vmem>>, vector<1x128xf32>
    %654 = vector.shape_cast %653 : vector<1x128xf32> to vector<128xf32>
    %655 = arith.truncf %632 : vector<1x128xf32> to vector<1x128xbf16>
    %cst_196 = arith.constant dense<0.000000e+00> : vector<1x128xf32>
    %656 = tpu.matmul %655, %652, %cst_196 {dimension_numbers = #tpu.dot_dimension_numbers<[1], [0], [0], [1], [0, 0, 1, 1], [], []>} : vector<1x128xbf16>, vector<128x128xbf16>, vector<1x128xf32> -> vector<1x128xf32>
    %657 = vector.shape_cast %654 : vector<128xf32> to vector<1x128xf32>
    %658 = arith.addf %656, %657 : vector<1x128xf32>
    %cst_197 = arith.constant 5.000000e-01 : f32
    %659 = vector.broadcast %cst_197 : f32 to vector<1x128xf32>
    %660 = arith.mulf %659, %658 : vector<1x128xf32>
    %661 = math.tanh %660 : vector<1x128xf32>
    %cst_198 = arith.constant 1.000000e+00 : f32
    %662 = vector.broadcast %cst_198 : f32 to vector<1x128xf32>
    %663 = arith.addf %661, %662 : vector<1x128xf32>
    %cst_199 = arith.constant 5.000000e-01 : f32
    %664 = vector.broadcast %cst_199 : f32 to vector<1x128xf32>
    %665 = arith.mulf %664, %663 : vector<1x128xf32>
    %666 = arith.mulf %658, %665 : vector<1x128xf32>
    %c18_200 = arith.constant 18 : index
    %c0_201 = arith.constant 0 : index
    %c0_202 = arith.constant 0 : index
    %667 = vector.load %arg2[%c18_200, %c0_201, %c0_202] : memref<31x128x128xbf16, #tpu.memory_space<vmem>>, vector<1x128x128xbf16>
    %668 = vector.shape_cast %667 : vector<1x128x128xbf16> to vector<128x128xbf16>
    %c22 = arith.constant 22 : index
    %c0_203 = arith.constant 0 : index
    %669 = vector.load %arg3[%c22, %c0_203] : memref<36x128xf32, #tpu.memory_space<vmem>>, vector<1x128xf32>
    %670 = vector.shape_cast %669 : vector<1x128xf32> to vector<128xf32>
    %671 = arith.truncf %650 : vector<1x128xf32> to vector<1x128xbf16>
    %cst_204 = arith.constant dense<0.000000e+00> : vector<1x128xf32>
    %672 = tpu.matmul %671, %668, %cst_204 {dimension_numbers = #tpu.dot_dimension_numbers<[1], [0], [0], [1], [0, 0, 1, 1], [], []>} : vector<1x128xbf16>, vector<128x128xbf16>, vector<1x128xf32> -> vector<1x128xf32>
    %673 = vector.shape_cast %670 : vector<128xf32> to vector<1x128xf32>
    %674 = arith.addf %672, %673 : vector<1x128xf32>
    %cst_205 = arith.constant 5.000000e-01 : f32
    %675 = vector.broadcast %cst_205 : f32 to vector<1x128xf32>
    %676 = arith.mulf %675, %674 : vector<1x128xf32>
    %677 = math.tanh %676 : vector<1x128xf32>
    %cst_206 = arith.constant 1.000000e+00 : f32
    %678 = vector.broadcast %cst_206 : f32 to vector<1x128xf32>
    %679 = arith.addf %677, %678 : vector<1x128xf32>
    %cst_207 = arith.constant 5.000000e-01 : f32
    %680 = vector.broadcast %cst_207 : f32 to vector<1x128xf32>
    %681 = arith.mulf %680, %679 : vector<1x128xf32>
    %682 = arith.mulf %674, %681 : vector<1x128xf32>
    %c23 = arith.constant 23 : index
    %c0_208 = arith.constant 0 : index
    %683 = vector.load %arg3[%c23, %c0_208] : memref<36x128xf32, #tpu.memory_space<vmem>>, vector<1x128xf32>
    %684 = vector.shape_cast %683 : vector<1x128xf32> to vector<128xf32>
    %685 = vector.extract_strided_slice %634 {offsets = [4, 0], sizes = [1, 128], strides = [1, 1]} : vector<9x128xf32> to vector<1x128xf32>
    %686 = vector.shape_cast %685 : vector<1x128xf32> to vector<128xf32>
    %687 = vector.shape_cast %686 : vector<128xf32> to vector<1x128xf32>
    %688 = arith.mulf %682, %687 : vector<1x128xf32>
    %689 = vector.shape_cast %684 : vector<128xf32> to vector<1x128xf32>
    %690 = arith.addf %688, %689 : vector<1x128xf32>
    %cst_209 = arith.constant 5.000000e-01 : f32
    %691 = vector.broadcast %cst_209 : f32 to vector<1x128xf32>
    %692 = arith.mulf %691, %690 : vector<1x128xf32>
    %693 = math.tanh %692 : vector<1x128xf32>
    %cst_210 = arith.constant 1.000000e+00 : f32
    %694 = vector.broadcast %cst_210 : f32 to vector<1x128xf32>
    %695 = arith.addf %693, %694 : vector<1x128xf32>
    %cst_211 = arith.constant 5.000000e-01 : f32
    %696 = vector.broadcast %cst_211 : f32 to vector<1x128xf32>
    %697 = arith.mulf %696, %695 : vector<1x128xf32>
    %698 = arith.mulf %690, %697 : vector<1x128xf32>
    %c19_212 = arith.constant 19 : index
    %c0_213 = arith.constant 0 : index
    %c0_214 = arith.constant 0 : index
    %699 = vector.load %arg2[%c19_212, %c0_213, %c0_214] : memref<31x128x128xbf16, #tpu.memory_space<vmem>>, vector<1x128x128xbf16>
    %700 = vector.shape_cast %699 : vector<1x128x128xbf16> to vector<128x128xbf16>
    %c24 = arith.constant 24 : index
    %c0_215 = arith.constant 0 : index
    %701 = vector.load %arg3[%c24, %c0_215] : memref<36x128xf32, #tpu.memory_space<vmem>>, vector<1x128xf32>
    %702 = vector.shape_cast %701 : vector<1x128xf32> to vector<128xf32>
    %703 = arith.truncf %698 : vector<1x128xf32> to vector<1x128xbf16>
    %cst_216 = arith.constant dense<0.000000e+00> : vector<1x128xf32>
    %704 = tpu.matmul %703, %700, %cst_216 {dimension_numbers = #tpu.dot_dimension_numbers<[1], [0], [0], [1], [0, 0, 1, 1], [], []>} : vector<1x128xbf16>, vector<128x128xbf16>, vector<1x128xf32> -> vector<1x128xf32>
    %705 = vector.shape_cast %702 : vector<128xf32> to vector<1x128xf32>
    %706 = arith.addf %704, %705 : vector<1x128xf32>
    %cst_217 = arith.constant 5.000000e-01 : f32
    %707 = vector.broadcast %cst_217 : f32 to vector<1x128xf32>
    %708 = arith.mulf %707, %706 : vector<1x128xf32>
    %709 = math.tanh %708 : vector<1x128xf32>
    %cst_218 = arith.constant 1.000000e+00 : f32
    %710 = vector.broadcast %cst_218 : f32 to vector<1x128xf32>
    %711 = arith.addf %709, %710 : vector<1x128xf32>
    %cst_219 = arith.constant 5.000000e-01 : f32
    %712 = vector.broadcast %cst_219 : f32 to vector<1x128xf32>
    %713 = arith.mulf %712, %711 : vector<1x128xf32>
    %714 = arith.mulf %706, %713 : vector<1x128xf32>
    %715 = arith.addf %650, %714 : vector<1x128xf32>
    %716 = arith.truncf %715 : vector<1x128xf32> to vector<1x128xbf16>
    %c20_220 = arith.constant 20 : index
    %c0_221 = arith.constant 0 : index
    %c0_222 = arith.constant 0 : index
    %717 = vector.load %arg2[%c20_220, %c0_221, %c0_222] : memref<31x128x128xbf16, #tpu.memory_space<vmem>>, vector<1x128x128xbf16>
    %718 = vector.shape_cast %717 : vector<1x128x128xbf16> to vector<128x128xbf16>
    %cst_223 = arith.constant dense<0.000000e+00> : vector<1x128xf32>
    %719 = tpu.matmul %716, %718, %cst_223 {dimension_numbers = #tpu.dot_dimension_numbers<[1], [0], [0], [1], [0, 0, 1, 1], [], []>} : vector<1x128xbf16>, vector<128x128xbf16>, vector<1x128xf32> -> vector<1x128xf32>
    %720 = arith.truncf %666 : vector<1x128xf32> to vector<1x128xbf16>
    %c21_224 = arith.constant 21 : index
    %c0_225 = arith.constant 0 : index
    %c0_226 = arith.constant 0 : index
    %721 = vector.load %arg2[%c21_224, %c0_225, %c0_226] : memref<31x128x128xbf16, #tpu.memory_space<vmem>>, vector<1x128x128xbf16>
    %722 = vector.shape_cast %721 : vector<1x128x128xbf16> to vector<128x128xbf16>
    %cst_227 = arith.constant dense<0.000000e+00> : vector<1x128xf32>
    %723 = tpu.matmul %720, %722, %cst_227 {dimension_numbers = #tpu.dot_dimension_numbers<[1], [0], [0], [1], [0, 0, 1, 1], [], []>} : vector<1x128xbf16>, vector<128x128xbf16>, vector<1x128xf32> -> vector<1x128xf32>
    %724 = arith.addf %719, %723 : vector<1x128xf32>
    %c25 = arith.constant 25 : index
    %c0_228 = arith.constant 0 : index
    %725 = vector.load %arg3[%c25, %c0_228] : memref<36x128xf32, #tpu.memory_space<vmem>>, vector<1x128xf32>
    %726 = vector.shape_cast %725 : vector<1x128xf32> to vector<128xf32>
    %727 = vector.shape_cast %726 : vector<128xf32> to vector<1x128xf32>
    %728 = arith.addf %724, %727 : vector<1x128xf32>
    %cst_229 = arith.constant 5.000000e-01 : f32
    %729 = vector.broadcast %cst_229 : f32 to vector<1x128xf32>
    %730 = arith.mulf %729, %728 : vector<1x128xf32>
    %731 = math.tanh %730 : vector<1x128xf32>
    %cst_230 = arith.constant 1.000000e+00 : f32
    %732 = vector.broadcast %cst_230 : f32 to vector<1x128xf32>
    %733 = arith.addf %731, %732 : vector<1x128xf32>
    %cst_231 = arith.constant 5.000000e-01 : f32
    %734 = vector.broadcast %cst_231 : f32 to vector<1x128xf32>
    %735 = arith.mulf %734, %733 : vector<1x128xf32>
    %736 = arith.mulf %728, %735 : vector<1x128xf32>
    %c7_232 = arith.constant 7 : index
    %c0_233 = arith.constant 0 : index
    %c0_234 = arith.constant 0 : index
    %737 = vector.load %arg4[%c7_232, %c0_233, %c0_234] : memref<9x9x128xf32, #tpu.memory_space<vmem>>, vector<1x9x128xf32>
    %738 = vector.shape_cast %737 : vector<1x9x128xf32> to vector<9x128xf32>
    %c26 = arith.constant 26 : index
    %c0_235 = arith.constant 0 : index
    %739 = vector.load %arg3[%c26, %c0_235] : memref<36x128xf32, #tpu.memory_space<vmem>>, vector<1x128xf32>
    %740 = vector.shape_cast %739 : vector<1x128xf32> to vector<128xf32>
    %741 = vector.extract_strided_slice %738 {offsets = [4, 0], sizes = [1, 128], strides = [1, 1]} : vector<9x128xf32> to vector<1x128xf32>
    %742 = vector.shape_cast %741 : vector<1x128xf32> to vector<128xf32>
    %743 = vector.shape_cast %742 : vector<128xf32> to vector<1x128xf32>
    %744 = arith.mulf %736, %743 : vector<1x128xf32>
    %745 = vector.shape_cast %740 : vector<128xf32> to vector<1x128xf32>
    %746 = arith.addf %744, %745 : vector<1x128xf32>
    %cst_236 = arith.constant 5.000000e-01 : f32
    %747 = vector.broadcast %cst_236 : f32 to vector<1x128xf32>
    %748 = arith.mulf %747, %746 : vector<1x128xf32>
    %749 = math.tanh %748 : vector<1x128xf32>
    %cst_237 = arith.constant 1.000000e+00 : f32
    %750 = vector.broadcast %cst_237 : f32 to vector<1x128xf32>
    %751 = arith.addf %749, %750 : vector<1x128xf32>
    %cst_238 = arith.constant 5.000000e-01 : f32
    %752 = vector.broadcast %cst_238 : f32 to vector<1x128xf32>
    %753 = arith.mulf %752, %751 : vector<1x128xf32>
    %754 = arith.mulf %746, %753 : vector<1x128xf32>
    %c22_239 = arith.constant 22 : index
    %c0_240 = arith.constant 0 : index
    %c0_241 = arith.constant 0 : index
    %755 = vector.load %arg2[%c22_239, %c0_240, %c0_241] : memref<31x128x128xbf16, #tpu.memory_space<vmem>>, vector<1x128x128xbf16>
    %756 = vector.shape_cast %755 : vector<1x128x128xbf16> to vector<128x128xbf16>
    %c27 = arith.constant 27 : index
    %c0_242 = arith.constant 0 : index
    %757 = vector.load %arg3[%c27, %c0_242] : memref<36x128xf32, #tpu.memory_space<vmem>>, vector<1x128xf32>
    %758 = vector.shape_cast %757 : vector<1x128xf32> to vector<128xf32>
    %759 = arith.truncf %754 : vector<1x128xf32> to vector<1x128xbf16>
    %cst_243 = arith.constant dense<0.000000e+00> : vector<1x128xf32>
    %760 = tpu.matmul %759, %756, %cst_243 {dimension_numbers = #tpu.dot_dimension_numbers<[1], [0], [0], [1], [0, 0, 1, 1], [], []>} : vector<1x128xbf16>, vector<128x128xbf16>, vector<1x128xf32> -> vector<1x128xf32>
    %761 = vector.shape_cast %758 : vector<128xf32> to vector<1x128xf32>
    %762 = arith.addf %760, %761 : vector<1x128xf32>
    %cst_244 = arith.constant 5.000000e-01 : f32
    %763 = vector.broadcast %cst_244 : f32 to vector<1x128xf32>
    %764 = arith.mulf %763, %762 : vector<1x128xf32>
    %765 = math.tanh %764 : vector<1x128xf32>
    %cst_245 = arith.constant 1.000000e+00 : f32
    %766 = vector.broadcast %cst_245 : f32 to vector<1x128xf32>
    %767 = arith.addf %765, %766 : vector<1x128xf32>
    %cst_246 = arith.constant 5.000000e-01 : f32
    %768 = vector.broadcast %cst_246 : f32 to vector<1x128xf32>
    %769 = arith.mulf %768, %767 : vector<1x128xf32>
    %770 = arith.mulf %762, %769 : vector<1x128xf32>
    %c8_247 = arith.constant 8 : index
    %c0_248 = arith.constant 0 : index
    %c0_249 = arith.constant 0 : index
    %771 = vector.load %arg4[%c8_247, %c0_248, %c0_249] : memref<9x9x128xf32, #tpu.memory_space<vmem>>, vector<1x9x128xf32>
    %772 = vector.shape_cast %771 : vector<1x9x128xf32> to vector<9x128xf32>
    %c23_250 = arith.constant 23 : index
    %c0_251 = arith.constant 0 : index
    %c0_252 = arith.constant 0 : index
    %773 = vector.load %arg2[%c23_250, %c0_251, %c0_252] : memref<31x128x128xbf16, #tpu.memory_space<vmem>>, vector<1x128x128xbf16>
    %774 = vector.shape_cast %773 : vector<1x128x128xbf16> to vector<128x128xbf16>
    %c28 = arith.constant 28 : index
    %c0_253 = arith.constant 0 : index
    %775 = vector.load %arg3[%c28, %c0_253] : memref<36x128xf32, #tpu.memory_space<vmem>>, vector<1x128xf32>
    %776 = vector.shape_cast %775 : vector<1x128xf32> to vector<128xf32>
    %777 = arith.truncf %770 : vector<1x128xf32> to vector<1x128xbf16>
    %cst_254 = arith.constant dense<0.000000e+00> : vector<1x128xf32>
    %778 = tpu.matmul %777, %774, %cst_254 {dimension_numbers = #tpu.dot_dimension_numbers<[1], [0], [0], [1], [0, 0, 1, 1], [], []>} : vector<1x128xbf16>, vector<128x128xbf16>, vector<1x128xf32> -> vector<1x128xf32>
    %779 = vector.shape_cast %776 : vector<128xf32> to vector<1x128xf32>
    %780 = arith.addf %778, %779 : vector<1x128xf32>
    %cst_255 = arith.constant 5.000000e-01 : f32
    %781 = vector.broadcast %cst_255 : f32 to vector<1x128xf32>
    %782 = arith.mulf %781, %780 : vector<1x128xf32>
    %783 = math.tanh %782 : vector<1x128xf32>
    %cst_256 = arith.constant 1.000000e+00 : f32
    %784 = vector.broadcast %cst_256 : f32 to vector<1x128xf32>
    %785 = arith.addf %783, %784 : vector<1x128xf32>
    %cst_257 = arith.constant 5.000000e-01 : f32
    %786 = vector.broadcast %cst_257 : f32 to vector<1x128xf32>
    %787 = arith.mulf %786, %785 : vector<1x128xf32>
    %788 = arith.mulf %780, %787 : vector<1x128xf32>
    %c24_258 = arith.constant 24 : index
    %c0_259 = arith.constant 0 : index
    %c0_260 = arith.constant 0 : index
    %789 = vector.load %arg2[%c24_258, %c0_259, %c0_260] : memref<31x128x128xbf16, #tpu.memory_space<vmem>>, vector<1x128x128xbf16>
    %790 = vector.shape_cast %789 : vector<1x128x128xbf16> to vector<128x128xbf16>
    %c29 = arith.constant 29 : index
    %c0_261 = arith.constant 0 : index
    %791 = vector.load %arg3[%c29, %c0_261] : memref<36x128xf32, #tpu.memory_space<vmem>>, vector<1x128xf32>
    %792 = vector.shape_cast %791 : vector<1x128xf32> to vector<128xf32>
    %793 = arith.truncf %770 : vector<1x128xf32> to vector<1x128xbf16>
    %cst_262 = arith.constant dense<0.000000e+00> : vector<1x128xf32>
    %794 = tpu.matmul %793, %790, %cst_262 {dimension_numbers = #tpu.dot_dimension_numbers<[1], [0], [0], [1], [0, 0, 1, 1], [], []>} : vector<1x128xbf16>, vector<128x128xbf16>, vector<1x128xf32> -> vector<1x128xf32>
    %795 = vector.shape_cast %792 : vector<128xf32> to vector<1x128xf32>
    %796 = arith.addf %794, %795 : vector<1x128xf32>
    %cst_263 = arith.constant 5.000000e-01 : f32
    %797 = vector.broadcast %cst_263 : f32 to vector<1x128xf32>
    %798 = arith.mulf %797, %796 : vector<1x128xf32>
    %799 = math.tanh %798 : vector<1x128xf32>
    %cst_264 = arith.constant 1.000000e+00 : f32
    %800 = vector.broadcast %cst_264 : f32 to vector<1x128xf32>
    %801 = arith.addf %799, %800 : vector<1x128xf32>
    %cst_265 = arith.constant 5.000000e-01 : f32
    %802 = vector.broadcast %cst_265 : f32 to vector<1x128xf32>
    %803 = arith.mulf %802, %801 : vector<1x128xf32>
    %804 = arith.mulf %796, %803 : vector<1x128xf32>
    %c25_266 = arith.constant 25 : index
    %c0_267 = arith.constant 0 : index
    %c0_268 = arith.constant 0 : index
    %805 = vector.load %arg2[%c25_266, %c0_267, %c0_268] : memref<31x128x128xbf16, #tpu.memory_space<vmem>>, vector<1x128x128xbf16>
    %806 = vector.shape_cast %805 : vector<1x128x128xbf16> to vector<128x128xbf16>
    %c30 = arith.constant 30 : index
    %c0_269 = arith.constant 0 : index
    %807 = vector.load %arg3[%c30, %c0_269] : memref<36x128xf32, #tpu.memory_space<vmem>>, vector<1x128xf32>
    %808 = vector.shape_cast %807 : vector<1x128xf32> to vector<128xf32>
    %809 = arith.truncf %788 : vector<1x128xf32> to vector<1x128xbf16>
    %cst_270 = arith.constant dense<0.000000e+00> : vector<1x128xf32>
    %810 = tpu.matmul %809, %806, %cst_270 {dimension_numbers = #tpu.dot_dimension_numbers<[1], [0], [0], [1], [0, 0, 1, 1], [], []>} : vector<1x128xbf16>, vector<128x128xbf16>, vector<1x128xf32> -> vector<1x128xf32>
    %811 = vector.shape_cast %808 : vector<128xf32> to vector<1x128xf32>
    %812 = arith.addf %810, %811 : vector<1x128xf32>
    %cst_271 = arith.constant 5.000000e-01 : f32
    %813 = vector.broadcast %cst_271 : f32 to vector<1x128xf32>
    %814 = arith.mulf %813, %812 : vector<1x128xf32>
    %815 = math.tanh %814 : vector<1x128xf32>
    %cst_272 = arith.constant 1.000000e+00 : f32
    %816 = vector.broadcast %cst_272 : f32 to vector<1x128xf32>
    %817 = arith.addf %815, %816 : vector<1x128xf32>
    %cst_273 = arith.constant 5.000000e-01 : f32
    %818 = vector.broadcast %cst_273 : f32 to vector<1x128xf32>
    %819 = arith.mulf %818, %817 : vector<1x128xf32>
    %820 = arith.mulf %812, %819 : vector<1x128xf32>
    %c31 = arith.constant 31 : index
    %c0_274 = arith.constant 0 : index
    %821 = vector.load %arg3[%c31, %c0_274] : memref<36x128xf32, #tpu.memory_space<vmem>>, vector<1x128xf32>
    %822 = vector.shape_cast %821 : vector<1x128xf32> to vector<128xf32>
    %823 = vector.extract_strided_slice %772 {offsets = [4, 0], sizes = [1, 128], strides = [1, 1]} : vector<9x128xf32> to vector<1x128xf32>
    %824 = vector.shape_cast %823 : vector<1x128xf32> to vector<128xf32>
    %825 = vector.shape_cast %824 : vector<128xf32> to vector<1x128xf32>
    %826 = arith.mulf %820, %825 : vector<1x128xf32>
    %827 = vector.shape_cast %822 : vector<128xf32> to vector<1x128xf32>
    %828 = arith.addf %826, %827 : vector<1x128xf32>
    %cst_275 = arith.constant 5.000000e-01 : f32
    %829 = vector.broadcast %cst_275 : f32 to vector<1x128xf32>
    %830 = arith.mulf %829, %828 : vector<1x128xf32>
    %831 = math.tanh %830 : vector<1x128xf32>
    %cst_276 = arith.constant 1.000000e+00 : f32
    %832 = vector.broadcast %cst_276 : f32 to vector<1x128xf32>
    %833 = arith.addf %831, %832 : vector<1x128xf32>
    %cst_277 = arith.constant 5.000000e-01 : f32
    %834 = vector.broadcast %cst_277 : f32 to vector<1x128xf32>
    %835 = arith.mulf %834, %833 : vector<1x128xf32>
    %836 = arith.mulf %828, %835 : vector<1x128xf32>
    %c26_278 = arith.constant 26 : index
    %c0_279 = arith.constant 0 : index
    %c0_280 = arith.constant 0 : index
    %837 = vector.load %arg2[%c26_278, %c0_279, %c0_280] : memref<31x128x128xbf16, #tpu.memory_space<vmem>>, vector<1x128x128xbf16>
    %838 = vector.shape_cast %837 : vector<1x128x128xbf16> to vector<128x128xbf16>
    %c32 = arith.constant 32 : index
    %c0_281 = arith.constant 0 : index
    %839 = vector.load %arg3[%c32, %c0_281] : memref<36x128xf32, #tpu.memory_space<vmem>>, vector<1x128xf32>
    %840 = vector.shape_cast %839 : vector<1x128xf32> to vector<128xf32>
    %841 = arith.truncf %836 : vector<1x128xf32> to vector<1x128xbf16>
    %cst_282 = arith.constant dense<0.000000e+00> : vector<1x128xf32>
    %842 = tpu.matmul %841, %838, %cst_282 {dimension_numbers = #tpu.dot_dimension_numbers<[1], [0], [0], [1], [0, 0, 1, 1], [], []>} : vector<1x128xbf16>, vector<128x128xbf16>, vector<1x128xf32> -> vector<1x128xf32>
    %843 = vector.shape_cast %840 : vector<128xf32> to vector<1x128xf32>
    %844 = arith.addf %842, %843 : vector<1x128xf32>
    %cst_283 = arith.constant 5.000000e-01 : f32
    %845 = vector.broadcast %cst_283 : f32 to vector<1x128xf32>
    %846 = arith.mulf %845, %844 : vector<1x128xf32>
    %847 = math.tanh %846 : vector<1x128xf32>
    %cst_284 = arith.constant 1.000000e+00 : f32
    %848 = vector.broadcast %cst_284 : f32 to vector<1x128xf32>
    %849 = arith.addf %847, %848 : vector<1x128xf32>
    %cst_285 = arith.constant 5.000000e-01 : f32
    %850 = vector.broadcast %cst_285 : f32 to vector<1x128xf32>
    %851 = arith.mulf %850, %849 : vector<1x128xf32>
    %852 = arith.mulf %844, %851 : vector<1x128xf32>
    %853 = arith.addf %788, %852 : vector<1x128xf32>
    %854 = arith.truncf %853 : vector<1x128xf32> to vector<1x128xbf16>
    %c27_286 = arith.constant 27 : index
    %c0_287 = arith.constant 0 : index
    %c0_288 = arith.constant 0 : index
    %855 = vector.load %arg2[%c27_286, %c0_287, %c0_288] : memref<31x128x128xbf16, #tpu.memory_space<vmem>>, vector<1x128x128xbf16>
    %856 = vector.shape_cast %855 : vector<1x128x128xbf16> to vector<128x128xbf16>
    %cst_289 = arith.constant dense<0.000000e+00> : vector<1x128xf32>
    %857 = tpu.matmul %854, %856, %cst_289 {dimension_numbers = #tpu.dot_dimension_numbers<[1], [0], [0], [1], [0, 0, 1, 1], [], []>} : vector<1x128xbf16>, vector<128x128xbf16>, vector<1x128xf32> -> vector<1x128xf32>
    %858 = arith.truncf %804 : vector<1x128xf32> to vector<1x128xbf16>
    %c28_290 = arith.constant 28 : index
    %c0_291 = arith.constant 0 : index
    %c0_292 = arith.constant 0 : index
    %859 = vector.load %arg2[%c28_290, %c0_291, %c0_292] : memref<31x128x128xbf16, #tpu.memory_space<vmem>>, vector<1x128x128xbf16>
    %860 = vector.shape_cast %859 : vector<1x128x128xbf16> to vector<128x128xbf16>
    %cst_293 = arith.constant dense<0.000000e+00> : vector<1x128xf32>
    %861 = tpu.matmul %858, %860, %cst_293 {dimension_numbers = #tpu.dot_dimension_numbers<[1], [0], [0], [1], [0, 0, 1, 1], [], []>} : vector<1x128xbf16>, vector<128x128xbf16>, vector<1x128xf32> -> vector<1x128xf32>
    %862 = arith.addf %857, %861 : vector<1x128xf32>
    %c33 = arith.constant 33 : index
    %c0_294 = arith.constant 0 : index
    %863 = vector.load %arg3[%c33, %c0_294] : memref<36x128xf32, #tpu.memory_space<vmem>>, vector<1x128xf32>
    %864 = vector.shape_cast %863 : vector<1x128xf32> to vector<128xf32>
    %865 = vector.shape_cast %864 : vector<128xf32> to vector<1x128xf32>
    %866 = arith.addf %862, %865 : vector<1x128xf32>
    %cst_295 = arith.constant 5.000000e-01 : f32
    %867 = vector.broadcast %cst_295 : f32 to vector<1x128xf32>
    %868 = arith.mulf %867, %866 : vector<1x128xf32>
    %869 = math.tanh %868 : vector<1x128xf32>
    %cst_296 = arith.constant 1.000000e+00 : f32
    %870 = vector.broadcast %cst_296 : f32 to vector<1x128xf32>
    %871 = arith.addf %869, %870 : vector<1x128xf32>
    %cst_297 = arith.constant 5.000000e-01 : f32
    %872 = vector.broadcast %cst_297 : f32 to vector<1x128xf32>
    %873 = arith.mulf %872, %871 : vector<1x128xf32>
    %874 = arith.mulf %866, %873 : vector<1x128xf32>
    %c29_298 = arith.constant 29 : index
    %c0_299 = arith.constant 0 : index
    %c0_300 = arith.constant 0 : index
    %875 = vector.load %arg2[%c29_298, %c0_299, %c0_300] : memref<31x128x128xbf16, #tpu.memory_space<vmem>>, vector<1x128x128xbf16>
    %876 = vector.shape_cast %875 : vector<1x128x128xbf16> to vector<128x128xbf16>
    %c34 = arith.constant 34 : index
    %c0_301 = arith.constant 0 : index
    %877 = vector.load %arg3[%c34, %c0_301] : memref<36x128xf32, #tpu.memory_space<vmem>>, vector<1x128xf32>
    %878 = vector.shape_cast %877 : vector<1x128xf32> to vector<128xf32>
    %879 = arith.truncf %874 : vector<1x128xf32> to vector<1x128xbf16>
    %cst_302 = arith.constant dense<0.000000e+00> : vector<1x128xf32>
    %880 = tpu.matmul %879, %876, %cst_302 {dimension_numbers = #tpu.dot_dimension_numbers<[1], [0], [0], [1], [0, 0, 1, 1], [], []>} : vector<1x128xbf16>, vector<128x128xbf16>, vector<1x128xf32> -> vector<1x128xf32>
    %881 = vector.shape_cast %878 : vector<128xf32> to vector<1x128xf32>
    %882 = arith.addf %880, %881 : vector<1x128xf32>
    %cst_303 = arith.constant 5.000000e-01 : f32
    %883 = vector.broadcast %cst_303 : f32 to vector<1x128xf32>
    %884 = arith.mulf %883, %882 : vector<1x128xf32>
    %885 = math.tanh %884 : vector<1x128xf32>
    %cst_304 = arith.constant 1.000000e+00 : f32
    %886 = vector.broadcast %cst_304 : f32 to vector<1x128xf32>
    %887 = arith.addf %885, %886 : vector<1x128xf32>
    %cst_305 = arith.constant 5.000000e-01 : f32
    %888 = vector.broadcast %cst_305 : f32 to vector<1x128xf32>
    %889 = arith.mulf %888, %887 : vector<1x128xf32>
    %890 = arith.mulf %882, %889 : vector<1x128xf32>
    %cst_306 = arith.constant dense<0.000000e+00> : vector<128xf32>
    %891 = vector.multi_reduction <add>, %890, %cst_306 [0] : vector<1x128xf32> to vector<128xf32>
    %892 = vector.shape_cast %891 : vector<128xf32> to vector<1x128xf32>
    %cst_307 = arith.constant 1.000000e+00 : f32
    %893 = vector.broadcast %cst_307 : f32 to vector<1x128xf32>
    %894 = arith.divf %892, %893 : vector<1x128xf32>
    %895 = arith.truncf %894 : vector<1x128xf32> to vector<1x128xbf16>
    %c30_308 = arith.constant 30 : index
    %c0_309 = arith.constant 0 : index
    %c0_310 = arith.constant 0 : index
    %896 = vector.load %arg2[%c30_308, %c0_309, %c0_310] : memref<31x128x128xbf16, #tpu.memory_space<vmem>>, vector<1x128x128xbf16>
    %897 = vector.shape_cast %896 : vector<1x128x128xbf16> to vector<128x128xbf16>
    %cst_311 = arith.constant dense<0.000000e+00> : vector<1x128xf32>
    %898 = tpu.matmul %895, %897, %cst_311 {dimension_numbers = #tpu.dot_dimension_numbers<[1], [0], [0], [1], [0, 0, 1, 1], [], []>} : vector<1x128xbf16>, vector<128x128xbf16>, vector<1x128xf32> -> vector<1x128xf32>
    %c35 = arith.constant 35 : index
    %c0_312 = arith.constant 0 : index
    %899 = vector.load %arg3[%c35, %c0_312] : memref<36x128xf32, #tpu.memory_space<vmem>>, vector<1x128xf32>
    %900 = vector.shape_cast %899 : vector<1x128xf32> to vector<128xf32>
    %901 = vector.shape_cast %900 : vector<128xf32> to vector<1x128xf32>
    %902 = arith.addf %898, %901 : vector<1x128xf32>
    %903 = vector.shape_cast %902 : vector<1x128xf32> to vector<1x1x128xf32>
    %904 = vector.shape_cast %903 : vector<1x1x128xf32> to vector<1x1x128xf32>
    %905 = vector.broadcast %904 : vector<1x1x128xf32> to vector<1x8x128xf32>
    %c0_313 = arith.constant 0 : index
    %c0_314 = arith.constant 0 : index
    %c0_315 = arith.constant 0 : index
    %906 = vector.load %arg11[%c0_313, %c0_314, %c0_315] : memref<1x8x128xf32, #tpu.memory_space<vmem>>, vector<1x8x128xf32>
    tpu.vector_store %arg11[%c0_313, %c0_314, %c0_315], %905 {strides = array<i32>} : memref<1x8x128xf32, #tpu.memory_space<vmem>>, vector<1x8x128xf32>,
    return
  }
  func.func @transform_0(%arg0: i32) -> (i32, i32) {
    %c0_i32 = arith.constant 0 : i32
    %c0_i32_0 = arith.constant 0 : i32
    return %arg0, %c0_i32 : i32, i32
  }
  func.func @transform_1(%arg0: i32) -> (i32, i32, i32) {
    %c0_i32 = arith.constant 0 : i32
    %c0_i32_0 = arith.constant 0 : i32
    %c0_i32_1 = arith.constant 0 : i32
    %c0_i32_2 = arith.constant 0 : i32
    return %c0_i32, %c0_i32_0, %c0_i32_1 : i32, i32, i32
  }
  func.func @transform_2(%arg0: i32) -> (i32, i32) {
    %c0_i32 = arith.constant 0 : i32
    %c0_i32_0 = arith.constant 0 : i32
    %c0_i32_1 = arith.constant 0 : i32
    return %c0_i32, %c0_i32_0 : i32, i32
  }
  func.func @transform_3(%arg0: i32) -> (i32, i32, i32) {
    %c0_i32 = arith.constant 0 : i32
    %c0_i32_0 = arith.constant 0 : i32
    %c0_i32_1 = arith.constant 0 : i32
    %c0_i32_2 = arith.constant 0 : i32
    return %c0_i32, %c0_i32_0, %c0_i32_1 : i32, i32, i32
  }
  func.func @transform_4(%arg0: i32) -> (i32, i32) {
    %c0_i32 = arith.constant 0 : i32
    %c0_i32_0 = arith.constant 0 : i32
    %c0_i32_1 = arith.constant 0 : i32
    return %c0_i32, %c0_i32_0 : i32, i32
  }
  func.func @transform_5(%arg0: i32) -> (i32, i32) {
    %c0_i32 = arith.constant 0 : i32
    %c0_i32_0 = arith.constant 0 : i32
    %c0_i32_1 = arith.constant 0 : i32
    return %c0_i32, %c0_i32_0 : i32, i32
  }
  func.func @transform_6(%arg0: i32) -> (i32, i32) {
    %c0_i32 = arith.constant 0 : i32
    %c0_i32_0 = arith.constant 0 : i32
    %c0_i32_1 = arith.constant 0 : i32
    return %c0_i32, %c0_i32_0 : i32, i32
  }
  func.func @transform_7(%arg0: i32) -> (i32, i32) {
    %c0_i32 = arith.constant 0 : i32
    %c0_i32_0 = arith.constant 0 : i32
    %c0_i32_1 = arith.constant 0 : i32
    return %c0_i32, %c0_i32_0 : i32, i32
  }
  func.func @transform_8(%arg0: i32) -> (i32, i32) {
    %c0_i32 = arith.constant 0 : i32
    %c0_i32_0 = arith.constant 0 : i32
    %c0_i32_1 = arith.constant 0 : i32
    return %c0_i32, %c0_i32_0 : i32, i32
  }
  func.func @transform_9(%arg0: i32) -> (i32, i32) {
    %c0_i32 = arith.constant 0 : i32
    %c0_i32_0 = arith.constant 0 : i32
    %c0_i32_1 = arith.constant 0 : i32
    return %c0_i32, %c0_i32_0 : i32, i32
  }
  func.func @transform_10(%arg0: i32) -> (i32, i32, i32) {
    %c0_i32 = arith.constant 0 : i32
    %c0_i32_0 = arith.constant 0 : i32
    %c0_i32_1 = arith.constant 0 : i32
    return %arg0, %c0_i32, %c0_i32_0 : i32, i32, i32
  }
}

</mosaic_0001>

<bundles_post_ra>
// kernel: forward.1
= control target key start
LH: loop header
LB: loop body
LE: loop exit
PB: predicated region body
PF: predicated region fallthrough
CT: control target
= control target key end

     0   :  { %15 = vsyncpa [#allocation3], 0  ;;  %s8859_s13 = smov 0   ;;  %s10864_s0 = inlined_call_operand.vmem [shape: f32[512,128], index: 0, kind: input, shape index: {}]   ;;  %s10865_s1 = inlined_call_operand.hbm [shape: bf16[31,128,128], index: 1, kind: input, shape index: {}]   ;;  %s10866_s2 = inlined_call_operand.vmem [shape: f32[36,128], index: 2, kind: input, shape index: {}]   ;;  %s10867_s3 = inlined_call_operand.vmem [shape: f32[9,9,128], index: 3, kind: input, shape index: {}]   ;;  %s10868_s4 = inlined_call_operand.vmem [shape: bf16[64,2304], index: 4, kind: input, shape index: {}]   ;;  %s10869_s5 = inlined_call_operand.vmem [shape: bf16[16,576], index: 5, kind: input, shape index: {}]   ;;  %s10870_s6 = inlined_call_operand.vmem [shape: bf16[16,144], index: 6, kind: input, shape index: {}]   ;;  %s10871_s7 = inlined_call_operand.vmem [shape: bf16[4,144], index: 7, kind: input, shape index: {}]   ;;  %s10872_s8 = inlined_call_operand.vmem [shape: bf16[4,36], index: 8, kind: input, shape index: {}]   ;;  %s10873_s9 = inlined_call_operand.vmem [shape: bf16[1,36], index: 9, kind: input, shape index: {}]   ;;  %s10874_s10 = inlined_call_operand.vmem [shape: f32[2,8,128], index: 10, kind: output, shape index: {}]  }
   0x1 LB: > { %s8865_s14 = sadd.s32 4294967295, %s8796_s13   ;;  %p6486_p0 = scmp.ge.s32.totalorder %s8796_s13, 1  ;;  %s8796_s13 = sphi %s8859_s13, %s21_s13  }
   0x2   : > { %p267_p1 = scmp.lt.s32.totalorder %s8796_s13, 3  ;;  %s8798_s15 = smov [#allocation2]  }
   0x3   : > { %s279_s16 = sshll.u32 %s8798_s15, 4  ;;  %p10875_p3 = scmp.eq.s32.totalorder %s8865_s14, 0  ;;  %s280_s16 = int_to_ptr.vmem [resolvable:$true] %s279_s16 }
   0x4   : > { %p8869_p2 = pnand %p6486_p0, %p267_p1  ;;  %s8758_s21 = scalar_lea.hbm %s10865_s1, 31744 }
   0x5   : > { %p8759_p6 = scmp.ne.s32.totalorder %s10865_s1, %s8758_s21  ;;  %p8765_p10 = scmp.lt.u32.totalorder %s8758_s21, %s10865_s1 }
   0x6   : > { %s10881_s17 = scalar_select %p8869_p2, 1, 0 }
   0x7   : > { %p8225_p4 = pneg %p8869_p2 }
   0x9   : > { %p8878_p5 = pnand %p10875_p3, %p8225_p4 }
   0xb   : > { %p8760_p7 = pneg %p8878_p5 }
   0xd   : > { %p8761_p8 = pnand %p8760_p7, %p8759_p6 }
   0xf   : > { %p8762_p9 = pneg %p8761_p8 }
  0x11   : > { %p8767_p11 = pnand %p8765_p10, %p8762_p9 }
  0x13   : > { %8770 = shalt.err (!%p8767_p11)
}
  0x14   : > { %s8771_s26 = scalar_lea.vmem %s280_s16, 31744  ;;  %p8779_p1 = scmp.lt.s32.totalorder %s280_s16, %s280_s16 }
  0x15   : > { %p8772_p12 = scmp.ne.s32.totalorder %s280_s16, %s8771_s26  ;;  %p8780_p4 = scmp.lt.s32.totalorder %s8771_s26, %s8771_s26 }
  0x17   : > { %p8774_p13 = pnand %p8772_p12, %p8760_p7  ;;  %p8781_p3 = por %p8780_p4, %p8779_p1 }
  0x19   : > { %p8775_p0 = pneg %p8774_p13 }
  0x1b   : > { %p8782_p2 = pnand %p8781_p3, %p8775_p0 }
  0x1d   : > { %8785 = shalt.err (!%p8782_p2)
}
  0x1e   : > { %s8799_s27 = smov 64   ;;  %s8800_s28 = smov 4  }
  0x1f   : > { %8228 = dma.hbm_to_vmem [thread:$0]  (!%p8878_p5), %s10865_s1, 31744, %s280_s16, [#allocation3], %s8799_s27, %s8799_s27, %s8800_s28  }
  0x20   : > { %p10883_p6 = scmp.ne.s32.totalorder %s10881_s17, 0 }
  0x22   : > { %328 = sbr.rel (%p10883_p6) target bundleno = 7292 (0x1c7c), region = 60 }
  0x29   : > { %p10884_p8 = scmp.eq.s32.totalorder %s8865_s14, 0 }
  0x2b   : > { %8791 = dma.done.wait (%p10884_p8), [#allocation3], 31744   ;;  %p10885_p7 = pmov %p10884_p8 }
  0x2c   : > { %s6491_s11 = sshll.u32 %s8865_s14, 5  ;;  %v411_v0 = vlaneseq  ;;  %v8927_v6 = vld [vmem:[%s10867_s3] sm:$0xff]  ;;  %vm8802_vm0 = vmmov 0   ;;  %vm2301_vm1 = vcmask 523264   ;;  %vm3007_vm2 = vcmask 130048   ;;  %p371_p3 = scmp.lt.s32.totalorder %s8865_s14, 1 }
  0x2d   : > { %8793 = vsyncadd (%p10885_p7), [#allocation3], 4294935552  ;;  %p366_p2 = scmp.lt.s32.totalorder %s6491_s11, 63  ;;  %vm4071_vm3 = vcmask 1043456   ;;  %vm4088_vm4 = vcmask 1041408   ;;  %vm4084_vm5 = vcmask 293888  }
  0x2e   : > { %v8905_v1 = vshrl.u32 %v411_v0, 7  ;;  %v8247_v0 = vld [vmem:[%s10868_s4 + $0x4] ss:$72 sps:$4 sm:$0xff]   ;;  %s10896_s14 = smov (!%p371_p3, %s8865_s14), 1 }
  0x2f   : > { %s10894_s11 = smov (!%p366_p2, %s6491_s11), 63  ;;  %1347 = vmatprep.mubr.bf16.mxu0 %v8247_v0  ;;  %s6493_s21 = sshll.u32 %s10896_s14, 3 }
  0x30   : > { %v8908_v2 = vsub.s32 0, %v8905_v1  ;;  %v8911_v3 = vsub.s32 1, %v8905_v1  ;;  %s6492_s12 = sshll.u32 %s10894_s11, 3  ;;  %s374_s24 = scalar_lea.vmem %s10874_s10, %s6493_s21 }
  0x31   : > { %s8916_s17 = scalar_lea.vmem %s10864_s0, %s6492_s12 }
  0x32   : > { %10886 = vst [vmem:[#allocation5_spill] sm:$0xff] %v8911_v3  ;;  %v8919_v4 = vld [vmem:[%s8916_s17 + $0x80] sm:$0xff]  ;;  %v8922_v5 = vld [vmem:[%s8916_s17 + $0x88] sm:$0xff]  ;;  %v8931_v7 = vrot.slane %v8927_v6, %v8908_v2  ;;  %v8941_v10 = vrot.slane %v8927_v6, %v8911_v3  ;;  %v8944_v11 = vld [vmem:[%s8916_s17 + $0x90] sm:$0xff] }
  0x33   : > { %v8934_v8 = vld [vmem:[%s8916_s17] sm:$0xff]  ;;  %v8937_v9 = vld [vmem:[%s8916_s17 + $0x8] sm:$0xff]  ;;  %v8947_v12 = vld [vmem:[%s8916_s17 + $0x98] sm:$0xff] }
  0x34   : > { %v431_v13 = vmul.f32 %v8931_v7, %v8919_v4  ;;  %v432_v14 = vmul.f32 %v8931_v7, %v8922_v5  ;;  %v415_v15 = vmul.f32 %v8931_v7, %v8934_v8  ;;  %v416_v16 = vmul.f32 %v8931_v7, %v8937_v9  ;;  %v8958_v17 = vld [vmem:[%s8916_s17 + $0x10] sm:$0xff]  ;;  %v8961_v18 = vld [vmem:[%s8916_s17 + $0x18] sm:$0xff]  ;;  %v8976_v27 = vld [vmem:[%s8916_s17 + $0xa0] sm:$0xff] }
  0x35   : > { %v467_v19 = vmul.f32 %v8941_v10, %v8919_v4  ;;  %v468_v20 = vmul.f32 %v8941_v10, %v8922_v5  ;;  %v451_v21 = vmul.f32 %v8941_v10, %v8934_v8  ;;  %v452_v22 = vmul.f32 %v8941_v10, %v8937_v9  ;;  %v8983_v32 = vld [vmem:[%s8916_s17 + $0xa8] sm:$0xff]  ;;  %v8986_v33 = vld [vmem:[%s8916_s17 + $0x20] sm:$0xff]  ;;  %v9002_v42 = vld [vmem:[%s8916_s17 + $0xb0] sm:$0xff] }
  0x36   : > { %v815_v23 = vpack.c.bf16 %v432_v14, %v431_v13  ;;  %v807_v24 = vpack.c.bf16 %v416_v16, %v415_v15  ;;  %v433_v25 = vmul.f32 %v8931_v7, %v8944_v11  ;;  %v434_v26 = vmul.f32 %v8931_v7, %v8947_v12  ;;  %v8995_v38 = vld [vmem:[%s8916_s17 + $0x28] sm:$0xff]  ;;  %v9009_v46 = vld [vmem:[%s8916_s17 + $0xb8] sm:$0xff]  ;;  %v9012_v47 = vld [vmem:[%s8916_s17 + $0x30] sm:$0xff] }
  0x37   : > { %v831_v28 = vpack.c.bf16 %v468_v20, %v467_v19  ;;  %v823_v29 = vpack.c.bf16 %v452_v22, %v451_v21  ;;  %v417_v30 = vmul.f32 %v8931_v7, %v8958_v17  ;;  %v418_v31 = vmul.f32 %v8931_v7, %v8961_v18  ;;  %v9021_v52 = vld [vmem:[%s8916_s17 + $0x38] sm:$0xff]  ;;  %v9024_v53 = vld [vmem:[%s8916_s17 + $0xc0] sm:$0xff]  ;;  %v9027_v54 = vld [vmem:[%s8916_s17 + $0xc8] sm:$0xff] }
  0x38   : > { %6866 = vmatprep.subr.bf16.mxu0 %v815_v23  ;;  %v816_v34 = vpack.c.bf16 %v434_v26, %v433_v25  ;;  %v469_v35 = vmul.f32 %v8941_v10, %v8944_v11  ;;  %v470_v36 = vmul.f32 %v8941_v10, %v8947_v12  ;;  %v453_v37 = vmul.f32 %v8941_v10, %v8958_v17  ;;  %v9036_v59 = vld [vmem:[%s8916_s17 + $0x40] sm:$0xff]  ;;  %v9050_v16 = vld [vmem:[%s8916_s17 + $0x48] sm:$0xff]  ;;  %v9053_v19 = vld [vmem:[%s8916_s17 + $0xd0] sm:$0xff] }
  0x39   : > { %6867 = vmatpush3.bf16.msra.mxu0 %v807_v24  ;;  %6906 = vmatprep.subr.bf16.mxu1 %v831_v28  ;;  %v808_v39 = vpack.c.bf16 %v418_v31, %v417_v30  ;;  %v454_v40 = vmul.f32 %v8941_v10, %v8961_v18  ;;  %v435_v41 = vmul.f32 %v8931_v7, %v8976_v27  ;;  %v9062_v24 = vld [vmem:[%s8916_s17 + $0xd8] sm:$0xff]  ;;  %v9065_v25 = vld [vmem:[%s8916_s17 + $0x50] sm:$0xff]  ;;  %v9113_v0 = vld [vmem:[%s8916_s17 + $0x60] sm:$0xff] }
  0x3a   : > { %6907 = vmatpush3.bf16.msra.mxu1 %v823_v29  ;;  %6868 = vmatprep.subr.bf16.mxu0 %v816_v34  ;;  %v832_v43 = vpack.c.bf16 %v470_v36, %v469_v35  ;;  %v436_v44 = vmul.f32 %v8931_v7, %v8983_v32  ;;  %v419_v45 = vmul.f32 %v8931_v7, %v8986_v33  ;;  %v8250_v31 = vld [vmem:[%s10868_s4 + $0xc] ss:$72 sps:$4 sm:$0xff]  }
  0x3b   : > { %v824_v48 = vpack.c.bf16 %v454_v40, %v453_v37  ;;  %v420_v49 = vmul.f32 %v8931_v7, %v8995_v38  ;;  %v471_v50 = vmul.f32 %v8941_v10, %v8976_v27  ;;  %v472_v51 = vmul.f32 %v8941_v10, %v8983_v32  ;;  %1412 = vmatprep.mubr.bf16.mxu1 %v8250_v31 }
  0x3c   : > { %6908 = vmatprep.subr.bf16.mxu1 %v832_v43  ;;  %v817_v55 = vpack.c.bf16 %v436_v44, %v435_v41  ;;  %v455_v56 = vmul.f32 %v8941_v10, %v8986_v33  ;;  %v456_v57 = vmul.f32 %v8941_v10, %v8995_v38  ;;  %v437_v58 = vmul.f32 %v8931_v7, %v9002_v42 }
  0x3d   : > { %6869 = vmatpush3.bf16.msra.mxu0 %v808_v39  ;;  %v809_v60 = vpack.c.bf16 %v420_v49, %v419_v45  ;;  %v833_v61 = vpack.c.bf16 %v472_v51, %v471_v50  ;;  %v438_v62 = vmul.f32 %v8931_v7, %v9009_v46  ;;  %v421_v63 = vmul.f32 %v8931_v7, %v9012_v47  ;;  %v9081_v39 = vld [vmem:[%s8916_s17 + $0x58] sm:$0xff]  ;;  %v9094_v49 = vld [vmem:[%s8916_s17 + $0xe0] sm:$0xff] }
  0x3e   : > { %6909 = vmatpush3.bf16.msra.mxu1 %v824_v48  ;;  %6870 = vmatprep.subr.bf16.mxu0 %v817_v55  ;;  %v825_v13 = vpack.c.bf16 %v456_v57, %v455_v56  ;;  %v422_v14 = vmul.f32 %v8931_v7, %v9021_v52  ;;  %v473_v15 = vmul.f32 %v8941_v10, %v9002_v42  ;;  %v9097_v50 = vsub.s32 2, %v8905_v1 }
  0x3f   : > { %6910 = vmatprep.subr.bf16.mxu1 %v833_v61  ;;  %v818_v20 = vpack.c.bf16 %v438_v62, %v437_v58  ;;  %v474_v21 = vmul.f32 %v8941_v10, %v9009_v46  ;;  %v457_v22 = vmul.f32 %v8941_v10, %v9012_v47  ;;  %v458_v23 = vmul.f32 %v8941_v10, %v9021_v52  ;;  %v9106_v58 = vld [vmem:[%s8916_s17 + $0xe8] sm:$0xff] }
  0x40   : > { %v810_v26 = vpack.c.bf16 %v422_v14, %v421_v63  ;;  %v439_v28 = vmul.f32 %v8931_v7, %v9024_v53  ;;  %v440_v29 = vmul.f32 %v8931_v7, %v9027_v54  ;;  %v423_v30 = vmul.f32 %v8931_v7, %v9036_v59 }
  0x41   : > { %6871 = vmatpush3.bf16.msra.mxu0 %v809_v60  ;;  %v834_v34 = vpack.c.bf16 %v474_v21, %v473_v15  ;;  %v826_v35 = vpack.c.bf16 %v458_v23, %v457_v22  ;;  %v424_v36 = vmul.f32 %v8931_v7, %v9050_v16  ;;  %v475_v37 = vmul.f32 %v8941_v10, %v9024_v53  ;;  %v9125_v23 = vld [vmem:[%s8916_s17 + $0xf0] sm:$0xff] }
  0x42   : > { %6911 = vmatpush3.bf16.msra.mxu1 %v825_v13  ;;  %6872 = vmatprep.subr.bf16.mxu0 %v818_v20  ;;  %v819_v40 = vpack.c.bf16 %v440_v29, %v439_v28  ;;  %v476_v41 = vmul.f32 %v8941_v10, %v9027_v54  ;;  %v459_v43 = vmul.f32 %v8941_v10, %v9036_v59  ;;  %v9120_v20 = vld [vmem:[%s8916_s17 + $0x68] sm:$0xff]  ;;  %v9135_v29 = vsub.s32 3, %v8905_v1 }
  0x43   : > { %6912 = vmatprep.subr.bf16.mxu1 %v834_v34  ;;  %v460_v44 = vmul.f32 %v8941_v10, %v9050_v16  ;;  %v441_v45 = vmul.f32 %v8931_v7, %v9053_v19  ;;  %v442_v48 = vmul.f32 %v8931_v7, %v9062_v24  ;;  %v425_v55 = vmul.f32 %v8931_v7, %v9065_v25 }
  0x44   : > { %v835_v51 = vpack.c.bf16 %v476_v41, %v475_v37  ;;  %v426_v56 = vmul.f32 %v8931_v7, %v9081_v39  ;;  %v477_v57 = vmul.f32 %v8941_v10, %v9053_v19  ;;  %v811_v60 = vpack.c.bf16 %v424_v36, %v423_v30  ;;  %10887 = vst [vmem:[#allocation6_spill] sm:$0xff] %v9135_v29  ;;  %v9144_v36 = vld [vmem:[%s8916_s17 + $0x70] sm:$0xff] }
  0x45   : > { %6873 = vmatpush3.bf16.msra.mxu0 %v810_v26  ;;  %v827_v61 = vpack.c.bf16 %v460_v44, %v459_v43  ;;  %v478_v62 = vmul.f32 %v8941_v10, %v9062_v24  ;;  %v461_v63 = vmul.f32 %v8941_v10, %v9065_v25  ;;  %v820_v13 = vpack.c.bf16 %v442_v48, %v441_v45  ;;  %v9128_v26 = vld [vmem:[%s8916_s17 + $0xf8] sm:$0xff] }
  0x46   : > { %6913 = vmatpush3.bf16.msra.mxu1 %v826_v35  ;;  %6874 = vmatprep.subr.bf16.mxu0 %v819_v40  ;;  %v462_v14 = vmul.f32 %v8941_v10, %v9081_v39  ;;  %v443_v15 = vmul.f32 %v8931_v7, %v9094_v49  ;;  %v444_v22 = vmul.f32 %v8931_v7, %v9106_v58  ;;  %v9153_v44 = vld [vmem:[%s8916_s17 + $0x78] sm:$0xff] }
  0x47   : > { %6914 = vmatprep.subr.bf16.mxu1 %v835_v51  ;;  %v836_v21 = vpack.c.bf16 %v478_v62, %v477_v57  ;;  %v9132_v28 = vrot.slane %v8927_v6, %v9097_v50  ;;  %v812_v30 = vpack.c.bf16 %v426_v56, %v425_v55  ;;  %v427_v31 = vmul.f32 %v8931_v7, %v9113_v0 }
  0x48   : > { %v479_v34 = vmul.f32 %v8941_v10, %v9094_v49  ;;  %v480_v35 = vmul.f32 %v8941_v10, %v9106_v58  ;;  %v828_v37 = vpack.c.bf16 %v462_v14, %v461_v63  ;;  %v428_v40 = vmul.f32 %v8931_v7, %v9120_v20 }
  0x49   : > { %6875 = vmatpush3.bf16.msra.mxu0 %v811_v60  ;;  %v463_v41 = vmul.f32 %v8941_v10, %v9113_v0  ;;  %v464_v43 = vmul.f32 %v8941_v10, %v9120_v20  ;;  %v821_v45 = vpack.c.bf16 %v444_v22, %v443_v15  ;;  %v445_v48 = vmul.f32 %v8931_v7, %v9125_v23 }
  0x4a   : > { %6915 = vmatpush3.bf16.msra.mxu1 %v827_v61  ;;  %6876 = vmatprep.subr.bf16.mxu0 %v820_v13  ;;  %v446_v51 = vmul.f32 %v8931_v7, %v9128_v26  ;;  %v837_v55 = vpack.c.bf16 %v480_v35, %v479_v34  ;;  %v481_v56 = vmul.f32 %v8941_v10, %v9125_v23 }
  0x4b   : > { %6916 = vmatprep.subr.bf16.mxu1 %v836_v21  ;;  %v482_v57 = vmul.f32 %v8941_v10, %v9128_v26  ;;  %v9165_v60 = vrot.slane %v8927_v6, %v9135_v29  ;;  %v429_v61 = vmul.f32 %v8931_v7, %v9144_v36  ;;  %v430_v62 = vmul.f32 %v8931_v7, %v9153_v44 }
  0x4c   : > { %v813_v63 = vpack.c.bf16 %v428_v40, %v427_v31  ;;  %v829_v13 = vpack.c.bf16 %v464_v43, %v463_v41  ;;  %v465_v14 = vmul.f32 %v8941_v10, %v9144_v36  ;;  %v466_v15 = vmul.f32 %v8941_v10, %v9153_v44 }
  0x4d   : > { %6877 = vmatpush3.bf16.msra.mxu0 %v812_v30  ;;  %v822_v21 = vpack.c.bf16 %v446_v51, %v445_v48  ;;  %v503_v22 = vmul.f32 %v9132_v28, %v8919_v4  ;;  %v504_v34 = vmul.f32 %v9132_v28, %v8922_v5  ;;  %v838_v7 = vpack.c.bf16 %v482_v57, %v481_v56 }
  0x4e   : > { %6917 = vmatpush3.bf16.msra.mxu1 %v828_v37  ;;  %6878 = vmatprep.subr.bf16.mxu0 %v821_v45  ;;  %v539_v30 = vmul.f32 %v9165_v60, %v8919_v4  ;;  %v540_v31 = vmul.f32 %v9165_v60, %v8922_v5  ;;  %v814_v35 = vpack.c.bf16 %v430_v62, %v429_v61  ;;  %v8245_v61 = vld [vmem:[%s10868_s4] ss:$72 sps:$4 sm:$0xff]  }
  0x4f   : > { %6918 = vmatprep.subr.bf16.mxu1 %v837_v55  ;;  %v487_v10 = vmul.f32 %v9132_v28, %v8934_v8  ;;  %v830_v37 = vpack.c.bf16 %v466_v15, %v465_v14  ;;  %v488_v40 = vmul.f32 %v9132_v28, %v8937_v9  ;;  %v523_v41 = vmul.f32 %v9165_v60, %v8934_v8 }
  0x50   : > { %v524_v43 = vmul.f32 %v9165_v60, %v8937_v9  ;;  %v847_v45 = vpack.c.bf16 %v504_v34, %v503_v22  ;;  %v505_v48 = vmul.f32 %v9132_v28, %v8944_v11  ;;  %v506_v51 = vmul.f32 %v9132_v28, %v8947_v12 }
  0x51   : > { %6879 = vmatpush3.bf16.msra.mxu0 %v813_v63  ;;  %v863_v55 = vpack.c.bf16 %v540_v31, %v539_v30  ;;  %v541_v56 = vmul.f32 %v9165_v60, %v8944_v11  ;;  %v542_v57 = vmul.f32 %v9165_v60, %v8947_v12  ;;  %v489_v62 = vmul.f32 %v9132_v28, %v8958_v17 }
  0x52   : > { %6919 = vmatpush3.bf16.msra.mxu1 %v829_v13  ;;  %6880 = vmatprep.subr.bf16.mxu0 %v822_v21  ;;  %v490_v63 = vmul.f32 %v9132_v28, %v8961_v18  ;;  %v8248_v13 = vld [vmem:[%s10868_s4 + $0x8] ss:$72 sps:$4 sm:$0xff]   ;;  %v839_v14 = vpack.c.bf16 %v488_v40, %v487_v10  ;;  %v855_v15 = vpack.c.bf16 %v524_v43, %v523_v41  ;;  %v8254_v41 = vld [vmem:[%s10868_s4 + $0x9c] ss:$72 sps:$4 sm:$0xff]  }
  0x53   : > { %6920 = vmatprep.subr.bf16.mxu1 %v838_v7  ;;  %v525_v21 = vmul.f32 %v9165_v60, %v8958_v17  ;;  %v526_v22 = vmul.f32 %v9165_v60, %v8961_v18  ;;  %v848_v34 = vpack.c.bf16 %v506_v51, %v505_v48  ;;  %v507_v7 = vmul.f32 %v9132_v28, %v8976_v27 }
  0x54   : > { %v508_v30 = vmul.f32 %v9132_v28, %v8983_v32  ;;  %v864_v31 = vpack.c.bf16 %v542_v57, %v541_v56  ;;  %v543_v10 = vmul.f32 %v9165_v60, %v8976_v27  ;;  %v840_v40 = vpack.c.bf16 %v490_v63, %v489_v62 }
  0x55   : > { %6881 = vmatpush3.bf16.msra.mxu0 %v814_v35  ;;  %v8251_v35 = vld [vmem:[%s10868_s4 + $0x94] ss:$72 sps:$4 sm:$0xff]   ;;  %v491_v43 = vmul.f32 %v9132_v28, %v8986_v33  ;;  %v856_v48 = vpack.c.bf16 %v526_v22, %v525_v21  ;;  %v527_v51 = vmul.f32 %v9165_v60, %v8986_v33  ;;  %v509_v57 = vmul.f32 %v9132_v28, %v9002_v42 }
  0x56   : > { %6921 = vmatpush3.bf16.msra.mxu1 %v830_v37  ;;  %6946 = vmatprep.subr.bf16.mxu0 %v847_v45  ;;  %v544_v37 = vmul.f32 %v9165_v60, %v8983_v32  ;;  %v492_v45 = vmul.f32 %v9132_v28, %v8995_v38  ;;  %v849_v56 = vpack.c.bf16 %v508_v30, %v507_v7  ;;  %v8256_v30 = vld [vmem:[%s10868_s4 + $0x98] ss:$72 sps:$4 sm:$0xff]  }
  0x57   : > { %6986 = vmatprep.subr.bf16.mxu1 %v863_v55  ;;  %v528_v55 = vmul.f32 %v9165_v60, %v8995_v38  ;;  %v545_v63 = vmul.f32 %v9165_v60, %v9002_v42  ;;  %v494_v21 = vmul.f32 %v9132_v28, %v9021_v52  ;;  %v529_v22 = vmul.f32 %v9165_v60, %v9012_v47 }
  0x58   : > { %1348 = vmatmul.mubr.bf16.vlgmr.msra.gmra.mrb[0].mxu0 %v8245_v61  ;;  %v510_v61 = vmul.f32 %v9132_v28, %v9009_v46  ;;  %v865_v62 = vpack.c.bf16 %v544_v37, %v543_v10  ;;  %v841_v7 = vpack.c.bf16 %v492_v45, %v491_v43  ;;  %v511_v10 = vmul.f32 %v9132_v28, %v9024_v53 }
  0x59   : > { %6947 = vmatpush3.bf16.msra.mxu0 %v839_v14  ;;  %1413 = vmatmul.mubr.bf16.vlgmr.msra.gmra.mrb[0].mxu1 %v8248_v13  ;;  %v546_v13 = vmul.f32 %v9165_v60, %v9009_v46  ;;  %v8253_v14 = vld [vmem:[%s10868_s4 + $0x90] ss:$72 sps:$4 sm:$0xff]   ;;  %v512_v37 = vmul.f32 %v9132_v28, %v9027_v54  ;;  %v547_v43 = vmul.f32 %v9165_v60, %v9024_v53 }
  0x5a   : > { %6987 = vmatpush3.bf16.msra.mxu1 %v855_v15  ;;  %6948 = vmatprep.subr.bf16.mxu0 %v848_v34  ;;  %v493_v15 = vmul.f32 %v9132_v28, %v9012_v47  ;;  %v530_v34 = vmul.f32 %v9165_v60, %v9021_v52  ;;  %v548_v45 = vmul.f32 %v9165_v60, %v9027_v54 }
  0x5b   : > { %6988 = vmatprep.subr.bf16.mxu1 %v864_v31  ;;  %1355 = vmatprep.mubr.bf16.mxu0 %v8251_v35  ;;  %v857_v31 = vpack.c.bf16 %v528_v55, %v527_v51  ;;  %v850_v35 = vpack.c.bf16 %v510_v61, %v509_v57  ;;  %v8260_v55 = vld [vmem:[%s10868_s4 + $0x12c] ss:$72 sps:$4 sm:$0xff]   ;;  %v496_v57 = vmul.f32 %v9132_v28, %v9050_v16 }
  0x5c   : > { %1420 = vmatprep.mubr.bf16.mxu1 %v8254_v41  ;;  %v866_v41 = vpack.c.bf16 %v546_v13, %v545_v63  ;;  %v858_v51 = vpack.c.bf16 %v530_v34, %v529_v22  ;;  %v531_v61 = vmul.f32 %v9165_v60, %v9036_v59  ;;  %v851_v63 = vpack.c.bf16 %v512_v37, %v511_v10 }
  0x5d   : > { %6949 = vmatpush3.bf16.msra.mxu0 %v840_v40  ;;  %v8257_v40 = vld [vmem:[%s10868_s4 + $0x124] ss:$72 sps:$4 sm:$0xff]   ;;  %v513_v13 = vmul.f32 %v9132_v28, %v9053_v19  ;;  %v549_v22 = vmul.f32 %v9165_v60, %v9053_v19  ;;  %v550_v34 = vmul.f32 %v9165_v60, %v9062_v24  ;;  %v533_v10 = vmul.f32 %v9165_v60, %v9065_v25 }
  0x5e   : > { %6989 = vmatpush3.bf16.msra.mxu1 %v856_v48  ;;  %6950 = vmatprep.subr.bf16.mxu0 %v849_v56  ;;  %v842_v48 = vpack.c.bf16 %v494_v21, %v493_v15  ;;  %v495_v56 = vmul.f32 %v9132_v28, %v9036_v59  ;;  %v9284_v15 = vsub.s32 4, %v8905_v1  ;;  %v867_v21 = vpack.c.bf16 %v548_v45, %v547_v43 }
  0x5f   : > { %6990 = vmatprep.subr.bf16.mxu1 %v865_v62  ;;  %v532_v62 = vmul.f32 %v9165_v60, %v9050_v16  ;;  %v534_v37 = vmul.f32 %v9165_v60, %v9081_v39  ;;  %v516_v3 = vmul.f32 %v9132_v28, %v9106_v58  ;;  %v868_v29 = vpack.c.bf16 %v550_v34, %v549_v22 }
  0x60   : > { %1356 = vmatmul.mubr.bf16.gmra.mrb[4].mxu0 %v8253_v14  ;;  %v514_v14 = vmul.f32 %v9132_v28, %v9062_v24  ;;  %v535_v22 = vmul.f32 %v9165_v60, %v9113_v0  ;;  %v536_v34 = vmul.f32 %v9165_v60, %v9120_v20 }
  0x61   : > { %6951 = vmatpush3.bf16.msra.mxu0 %v841_v7  ;;  %1421 = vmatmul.mubr.bf16.gmra.mrb[4].mxu1 %v8256_v30  ;;  %v9291_v7 = vsub.s32 5, %v8905_v1  ;;  %v8259_v30 = vld [vmem:[%s10868_s4 + $0x120] ss:$72 sps:$4 sm:$0xff]   ;;  %v859_v43 = vpack.c.bf16 %v532_v62, %v531_v61  ;;  %v860_v62 = vpack.c.bf16 %v534_v37, %v533_v10  ;;  %v553_v37 = vmul.f32 %v9165_v60, %v9125_v23 }
  0x62   : > { %6991 = vmatpush3.bf16.msra.mxu1 %v857_v31  ;;  %6952 = vmatprep.subr.bf16.mxu0 %v850_v35  ;;  %v497_v31 = vmul.f32 %v9132_v28, %v9065_v25  ;;  %v498_v35 = vmul.f32 %v9132_v28, %v9081_v39  ;;  %v852_v45 = vpack.c.bf16 %v514_v14, %v513_v13 }
  0x63   : > { %6992 = vmatprep.subr.bf16.mxu1 %v866_v41  ;;  %1363 = vmatprep.mubr.bf16.mxu0 %v8257_v40  ;;  %v843_v41 = vpack.c.bf16 %v496_v57, %v495_v56  ;;  %v8262_v40 = vld [vmem:[%s10868_s4 + $0x128] ss:$72 sps:$4 sm:$0xff]   ;;  %v551_v56 = vmul.f32 %v9165_v60, %v9094_v49  ;;  %v9320_v57 = vrot.slane %v8927_v6, %v9284_v15 }
  0x64   : > { %1428 = vmatprep.mubr.bf16.mxu1 %v8260_v55  ;;  %v515_v55 = vmul.f32 %v9132_v28, %v9094_v49  ;;  %v844_v61 = vpack.c.bf16 %v498_v35, %v497_v31  ;;  %v499_v13 = vmul.f32 %v9132_v28, %v9113_v0  ;;  %v9329_v14 = vrot.slane %v8927_v6, %v9291_v7  ;;  %v8265_v35 = vld [vmem:[%s10868_s4 + $0x1b0] ss:$72 sps:$4 sm:$0xff]  }
  0x65   : > { %6953 = vmatpush3.bf16.msra.mxu0 %v842_v48  ;;  %v8263_v48 = vld [vmem:[%s10868_s4 + $0x1b4] ss:$72 sps:$4 sm:$0xff]   ;;  %v517_v31 = vmul.f32 %v9132_v28, %v9125_v23  ;;  %v518_v6 = vmul.f32 %v9132_v28, %v9128_v26 }
  0x66   : > { %6993 = vmatpush3.bf16.msra.mxu1 %v858_v51  ;;  %6954 = vmatprep.subr.bf16.mxu0 %v851_v63  ;;  %v552_v51 = vmul.f32 %v9165_v60, %v9106_v58  ;;  %v8266_v63 = vld [vmem:[%s10868_s4 + $0x1bc] ss:$72 sps:$4 sm:$0xff]  }
  0x67   : > { %6994 = vmatprep.subr.bf16.mxu1 %v867_v21  ;;  %v500_v21 = vmul.f32 %v9132_v28, %v9120_v20 }
  0x68   : > { %1364 = vmatmul.mubr.bf16.gmra.mrb[8].mxu0 %v8259_v30  ;;  %v853_v30 = vpack.c.bf16 %v516_v3, %v515_v55  ;;  %v869_v10 = vpack.c.bf16 %v552_v51, %v551_v56  ;;  %v8268_v3 = vld [vmem:[%s10868_s4 + $0x1b8] ss:$72 sps:$4 sm:$0xff]   ;;  %v8271_v55 = vld [vmem:[%s10868_s4 + $0x14] ss:$72 sps:$4 sm:$0xff]   ;;  %v538_v56 = vmul.f32 %v9165_v60, %v9153_v44  ;;  %v854_v51 = vpack.c.bf16 %v518_v6, %v517_v31 }
  0x69   : > { %6955 = vmatpush3.bf16.msra.mxu0 %v843_v41  ;;  %1429 = vmatmul.mubr.bf16.gmra.mrb[8].mxu1 %v8262_v40  ;;  %v554_v41 = vmul.f32 %v9165_v60, %v9128_v26  ;;  %v502_v40 = vmul.f32 %v9132_v28, %v9153_v44  ;;  %v595_v31 = vmul.f32 %v9329_v14, %v8934_v8  ;;  %v9382_v6 = vsub.s32 6, %v8905_v1 }
  0x6a   : > { %6995 = vmatpush3.bf16.msra.mxu1 %v859_v43  ;;  %6956 = vmatprep.subr.bf16.mxu0 %v852_v45  ;;  %v845_v43 = vpack.c.bf16 %v500_v21, %v499_v13  ;;  %v861_v45 = vpack.c.bf16 %v536_v34, %v535_v22  ;;  %v611_v21 = vmul.f32 %v9329_v14, %v8919_v4 }
  0x6b   : > { %6996 = vmatprep.subr.bf16.mxu1 %v868_v29  ;;  %1371 = vmatprep.mubr.bf16.mxu0 %v8263_v48  ;;  %v501_v29 = vmul.f32 %v9132_v28, %v9144_v36  ;;  %v537_v48 = vmul.f32 %v9165_v60, %v9144_v36  ;;  %v576_v28 = vmul.f32 %v9320_v57, %v8922_v5 }
  0x6c   : > { %1436 = vmatprep.mubr.bf16.mxu1 %v8266_v63  ;;  %v575_v63 = vmul.f32 %v9320_v57, %v8919_v4  ;;  %v870_v13 = vpack.c.bf16 %v554_v41, %v553_v37  ;;  %v612_v60 = vmul.f32 %v9329_v14, %v8922_v5  ;;  %v559_v22 = vmul.f32 %v9320_v57, %v8934_v8  ;;  %v8269_v5 = vld [vmem:[%s10868_s4 + $0x10] ss:$72 sps:$4 sm:$0xff]  }
  0x6d   : > { %6957 = vmatpush3.bf16.msra.mxu0 %v844_v61  ;;  %v8274_v61 = vld [vmem:[%s10868_s4 + $0x1c] ss:$72 sps:$4 sm:$0xff]   ;;  %v560_v34 = vmul.f32 %v9320_v57, %v8937_v9  ;;  %v596_v4 = vmul.f32 %v9329_v14, %v8937_v9  ;;  %v578_v37 = vmul.f32 %v9320_v57, %v8947_v12  ;;  %v9392_v8 = vsub.s32 7, %v8905_v1  ;;  %v8272_v9 = vld [vmem:[%s10868_s4 + $0x18] ss:$72 sps:$4 sm:$0xff]  }
  0x6e   : > { %6997 = vmatpush3.bf16.msra.mxu1 %v860_v62  ;;  %6958 = vmatprep.subr.bf16.mxu0 %v853_v30  ;;  %v846_v62 = vpack.c.bf16 %v502_v40, %v501_v29  ;;  %v862_v30 = vpack.c.bf16 %v538_v56, %v537_v48  ;;  %v895_v41 = vpack.c.bf16 %v612_v60, %v611_v21 }
  0x6f   : > { %6998 = vmatprep.subr.bf16.mxu1 %v869_v10  ;;  %v577_v10 = vmul.f32 %v9320_v57, %v8944_v11  ;;  %v614_v29 = vmul.f32 %v9329_v14, %v8947_v12  ;;  %v561_v40 = vmul.f32 %v9320_v57, %v8958_v17  ;;  %v562_v1 = vmul.f32 %v9320_v57, %v8961_v18 }
  0x70   : > { %1372 = vmatmul.mubr.bf16.gmra.mrb[12].mxu0 %v8265_v35  ;;  %v879_v35 = vpack.c.bf16 %v576_v28, %v575_v63  ;;  %v887_v48 = vpack.c.bf16 %v596_v4, %v595_v31  ;;  %v579_v56 = vmul.f32 %v9320_v57, %v8976_v27  ;;  %v615_v63 = vmul.f32 %v9329_v14, %v8976_v27 }
  0x71   : > { %6959 = vmatpush3.bf16.msra.mxu0 %v845_v43  ;;  %1437 = vmatmul.mubr.bf16.gmra.mrb[12].mxu1 %v8268_v3  ;;  %v613_v3 = vmul.f32 %v9329_v14, %v8944_v11  ;;  %v597_v43 = vmul.f32 %v9329_v14, %v8958_v17  ;;  %v8275_v11 = vld [vmem:[%s10868_s4 + $0xa4] ss:$72 sps:$4 sm:$0xff]   ;;  %v880_v12 = vpack.c.bf16 %v578_v37, %v577_v10 }
  0x72   : > { %6999 = vmatpush3.bf16.msra.mxu1 %v861_v45  ;;  %6960 = vmatprep.subr.bf16.mxu0 %v854_v51  ;;  %v598_v45 = vmul.f32 %v9329_v14, %v8961_v18  ;;  %v580_v51 = vmul.f32 %v9320_v57, %v8983_v32  ;;  %v8278_v17 = vld [vmem:[%s10868_s4 + $0xac] ss:$72 sps:$4 sm:$0xff]   ;;  %v616_v28 = vmul.f32 %v9329_v14, %v8983_v32  ;;  %v8277_v32 = vld [vmem:[%s10868_s4 + $0xa0] ss:$72 sps:$4 sm:$0xff]  }
  0x73   : > { %7000 = vmatprep.subr.bf16.mxu1 %v870_v13  ;;  %1477 = vmatprep.mubr.bf16.mxu0 %v8271_v55  ;;  %v871_v55 = vpack.c.bf16 %v560_v34, %v559_v22  ;;  %v896_v18 = vpack.c.bf16 %v614_v29, %v613_v3  ;;  %v563_v21 = vmul.f32 %v9320_v57, %v8986_v33 }
  0x74   : > { %1542 = vmatprep.mubr.bf16.mxu1 %v8274_v61  ;;  %v872_v61 = vpack.c.bf16 %v562_v1, %v561_v40  ;;  %v888_v13 = vpack.c.bf16 %v598_v45, %v597_v43  ;;  %v564_v60 = vmul.f32 %v9320_v57, %v8995_v38  ;;  %v600_v27 = vmul.f32 %v9329_v14, %v8995_v38  ;;  %v8284_v40 = vld [vmem:[%s10868_s4 + $0x13c] ss:$72 sps:$4 sm:$0xff]  }
  0x75   : > { %6961 = vmatpush3.bf16.msra.mxu0 %v846_v62  ;;  %v599_v62 = vmul.f32 %v9329_v14, %v8986_v33  ;;  %v881_v22 = vpack.c.bf16 %v580_v51, %v579_v56  ;;  %v581_v34 = vmul.f32 %v9320_v57, %v9002_v42  ;;  %v8280_v33 = vld [vmem:[%s10868_s4 + $0xa8] ss:$72 sps:$4 sm:$0xff]   ;;  %v897_v38 = vpack.c.bf16 %v616_v28, %v615_v63 }
  0x76   : > { %7001 = vmatpush3.bf16.msra.mxu1 %v862_v30  ;;  %7026 = vmatprep.subr.bf16.mxu0 %v879_v35  ;;  %v582_v30 = vmul.f32 %v9320_v57, %v9009_v46  ;;  %v617_v31 = vmul.f32 %v9329_v14, %v9002_v42  ;;  %v618_v4 = vmul.f32 %v9329_v14, %v9009_v46 }
  0x77   : > { %7066 = vmatprep.subr.bf16.mxu1 %v895_v41  ;;  %v566_v35 = vmul.f32 %v9320_v57, %v9021_v52  ;;  %v873_v10 = vpack.c.bf16 %v564_v60, %v563_v21  ;;  %v889_v37 = vpack.c.bf16 %v600_v27, %v599_v62  ;;  %v601_v42 = vmul.f32 %v9329_v14, %v9012_v47  ;;  %v8287_v21 = vld [vmem:[%s10868_s4 + $0x1c4] ss:$72 sps:$4 sm:$0xff]  }
  0x78   : > { %1478 = vmatmul.mubr.bf16.vlgmr.msra.gmra.mrb[16].mxu0 %v8269_v5  ;;  %v565_v5 = vmul.f32 %v9320_v57, %v9012_v47  ;;  %v602_v46 = vmul.f32 %v9329_v14, %v9021_v52  ;;  %v882_v41 = vpack.c.bf16 %v582_v30, %v581_v34  ;;  %v583_v3 = vmul.f32 %v9320_v57, %v9024_v53  ;;  %v8725_v34 = vld [vmem:[%s10867_s3] sm:$0xff] }
  0x79   : > { %7027 = vmatpush3.bf16.msra.mxu0 %v871_v55  ;;  %1543 = vmatmul.mubr.bf16.vlgmr.msra.gmra.mrb[16].mxu1 %v8272_v9  ;;  %v8281_v9 = vld [vmem:[%s10868_s4 + $0x134] ss:$72 sps:$4 sm:$0xff]   ;;  %v584_v29 = vmul.f32 %v9320_v57, %v9027_v54  ;;  %v898_v1 = vpack.c.bf16 %v618_v4, %v617_v31  ;;  %v619_v47 = vmul.f32 %v9329_v14, %v9024_v53 }
  0x7a   : > { %7067 = vmatpush3.bf16.msra.mxu1 %v887_v48  ;;  %7028 = vmatprep.subr.bf16.mxu0 %v880_v12  ;;  %v620_v52 = vmul.f32 %v9329_v14, %v9027_v54  ;;  %v874_v43 = vpack.c.bf16 %v566_v35, %v565_v5  ;;  %v567_v45 = vmul.f32 %v9320_v57, %v9036_v59  ;;  %v8283_v54 = vld [vmem:[%s10868_s4 + $0x130] ss:$72 sps:$4 sm:$0xff]   ;;  %v8289_v35 = vld [vmem:[%s10868_s4 + $0x1c0] ss:$72 sps:$4 sm:$0xff]  }
  0x7b   : > { %7068 = vmatprep.subr.bf16.mxu1 %v896_v18  ;;  %1485 = vmatprep.mubr.bf16.mxu0 %v8275_v11  ;;  %v568_v55 = vmul.f32 %v9320_v57, %v9050_v16  ;;  %v890_v48 = vpack.c.bf16 %v602_v46, %v601_v42  ;;  %v603_v11 = vmul.f32 %v9329_v14, %v9036_v59  ;;  %v8286_v59 = vld [vmem:[%s10868_s4 + $0x138] ss:$72 sps:$4 sm:$0xff]  }
  0x7c   : > { %1550 = vmatprep.mubr.bf16.mxu1 %v8278_v17  ;;  %v604_v53 = vmul.f32 %v9329_v14, %v9050_v16  ;;  %v883_v12 = vpack.c.bf16 %v584_v29, %v583_v3  ;;  %v585_v56 = vmul.f32 %v9320_v57, %v9053_v19  ;;  %v586_v51 = vmul.f32 %v9320_v57, %v9062_v24 }
  0x7d   : > { %7029 = vmatpush3.bf16.msra.mxu0 %v872_v61  ;;  %v899_v16 = vpack.c.bf16 %v620_v52, %v619_v47  ;;  %v621_v17 = vmul.f32 %v9329_v14, %v9053_v19  ;;  %v622_v18 = vmul.f32 %v9329_v14, %v9062_v24  ;;  %v569_v63 = vmul.f32 %v9320_v57, %v9065_v25  ;;  %v9554_v52 = vld [vmem:[%s8916_s17 + $0x80] sm:$0xff] }
  0x7e   : > { %7069 = vmatpush3.bf16.msra.mxu1 %v888_v13  ;;  %7030 = vmatprep.subr.bf16.mxu0 %v881_v22  ;;  %v570_v28 = vmul.f32 %v9320_v57, %v9081_v39  ;;  %v875_v61 = vpack.c.bf16 %v568_v55, %v567_v45  ;;  %v891_v13 = vpack.c.bf16 %v604_v53, %v603_v11  ;;  %v9571_v11 = vld [vmem:[%s8916_s17] sm:$0xff] }
  0x7f   : > { %7070 = vmatprep.subr.bf16.mxu1 %v897_v38  ;;  %v605_v19 = vmul.f32 %v9329_v14, %v9065_v25  ;;  %v606_v24 = vmul.f32 %v9329_v14, %v9081_v39  ;;  %v884_v60 = vpack.c.bf16 %v586_v51, %v585_v56  ;;  %v587_v62 = vmul.f32 %v9320_v57, %v9094_v49 }
  0x80   : > { %1486 = vmatmul.mubr.bf16.gmra.mrb[20].mxu0 %v8277_v32  ;;  %v588_v27 = vmul.f32 %v9320_v57, %v9106_v58  ;;  %v8290_v32 = vld [vmem:[%s10868_s4 + $0x1cc] ss:$72 sps:$4 sm:$0xff]   ;;  %v900_v22 = vpack.c.bf16 %v622_v18, %v621_v17  ;;  %v623_v25 = vmul.f32 %v9329_v14, %v9094_v49  ;;  %v624_v39 = vmul.f32 %v9329_v14, %v9106_v58 }
  0x81   : > { %7031 = vmatpush3.bf16.msra.mxu0 %v873_v10  ;;  %1551 = vmatmul.mubr.bf16.gmra.mrb[20].mxu1 %v8280_v33  ;;  %v9515_v30 = vrot.slane %v8725_v34, %v9382_v6  ;;  %v876_v33 = vpack.c.bf16 %v570_v28, %v569_v63  ;;  %v571_v38 = vmul.f32 %v9320_v57, %v9113_v0  ;;  %v9588_v18 = vld [vmem:[%s8916_s17 + $0x90] sm:$0xff]  ;;  %v9593_v28 = vld [vmem:[%s8916_s17 + $0x98] sm:$0xff] }
  0x82   : > { %7071 = vmatpush3.bf16.msra.mxu1 %v889_v37  ;;  %7032 = vmatprep.subr.bf16.mxu0 %v882_v41  ;;  %v572_v31 = vmul.f32 %v9320_v57, %v9120_v20  ;;  %v9522_v49 = vrot.slane %v8725_v34, %v9392_v8  ;;  %v892_v58 = vpack.c.bf16 %v606_v24, %v605_v19 }
  0x83   : > { %7072 = vmatprep.subr.bf16.mxu1 %v898_v1  ;;  %1493 = vmatprep.mubr.bf16.mxu0 %v8281_v9  ;;  %v607_v4 = vmul.f32 %v9329_v14, %v9113_v0  ;;  %v608_v5 = vmul.f32 %v9329_v14, %v9120_v20  ;;  %v885_v10 = vpack.c.bf16 %v588_v27, %v587_v62  ;;  %v8292_v0 = vld [vmem:[%s10868_s4 + $0x1c8] ss:$72 sps:$4 sm:$0xff]   ;;  %v8295_v1 = vld [vmem:[%s10868_s4 + $0x24] ss:$72 sps:$4 sm:$0xff]   ;;  %v9610_v27 = vld [vmem:[%s8916_s17 + $0x18] sm:$0xff] }
  0x84   : > { %1558 = vmatprep.mubr.bf16.mxu1 %v8284_v40  ;;  %v589_v37 = vmul.f32 %v9320_v57, %v9125_v23  ;;  %v590_v9 = vmul.f32 %v9320_v57, %v9128_v26  ;;  %v901_v20 = vpack.c.bf16 %v624_v39, %v623_v25  ;;  %v625_v42 = vmul.f32 %v9329_v14, %v9125_v23 }
  0x85   : > { %7033 = vmatpush3.bf16.msra.mxu0 %v874_v43  ;;  %v626_v46 = vmul.f32 %v9329_v14, %v9128_v26  ;;  %v573_v41 = vmul.f32 %v9320_v57, %v9144_v36  ;;  %v574_v3 = vmul.f32 %v9320_v57, %v9153_v44  ;;  %v877_v29 = vpack.c.bf16 %v572_v31, %v571_v38  ;;  %v9559_v43 = vld [vmem:[%s8916_s17 + $0x88] sm:$0xff]  ;;  %v9622_v31 = vld [vmem:[%s8916_s17 + $0xa0] sm:$0xff] }
  0x86   : > { %7073 = vmatpush3.bf16.msra.mxu1 %v890_v48  ;;  %7034 = vmatprep.subr.bf16.mxu0 %v883_v12  ;;  %v893_v40 = vpack.c.bf16 %v608_v5, %v607_v4  ;;  %v609_v23 = vmul.f32 %v9329_v14, %v9144_v36  ;;  %v610_v26 = vmul.f32 %v9329_v14, %v9153_v44  ;;  %v8298_v36 = vld [vmem:[%s10868_s4 + $0x2c] ss:$72 sps:$4 sm:$0xff]  }
  0x87   : > { %7074 = vmatprep.subr.bf16.mxu1 %v899_v16  ;;  %v886_v47 = vpack.c.bf16 %v590_v9, %v589_v37  ;;  %v647_v57 = vmul.f32 %v9554_v52, %v9515_v30  ;;  %v648_v45 = vmul.f32 %v9559_v43, %v9515_v30  ;;  %v902_v44 = vpack.c.bf16 %v626_v46, %v625_v42  ;;  %v8293_v16 = vld [vmem:[%s10868_s4 + $0x20] ss:$72 sps:$4 sm:$0xff]  }
  0x88   : > { %1494 = vmatmul.mubr.bf16.gmra.mrb[24].mxu0 %v8283_v54  ;;  %v683_v14 = vmul.f32 %v9554_v52, %v9522_v49  ;;  %v684_v55 = vmul.f32 %v9559_v43, %v9522_v49  ;;  %v878_v48 = vpack.c.bf16 %v574_v3, %v573_v41  ;;  %v631_v53 = vmul.f32 %v9571_v11, %v9515_v30  ;;  %v9576_v54 = vld [vmem:[%s8916_s17 + $0x8] sm:$0xff]  ;;  %v9639_v42 = vld [vmem:[%s8916_s17 + $0x20] sm:$0xff] }
  0x89   : > { %7035 = vmatpush3.bf16.msra.mxu0 %v875_v61  ;;  %1559 = vmatmul.mubr.bf16.gmra.mrb[24].mxu1 %v8286_v59  ;;  %v632_v12 = vmul.f32 %v9576_v54, %v9515_v30  ;;  %v894_v56 = vpack.c.bf16 %v610_v26, %v609_v23  ;;  %v667_v51 = vmul.f32 %v9571_v11, %v9522_v49  ;;  %v9627_v4 = vld [vmem:[%s8916_s17 + $0xa8] sm:$0xff]  ;;  %v9656_v26 = vld [vmem:[%s8916_s17 + $0xb0] sm:$0xff] }
  0x8a   : > { %7075 = vmatpush3.bf16.msra.mxu1 %v891_v13  ;;  %7036 = vmatprep.subr.bf16.mxu0 %v884_v60  ;;  %v668_v59 = vmul.f32 %v9576_v54, %v9522_v49  ;;  %v911_v17 = vpack.c.bf16 %v648_v45, %v647_v57  ;;  %v649_v63 = vmul.f32 %v9588_v18, %v9515_v30  ;;  %v8296_v13 = vld [vmem:[%s10868_s4 + $0x28] ss:$72 sps:$4 sm:$0xff]   ;;  %v9661_v57 = vld [vmem:[%s8916_s17 + $0xb8] sm:$0xff] }
  0x8b   : > { %7076 = vmatprep.subr.bf16.mxu1 %v900_v22  ;;  %1501 = vmatprep.mubr.bf16.mxu0 %v8287_v21  ;;  %v650_v61 = vmul.f32 %v9593_v28, %v9515_v30  ;;  %v927_v21 = vpack.c.bf16 %v684_v55, %v683_v14  ;;  %v685_v19 = vmul.f32 %v9588_v18, %v9522_v49  ;;  %v9605_v60 = vld [vmem:[%s8916_s17 + $0x10] sm:$0xff]  ;;  %v9644_v41 = vld [vmem:[%s8916_s17 + $0x28] sm:$0xff] }
  0x8c   : > { %1566 = vmatprep.mubr.bf16.mxu1 %v8290_v32  ;;  %v686_v24 = vmul.f32 %v9593_v28, %v9522_v49  ;;  %v633_v62 = vmul.f32 %v9605_v60, %v9515_v30  ;;  %v634_v32 = vmul.f32 %v9610_v27, %v9515_v30  ;;  %v669_v22 = vmul.f32 %v9605_v60, %v9522_v49 }
  0x8d   : > { %7037 = vmatpush3.bf16.msra.mxu0 %v876_v33  ;;  %v670_v25 = vmul.f32 %v9610_v27, %v9522_v49  ;;  %v903_v39 = vpack.c.bf16 %v632_v12, %v631_v53  ;;  %v919_v34 = vpack.c.bf16 %v668_v59, %v667_v51  ;;  %v8299_v33 = vld [vmem:[%s10868_s4 + $0xb4] ss:$72 sps:$4 sm:$0xff]   ;;  %v912_v38 = vpack.c.bf16 %v650_v61, %v649_v63  ;;  %v8305_v63 = vld [vmem:[%s10868_s4 + $0x144] ss:$72 sps:$4 sm:$0xff]  }
  0x8e   : > { %7077 = vmatpush3.bf16.msra.mxu1 %v892_v58  ;;  %7038 = vmatprep.subr.bf16.mxu0 %v885_v10  ;;  %v651_v58 = vmul.f32 %v9622_v31, %v9515_v30  ;;  %v652_v5 = vmul.f32 %v9627_v4, %v9515_v30  ;;  %v928_v10 = vpack.c.bf16 %v686_v24, %v685_v19  ;;  %v9678_v12 = vld [vmem:[%s8916_s17 + $0x38] sm:$0xff]  ;;  %v9695_v19 = vld [vmem:[%s8916_s17 + $0xc8] sm:$0xff] }
  0x8f   : > { %7078 = vmatprep.subr.bf16.mxu1 %v901_v20  ;;  %v687_v37 = vmul.f32 %v9622_v31, %v9522_v49  ;;  %v688_v9 = vmul.f32 %v9627_v4, %v9522_v49  ;;  %v920_v20 = vpack.c.bf16 %v670_v25, %v669_v22  ;;  %v635_v46 = vmul.f32 %v9639_v42, %v9515_v30 }
  0x90   : > { %1502 = vmatmul.mubr.bf16.gmra.mrb[28].mxu0 %v8289_v35  ;;  %v8302_v35 = vld [vmem:[%s10868_s4 + $0xbc] ss:$72 sps:$4 sm:$0xff]   ;;  %v636_v3 = vmul.f32 %v9644_v41, %v9515_v30  ;;  %v913_v23 = vpack.c.bf16 %v652_v5, %v651_v58  ;;  %v654_v45 = vmul.f32 %v9661_v57, %v9515_v30  ;;  %v689_v14 = vmul.f32 %v9656_v26, %v9522_v49  ;;  %v9712_v58 = vld [vmem:[%s8916_s17 + $0x48] sm:$0xff] }
  0x91   : > { %7039 = vmatpush3.bf16.msra.mxu0 %v877_v29  ;;  %1567 = vmatmul.mubr.bf16.gmra.mrb[28].mxu1 %v8292_v0  ;;  %v904_v0 = vpack.c.bf16 %v634_v32, %v633_v62  ;;  %v671_v29 = vmul.f32 %v9639_v42, %v9522_v49  ;;  %v690_v55 = vmul.f32 %v9661_v57, %v9522_v49  ;;  %v8308_v62 = vld [vmem:[%s10868_s4 + $0x14c] ss:$72 sps:$4 sm:$0xff]  }
  0x92   : > { %7079 = vmatpush3.bf16.msra.mxu1 %v893_v40  ;;  %7040 = vmatprep.subr.bf16.mxu0 %v886_v47  ;;  %v672_v40 = vmul.f32 %v9644_v41, %v9522_v49  ;;  %v653_v47 = vmul.f32 %v9656_v26, %v9515_v30  ;;  %v674_v59 = vmul.f32 %v9678_v12, %v9522_v49 }
  0x93   : > { %7080 = vmatprep.subr.bf16.mxu1 %v902_v44  ;;  %1607 = vmatprep.mubr.bf16.mxu0 %v8295_v1  ;;  %v8301_v1 = vld [vmem:[%s10868_s4 + $0xb0] ss:$72 sps:$4 sm:$0xff]   ;;  %v929_v44 = vpack.c.bf16 %v688_v9, %v687_v37  ;;  %v656_v24 = vmul.f32 %v9695_v19, %v9515_v30  ;;  %v930_v32 = vpack.c.bf16 %v690_v55, %v689_v14  ;;  %v8307_v37 = vld [vmem:[%s10868_s4 + $0x140] ss:$72 sps:$4 sm:$0xff]  }
  0x94   : > { %1672 = vmatprep.mubr.bf16.mxu1 %v8298_v36  ;;  %v8304_v36 = vld [vmem:[%s10868_s4 + $0xb8] ss:$72 sps:$4 sm:$0xff]   ;;  %v914_v61 = vpack.c.bf16 %v654_v45, %v653_v47  ;;  %v692_v25 = vmul.f32 %v9695_v19, %v9522_v49  ;;  %v640_v5 = vmul.f32 %v9712_v58, %v9515_v30  ;;  %v9741_v47 = vld [vmem:[%s8916_s17 + $0x50] sm:$0xff] }
  0x95   : > { %7041 = vmatpush3.bf16.msra.mxu0 %v878_v48  ;;  %v9673_v48 = vld [vmem:[%s8916_s17 + $0x30] sm:$0xff]  ;;  %v641_v45 = vmul.f32 %v9741_v47, %v9515_v30 }
  0x96   : > { %7081 = vmatpush3.bf16.msra.mxu1 %v894_v56  ;;  %7106 = vmatprep.subr.bf16.mxu0 %v911_v17  ;;  %v637_v53 = vmul.f32 %v9673_v48, %v9515_v30  ;;  %v638_v56 = vmul.f32 %v9678_v12, %v9515_v30  ;;  %v673_v51 = vmul.f32 %v9673_v48, %v9522_v49 }
  0x97   : > { %7146 = vmatprep.subr.bf16.mxu1 %v927_v21  ;;  %v921_v17 = vpack.c.bf16 %v672_v40, %v671_v29  ;;  %v8310_v29 = vld [vmem:[%s10868_s4 + $0x148] ss:$72 sps:$4 sm:$0xff]  }
  0x98   : > { %1608 = vmatmul.mubr.bf16.vlgmr.msra.gmra.mrb[32].mxu0 %v8293_v16  ;;  %v905_v16 = vpack.c.bf16 %v636_v3, %v635_v46  ;;  %v9729_v46 = vld [vmem:[%s8916_s17 + $0xd8] sm:$0xff] }
  0x99   : > { %7107 = vmatpush3.bf16.msra.mxu0 %v903_v39  ;;  %1673 = vmatmul.mubr.bf16.vlgmr.msra.gmra.mrb[32].mxu1 %v8296_v13  ;;  %v9690_v13 = vld [vmem:[%s8916_s17 + $0xc0] sm:$0xff]  ;;  %v906_v39 = vpack.c.bf16 %v638_v56, %v637_v53  ;;  %v658_v3 = vmul.f32 %v9729_v46, %v9515_v30  ;;  %v8311_v53 = vld [vmem:[%s10868_s4 + $0x1d4] ss:$72 sps:$4 sm:$0xff]   ;;  %v677_v56 = vmul.f32 %v9741_v47, %v9522_v49 }
  0x9a   : > { %7147 = vmatpush3.bf16.msra.mxu1 %v919_v34  ;;  %7108 = vmatprep.subr.bf16.mxu0 %v912_v38  ;;  %v655_v21 = vmul.f32 %v9690_v13, %v9515_v30  ;;  %v691_v22 = vmul.f32 %v9690_v13, %v9522_v49  ;;  %v922_v34 = vpack.c.bf16 %v674_v59, %v673_v51 }
  0x9b   : > { %7148 = vmatprep.subr.bf16.mxu1 %v928_v10  ;;  %1615 = vmatprep.mubr.bf16.mxu0 %v8299_v33  ;;  %v9707_v33 = vld [vmem:[%s8916_s17 + $0x40] sm:$0xff]  ;;  %v676_v10 = vmul.f32 %v9712_v58, %v9522_v49 }
  0x9c   : > { %1680 = vmatprep.mubr.bf16.mxu1 %v8302_v35  ;;  %v639_v38 = vmul.f32 %v9707_v33, %v9515_v30  ;;  %v675_v35 = vmul.f32 %v9707_v33, %v9522_v49  ;;  %v915_v9 = vpack.c.bf16 %v656_v24, %v655_v21  ;;  %v931_v40 = vpack.c.bf16 %v692_v25, %v691_v22  ;;  %v8314_v21 = vld [vmem:[%s10868_s4 + $0x1dc] ss:$72 sps:$4 sm:$0xff]  }
  0x9d   : > { %7109 = vmatpush3.bf16.msra.mxu0 %v904_v0  ;;  %v9724_v0 = vld [vmem:[%s8916_s17 + $0xd0] sm:$0xff]  ;;  %v9775_v25 = vld [vmem:[%s8916_s17 + $0x60] sm:$0xff] }
  0x9e   : > { %7149 = vmatpush3.bf16.msra.mxu1 %v920_v20  ;;  %7110 = vmatprep.subr.bf16.mxu0 %v913_v23  ;;  %v657_v20 = vmul.f32 %v9724_v0, %v9515_v30  ;;  %v694_v23 = vmul.f32 %v9729_v46, %v9522_v49  ;;  %v907_v14 = vpack.c.bf16 %v640_v5, %v639_v38 }
  0x9f   : > { %7150 = vmatprep.subr.bf16.mxu1 %v929_v44  ;;  %v923_v55 = vpack.c.bf16 %v676_v10, %v675_v35  ;;  %v679_v35 = vmul.f32 %v9775_v25, %v9522_v49 }
  0xa0   : > { %1616 = vmatmul.mubr.bf16.gmra.mrb[36].mxu0 %v8301_v1  ;;  %v693_v1 = vmul.f32 %v9724_v0, %v9522_v49  ;;  %v916_v59 = vpack.c.bf16 %v658_v3, %v657_v20  ;;  %v9792_v20 = vld [vmem:[%s8916_s17 + $0xf0] sm:$0xff] }
  0xa1   : > { %7111 = vmatpush3.bf16.msra.mxu0 %v905_v16  ;;  %1681 = vmatmul.mubr.bf16.gmra.mrb[36].mxu1 %v8304_v36  ;;  %v9746_v36 = vld [vmem:[%s8916_s17 + $0x58] sm:$0xff]  ;;  %v9758_v16 = vld [vmem:[%s8916_s17 + $0xe0] sm:$0xff]  ;;  %v661_v3 = vmul.f32 %v9792_v20, %v9515_v30 }
  0xa2   : > { %7151 = vmatpush3.bf16.msra.mxu1 %v921_v17  ;;  %7112 = vmatprep.subr.bf16.mxu0 %v914_v61  ;;  %v642_v44 = vmul.f32 %v9746_v36, %v9515_v30  ;;  %v678_v51 = vmul.f32 %v9746_v36, %v9522_v49  ;;  %v659_v17 = vmul.f32 %v9758_v16, %v9515_v30 }
  0xa3   : > { %7152 = vmatprep.subr.bf16.mxu1 %v930_v32  ;;  %1623 = vmatprep.mubr.bf16.mxu0 %v8305_v63  ;;  %v9763_v63 = vld [vmem:[%s8916_s17 + $0xe8] sm:$0xff]  ;;  %v932_v24 = vpack.c.bf16 %v694_v23, %v693_v1  ;;  %v8316_v1 = vld [vmem:[%s10868_s4 + $0x1d8] ss:$72 sps:$4 sm:$0xff]  }
  0xa4   : > { %1688 = vmatprep.mubr.bf16.mxu1 %v8308_v62  ;;  %v660_v61 = vmul.f32 %v9763_v63, %v9515_v30  ;;  %v695_v62 = vmul.f32 %v9758_v16, %v9522_v49  ;;  %v696_v32 = vmul.f32 %v9763_v63, %v9522_v49  ;;  %v908_v22 = vpack.c.bf16 %v642_v44, %v641_v45 }
  0xa5   : > { %7113 = vmatpush3.bf16.msra.mxu0 %v906_v39  ;;  %v643_v39 = vmul.f32 %v9775_v25, %v9515_v30  ;;  %v924_v5 = vpack.c.bf16 %v678_v51, %v677_v56  ;;  %v697_v45 = vmul.f32 %v9792_v20, %v9522_v49  ;;  %v9819_v56 = vld [vmem:[%s8916_s17 + $0x78] sm:$0xff] }
  0xa6   : > { %7153 = vmatpush3.bf16.msra.mxu1 %v922_v34  ;;  %7114 = vmatprep.subr.bf16.mxu0 %v915_v9  ;;  %v9780_v34 = vld [vmem:[%s8916_s17 + $0x68] sm:$0xff]  ;;  %v917_v9 = vpack.c.bf16 %v660_v61, %v659_v17  ;;  %v933_v23 = vpack.c.bf16 %v696_v32, %v695_v62  ;;  %v646_v51 = vmul.f32 %v9819_v56, %v9515_v30  ;;  %v8319_v61 = vld [vmem:[%s10868_s4 + $0x34] ss:$72 sps:$4 sm:$0xff]  }
  0xa7   : > { %7154 = vmatprep.subr.bf16.mxu1 %v931_v40  ;;  %v644_v38 = vmul.f32 %v9780_v34, %v9515_v30  ;;  %v680_v10 = vmul.f32 %v9780_v34, %v9522_v49 }
  0xa8   : > { %1624 = vmatmul.mubr.bf16.gmra.mrb[40].mxu0 %v8307_v37  ;;  %v8313_v37 = vld [vmem:[%s10868_s4 + $0x1d0] ss:$72 sps:$4 sm:$0xff]  }
  0xa9   : > { %7115 = vmatpush3.bf16.msra.mxu0 %v907_v14  ;;  %1689 = vmatmul.mubr.bf16.gmra.mrb[40].mxu1 %v8310_v29  ;;  %v9797_v29 = vld [vmem:[%s8916_s17 + $0xf8] sm:$0xff]  ;;  %v9811_v14 = vld [vmem:[%s10867_s3 + $0x8] ss:$0 sm:$0xff]  ;;  %v925_v17 = vpack.c.bf16 %v680_v10, %v679_v35 }
  0xaa   : > { %7155 = vmatpush3.bf16.msra.mxu1 %v923_v55  ;;  %7116 = vmatprep.subr.bf16.mxu0 %v916_v59  ;;  %v662_v40 = vmul.f32 %v9797_v29, %v9515_v30  ;;  %v698_v44 = vmul.f32 %v9797_v29, %v9522_v49  ;;  %v9814_v55 = vld [vmem:[%s8916_s17 + $0x70] sm:$0xff]  ;;  %v909_v59 = vpack.c.bf16 %v644_v38, %v643_v39 }
  0xab   : > { %7156 = vmatprep.subr.bf16.mxu1 %v932_v24  ;;  %1631 = vmatprep.mubr.bf16.mxu0 %v8311_v53  ;;  %v645_v53 = vmul.f32 %v9814_v55, %v9515_v30  ;;  %v682_v24 = vmul.f32 %v9819_v56, %v9522_v49  ;;  %v719_v32 = vmul.f32 %v9554_v52, %v9811_v14 }
  0xac   : > { %1696 = vmatprep.mubr.bf16.mxu1 %v8314_v21  ;;  %v681_v21 = vmul.f32 %v9814_v55, %v9522_v49  ;;  %v918_v62 = vpack.c.bf16 %v662_v40, %v661_v3  ;;  %v720_v30 = vmul.f32 %v9559_v43, %v9811_v14  ;;  %v934_v39 = vpack.c.bf16 %v698_v44, %v697_v45  ;;  %v8317_v43 = vld [vmem:[%s10868_s4 + $0x30] ss:$72 sps:$4 sm:$0xff]   ;;  %v8325_v44 = vld [vmem:[%s10868_s4 + $0xc0] ss:$72 sps:$4 sm:$0xff]  }
  0xad   : > { %7117 = vmatpush3.bf16.msra.mxu0 %v908_v22  ;;  %v8322_v22 = vld [vmem:[%s10868_s4 + $0x3c] ss:$72 sps:$4 sm:$0xff]   ;;  %v910_v38 = vpack.c.bf16 %v646_v51, %v645_v53  ;;  %v704_v52 = vmul.f32 %v9576_v54, %v9811_v14  ;;  %v721_v10 = vmul.f32 %v9588_v18, %v9811_v14  ;;  %v705_v3 = vmul.f32 %v9605_v60, %v9811_v14 }
  0xae   : > { %7157 = vmatpush3.bf16.msra.mxu1 %v924_v5  ;;  %7118 = vmatprep.subr.bf16.mxu0 %v917_v9  ;;  %v926_v49 = vpack.c.bf16 %v682_v24, %v681_v21  ;;  %v703_v5 = vmul.f32 %v9571_v11, %v9811_v14  ;;  %v943_v35 = vpack.c.bf16 %v720_v30, %v719_v32  ;;  %v8320_v11 = vld [vmem:[%s10868_s4 + $0x38] ss:$72 sps:$4 sm:$0xff]   ;;  %v8323_v54 = vld [vmem:[%s10868_s4 + $0xc4] ss:$72 sps:$4 sm:$0xff]  }
  0xaf   : > { %7158 = vmatprep.subr.bf16.mxu1 %v933_v23  ;;  %v706_v18 = vmul.f32 %v9610_v27, %v9811_v14  ;;  %v724_v23 = vmul.f32 %v9627_v4, %v9811_v14  ;;  %v707_v27 = vmul.f32 %v9639_v42, %v9811_v14  ;;  %v708_v45 = vmul.f32 %v9644_v41, %v9811_v14  ;;  %v8328_v42 = vld [vmem:[%s10868_s4 + $0xc8] ss:$72 sps:$4 sm:$0xff]   ;;  %v8329_v41 = vld [vmem:[%s10868_s4 + $0x154] ss:$72 sps:$4 sm:$0xff]  }
  0xb0   : > { %1632 = vmatmul.mubr.bf16.gmra.mrb[44].mxu0 %v8313_v37  ;;  %v722_v37 = vmul.f32 %v9593_v28, %v9811_v14  ;;  %v935_v9 = vpack.c.bf16 %v704_v52, %v703_v5  ;;  %v8326_v28 = vld [vmem:[%s10868_s4 + $0xcc] ss:$72 sps:$4 sm:$0xff]   ;;  %v725_v4 = vmul.f32 %v9656_v26, %v9811_v14  ;;  %v726_v53 = vmul.f32 %v9661_v57, %v9811_v14  ;;  %v8332_v57 = vld [vmem:[%s10868_s4 + $0x15c] ss:$72 sps:$4 sm:$0xff]   ;;  %v8337_v52 = vld [vmem:[%s10868_s4 + $0x1e0] ss:$72 sps:$4 sm:$0xff]  }
  0xb1   : > { %7119 = vmatpush3.bf16.msra.mxu0 %v909_v59  ;;  %1697 = vmatmul.mubr.bf16.gmra.mrb[44].mxu1 %v8316_v1  ;;  %v723_v1 = vmul.f32 %v9622_v31, %v9811_v14  ;;  %v936_v60 = vpack.c.bf16 %v706_v18, %v705_v3  ;;  %v937_v51 = vpack.c.bf16 %v708_v45, %v707_v27  ;;  %v8352_v3 = vld [vmem:[%s10868_s4 + $0x1f0] ss:$72 sps:$4 sm:$0xff]  }
  0xb2   : > { %7159 = vmatpush3.bf16.msra.mxu1 %v925_v17  ;;  %7120 = vmatprep.subr.bf16.mxu0 %v918_v62  ;;  %v944_v40 = vpack.c.bf16 %v722_v37, %v721_v10  ;;  %v709_v59 = vmul.f32 %v9673_v48, %v9811_v14  ;;  %v710_v26 = vmul.f32 %v9678_v12, %v9811_v14  ;;  %v8331_v62 = vld [vmem:[%s10868_s4 + $0x150] ss:$72 sps:$4 sm:$0xff]  }
  0xb3   : > { %7160 = vmatprep.subr.bf16.mxu1 %v934_v39  ;;  %1737 = vmatprep.mubr.bf16.mxu0 %v8319_v61  ;;  %v945_v31 = vpack.c.bf16 %v724_v23, %v723_v1  ;;  %v946_v17 = vpack.c.bf16 %v726_v53, %v725_v4  ;;  %v727_v61 = vmul.f32 %v9690_v13, %v9811_v14  ;;  %v8353_v4 = vld [vmem:[#allocation2] sm:$0xff]  }
  0xb4   : > { %1802 = vmatprep.mubr.bf16.mxu1 %v8322_v22  ;;  %v728_v21 = vmul.f32 %v9695_v19, %v9811_v14  ;;  %v938_v24 = vpack.c.bf16 %v710_v26, %v709_v59  ;;  %v711_v48 = vmul.f32 %v9707_v33, %v9811_v14  ;;  %v712_v12 = vmul.f32 %v9712_v58, %v9811_v14  ;;  %v8334_v33 = vld [vmem:[%s10868_s4 + $0x158] ss:$72 sps:$4 sm:$0xff]   ;;  %v8335_v58 = vld [vmem:[%s10868_s4 + $0x1e4] ss:$72 sps:$4 sm:$0xff]  }
  0xb5   : > { %7121 = vmatpush3.bf16.msra.mxu0 %v910_v38  ;;  %v729_v19 = vmul.f32 %v9724_v0, %v9811_v14  ;;  %v730_v32 = vmul.f32 %v9729_v46, %v9811_v14  ;;  %v713_v22 = vmul.f32 %v9741_v47, %v9811_v14  ;;  %v714_v0 = vmul.f32 %v9746_v36, %v9811_v14  ;;  %v8338_v46 = vld [vmem:[%s10868_s4 + $0x1ec] ss:$72 sps:$4 sm:$0xff]  }
  0xb6   : > { %7161 = vmatpush3.bf16.msra.mxu1 %v926_v49  ;;  %7186 = vmatprep.subr.bf16.mxu0 %v943_v35  ;;  %v947_v13 = vpack.c.bf16 %v728_v21, %v727_v61  ;;  %v939_v30 = vpack.c.bf16 %v712_v12, %v711_v48  ;;  %v731_v38 = vmul.f32 %v9758_v16, %v9811_v14 }
  0xb7   : > { %v948_v39 = vpack.c.bf16 %v730_v32, %v729_v19  ;;  %v732_v49 = vmul.f32 %v9763_v63, %v9811_v14  ;;  %v940_v5 = vpack.c.bf16 %v714_v0, %v713_v22  ;;  %v715_v47 = vmul.f32 %v9775_v25, %v9811_v14  ;;  %v8340_v25 = vld [vmem:[%s10868_s4 + $0x1e8] ss:$72 sps:$4 sm:$0xff]   ;;  %7565 = vmatprep.subr.bf16.mxu1 %v8353_v4 }
  0xb8   : > { %1738 = vmatmul.mubr.bf16.vlgmr.msra.gmra.mrb[48].mxu0 %v8317_v43  ;;  %v716_v36 = vmul.f32 %v9780_v34, %v9811_v14  ;;  %v733_v63 = vmul.f32 %v9792_v20, %v9811_v14  ;;  %v734_v43 = vmul.f32 %v9797_v29, %v9811_v14  ;;  %v8343_v34 = vld [vmem:[%s10868_s4 + $0x44] ss:$72 sps:$4 sm:$0xff]   ;;  %v717_v10 = vmul.f32 %v9814_v55, %v9811_v14 }
  0xb9   : > { %7187 = vmatpush3.bf16.msra.mxu0 %v935_v9  ;;  %1803 = vmatmul.mubr.bf16.vlgmr.msra.gmra.mrb[48].mxu1 %v8320_v11  ;;  %v949_v16 = vpack.c.bf16 %v732_v49, %v731_v38  ;;  %v718_v20 = vmul.f32 %v9819_v56, %v9811_v14  ;;  %v8341_v11 = vld [vmem:[%s10868_s4 + $0x40] ss:$72 sps:$4 sm:$0xff]   ;;  %v8346_v14 = vld [vmem:[%s10868_s4 + $0xd0] ss:$72 sps:$4 sm:$0xff]   ;;  %v8347_v55 = vld [vmem:[%s10868_s4 + $0x164] ss:$72 sps:$4 sm:$0xff]  }
  0xba   : > { %7188 = vmatprep.subr.bf16.mxu0 %v944_v40  ;;  %1745 = vmatprep.mubr.bf16.mxu0 %v8323_v54  ;;  %v941_v35 = vpack.c.bf16 %v716_v36, %v715_v47  ;;  %v950_v37 = vpack.c.bf16 %v734_v43, %v733_v63  ;;  %v8344_v54 = vld [vmem:[%s10868_s4 + $0xd4] ss:$72 sps:$4 sm:$0xff]   ;;  %v8349_v56 = vld [vmem:[%s10868_s4 + $0x160] ss:$72 sps:$4 sm:$0xff]  }
  0xbb   : > { %1810 = vmatprep.mubr.bf16.mxu1 %v8326_v28  ;;  %v942_v29 = vpack.c.bf16 %v718_v20, %v717_v10  ;;  %v8350_v9 = vld [vmem:[%s10868_s4 + $0x1f4] ss:$72 sps:$4 sm:$0xff]   ;;  %v9966_v28 = vld [vmem:[%s10866_s2] ss:$0 sm:$0xff]  ;;  %7566 = vmatpush3.bf16.msra.mxu1 %v8353_v4 }
  0xbc   : > { %v8356_v38 = vld [vmem:[#allocation2 + $0x18] sm:$0xff]  }
  0xbd   : > { %7189 = vmatpush3.bf16.msra.mxu0 %v936_v60 }
  0xbe   : > { %7190 = vmatprep.subr.bf16.mxu0 %v945_v31 }
  0xc0   : > { %1746 = vmatmul.mubr.bf16.gmra.mrb[52].mxu0 %v8325_v44 }
  0xc1   : > { %7191 = vmatpush3.bf16.msra.mxu0 %v937_v51  ;;  %1811 = vmatmul.mubr.bf16.gmra.mrb[52].mxu1 %v8328_v42 }
  0xc2   : > { %7192 = vmatprep.subr.bf16.mxu0 %v946_v17  ;;  %1753 = vmatprep.mubr.bf16.mxu0 %v8329_v41 }
  0xc3   : > { %1818 = vmatprep.mubr.bf16.mxu1 %v8332_v57  ;;  %v8354_v57 = vld [vmem:[#allocation2 + $0x8] sm:$0xff]  }
  0xc4   : > { %7567 = vmatprep.subr.bf16.mxu1 %v8354_v57 }
  0xc5   : > { %7193 = vmatpush3.bf16.msra.mxu0 %v938_v24  ;;  %7568 = vmatpush3.bf16.msra.mxu1 %v8354_v57 }
  0xc6   : > { %7194 = vmatprep.subr.bf16.mxu0 %v947_v13 }
  0xc8   : > { %1754 = vmatmul.mubr.bf16.gmra.mrb[56].mxu0 %v8331_v62 }
  0xc9   : > { %7195 = vmatpush3.bf16.msra.mxu0 %v939_v30  ;;  %1819 = vmatmul.mubr.bf16.gmra.mrb[56].mxu1 %v8334_v33  ;;  %v8355_v33 = vld [vmem:[#allocation2 + $0x10] sm:$0xff]  }
  0xca   : > { %7196 = vmatprep.subr.bf16.mxu0 %v948_v39  ;;  %1761 = vmatprep.mubr.bf16.mxu0 %v8335_v58 }
  0xcb   : > { %1826 = vmatprep.mubr.bf16.mxu1 %v8338_v46  ;;  %7569 = vmatprep.subr.bf16.mxu1 %v8355_v33 }
  0xcc   : > { %7570 = vmatpush3.bf16.msra.mxu1 %v8355_v33 }
  0xcd   : > { %7197 = vmatpush3.bf16.msra.mxu0 %v940_v5  ;;  %7571 = vmatprep.subr.bf16.mxu1 %v8356_v38 }
  0xce   : > { %7198 = vmatprep.subr.bf16.mxu0 %v949_v16 }
  0xd0   : > { %1762 = vmatmul.mubr.bf16.gmra.mrb[60].mxu0 %v8337_v52  ;;  %7572 = vmatpush3.bf16.msra.mxu1 %v8356_v38 }
  0xd1   : > { %7199 = vmatpush3.bf16.msra.mxu0 %v941_v35  ;;  %1827 = vmatmul.mubr.bf16.gmra.mrb[60].mxu1 %v8340_v25  ;;  %v8357_v35 = vld [vmem:[#allocation2 + $0x20] sm:$0xff]  }
  0xd2   : > { %7200 = vmatprep.subr.bf16.mxu0 %v950_v37  ;;  %1867 = vmatprep.mubr.bf16.mxu0 %v8343_v34 }
  0xd3   : > { %7573 = vmatprep.subr.bf16.mxu1 %v8357_v35 }
  0xd4   : > { %7574 = vmatpush3.bf16.msra.mxu1 %v8357_v35 }
  0xd5   : > { %7201 = vmatpush3.bf16.msra.mxu0 %v942_v29 }
  0xd8   : > { %1868 = vmatmul.mubr.bf16.vlgmr.msra.gmra.mrb[64].mxu0 %v8341_v11 }
  0xd9   : > { %1875 = vmatprep.mubr.bf16.mxu0 %v8344_v54 }
  0xe0   : > { %1876 = vmatmul.mubr.bf16.gmra.mrb[68].mxu0 %v8346_v14  ;;  %v8358_v14 = vld [vmem:[#allocation2 + $0x28] sm:$0xff]  }
  0xe1   : > { %1883 = vmatprep.mubr.bf16.mxu0 %v8347_v55  ;;  %7575 = vmatprep.subr.bf16.mxu1 %v8358_v14 }
  0xe2   : > { %7576 = vmatpush3.bf16.msra.mxu1 %v8358_v14 }
  0xe8   : > { %1884 = vmatmul.mubr.bf16.gmra.mrb[72].mxu0 %v8349_v56 }
  0xe9   : > { %1891 = vmatprep.mubr.bf16.mxu0 %v8350_v9 }
  0xf0   : > { %1892 = vmatmul.mubr.bf16.gmra.mrb[76].mxu0 %v8352_v3 }
 0x12b   : > { %v6882_v18 = vpop.f32.mrb[0].mxu0 }
 0x12c   : > { %v6883_v40 = vpop.f32.mrb[1].mxu0  ;;  %v6922_v1 = vpop.f32.mrb[0].mxu1 }
 0x12d   : > { %v6884_v23 = vadd.f32 %v6883_v40, %v6882_v18  ;;  %v6885_v60 = vpop.f32.mrb[2].mxu0  ;;  %v6923_v27 = vpop.f32.mrb[1].mxu1 }
 0x12e   : > { %v6886_v45 = vpop.f32.mrb[3].mxu0  ;;  %v6924_v44 = vadd.f32 %v6923_v27, %v6922_v1  ;;  %v6925_v31 = vpop.f32.mrb[2].mxu1 }
 0x12f   : > { %v1350_v53 = vadd.f32 %v6884_v23, %v9966_v28  ;;  %v6887_v42 = vadd.f32 %v6886_v45, %v6885_v60  ;;  %v6926_v41 = vpop.f32.mrb[3].mxu1  ;;  %v8359_v45 = vld [vmem:[#allocation2 + $0x30] sm:$0xff]  }
 0x130   : > { %v6927_v51 = vadd.f32 %v6926_v41, %v6925_v31  ;;  %7577 = vmatprep.subr.bf16.mxu1 %v8359_v45 }
 0x131   : > { %v1353_v59 = vadd.f32 %v6887_v42, %v9966_v28  ;;  %v9970_v26 = vadd.f32 %v6924_v44, %v1350_v53  ;;  %7578 = vmatpush3.bf16.msra.mxu1 %v8359_v45 }
 0x133   : > { %v9972_v17 = vadd.f32 %v6927_v51, %v1353_v59  ;;  %v6888_v61 = vpop.f32.mrb[4].mxu0  ;;  %v8360_v51 = vld [vmem:[#allocation2 + $0x38] sm:$0xff]  }
 0x134   : > { %v6889_v21 = vpop.f32.mrb[5].mxu0  ;;  %v6928_v24 = vpop.f32.mrb[4].mxu1  ;;  %7579 = vmatprep.subr.bf16.mxu1 %v8360_v51 }
 0x135   : > { %v6890_v48 = vadd.f32 %v6889_v21, %v6888_v61  ;;  %v6891_v12 = vpop.f32.mrb[6].mxu0  ;;  %v6929_v62 = vpop.f32.mrb[5].mxu1  ;;  %7580 = vmatpush3.bf16.msra.mxu1 %v8360_v51 }
 0x136   : > { %v6892_v13 = vpop.f32.mrb[7].mxu0  ;;  %v6930_v19 = vadd.f32 %v6929_v62, %v6928_v24  ;;  %v6931_v32 = vpop.f32.mrb[6].mxu1 }
 0x137   : > { %v1358_v58 = vadd.f32 %v6890_v48, %v9966_v28  ;;  %v6893_v30 = vadd.f32 %v6892_v13, %v6891_v12  ;;  %v6932_v22 = vpop.f32.mrb[7].mxu1 }
 0x138   : > { %v6933_v0 = vadd.f32 %v6932_v22, %v6931_v32 }
 0x139   : > { %v1361_v46 = vadd.f32 %v6893_v30, %v9966_v28  ;;  %v9976_v39 = vadd.f32 %v6930_v19, %v1358_v58 }
 0x13b   : > { %v9978_v49 = vadd.f32 %v6933_v0, %v1361_v46  ;;  %v6894_v5 = vpop.f32.mrb[8].mxu0 }
 0x13c   : > { %v6895_v47 = vpop.f32.mrb[9].mxu0  ;;  %v6934_v36 = vpop.f32.mrb[8].mxu1 }
 0x13d   : > { %v6896_v52 = vadd.f32 %v6895_v47, %v6894_v5  ;;  %v6897_v16 = vpop.f32.mrb[10].mxu0  ;;  %v6935_v63 = vpop.f32.mrb[9].mxu1 }
 0x13e   : > { %v6898_v43 = vpop.f32.mrb[11].mxu0  ;;  %v6936_v25 = vadd.f32 %v6935_v63, %v6934_v36  ;;  %v6937_v34 = vpop.f32.mrb[10].mxu1 }
 0x13f   : > { %v1366_v10 = vadd.f32 %v6896_v52, %v9966_v28  ;;  %v6899_v20 = vadd.f32 %v6898_v43, %v6897_v16  ;;  %v6938_v37 = vpop.f32.mrb[11].mxu1 }
 0x140   : > { %v6939_v29 = vadd.f32 %v6938_v37, %v6937_v34 }
 0x141   : > { %v1369_v11 = vadd.f32 %v6899_v20, %v9966_v28  ;;  %v9982_v54 = vadd.f32 %v6936_v25, %v1366_v10 }
 0x143   : > { %v9984_v55 = vadd.f32 %v6939_v29, %v1369_v11  ;;  %v6900_v56 = vpop.f32.mrb[12].mxu0 }
 0x144   : > { %v6901_v9 = vpop.f32.mrb[13].mxu0  ;;  %v6940_v3 = vpop.f32.mrb[12].mxu1 }
 0x145   : > { %v6902_v18 = vadd.f32 %v6901_v9, %v6900_v56  ;;  %v6903_v40 = vpop.f32.mrb[14].mxu0  ;;  %v6941_v1 = vpop.f32.mrb[13].mxu1 }
 0x146   : > { %v6904_v23 = vpop.f32.mrb[15].mxu0  ;;  %v6942_v60 = vadd.f32 %v6941_v1, %v6940_v3  ;;  %v6943_v27 = vpop.f32.mrb[14].mxu1 }
 0x147   : > { %v1374_v44 = vadd.f32 %v6902_v18, %v9966_v28  ;;  %v6905_v31 = vadd.f32 %v6904_v23, %v6903_v40  ;;  %v6944_v4 = vpop.f32.mrb[15].mxu1 }
 0x148   : > { %v6945_v53 = vadd.f32 %v6944_v4, %v6943_v27 }
 0x149   : > { %v1377_v42 = vadd.f32 %v6905_v31, %v9966_v28  ;;  %v9988_v41 = vadd.f32 %v6942_v60, %v1374_v44 }
 0x14b   : > { %v9990_v59 = vadd.f32 %v6945_v53, %v1377_v42  ;;  %v6962_v57 = vpop.f32.mrb[16].mxu0 }
 0x14c   : > { %v6963_v61 = vpop.f32.mrb[17].mxu0  ;;  %v7002_v21 = vpop.f32.mrb[16].mxu1 }
 0x14d   : > { %v6964_v24 = vadd.f32 %v6963_v61, %v6962_v57  ;;  %v6965_v48 = vpop.f32.mrb[18].mxu0  ;;  %v7003_v12 = vpop.f32.mrb[17].mxu1 }
 0x14e   : > { %v6966_v62 = vpop.f32.mrb[19].mxu0  ;;  %v7004_v13 = vadd.f32 %v7003_v12, %v7002_v21  ;;  %v7005_v19 = vpop.f32.mrb[18].mxu1 }
 0x14f   : > { %v1480_v32 = vadd.f32 %v6964_v24, %v9970_v26  ;;  %v6967_v28 = vadd.f32 %v6966_v62, %v6965_v48  ;;  %v7006_v33 = vpop.f32.mrb[19].mxu1 }
 0x150   : > { %v7007_v58 = vadd.f32 %v7006_v33, %v7005_v19 }
 0x151   : > { %v1483_v30 = vadd.f32 %v6967_v28, %v9972_v17  ;;  %v1545_v22 = vadd.f32 %v7004_v13, %v1480_v32 }
 0x153   : > { %v1548_v0 = vadd.f32 %v7007_v58, %v1483_v30  ;;  %v6968_v46 = vpop.f32.mrb[20].mxu0 }
 0x154   : > { %v6969_v38 = vpop.f32.mrb[21].mxu0  ;;  %v7008_v5 = vpop.f32.mrb[20].mxu1 }
 0x155   : > { %v6970_v47 = vadd.f32 %v6969_v38, %v6968_v46  ;;  %v6971_v36 = vpop.f32.mrb[22].mxu0  ;;  %v7009_v52 = vpop.f32.mrb[21].mxu1 }
 0x156   : > { %v6972_v16 = vpop.f32.mrb[23].mxu0  ;;  %v7010_v63 = vadd.f32 %v7009_v52, %v7008_v5  ;;  %v7011_v43 = vpop.f32.mrb[22].mxu1 }
 0x157   : > { %v1488_v25 = vadd.f32 %v6970_v47, %v9976_v39  ;;  %v6973_v34 = vadd.f32 %v6972_v16, %v6971_v36  ;;  %v7012_v26 = vpop.f32.mrb[23].mxu1 }
 0x158   : > { %v7013_v35 = vadd.f32 %v7012_v26, %v7011_v43 }
 0x159   : > { %v1491_v10 = vadd.f32 %v6973_v34, %v9978_v49  ;;  %v1553_v20 = vadd.f32 %v7010_v63, %v1488_v25 }
 0x15b   : > { %v1556_v17 = vadd.f32 %v7013_v35, %v1491_v10  ;;  %v6974_v37 = vpop.f32.mrb[24].mxu0 }
 0x15c   : > { %v6975_v29 = vpop.f32.mrb[25].mxu0  ;;  %v7014_v11 = vpop.f32.mrb[24].mxu1 }
 0x15d   : > { %v6976_v14 = vadd.f32 %v6975_v29, %v6974_v37  ;;  %v6977_v56 = vpop.f32.mrb[26].mxu0  ;;  %v7015_v9 = vpop.f32.mrb[25].mxu1 }
 0x15e   : > { %v6978_v3 = vpop.f32.mrb[27].mxu0  ;;  %v7016_v18 = vadd.f32 %v7015_v9, %v7014_v11  ;;  %v7017_v40 = vpop.f32.mrb[26].mxu1 }
 0x15f   : > { %v1496_v1 = vadd.f32 %v6976_v14, %v9982_v54  ;;  %v6979_v23 = vadd.f32 %v6978_v3, %v6977_v56  ;;  %v7018_v39 = vpop.f32.mrb[27].mxu1 }
 0x160   : > { %v7019_v60 = vadd.f32 %v7018_v39, %v7017_v40 }
 0x161   : > { %v1499_v27 = vadd.f32 %v6979_v23, %v9984_v55  ;;  %v1561_v45 = vadd.f32 %v7016_v18, %v1496_v1 }
 0x163   : > { %v1564_v49 = vadd.f32 %v7019_v60, %v1499_v27  ;;  %v6980_v44 = vpop.f32.mrb[28].mxu0 }
 0x164   : > { %v6981_v31 = vpop.f32.mrb[29].mxu0  ;;  %v7020_v4 = vpop.f32.mrb[28].mxu1 }
 0x165   : > { %v6982_v53 = vadd.f32 %v6981_v31, %v6980_v44  ;;  %v6983_v42 = vpop.f32.mrb[30].mxu0  ;;  %v7021_v51 = vpop.f32.mrb[29].mxu1 }
 0x166   : > { %v6984_v57 = vpop.f32.mrb[31].mxu0  ;;  %v7022_v61 = vadd.f32 %v7021_v51, %v7020_v4  ;;  %v7023_v21 = vpop.f32.mrb[30].mxu1 }
 0x167   : > { %v1504_v24 = vadd.f32 %v6982_v53, %v9988_v41  ;;  %v6985_v48 = vadd.f32 %v6984_v57, %v6983_v42  ;;  %v7024_v54 = vpop.f32.mrb[31].mxu1 }
 0x168   : > { %v7025_v12 = vadd.f32 %v7024_v54, %v7023_v21 }
 0x169   : > { %v1507_v62 = vadd.f32 %v6985_v48, %v9990_v59  ;;  %v1569_v13 = vadd.f32 %v7022_v61, %v1504_v24 }
 0x16b   : > { %v1572_v55 = vadd.f32 %v7025_v12, %v1507_v62  ;;  %v7042_v19 = vpop.f32.mrb[32].mxu0 }
 0x16c   : > { %v7043_v32 = vpop.f32.mrb[33].mxu0  ;;  %v7082_v28 = vpop.f32.mrb[32].mxu1 }
 0x16d   : > { %v7044_v33 = vadd.f32 %v7043_v32, %v7042_v19  ;;  %v7045_v58 = vpop.f32.mrb[34].mxu0  ;;  %v7083_v30 = vpop.f32.mrb[33].mxu1 }
 0x16e   : > { %v7046_v46 = vpop.f32.mrb[35].mxu0  ;;  %v7084_v38 = vadd.f32 %v7083_v30, %v7082_v28  ;;  %v7085_v5 = vpop.f32.mrb[34].mxu1 }
 0x16f   : > { %v1610_v47 = vadd.f32 %v7044_v33, %v1545_v22  ;;  %v7047_v36 = vadd.f32 %v7046_v46, %v7045_v58  ;;  %v7086_v52 = vpop.f32.mrb[35].mxu1 }
 0x170   : > { %v7087_v41 = vadd.f32 %v7086_v52, %v7085_v5 }
 0x171   : > { %v1613_v16 = vadd.f32 %v7047_v36, %v1548_v0  ;;  %v1675_v63 = vadd.f32 %v7084_v38, %v1610_v47 }
 0x173   : > { %v1678_v43 = vadd.f32 %v7087_v41, %v1613_v16  ;;  %v7048_v25 = vpop.f32.mrb[36].mxu0 }
 0x174   : > { %v7049_v59 = vpop.f32.mrb[37].mxu0  ;;  %v7088_v34 = vpop.f32.mrb[36].mxu1 }
 0x175   : > { %v7050_v26 = vadd.f32 %v7049_v59, %v7048_v25  ;;  %v7051_v35 = vpop.f32.mrb[38].mxu0  ;;  %v7089_v10 = vpop.f32.mrb[37].mxu1 }
 0x176   : > { %v7052_v37 = vpop.f32.mrb[39].mxu0  ;;  %v7090_v29 = vadd.f32 %v7089_v10, %v7088_v34  ;;  %v7091_v11 = vpop.f32.mrb[38].mxu1 }
 0x177   : > { %v1618_v14 = vadd.f32 %v7050_v26, %v1553_v20  ;;  %v7053_v56 = vadd.f32 %v7052_v37, %v7051_v35  ;;  %v7092_v9 = vpop.f32.mrb[39].mxu1 }
 0x178   : > { %v7093_v3 = vadd.f32 %v7092_v9, %v7091_v11 }
 0x179   : > { %v1621_v22 = vadd.f32 %v7053_v56, %v1556_v17  ;;  %v1683_v18 = vadd.f32 %v7090_v29, %v1618_v14 }
 0x17b   : > { %v1686_v40 = vadd.f32 %v7093_v3, %v1621_v22  ;;  %v7054_v1 = vpop.f32.mrb[40].mxu0 }
 0x17c   : > { %v7055_v0 = vpop.f32.mrb[41].mxu0  ;;  %v7094_v23 = vpop.f32.mrb[40].mxu1 }
 0x17d   : > { %v7056_v39 = vadd.f32 %v7055_v0, %v7054_v1  ;;  %v7057_v60 = vpop.f32.mrb[42].mxu0  ;;  %v7095_v27 = vpop.f32.mrb[41].mxu1 }
 0x17e   : > { %v7058_v44 = vpop.f32.mrb[43].mxu0  ;;  %v7096_v31 = vadd.f32 %v7095_v27, %v7094_v23  ;;  %v7097_v4 = vpop.f32.mrb[42].mxu1 }
 0x17f   : > { %v1626_v53 = vadd.f32 %v7056_v39, %v1561_v45  ;;  %v7059_v42 = vadd.f32 %v7058_v44, %v7057_v60  ;;  %v7098_v51 = vpop.f32.mrb[43].mxu1 }
 0x180   : > { %v7099_v57 = vadd.f32 %v7098_v51, %v7097_v4 }
 0x181   : > { %v1629_v20 = vadd.f32 %v7059_v42, %v1564_v49  ;;  %v1691_v61 = vadd.f32 %v7096_v31, %v1626_v53 }
 0x183   : > { %v1694_v21 = vadd.f32 %v7099_v57, %v1629_v20  ;;  %v7060_v24 = vpop.f32.mrb[44].mxu0 }
 0x184   : > { %v7061_v17 = vpop.f32.mrb[45].mxu0  ;;  %v7100_v48 = vpop.f32.mrb[44].mxu1 }
 0x185   : > { %v7062_v54 = vadd.f32 %v7061_v17, %v7060_v24  ;;  %v7063_v12 = vpop.f32.mrb[46].mxu0  ;;  %v7101_v62 = vpop.f32.mrb[45].mxu1 }
 0x186   : > { %v7064_v19 = vpop.f32.mrb[47].mxu0  ;;  %v7102_v32 = vadd.f32 %v7101_v62, %v7100_v48  ;;  %v7103_v28 = vpop.f32.mrb[46].mxu1 }
 0x187   : > { %v1634_v33 = vadd.f32 %v7062_v54, %v1569_v13  ;;  %v7065_v58 = vadd.f32 %v7064_v19, %v7063_v12  ;;  %v7104_v30 = vpop.f32.mrb[47].mxu1 }
 0x188   : > { %v7105_v46 = vadd.f32 %v7104_v30, %v7103_v28 }
 0x189   : > { %v1637_v45 = vadd.f32 %v7065_v58, %v1572_v55  ;;  %v1699_v38 = vadd.f32 %v7102_v32, %v1634_v33 }
 0x18b   : > { %v1702_v5 = vadd.f32 %v7105_v46, %v1637_v45  ;;  %v7122_v47 = vpop.f32.mrb[48].mxu0 }
 0x18c   : > { %v7123_v49 = vpop.f32.mrb[49].mxu0  ;;  %v7162_v36 = vpop.f32.mrb[48].mxu1 }
 0x18d   : > { %v7124_v52 = vadd.f32 %v7123_v49, %v7122_v47  ;;  %v7125_v41 = vpop.f32.mrb[50].mxu0  ;;  %v7163_v16 = vpop.f32.mrb[49].mxu1 }
 0x18e   : > { %v7126_v25 = vpop.f32.mrb[51].mxu0  ;;  %v7164_v59 = vadd.f32 %v7163_v16, %v7162_v36  ;;  %v7165_v34 = vpop.f32.mrb[50].mxu1 }
 0x18f   : > { %v1740_v26 = vadd.f32 %v7124_v52, %v1675_v63  ;;  %v7127_v35 = vadd.f32 %v7126_v25, %v7125_v41  ;;  %v7166_v10 = vpop.f32.mrb[51].mxu1 }
 0x190   : > { %v7167_v37 = vadd.f32 %v7166_v10, %v7165_v34 }
 0x191   : > { %v1743_v13 = vadd.f32 %v7127_v35, %v1678_v43  ;;  %v1805_v29 = vadd.f32 %v7164_v59, %v1740_v26 }
 0x193   : > { %v1808_v11 = vadd.f32 %v7167_v37, %v1743_v13  ;;  %v7128_v14 = vpop.f32.mrb[52].mxu0 }
 0x194   : > { %v7129_v55 = vpop.f32.mrb[53].mxu0  ;;  %v7168_v56 = vpop.f32.mrb[52].mxu1 }
 0x195   : > { %v7130_v9 = vadd.f32 %v7129_v55, %v7128_v14  ;;  %v7131_v3 = vpop.f32.mrb[54].mxu0  ;;  %v7169_v22 = vpop.f32.mrb[53].mxu1 }
 0x196   : > { %v7132_v1 = vpop.f32.mrb[55].mxu0  ;;  %v7170_v0 = vadd.f32 %v7169_v22, %v7168_v56  ;;  %v7171_v23 = vpop.f32.mrb[54].mxu1 }
 0x197   : > { %v1748_v39 = vadd.f32 %v7130_v9, %v1683_v18  ;;  %v7133_v60 = vadd.f32 %v7132_v1, %v7131_v3  ;;  %v7172_v27 = vpop.f32.mrb[55].mxu1 }
 0x198   : > { %v7173_v44 = vadd.f32 %v7172_v27, %v7171_v23 }
 0x199   : > { %v1751_v63 = vadd.f32 %v7133_v60, %v1686_v40  ;;  %v1813_v31 = vadd.f32 %v7170_v0, %v1748_v39 }
 0x19b   : > { %v1816_v4 = vadd.f32 %v7173_v44, %v1751_v63  ;;  %v7134_v53 = vpop.f32.mrb[56].mxu0 }
 0x19c   : > { %v7135_v43 = vpop.f32.mrb[57].mxu0  ;;  %v7174_v42 = vpop.f32.mrb[56].mxu1 }
 0x19d   : > { %v7136_v51 = vadd.f32 %v7135_v43, %v7134_v53  ;;  %v7137_v57 = vpop.f32.mrb[58].mxu0  ;;  %v7175_v20 = vpop.f32.mrb[57].mxu1 }
 0x19e   : > { %v7138_v24 = vpop.f32.mrb[59].mxu0  ;;  %v7176_v17 = vadd.f32 %v7175_v20, %v7174_v42  ;;  %v7177_v48 = vpop.f32.mrb[58].mxu1 }
 0x19f   : > { %v1756_v54 = vadd.f32 %v7136_v51, %v1691_v61  ;;  %v7139_v12 = vadd.f32 %v7138_v24, %v7137_v57  ;;  %v7178_v62 = vpop.f32.mrb[59].mxu1 }
 0x1a0   : > { %v7179_v19 = vadd.f32 %v7178_v62, %v7177_v48 }
 0x1a1   : > { %v1759_v18 = vadd.f32 %v7139_v12, %v1694_v21  ;;  %v1821_v32 = vadd.f32 %v7176_v17, %v1756_v54 }
 0x1a3   : > { %v1824_v28 = vadd.f32 %v7179_v19, %v1759_v18  ;;  %v7140_v33 = vpop.f32.mrb[60].mxu0 }
 0x1a4   : > { %v7141_v40 = vpop.f32.mrb[61].mxu0  ;;  %v7180_v58 = vpop.f32.mrb[60].mxu1 }
 0x1a5   : > { %v7142_v30 = vadd.f32 %v7141_v40, %v7140_v33  ;;  %v7143_v46 = vpop.f32.mrb[62].mxu0  ;;  %v7181_v45 = vpop.f32.mrb[61].mxu1 }
 0x1a6   : > { %v7144_v47 = vpop.f32.mrb[63].mxu0  ;;  %v7182_v49 = vadd.f32 %v7181_v45, %v7180_v58  ;;  %v7183_v36 = vpop.f32.mrb[62].mxu1 }
 0x1a7   : > { %v1764_v52 = vadd.f32 %v7142_v30, %v1699_v38  ;;  %v7145_v41 = vadd.f32 %v7144_v47, %v7143_v46  ;;  %v7184_v16 = vpop.f32.mrb[63].mxu1 }
 0x1a8   : > { %v7185_v25 = vadd.f32 %v7184_v16, %v7183_v36 }
 0x1a9   : > { %v1767_v61 = vadd.f32 %v7145_v41, %v1702_v5  ;;  %v1829_v59 = vadd.f32 %v7182_v49, %v1764_v52 }
 0x1ab   : > { %v1832_v34 = vadd.f32 %v7185_v25, %v1767_v61  ;;  %v7202_v26 = vpop.f32.mrb[64].mxu0 }
 0x1ac   : > { %v7203_v21 = vpop.f32.mrb[65].mxu0 }
 0x1ad   : > { %v7204_v35 = vadd.f32 %v7203_v21, %v7202_v26  ;;  %v7205_v10 = vpop.f32.mrb[66].mxu0 }
 0x1ae   : > { %v7206_v37 = vpop.f32.mrb[67].mxu0 }
 0x1af   : > { %v1870_v13 = vadd.f32 %v7204_v35, %v1805_v29  ;;  %v7207_v14 = vadd.f32 %v7206_v37, %v7205_v10 }
 0x1b1   : > { %v1900_v55 = vmul.f32 0.5, %v1870_v13  ;;  %v1873_v56 = vadd.f32 %v7207_v14, %v1808_v11 }
 0x1b3   : > { %8611 = vtanh.f32 %v1900_v55  ;;  %v1901_v9 = vmul.f32 0.5, %v1873_v56  ;;  %v7208_v3 = vpop.f32.mrb[68].mxu0 }
 0x1b4   : > { %v7209_v22 = vpop.f32.mrb[69].mxu0 }
 0x1b5   : > { %8613 = vtanh.f32 %v1901_v9  ;;  %v7210_v38 = vadd.f32 %v7209_v22, %v7208_v3  ;;  %v7211_v1 = vpop.f32.mrb[70].mxu0 }
 0x1b6   : > { %v7212_v0 = vpop.f32.mrb[71].mxu0 }
 0x1b7   : > { %v1878_v5 = vadd.f32 %v7210_v38, %v1813_v31  ;;  %v7213_v23 = vadd.f32 %v7212_v0, %v7211_v1 }
 0x1b9   : > { %v1902_v39 = vmul.f32 0.5, %v1878_v5  ;;  %v1881_v60 = vadd.f32 %v7213_v23, %v1816_v4 }
 0x1bb   : > { %8615 = vtanh.f32 %v1902_v39  ;;  %v1903_v27 = vmul.f32 0.5, %v1881_v60  ;;  %v7214_v44 = vpop.f32.mrb[72].mxu0 }
 0x1bc   : > { %v7215_v63 = vpop.f32.mrb[73].mxu0 }
 0x1bd   : > { %v8612_v29 = vpop.eup %8611  ;;  %8617 = vtanh.f32 %v1903_v27  ;;  %v7216_v53 = vadd.f32 %v7215_v63, %v7214_v44  ;;  %v7217_v11 = vpop.f32.mrb[74].mxu0  ;;  %v8366_v27 = vld [vmem:[%s10869_s5 + $0xc] ss:$20 sps:$4 sm:$0xff]  }
 0x1be   : > { %v1916_v43 = vadd.f32 1.0, %v8612_v29  ;;  %v7218_v42 = vpop.f32.mrb[75].mxu0  ;;  %v6568_v44 = vld [vmem:[%s10866_s2 + $0x1] ss:$0 sm:$0xff] }
 0x1bf   : > { %v8614_v51 = vpop.eup %8613  ;;  %v1886_v57 = vadd.f32 %v7216_v53, %v1821_v32  ;;  %v7219_v20 = vadd.f32 %v7218_v42, %v7217_v11 }
 0x1c0   : > { %v1924_v24 = vmul.f32 0.5, %v1916_v43  ;;  %v1917_v17 = vadd.f32 1.0, %v8614_v51 }
 0x1c1   : > { %v1904_v48 = vmul.f32 0.5, %v1886_v57  ;;  %v1889_v31 = vadd.f32 %v7219_v20, %v1824_v28 }
 0x1c2   : > { %v1925_v54 = vmul.f32 0.5, %v1917_v17  ;;  %v1932_v62 = vmul.f32 %v1924_v24, %v1870_v13 }
 0x1c3   : > { %8619 = vtanh.f32 %v1904_v48  ;;  %v1905_v4 = vmul.f32 0.5, %v1889_v31  ;;  %v7220_v12 = vpop.f32.mrb[76].mxu0 }
 0x1c4   : > { %v1933_v19 = vmul.f32 %v1925_v54, %v1873_v56  ;;  %v7221_v18 = vpop.f32.mrb[77].mxu0 }
 0x1c5   : > { %v8616_v33 = vpop.eup %8615  ;;  %8621 = vtanh.f32 %v1905_v4  ;;  %v7222_v40 = vadd.f32 %v7221_v18, %v7220_v12  ;;  %v7223_v58 = vpop.f32.mrb[78].mxu0 }
 0x1c6   : > { %v1918_v30 = vadd.f32 1.0, %v8616_v33  ;;  %v7224_v46 = vpop.f32.mrb[79].mxu0  ;;  %v1957_v45 = vpack.c.bf16 %v1933_v19, %v1932_v62 }
 0x1c7   : > { %v8618_v32 = vpop.eup %8617  ;;  %v1894_v47 = vadd.f32 %v7222_v40, %v1829_v59  ;;  %v7225_v49 = vadd.f32 %v7224_v46, %v7223_v58  ;;  %v10888_v58 = vld [vmem:[#allocation6_spill] sm:$0xff] }
 0x1c8   : > { %v1926_v36 = vmul.f32 0.5, %v1918_v30  ;;  %v1919_v52 = vadd.f32 1.0, %v8618_v32  ;;  %7581 = vmatprep.mubr.bf16.mxu1 %v1957_v45 }
 0x1c9   : > { %v1906_v28 = vmul.f32 0.5, %v1894_v47  ;;  %v1897_v41 = vadd.f32 %v7225_v49, %v1832_v34 }
 0x1ca   : > { %v1927_v16 = vmul.f32 0.5, %v1919_v52  ;;  %v1934_v61 = vmul.f32 %v1926_v36, %v1878_v5  ;;  %v10889_v36 = vld [vmem:[#allocation5_spill] sm:$0xff] }
 0x1cb   : > { %8623 = vtanh.f32 %v1906_v28  ;;  %v1907_v25 = vmul.f32 0.5, %v1897_v41 }
 0x1cc   : > { %v1935_v26 = vmul.f32 %v1927_v16, %v1881_v60  ;;  %v8363_v60 = vld [vmem:[%s10869_s5 + $0x4] ss:$20 sps:$4 sm:$0xff]  }
 0x1cd   : > { %v8620_v21 = vpop.eup %8619  ;;  %8625 = vtanh.f32 %v1907_v25  ;;  %2337 = vmatprep.mubr.bf16.mxu0 %v8363_v60 }
 0x1ce   : > { %v1958_v35 = vpack.c.bf16 %v1935_v26, %v1934_v61  ;;  %v1920_v10 = vadd.f32 1.0, %v8620_v21 }
 0x1cf   : > { %v8622_v37 = vpop.eup %8621 }
 0x1d0   : > { %v1928_v13 = vmul.f32 0.5, %v1920_v10  ;;  %v1921_v14 = vadd.f32 1.0, %v8622_v37  ;;  %7582 = vmatmul.mubr.bf16.vlgmr.msra.gmra.mrb[64].mxu1 %v1958_v35 }
 0x1d2   : > { %v1929_v59 = vmul.f32 0.5, %v1921_v14  ;;  %v1936_v55 = vmul.f32 %v1928_v13, %v1886_v57 }
 0x1d4   : > { %v1937_v56 = vmul.f32 %v1929_v59, %v1889_v31  ;;  %v6577_v31 = vld [vmem:[%s10867_s3 + $0x10] sm:$0xff] }
 0x1d5   : > { %v8624_v9 = vpop.eup %8623  ;;  %v10013_v4 = vrot.slane %v6577_v31, %v9097_v50  ;;  %v10016_v12 = vrot.slane %v6577_v31, %v9382_v6  ;;  %v10019_v33 = vrot.slane %v6577_v31, %v8908_v2  ;;  %v10022_v40 = vrot.slane %v6577_v31, %v9284_v15 }
 0x1d6   : > { %v1922_v3 = vadd.f32 1.0, %v8624_v9  ;;  %v1959_v22 = vpack.c.bf16 %v1937_v56, %v1936_v55  ;;  %v10025_v30 = vrot.slane %v6577_v31, %v10888_v58  ;;  %v10030_v49 = vrot.slane %v6577_v31, %v9392_v8 }
 0x1d7   : > { %v8626_v34 = vpop.eup %8625  ;;  %v10033_v52 = vrot.slane %v6577_v31, %v10889_v36  ;;  %v10038_v26 = vrot.slane %v6577_v31, %v9291_v7 }
 0x1d8   : > { %v1930_v38 = vmul.f32 0.5, %v1922_v3  ;;  %v1923_v1 = vadd.f32 1.0, %v8626_v34  ;;  %7585 = vmatprep.mubr.bf16.mxu1 %v1959_v22 }
 0x1da   : > { %v1931_v0 = vmul.f32 0.5, %v1923_v1  ;;  %v1938_v5 = vmul.f32 %v1930_v38, %v1894_v47 }
 0x1dc   : > { %v1939_v23 = vmul.f32 %v1931_v0, %v1897_v41 }
 0x1de   : > { %v1960_v39 = vpack.c.bf16 %v1939_v23, %v1938_v5 }
 0x1e0   : > { %7586 = vmatmul.mubr.bf16.gmra.mrb[68].mxu1 %v1960_v39 }
 0x1e1   : > { %2378 = vmatprep.mubr.bf16.mxu1 %v8366_v27 }
 0x2a3   : > { %v7583_v63 = vpop.f32.mrb[64].mxu1 }
 0x2a4   : > { %v2056_v29 = vadd.f32 %v7583_v63, %v6568_v44  ;;  %v2047_v53 = vpop.f32.mrb[65].mxu1 }
 0x2a5   : > { %v2048_v11 = vadd.f32 %v6568_v44, %v2047_v53  ;;  %v7584_v43 = vpop.f32.mrb[66].mxu1 }
 0x2a6   : > { %v2080_v42 = vmul.f32 0.5, %v2056_v29  ;;  %v2059_v51 = vadd.f32 %v7584_v43, %v6568_v44  ;;  %v2050_v57 = vpop.f32.mrb[67].mxu1 }
 0x2a7   : > { %v2078_v20 = vmul.f32 0.5, %v2048_v11  ;;  %v2051_v24 = vadd.f32 %v6568_v44, %v2050_v57 }
 0x2a8   : > { %8627 = vtanh.f32 %v2080_v42  ;;  %v2081_v17 = vmul.f32 0.5, %v2059_v51 }
 0x2a9   : > { %8629 = vtanh.f32 %v2078_v20  ;;  %v2079_v48 = vmul.f32 0.5, %v2051_v24 }
 0x2aa   : > { %8631 = vtanh.f32 %v2081_v17 }
 0x2ab   : > { %8633 = vtanh.f32 %v2079_v48 }
 0x2b2   : > { %v8628_v54 = vpop.eup %8627 }
 0x2b3   : > { %v8630_v62 = vpop.eup %8629  ;;  %v2096_v19 = vadd.f32 1.0, %v8628_v54  ;;  %v7587_v18 = vpop.f32.mrb[68].mxu1 }
 0x2b4   : > { %v8632_v46 = vpop.eup %8631  ;;  %v2094_v45 = vadd.f32 1.0, %v8630_v62  ;;  %v10027_v32 = vadd.f32 %v7587_v18, %v6568_v44  ;;  %v2063_v47 = vpop.f32.mrb[69].mxu1 }
 0x2b5   : > { %v8634_v28 = vpop.eup %8633  ;;  %v2104_v41 = vmul.f32 0.5, %v2096_v19  ;;  %v2097_v16 = vadd.f32 1.0, %v8632_v46  ;;  %v10035_v25 = vadd.f32 %v6568_v44, %v2063_v47  ;;  %v7588_v61 = vpop.f32.mrb[70].mxu1 }
 0x2b6   : > { %v2102_v21 = vmul.f32 0.5, %v2094_v45  ;;  %v2095_v35 = vadd.f32 1.0, %v8634_v28  ;;  %v2084_v10 = vmul.f32 0.5, %v10027_v32  ;;  %v10041_v37 = vadd.f32 %v7588_v61, %v6568_v44  ;;  %v2066_v13 = vpop.f32.mrb[71].mxu1 }
 0x2b7   : > { %v10043_v14 = vmul.f32 %v2104_v41, %v2056_v29  ;;  %v2105_v59 = vmul.f32 0.5, %v2097_v16  ;;  %v2082_v55 = vmul.f32 0.5, %v10035_v25  ;;  %v10046_v56 = vadd.f32 %v6568_v44, %v2066_v13 }
 0x2b8   : > { %v10048_v9 = vmul.f32 %v2102_v21, %v2048_v11  ;;  %v2103_v3 = vmul.f32 0.5, %v2095_v35  ;;  %8635 = vtanh.f32 %v2084_v10  ;;  %v2085_v22 = vmul.f32 0.5, %v10041_v37 }
 0x2b9   : > { %v10051_v34 = vmul.f32 %v2105_v59, %v2059_v51  ;;  %8637 = vtanh.f32 %v2082_v55  ;;  %v2083_v38 = vmul.f32 0.5, %v10046_v56  ;;  %v2152_v1 = vmul.f32 %v10013_v4, %v10043_v14 }
 0x2ba   : > { %v10056_v0 = vmul.f32 %v2103_v3, %v2051_v24  ;;  %8639 = vtanh.f32 %v2085_v22  ;;  %v2150_v5 = vmul.f32 %v10013_v4, %v10048_v9  ;;  %v2198_v23 = vmul.f32 %v10016_v12, %v10048_v9 }
 0x2bb   : > { %8641 = vtanh.f32 %v2083_v38  ;;  %v2126_v39 = vmul.f32 %v10019_v33, %v10048_v9  ;;  %v2174_v60 = vmul.f32 %v10022_v40, %v10048_v9  ;;  %v2153_v27 = vmul.f32 %v10013_v4, %v10051_v34 }
 0x2bc   : > { %v2151_v44 = vmul.f32 %v10013_v4, %v10056_v0  ;;  %v2199_v63 = vmul.f32 %v10016_v12, %v10056_v0  ;;  %v2127_v29 = vmul.f32 %v10019_v33, %v10056_v0  ;;  %v2175_v53 = vmul.f32 %v10022_v40, %v10056_v0 }
 0x2bd   : > { %v2245_v11 = vpack.c.bf16 %v2153_v27, %v2152_v1  ;;  %v2200_v43 = vmul.f32 %v10016_v12, %v10043_v14  ;;  %v2201_v42 = vmul.f32 %v10016_v12, %v10051_v34  ;;  %v2128_v51 = vmul.f32 %v10019_v33, %v10043_v14 }
 0x2be   : > { %v2244_v57 = vpack.c.bf16 %v2151_v44, %v2150_v5  ;;  %v2260_v20 = vpack.c.bf16 %v2199_v63, %v2198_v23  ;;  %v2236_v24 = vpack.c.bf16 %v2127_v29, %v2126_v39  ;;  %v2252_v17 = vpack.c.bf16 %v2175_v53, %v2174_v60 }
 0x2bf   : > { %v2261_v48 = vpack.c.bf16 %v2201_v42, %v2200_v43  ;;  %v2129_v31 = vmul.f32 %v10019_v33, %v10051_v34  ;;  %v2176_v54 = vmul.f32 %v10022_v40, %v10043_v14  ;;  %v2177_v62 = vmul.f32 %v10022_v40, %v10051_v34 }
 0x2c0   : > { %7238 = vmatprep.subr.bf16.mxu0 %v2244_v57  ;;  %7260 = vmatprep.subr.bf16.mxu1 %v2260_v20  ;;  %v10090_v19 = vmul.f32 %v10025_v30, %v10048_v9  ;;  %v10094_v18 = vmul.f32 %v10025_v30, %v10056_v0  ;;  %v10098_v46 = vmul.f32 %v10030_v49, %v10048_v9 }
 0x2c1   : > { %7239 = vmatpush3.bf16.msra.mxu0 %v2236_v24  ;;  %7261 = vmatpush3.bf16.msra.mxu1 %v2252_v17  ;;  %v2237_v45 = vpack.c.bf16 %v2129_v31, %v2128_v51  ;;  %v2253_v47 = vpack.c.bf16 %v2177_v62, %v2176_v54  ;;  %v10102_v28 = vmul.f32 %v10030_v49, %v10056_v0 }
 0x2c2   : > { %v8636_v41 = vpop.eup %8635  ;;  %7240 = vmatprep.subr.bf16.mxu0 %v2245_v11  ;;  %7262 = vmatprep.subr.bf16.mxu1 %v2261_v48  ;;  %v2248_v16 = vpack.c.bf16 %v10094_v18, %v10090_v19  ;;  %v10108_v61 = vmul.f32 %v10033_v52, %v10048_v9  ;;  %v10112_v21 = vmul.f32 %v10033_v52, %v10056_v0 }
 0x2c3   : > { %v8638_v35 = vpop.eup %8637  ;;  %v2100_v10 = vadd.f32 1.0, %v8636_v41  ;;  %v2264_v13 = vpack.c.bf16 %v10102_v28, %v10098_v46  ;;  %v10118_v59 = vmul.f32 %v10038_v26, %v10048_v9  ;;  %v10122_v55 = vmul.f32 %v10038_v26, %v10056_v0 }
 0x2c4   : > { %v8640_v3 = vpop.eup %8639  ;;  %v2098_v22 = vadd.f32 1.0, %v8638_v35  ;;  %v2240_v38 = vpack.c.bf16 %v10112_v21, %v10108_v61  ;;  %v10128_v1 = vmul.f32 %v10025_v30, %v10043_v14  ;;  %v10132_v5 = vmul.f32 %v10025_v30, %v10051_v34 }
 0x2c5   : > { %v8642_v23 = vpop.eup %8641  ;;  %v2108_v39 = vmul.f32 0.5, %v2100_v10  ;;  %v2101_v60 = vadd.f32 1.0, %v8640_v3  ;;  %7241 = vmatpush3.bf16.msra.mxu0 %v2237_v45  ;;  %7263 = vmatpush3.bf16.msra.mxu1 %v2253_v47  ;;  %v10138_v44 = vmul.f32 %v10030_v49, %v10043_v14  ;;  %v10144_v11 = vmul.f32 %v10030_v49, %v10051_v34 }
 0x2c6   : > { %v2106_v63 = vmul.f32 0.5, %v2098_v22  ;;  %v2099_v29 = vadd.f32 1.0, %v8642_v23  ;;  %v10151_v51 = vmul.f32 %v10033_v52, %v10043_v14  ;;  %v10155_v57 = vmul.f32 %v10033_v52, %v10051_v34 }
 0x2c7   : > { %v10147_v43 = vmul.f32 %v2108_v39, %v10027_v32  ;;  %v2109_v42 = vmul.f32 0.5, %v2101_v60  ;;  %v10164_v32 = vmul.f32 %v10038_v26, %v10043_v14 }
 0x2c8   : > { %v10158_v20 = vmul.f32 %v2106_v63, %v10035_v25  ;;  %v2107_v24 = vmul.f32 0.5, %v2099_v29 }
 0x2c9   : > { %v10167_v48 = vmul.f32 %v2109_v42, %v10041_v37  ;;  %v2156_v31 = vmul.f32 %v10013_v4, %v10147_v43  ;;  %v2204_v54 = vmul.f32 %v10016_v12, %v10147_v43  ;;  %v2132_v25 = vmul.f32 %v10019_v33, %v10147_v43 }
 0x2ca   : > { %v10176_v62 = vmul.f32 %v2107_v24, %v10046_v56  ;;  %v2154_v45 = vmul.f32 %v10013_v4, %v10158_v20  ;;  %v2202_v47 = vmul.f32 %v10016_v12, %v10158_v20  ;;  %v2130_v37 = vmul.f32 %v10019_v33, %v10158_v20 }
 0x2cb   : > { %v2178_v41 = vmul.f32 %v10022_v40, %v10158_v20  ;;  %v2157_v35 = vmul.f32 %v10013_v4, %v10167_v48  ;;  %v2205_v10 = vmul.f32 %v10016_v12, %v10167_v48  ;;  %v2133_v56 = vmul.f32 %v10019_v33, %v10167_v48 }
 0x2cc   : > { %v2155_v3 = vmul.f32 %v10013_v4, %v10176_v62  ;;  %v2203_v22 = vmul.f32 %v10016_v12, %v10176_v62  ;;  %v2131_v23 = vmul.f32 %v10019_v33, %v10176_v62  ;;  %v2179_v39 = vmul.f32 %v10022_v40, %v10176_v62 }
 0x2cd   : > { %v2247_v60 = vpack.c.bf16 %v2157_v35, %v2156_v31  ;;  %v2263_v63 = vpack.c.bf16 %v2205_v10, %v2204_v54  ;;  %v2239_v29 = vpack.c.bf16 %v2133_v56, %v2132_v25  ;;  %v2180_v42 = vmul.f32 %v10022_v40, %v10147_v43 }
 0x2ce   : > { %v2246_v24 = vpack.c.bf16 %v2155_v3, %v2154_v45  ;;  %v2262_v17 = vpack.c.bf16 %v2203_v22, %v2202_v47  ;;  %v2238_v53 = vpack.c.bf16 %v2131_v23, %v2130_v37  ;;  %v2254_v27 = vpack.c.bf16 %v2179_v39, %v2178_v41  ;;  %v6579_v22 = vld [vmem:[%s10867_s3 + $0x18] ss:$0 sm:$0xff] }
 0x2cf   : > { %v2181_v4 = vmul.f32 %v10022_v40, %v10167_v48  ;;  %v2241_v12 = vpack.c.bf16 %v10155_v57, %v10151_v51  ;;  %v2189_v33 = vmul.f32 %v10038_v26, %v10051_v34  ;;  %v2166_v31 = vmul.f32 %v10025_v30, %v10158_v20 }
 0x2d0   : > { %7242 = vmatprep.subr.bf16.mxu0 %v2246_v24  ;;  %7264 = vmatprep.subr.bf16.mxu1 %v2262_v17  ;;  %v2167_v54 = vmul.f32 %v10025_v30, %v10176_v62  ;;  %v2214_v25 = vmul.f32 %v10030_v49, %v10158_v20  ;;  %v2215_v40 = vmul.f32 %v10030_v49, %v10176_v62 }
 0x2d1   : > { %7243 = vmatpush3.bf16.msra.mxu0 %v2238_v53  ;;  %7265 = vmatpush3.bf16.msra.mxu1 %v2254_v27  ;;  %v2255_v51 = vpack.c.bf16 %v2181_v4, %v2180_v42  ;;  %v2257_v57 = vpack.c.bf16 %v2189_v33, %v10164_v32  ;;  %v2142_v45 = vmul.f32 %v10033_v52, %v10158_v20  ;;  %v8373_v4 = vld [vmem:[#allocation2 + $0x68] sm:$0xff]   ;;  %v8375_v33 = vld [vmem:[#allocation2 + $0x78] sm:$0xff]  }
 0x2d2   : > { %7244 = vmatprep.subr.bf16.mxu0 %v2247_v60  ;;  %7266 = vmatprep.subr.bf16.mxu1 %v2263_v63  ;;  %v2250_v17 = vpack.c.bf16 %v2167_v54, %v2166_v31  ;;  %v2266_v47 = vpack.c.bf16 %v2215_v40, %v2214_v25  ;;  %v2143_v37 = vmul.f32 %v10033_v52, %v10176_v62  ;;  %v6580_v25 = vld [vmem:[%s10866_s2 + $0x2] ss:$0 sm:$0xff] }
 0x2d3   : > { %v2190_v41 = vmul.f32 %v10038_v26, %v10158_v20  ;;  %v2191_v53 = vmul.f32 %v10038_v26, %v10176_v62  ;;  %v2168_v27 = vmul.f32 %v10025_v30, %v10147_v43  ;;  %v2169_v32 = vmul.f32 %v10025_v30, %v10167_v48 }
 0x2d4   : > { %v2242_v35 = vpack.c.bf16 %v2143_v37, %v2142_v45  ;;  %v2216_v10 = vmul.f32 %v10030_v49, %v10147_v43  ;;  %v2217_v56 = vmul.f32 %v10030_v49, %v10167_v48  ;;  %v2144_v3 = vmul.f32 %v10033_v52, %v10147_v43 }
 0x2d5   : > { %7245 = vmatpush3.bf16.msra.mxu0 %v2239_v29  ;;  %7267 = vmatpush3.bf16.msra.mxu1 %v2255_v51  ;;  %v2258_v23 = vpack.c.bf16 %v2191_v53, %v2190_v41  ;;  %v2251_v39 = vpack.c.bf16 %v2169_v32, %v2168_v27  ;;  %v2145_v30 = vmul.f32 %v10033_v52, %v10167_v48 }
 0x2d6   : > { %7246 = vmatprep.subr.bf16.mxu0 %v2248_v16  ;;  %7268 = vmatprep.subr.bf16.mxu1 %v2264_v13  ;;  %v2267_v49 = vpack.c.bf16 %v2217_v56, %v2216_v10  ;;  %v2192_v60 = vmul.f32 %v10038_v26, %v10147_v43  ;;  %v2193_v63 = vmul.f32 %v10038_v26, %v10167_v48 }
 0x2d7   : > { %v2243_v29 = vpack.c.bf16 %v2145_v30, %v2144_v3  ;;  %v2222_v42 = vmul.f32 %v6579_v22, %v10048_v9  ;;  %v2223_v52 = vmul.f32 %v6579_v22, %v10056_v0  ;;  %v2224_v24 = vmul.f32 %v6579_v22, %v10043_v14 }
 0x2d8   : > { %v2259_v19 = vpack.c.bf16 %v2193_v63, %v2192_v60  ;;  %v2225_v18 = vmul.f32 %v6579_v22, %v10051_v34  ;;  %v2226_v46 = vmul.f32 %v6579_v22, %v10158_v20  ;;  %v2227_v28 = vmul.f32 %v6579_v22, %v10176_v62  ;;  %v8376_v20 = vld [vmem:[#allocation2 + $0x80] sm:$0xff]  }
 0x2d9   : > { %7247 = vmatpush3.bf16.msra.mxu0 %v2240_v38  ;;  %v10890_v26 = vpack.c.bf16 %v10122_v55, %v10118_v59  ;;  %v2268_v9 = vpack.c.bf16 %v2223_v52, %v2222_v42  ;;  %v2228_v0 = vmul.f32 %v6579_v22, %v10147_v43  ;;  %v2229_v14 = vmul.f32 %v6579_v22, %v10167_v48  ;;  %v8361_v59 = vld [vmem:[%s10869_s5] ss:$20 sps:$4 sm:$0xff]   ;;  %v8364_v55 = vld [vmem:[%s10869_s5 + $0x8] ss:$20 sps:$4 sm:$0xff]  }
 0x2da   : > { %v10891_v34 = vpack.c.bf16 %v10132_v5, %v10128_v1  ;;  %v10892_v16 = vpack.c.bf16 %v10144_v11, %v10138_v44  ;;  %v2269_v13 = vpack.c.bf16 %v2225_v18, %v2224_v24  ;;  %v2270_v61 = vpack.c.bf16 %v2227_v28, %v2226_v46  ;;  %v8367_v1 = vld [vmem:[%s10869_s5 + $0x10] ss:$20 sps:$4 sm:$0xff]   ;;  %v8369_v44 = vld [vmem:[#allocation2 + $0x48] sm:$0xff]   ;;  %v8371_v43 = vld [vmem:[#allocation2 + $0x58] sm:$0xff]  }
 0x2db   : > { %7269 = vmatpush3.bf16.msra.mxu1 %v10890_v26  ;;  %v2271_v21 = vpack.c.bf16 %v2229_v14, %v2228_v0  ;;  %v8801_v38 = vmov 0.0   ;;  %v8368_v5 = vld [vmem:[#allocation2 + $0x40] sm:$0xff]   ;;  %v8370_v11 = vld [vmem:[#allocation2 + $0x50] sm:$0xff]   ;;  %v8378_v48 = vld [vmem:[#allocation2 + $0x88] sm:$0xff]  }
 0x2dc   : > { %7248 = vmatprep.subr.bf16.mxu0 %v10891_v34  ;;  %7270 = vmatprep.subr.bf16.mxu1 %v10892_v16  ;;  %v8372_v62 = vld [vmem:[#allocation2 + $0x60] sm:$0xff]   ;;  %v8379_v0 = vld [vmem:[#allocation2 + $0xc8] sm:$0xff]   ;;  %v8380_v14 = vld [vmem:[#allocation2 + $0x90] sm:$0xff]  }
 0x2dd   : > { %7249 = vmatpush3.bf16.msra.mxu0 %v2241_v12  ;;  %v8374_v12 = vld [vmem:[#allocation2 + $0x70] sm:$0xff]   ;;  %v8377_v26 = vld [vmem:[#allocation2 + $0xc0] sm:$0xff]   ;;  %v8382_v16 = vld [vmem:[#allocation2 + $0x98] sm:$0xff]  }
 0x2de   : > { %7250 = vmatprep.subr.bf16.mxu0 %v2250_v17  ;;  %v8381_v34 = vld [vmem:[#allocation2 + $0xd0] sm:$0xff]  }
 0x2df   : > { %7271 = vmatpush3.bf16.msra.mxu1 %v2257_v57 }
 0x2e0   : > { %7272 = vmatprep.subr.bf16.mxu1 %v2266_v47 }
 0x2e1   : > { %7251 = vmatpush3.bf16.msra.mxu0 %v2242_v35 }
 0x2e2   : > { %7252 = vmatprep.subr.bf16.mxu0 %v2251_v39 }
 0x2e3   : > { %7273 = vmatpush3.bf16.msra.mxu1 %v2258_v23 }
 0x2e4   : > { %7274 = vmatprep.subr.bf16.mxu1 %v2267_v49 }
 0x2e5   : > { %7253 = vmatpush3.bf16.msra.mxu0 %v2243_v29 }
 0x2e6   : > { %7589 = vmatprep.subr.bf16.mxu0 %v8801_v38 }
 0x2e7   : > { %7275 = vmatpush3.bf16.msra.mxu1 %v2259_v19 }
 0x2e8   : > { %7601 = vmatprep.subr.bf16.mxu1 %v8801_v38  ;;  %2338 = vmatmul.mubr.bf16.vlgmr.msra.gmra.mrb[80].mxu0 %v8361_v59  ;;  %v8386_v59 = vld [vmem:[#allocation2 + $0xa8] sm:$0xff]  }
 0x2e9   : > { %7590 = vmatpush3.bf16.msra.mxu0 %v2268_v9  ;;  %7597 = vmatprep.mubr.msk.bf16.mxu0 %vm8802_vm0, %v8801_v38 }
 0x2ea   : > { %2379 = vmatmul.mubr.bf16.vlgmr.msra.gmra.mrb[72].mxu1 %v8364_v55  ;;  %7591 = vmatprep.subr.bf16.mxu0 %v8801_v38  ;;  %v8387_v55 = vld [vmem:[#allocation2 + $0xe8] sm:$0xff]  }
 0x2eb   : > { %7617 = vmatprep.mubr.msk.bf16.mxu1 %vm8802_vm0, %v8801_v38  ;;  %7602 = vmatpush3.bf16.msra.mxu1 %v8368_v5  ;;  %v8389_v5 = vld [vmem:[#allocation2 + $0xf0] sm:$0xff]  }
 0x2ec   : > { %7603 = vmatprep.subr.bf16.mxu1 %v8801_v38 }
 0x2ed   : > { %7592 = vmatpush3.bf16.msra.mxu0 %v2269_v13  ;;  %v8383_v13 = vld [vmem:[#allocation2 + $0xd8] sm:$0xff]  }
 0x2ee   : > { %7593 = vmatprep.subr.bf16.mxu0 %v8801_v38 }
 0x2ef   : > { %7604 = vmatpush3.bf16.msra.mxu1 %v8369_v44  ;;  %v8390_v44 = vld [vmem:[#allocation2 + $0xb8] sm:$0xff]  }
 0x2f0   : > { %7605 = vmatprep.subr.bf16.mxu1 %v8801_v38 }
 0x2f1   : > { %7594 = vmatpush3.bf16.msra.mxu0 %v2270_v61  ;;  %v8384_v61 = vld [vmem:[#allocation2 + $0xa0] sm:$0xff]  }
 0x2f2   : > { %7595 = vmatprep.subr.bf16.mxu0 %v8801_v38 }
 0x2f3   : > { %7606 = vmatpush3.bf16.msra.mxu1 %v8370_v11  ;;  %v8391_v11 = vld [vmem:[#allocation2 + $0xf8] sm:$0xff]  }
 0x2f4   : > { %7607 = vmatprep.subr.bf16.mxu1 %v8801_v38 }
 0x2f5   : > { %7596 = vmatpush3.bf16.msra.mxu0 %v2271_v21  ;;  %v8385_v21 = vld [vmem:[#allocation2 + $0xe0] sm:$0xff]  }
 0x2f6   : > { %7621 = vmatprep.subr.bf16.mxu0 %v8801_v38 }
 0x2f7   : > { %7608 = vmatpush3.bf16.msra.mxu1 %v8371_v43  ;;  %v6587_v43 = vld [vmem:[%s10866_s2 + $0x3] ss:$0 sm:$0xff] }
 0x2f8   : > { %7598 = vmatmul.mubr.msk.bf16.vlgmr.msra.gmra.mrb[84].mxu0 %vm2301_vm1, %v8367_v1  ;;  %7609 = vmatprep.subr.bf16.mxu1 %v8801_v38  ;;  %v8388_v1 = vld [vmem:[#allocation2 + $0xb0] sm:$0xff]  }
 0x2f9   : > { %7637 = vmatprep.mubr.msk.bf16.mxu0 %vm8802_vm0, %v8801_v38  ;;  %7622 = vmatpush3.bf16.msra.mxu0 %v8376_v20 }
 0x2fa   : > { %7623 = vmatprep.subr.bf16.mxu0 %v8801_v38 }
 0x2fb   : > { %7610 = vmatpush3.bf16.msra.mxu1 %v8372_v62 }
 0x2fc   : > { %7611 = vmatprep.subr.bf16.mxu1 %v8801_v38 }
 0x2fd   : > { %7624 = vmatpush3.bf16.msra.mxu0 %v8378_v48 }
 0x2fe   : > { %7625 = vmatprep.subr.bf16.mxu0 %v8801_v38 }
 0x2ff   : > { %7612 = vmatpush3.bf16.msra.mxu1 %v8373_v4 }
 0x300   : > { %7613 = vmatprep.subr.bf16.mxu1 %v8801_v38 }
 0x301   : > { %7626 = vmatpush3.bf16.msra.mxu0 %v8380_v14 }
 0x302   : > { %7627 = vmatprep.subr.bf16.mxu0 %v8801_v38 }
 0x303   : > { %7614 = vmatpush3.bf16.msra.mxu1 %v8374_v12 }
 0x304   : > { %7615 = vmatprep.subr.bf16.mxu1 %v8801_v38 }
 0x305   : > { %7628 = vmatpush3.bf16.msra.mxu0 %v8382_v16 }
 0x306   : > { %7629 = vmatprep.subr.bf16.mxu0 %v8801_v38 }
 0x307   : > { %7616 = vmatpush3.bf16.msra.mxu1 %v8375_v33 }
 0x308   : > { %7641 = vmatprep.subr.bf16.mxu1 %v8801_v38 }
 0x309   : > { %7630 = vmatpush3.bf16.msra.mxu0 %v8384_v61 }
 0x30a   : > { %7631 = vmatprep.subr.bf16.mxu0 %v8801_v38 }
 0x30d   : > { %7632 = vmatpush3.bf16.msra.mxu0 %v8386_v59 }
 0x30e   : > { %7633 = vmatprep.subr.bf16.mxu0 %v8801_v38 }
 0x311   : > { %7634 = vmatpush3.bf16.msra.mxu0 %v8388_v1 }
 0x312   : > { %7635 = vmatprep.subr.bf16.mxu0 %v8801_v38 }
 0x315   : > { %7636 = vmatpush3.bf16.msra.mxu0 %v8390_v44 }
 0x316   : > { %7661 = vmatprep.subr.bf16.mxu0 %v8801_v38 }
 0x3bb   : > { %v7254_v31 = vpop.f32.mrb[80].mxu0 }
 0x3bc   : > { %v7255_v40 = vpop.f32.mrb[81].mxu0 }
 0x3bd   : > { %v7276_v54 = vpop.f32.mrb[72].mxu1  ;;  %v7256_v57 = vadd.f32 %v7255_v40, %v7254_v31  ;;  %v7257_v45 = vpop.f32.mrb[82].mxu0 }
 0x3be   : > { %v7277_v51 = vpop.f32.mrb[73].mxu1  ;;  %v7258_v37 = vpop.f32.mrb[83].mxu0 }
 0x3bf   : > { %v7278_v17 = vadd.f32 %v7277_v51, %v7276_v54  ;;  %v7279_v47 = vpop.f32.mrb[74].mxu1  ;;  %v2340_v53 = vadd.f32 %v7256_v57, %v6580_v25  ;;  %v7259_v27 = vadd.f32 %v7258_v37, %v7257_v45 }
 0x3c0   : > { %v7280_v41 = vpop.f32.mrb[75].mxu1 }
 0x3c1   : > { %v7281_v32 = vadd.f32 %v7280_v41, %v7279_v47  ;;  %v2343_v35 = vadd.f32 %v7259_v27, %v6580_v25  ;;  %v2381_v10 = vadd.f32 %v7278_v17, %v2340_v53  ;;  %v8392_v41 = vld [vmem:[#allocation2 + $0x100] sm:$0xff]   ;;  %v8393_v27 = vld [vmem:[#allocation2 + $0x108] sm:$0xff]  }
 0x3c3   : > { %v2384_v56 = vadd.f32 %v7281_v32, %v2343_v35  ;;  %v8394_v32 = vld [vmem:[#allocation2 + $0x110] sm:$0xff]   ;;  %v8395_v35 = vld [vmem:[#allocation2 + $0x118] sm:$0xff]  }
 0x3cb   : > { %v2421_v3 = vpop.f32.mrb[84].mxu0 }
 0x3cc   : > { %v2422_v22 = vadd.f32 %v2421_v3, %v2381_v10  ;;  %v7599_v23 = vpop.f32.mrb[85].mxu0  ;;  %v8396_v10 = vld [vmem:[#allocation2 + $0x120] sm:$0xff]   ;;  %v8398_v3 = vld [vmem:[#allocation2 + $0x130] sm:$0xff]  }
 0x3cd   : > { %v2424_v39 = vpop.f32.mrb[86].mxu0  ;;  %v6598_v23 = vld [vmem:[%s10866_s2 + $0x4] ss:$0 sm:$0xff] }
 0x3ce   : > { %v2428_v30 = vmul.f32 0.5, %v2422_v22  ;;  %v2425_v49 = vadd.f32 %v2424_v39, %v2384_v56  ;;  %v7600_v60 = vpop.f32.mrb[87].mxu0  ;;  %v8397_v56 = vld [vmem:[#allocation2 + $0x128] sm:$0xff]   ;;  %v6607_v39 = vld [vmem:[%s10866_s2 + $0x5] ss:$0 sm:$0xff] }
 0x3d0   : > { %8643 = vtanh.f32 %v2428_v30  ;;  %v2429_v63 = vmul.f32 0.5, %v2425_v49 }
 0x3d2   : > { %8645 = vtanh.f32 %v2429_v63 }
 0x3da   : > { %v8644_v29 = vpop.eup %8643 }
 0x3db   : > { %v2432_v42 = vadd.f32 1.0, %v8644_v29 }
 0x3dc   : > { %v8646_v52 = vpop.eup %8645 }
 0x3dd   : > { %v2434_v24 = vmul.f32 0.5, %v2432_v42  ;;  %v2433_v19 = vadd.f32 1.0, %v8646_v52 }
 0x3df   : > { %v2435_v18 = vmul.f32 0.5, %v2433_v19  ;;  %v2436_v46 = vmul.f32 %v2434_v24, %v2422_v22  ;;  %v8399_v22 = vld [vmem:[#allocation2 + $0x138] sm:$0xff]  }
 0x3e1   : > { %v2437_v28 = vmul.f32 %v2435_v18, %v2425_v49 }
 0x3e3   : > { %v2456_v9 = vpack.c.bf16 %v2437_v28, %v2436_v46 }
 0x3e5   : > { %7618 = vmatmul.mubr.bf16.vlgmr.msra.gmra.mrb[76].mxu1 %v2456_v9 }
 0x3e6   : > { %7642 = vmatpush3.bf16.msra.mxu1 %v8377_v26  ;;  %7657 = vmatprep.mubr.msk.bf16.mxu1 %vm8802_vm0, %v8801_v38 }
 0x3e7   : > { %7643 = vmatprep.subr.bf16.mxu1 %v8801_v38 }
 0x3ea   : > { %7644 = vmatpush3.bf16.msra.mxu1 %v8379_v0 }
 0x3eb   : > { %7645 = vmatprep.subr.bf16.mxu1 %v8801_v38 }
 0x3ee   : > { %7646 = vmatpush3.bf16.msra.mxu1 %v8381_v34 }
 0x3ef   : > { %7647 = vmatprep.subr.bf16.mxu1 %v8801_v38 }
 0x3f2   : > { %7648 = vmatpush3.bf16.msra.mxu1 %v8383_v13 }
 0x3f3   : > { %7649 = vmatprep.subr.bf16.mxu1 %v8801_v38 }
 0x3f6   : > { %7650 = vmatpush3.bf16.msra.mxu1 %v8385_v21 }
 0x3f7   : > { %7651 = vmatprep.subr.bf16.mxu1 %v8801_v38 }
 0x3fa   : > { %7652 = vmatpush3.bf16.msra.mxu1 %v8387_v55 }
 0x3fb   : > { %7653 = vmatprep.subr.bf16.mxu1 %v8801_v38 }
 0x3fe   : > { %7654 = vmatpush3.bf16.msra.mxu1 %v8389_v5 }
 0x3ff   : > { %7655 = vmatprep.subr.bf16.mxu1 %v8801_v38 }
 0x402   : > { %7656 = vmatpush3.bf16.msra.mxu1 %v8391_v11 }
 0x4b8   : > { %v2543_v20 = vpop.f32.mrb[76].mxu1 }
 0x4b9   : > { %v2544_v48 = vadd.f32 %v6587_v43, %v2543_v20  ;;  %v7619_v62 = vpop.f32.mrb[77].mxu1 }
 0x4ba   : > { %v2546_v4 = vpop.f32.mrb[78].mxu1 }
 0x4bb   : > { %v2550_v12 = vmul.f32 0.5, %v2544_v48  ;;  %v2547_v33 = vadd.f32 %v6587_v43, %v2546_v4  ;;  %v7620_v31 = vpop.f32.mrb[79].mxu1 }
 0x4bc   : > { %v8803_v31 = vmov 0  }
 0x4bd   : > { %8647 = vtanh.f32 %v2550_v12  ;;  %v2551_v54 = vmul.f32 0.5, %v2547_v33  ;;  %3011 = vmatprep.subr.bf16.mxu1 %v8803_v31 }
 0x4bf   : > { %8649 = vtanh.f32 %v2551_v54  ;;  %v8400_v54 = vld [vmem:[%s10870_s6 + $0x4] ss:$8 sps:$4 sm:$0xff]  }
 0x4c7   : > { %v8648_v25 = vpop.eup %8647 }
 0x4c8   : > { %v2554_v40 = vadd.f32 1.0, %v8648_v25  ;;  %v8411_v25 = vld [vmem:[#allocation2 + $0x140] sm:$0xff]  }
 0x4c9   : > { %v8650_v51 = vpop.eup %8649 }
 0x4ca   : > { %v2556_v57 = vmul.f32 0.5, %v2554_v40  ;;  %v2555_v45 = vadd.f32 1.0, %v8650_v51  ;;  %v8412_v40 = vld [vmem:[#allocation2 + $0x148] sm:$0xff]   ;;  %v6616_v51 = vld [vmem:[%s10866_s2 + $0x6] ss:$0 sm:$0xff] }
 0x4cc   : > { %v2557_v17 = vmul.f32 0.5, %v2555_v45  ;;  %v2558_v47 = vmul.f32 %v2556_v57, %v2544_v48 }
 0x4ce   : > { %v2559_v37 = vmul.f32 %v2557_v17, %v2547_v33 }
 0x4d0   : > { %v2581_v53 = vpack.c.bf16 %v2559_v37, %v2558_v47 }
 0x4d2   : > { %7638 = vmatmul.mubr.bf16.vlgmr.msra.gmra.mrb[88].mxu0 %v2581_v53  ;;  %7658 = vmatmul.mubr.bf16.vlgmr.msra.gmra.mrb[80].mxu1 %v2581_v53 }
 0x4d3   : > { %7662 = vmatpush3.bf16.msra.mxu0 %v8392_v41  ;;  %7677 = vmatprep.mubr.msk.bf16.mxu0 %vm8802_vm0, %v8801_v38 }
 0x4d4   : > { %7663 = vmatprep.subr.bf16.mxu0 %v8801_v38  ;;  %6629 = vmatprep.mubr.msk.bf16.mxu1 %vm3007_vm2, %v8400_v54 }
 0x4d7   : > { %7664 = vmatpush3.bf16.msra.mxu0 %v8393_v27 }
 0x4d8   : > { %7665 = vmatprep.subr.bf16.mxu0 %v8801_v38 }
 0x4db   : > { %7666 = vmatpush3.bf16.msra.mxu0 %v8394_v32  ;;  %v6596_v32 = vld [vmem:[%s10867_s3 + $0x20] sm:$0xff] }
 0x4dc   : > { %7667 = vmatprep.subr.bf16.mxu0 %v8801_v38 }
 0x4df   : > { %7668 = vmatpush3.bf16.msra.mxu0 %v8395_v35 }
 0x4e0   : > { %7669 = vmatprep.subr.bf16.mxu0 %v8801_v38 }
 0x4e3   : > { %7670 = vmatpush3.bf16.msra.mxu0 %v8396_v10 }
 0x4e4   : > { %7671 = vmatprep.subr.bf16.mxu0 %v8801_v38 }
 0x4e7   : > { %7672 = vmatpush3.bf16.msra.mxu0 %v8397_v56 }
 0x4e8   : > { %7673 = vmatprep.subr.bf16.mxu0 %v8801_v38 }
 0x4eb   : > { %7674 = vmatpush3.bf16.msra.mxu0 %v8398_v3  ;;  %v2932_v3 = vrot.slane %v6596_v32, %v8908_v2 }
 0x4ec   : > { %7675 = vmatprep.subr.bf16.mxu0 %v8801_v38 }
 0x4ef   : > { %7676 = vmatpush3.bf16.msra.mxu0 %v8399_v22 }
 0x4f0   : > { %7681 = vmatprep.subr.bf16.mxu0 %v8801_v38 }
 0x5a5   : > { %v2668_v30 = vpop.f32.mrb[88].mxu0  ;;  %v2789_v49 = vpop.f32.mrb[80].mxu1 }
 0x5a6   : > { %v2669_v60 = vadd.f32 %v6598_v23, %v2668_v30  ;;  %v2790_v63 = vadd.f32 %v6607_v39, %v2789_v49  ;;  %v7639_v29 = vpop.f32.mrb[89].mxu0  ;;  %v7659_v42 = vpop.f32.mrb[81].mxu1  ;;  %v2944_v30 = vrot.slane %v6596_v32, %v9097_v50  ;;  %v2950_v49 = vrot.slane %v6596_v32, %v10888_v58 }
 0x5a7   : > { %v2671_v52 = vpop.f32.mrb[90].mxu0  ;;  %v2792_v24 = vpop.f32.mrb[82].mxu1  ;;  %v2968_v29 = vrot.slane %v6596_v32, %v9382_v6 }
 0x5a8   : > { %v2675_v19 = vmul.f32 0.5, %v2669_v60  ;;  %v2796_v18 = vmul.f32 0.5, %v2790_v63  ;;  %v2672_v46 = vadd.f32 %v6598_v23, %v2671_v52  ;;  %v2793_v28 = vadd.f32 %v6607_v39, %v2792_v24  ;;  %v7640_v26 = vpop.f32.mrb[91].mxu0  ;;  %v7660_v9 = vpop.f32.mrb[83].mxu1 }
 0x5a9   : > { %v2938_v39 = vrot.slane %v6596_v32, %v10889_v36  ;;  %v2974_v24 = vrot.slane %v6596_v32, %v9392_v8 }
 0x5aa   : > { %8651 = vtanh.f32 %v2675_v19  ;;  %v2676_v0 = vmul.f32 0.5, %v2672_v46  ;;  %v2797_v14 = vmul.f32 0.5, %v2793_v28 }
 0x5ab   : > { %8653 = vtanh.f32 %v2796_v18 }
 0x5ac   : > { %8655 = vtanh.f32 %v2676_v0 }
 0x5ad   : > { %8657 = vtanh.f32 %v2797_v14 }
 0x5b4   : > { %v8652_v34 = vpop.eup %8651 }
 0x5b5   : > { %v8654_v16 = vpop.eup %8653  ;;  %v2679_v13 = vadd.f32 1.0, %v8652_v34 }
 0x5b6   : > { %v8656_v61 = vpop.eup %8655  ;;  %v2800_v21 = vadd.f32 1.0, %v8654_v16 }
 0x5b7   : > { %v8658_v59 = vpop.eup %8657  ;;  %v2681_v55 = vmul.f32 0.5, %v2679_v13  ;;  %v2680_v1 = vadd.f32 1.0, %v8656_v61 }
 0x5b8   : > { %v2802_v5 = vmul.f32 0.5, %v2800_v21  ;;  %v2801_v44 = vadd.f32 1.0, %v8658_v59 }
 0x5b9   : > { %v2682_v11 = vmul.f32 0.5, %v2680_v1  ;;  %v10338_v20 = vmul.f32 %v2681_v55, %v2669_v60  ;;  %v2956_v60 = vrot.slane %v6596_v32, %v9284_v15 }
 0x5ba   : > { %v2803_v43 = vmul.f32 0.5, %v2801_v44  ;;  %v10342_v62 = vmul.f32 %v2802_v5, %v2790_v63  ;;  %v2962_v63 = vrot.slane %v6596_v32, %v9291_v7  ;;  %v6625_v5 = vld [vmem:[%s10867_s3 + $0x28] ss:$0 sm:$0xff]  ;;  %v8406_v32 = vld [vmem:[#allocation2 + $0x1d8] sm:$0xff]  }
 0x5bb   : > { %v10340_v48 = vmul.f32 %v2682_v11, %v2672_v46 }
 0x5bc   : > { %v10344_v4 = vmul.f32 %v2803_v43, %v2793_v28 }
 0x5bd   : > { %v2824_v12 = vpack.c.bf16 %v10340_v48, %v10338_v20 }
 0x5be   : > { %v3204_v33 = vpack.c.bf16 %v10344_v4, %v10342_v62  ;;  %v8418_v62 = vld [vmem:[#allocation2 + $0x178] sm:$0xff]   ;;  %v6626_v4 = vld [vmem:[%s10866_s2 + $0x7] ss:$0 sm:$0xff] }
 0x5bf   : > { %7678 = vmatmul.mubr.bf16.vlgmr.msra.gmra.mrb[92].mxu0 %v2824_v12 }
 0x5c0   : > { %7697 = vmatprep.mubr.msk.bf16.mxu0 %vm8802_vm0, %v8801_v38  ;;  %7682 = vmatpush3.bf16.msra.mxu0 %v8411_v25 }
 0x5c1   : > { %7683 = vmatprep.subr.bf16.mxu0 %v8801_v38 }
 0x5c4   : > { %7684 = vmatpush3.bf16.msra.mxu0 %v8412_v40 }
 0x5c5   : > { %7685 = vmatprep.subr.bf16.mxu0 %v8801_v38 }
 0x692   : > { %v2911_v57 = vpop.f32.mrb[92].mxu0 }
 0x693   : > { %v2912_v45 = vadd.f32 %v6616_v51, %v2911_v57  ;;  %v7679_v17 = vpop.f32.mrb[93].mxu0 }
 0x694   : > { %v2914_v47 = vpop.f32.mrb[94].mxu0 }
 0x695   : > { %v2918_v37 = vmul.f32 0.5, %v2912_v45  ;;  %v2915_v41 = vadd.f32 %v6616_v51, %v2914_v47  ;;  %v7680_v53 = vpop.f32.mrb[95].mxu0 }
 0x696   : > { %v8404_v53 = vld [vmem:[#allocation2 + $0x1c8] sm:$0xff]  }
 0x697   : > { %8659 = vtanh.f32 %v2918_v37  ;;  %v2919_v27 = vmul.f32 0.5, %v2915_v41  ;;  %v8402_v37 = vld [vmem:[%s10870_s6] ss:$8 sps:$4 sm:$0xff]  }
 0x699   : > { %8661 = vtanh.f32 %v2919_v27  ;;  %v8405_v27 = vld [vmem:[#allocation2 + $0x1d0] sm:$0xff]  }
 0x6a1   : > { %v8660_v35 = vpop.eup %8659 }
 0x6a2   : > { %v2922_v10 = vadd.f32 1.0, %v8660_v35  ;;  %v8407_v35 = vld [vmem:[#allocation2 + $0x1e0] sm:$0xff]  }
 0x6a3   : > { %v8662_v56 = vpop.eup %8661 }
 0x6a4   : > { %v2924_v22 = vmul.f32 0.5, %v2922_v10  ;;  %v2923_v23 = vadd.f32 1.0, %v8662_v56  ;;  %v8408_v10 = vld [vmem:[#allocation2 + $0x1e8] sm:$0xff]   ;;  %v8409_v56 = vld [vmem:[#allocation2 + $0x1f0] sm:$0xff]  }
 0x6a6   : > { %v2926_v42 = vmul.f32 %v2924_v22, %v2912_v45  ;;  %v2925_v52 = vmul.f32 0.5, %v2923_v23  ;;  %v8413_v22 = vld [vmem:[#allocation2 + $0x150] sm:$0xff]   ;;  %v8414_v23 = vld [vmem:[#allocation2 + $0x158] sm:$0xff]  }
 0x6a7   : > { %7686 = vmatpush3.bf16.msra.mxu0 %v8413_v22 }
 0x6a8   : > { %v2927_v19 = vmul.f32 %v2925_v52, %v2915_v41  ;;  %v2933_v18 = vmul.f32 %v2932_v3, %v2926_v42  ;;  %v2939_v46 = vmul.f32 %v2938_v39, %v2926_v42  ;;  %v2945_v28 = vmul.f32 %v2944_v30, %v2926_v42  ;;  %v8403_v41 = vld [vmem:[#allocation2 + $0x1c0] sm:$0xff]   ;;  %7687 = vmatprep.subr.bf16.mxu0 %v8801_v38 }
 0x6a9   : > { %v2951_v26 = vmul.f32 %v2950_v49, %v2926_v42  ;;  %v2957_v9 = vmul.f32 %v2956_v60, %v2926_v42  ;;  %v2963_v0 = vmul.f32 %v2962_v63, %v2926_v42  ;;  %v2969_v14 = vmul.f32 %v2968_v29, %v2926_v42 }
 0x6aa   : > { %v2934_v34 = vmul.f32 %v2932_v3, %v2927_v19  ;;  %v2940_v16 = vmul.f32 %v2938_v39, %v2927_v19  ;;  %v2946_v13 = vmul.f32 %v2944_v30, %v2927_v19  ;;  %v2952_v61 = vmul.f32 %v2950_v49, %v2927_v19  ;;  %v8410_v3 = vld [vmem:[#allocation2 + $0x1f8] sm:$0xff]   ;;  %v8415_v39 = vld [vmem:[#allocation2 + $0x160] sm:$0xff]   ;;  %v8416_v30 = vld [vmem:[#allocation2 + $0x168] sm:$0xff]  }
 0x6ab   : > { %v2958_v21 = vmul.f32 %v2956_v60, %v2927_v19  ;;  %v2964_v59 = vmul.f32 %v2962_v63, %v2927_v19  ;;  %v2970_v55 = vmul.f32 %v2968_v29, %v2927_v19  ;;  %v2975_v1 = vmul.f32 %v2974_v24, %v2926_v42  ;;  %7688 = vmatpush3.bf16.msra.mxu0 %v8414_v23  ;;  %v8417_v49 = vld [vmem:[#allocation2 + $0x170] sm:$0xff]  }
 0x6ac   : > { %v2985_v44 = vpack.c.bf16 %v2934_v34, %v2933_v18  ;;  %v2986_v11 = vpack.c.bf16 %v2940_v16, %v2939_v46  ;;  %v2987_v43 = vpack.c.bf16 %v2946_v13, %v2945_v28  ;;  %v2988_v12 = vpack.c.bf16 %v2952_v61, %v2951_v26  ;;  %7689 = vmatprep.subr.bf16.mxu0 %v8801_v38  ;;  %v8419_v16 = vld [vmem:[#allocation2 + $0x180] sm:$0xff]  }
 0x6ad   : > { %v2989_v54 = vpack.c.bf16 %v2958_v21, %v2957_v9  ;;  %v2990_v25 = vpack.c.bf16 %v2964_v59, %v2963_v0  ;;  %v2991_v40 = vpack.c.bf16 %v2970_v55, %v2969_v14  ;;  %v2976_v51 = vmul.f32 %v2974_v24, %v2927_v19 }
 0x6ae   : > { %3012 = vmatpush1.bf16.msra.mxu1 %v2985_v44  ;;  %v2981_v57 = vmul.f32 %v6625_v5, %v2926_v42  ;;  %v2982_v45 = vmul.f32 %v6625_v5, %v2927_v19  ;;  %v8421_v5 = vld [vmem:[#allocation2 + $0x190] sm:$0xff]   ;;  %v8422_v44 = vld [vmem:[#allocation2 + $0x198] sm:$0xff]  }
 0x6af   : > { %3013 = vmatprep.subr.bf16.mxu1 %v8803_v31  ;;  %v2992_v17 = vpack.c.bf16 %v2976_v51, %v2975_v1  ;;  %7690 = vmatpush3.bf16.msra.mxu0 %v8415_v39  ;;  %v8420_v1 = vld [vmem:[#allocation2 + $0x188] sm:$0xff]  }
 0x6b0   : > { %v2993_v47 = vpack.c.bf16 %v2982_v45, %v2981_v57  ;;  %7691 = vmatprep.subr.bf16.mxu0 %v8801_v38 }
 0x6b2   : > { %3014 = vmatpush1.bf16.msra.mxu1 %v2986_v11  ;;  %v8423_v11 = vld [vmem:[#allocation2 + $0x1a0] sm:$0xff]  }
 0x6b3   : > { %3015 = vmatprep.subr.bf16.mxu1 %v8803_v31  ;;  %7692 = vmatpush3.bf16.msra.mxu0 %v8416_v30 }
 0x6b4   : > { %7693 = vmatprep.subr.bf16.mxu0 %v8801_v38 }
 0x6b6   : > { %3016 = vmatpush1.bf16.msra.mxu1 %v2987_v43  ;;  %v8424_v43 = vld [vmem:[#allocation2 + $0x1a8] sm:$0xff]  }
 0x6b7   : > { %3017 = vmatprep.subr.bf16.mxu1 %v8803_v31  ;;  %7694 = vmatpush3.bf16.msra.mxu0 %v8417_v49  ;;  %v10430_v49 = vld.sshfl [vmem:[%s10871_s7] sm:$0x33 pattern:$0x76325410] }
 0x6b8   : > { %7695 = vmatprep.subr.bf16.mxu0 %v8801_v38 }
 0x6ba   : > { %3018 = vmatpush1.bf16.msra.mxu1 %v2988_v12  ;;  %v8425_v12 = vld [vmem:[#allocation2 + $0x1b0] sm:$0xff]  }
 0x6bb   : > { %3019 = vmatprep.subr.bf16.mxu1 %v8803_v31  ;;  %7696 = vmatpush3.bf16.msra.mxu0 %v8418_v62  ;;  %v3497_v62 = vcombine.high %v10430_v49, %v10430_v49 }
 0x6bc   : > { %7721 = vmatprep.subr.bf16.mxu0 %v8801_v38 }
 0x6be   : > { %3020 = vmatpush1.bf16.msra.mxu1 %v2989_v54  ;;  %v8426_v54 = vld [vmem:[#allocation2 + $0x1b8] sm:$0xff]  }
 0x6bf   : > { %3021 = vmatprep.subr.bf16.mxu1 %v8803_v31 }
 0x6c2   : > { %3022 = vmatpush1.bf16.msra.mxu1 %v2990_v25  ;;  %v6630_v25 = vld [vmem:[%s10866_s2 + $0x8] ss:$0 sm:$0xff] }
 0x6c3   : > { %3023 = vmatprep.subr.bf16.mxu1 %v8803_v31 }
 0x6c6   : > { %3024 = vmatpush1.bf16.msra.mxu1 %v2991_v40 }
 0x6c7   : > { %3025 = vmatprep.subr.bf16.mxu1 %v8803_v31 }
 0x6ca   : > { %3026 = vmatpush1.bf16.msra.mxu1 %v2992_v17 }
 0x6cb   : > { %3027 = vmatprep.subr.bf16.mxu1 %v8803_v31 }
 0x6ce   : > { %3028 = vmatpush1.bf16.msra.mxu1 %v2993_v47 }
 0x6cf   : > { %7701 = vmatprep.subr.bf16.mxu1 %v8801_v38 }
 0x6d1   : > { %3044 = vmatmul.mubr.bf16.vlgmr.msra.gmra.mrb[84].mxu1 %v8402_v37 }
 0x6d2   : > { %7702 = vmatpush3.bf16.msra.mxu1 %v8403_v41  ;;  %7717 = vmatprep.mubr.msk.bf16.mxu1 %vm8802_vm0, %v8801_v38 }
 0x6d3   : > { %7703 = vmatprep.subr.bf16.mxu1 %v8801_v38 }
 0x6d6   : > { %7704 = vmatpush3.bf16.msra.mxu1 %v8404_v53 }
 0x6d7   : > { %7705 = vmatprep.subr.bf16.mxu1 %v8801_v38 }
 0x6da   : > { %7706 = vmatpush3.bf16.msra.mxu1 %v8405_v27 }
 0x6db   : > { %7707 = vmatprep.subr.bf16.mxu1 %v8801_v38 }
 0x6de   : > { %7708 = vmatpush3.bf16.msra.mxu1 %v8406_v32 }
 0x6df   : > { %7709 = vmatprep.subr.bf16.mxu1 %v8801_v38 }
 0x6e2   : > { %7710 = vmatpush3.bf16.msra.mxu1 %v8407_v35 }
 0x6e3   : > { %7711 = vmatprep.subr.bf16.mxu1 %v8801_v38 }
 0x6e6   : > { %7712 = vmatpush3.bf16.msra.mxu1 %v8408_v10 }
 0x6e7   : > { %7713 = vmatprep.subr.bf16.mxu1 %v8801_v38 }
 0x6ea   : > { %7714 = vmatpush3.bf16.msra.mxu1 %v8409_v56 }
 0x6eb   : > { %7715 = vmatprep.subr.bf16.mxu1 %v8801_v38 }
 0x6ee   : > { %7716 = vmatpush3.bf16.msra.mxu1 %v8410_v3 }
 0x6ef   : > { %3502 = vmatprep.subr.bf16.mxu1 %v8803_v31 }
 0x6f1   : > { %7718 = vmatmul.mubr.bf16.vlgmr.msra.gmra.mrb[88].mxu1 %v3204_v33 }
 0x6f2   : > { %6661 = vmatprep.mubr.msk.bf16.mxu1 %vm3007_vm2, %v3497_v62 }
 0x7a4   : > { %v3045_v33 = vpop.f32.mrb[84].mxu1 }
 0x7a5   : > { %v3046_v60 = vadd.f32 %v6626_v4, %v3045_v33  ;;  %v3047_v63 = vpop.f32.mrb[85].mxu1  ;;  %v6655_v33 = vld [vmem:[%s10866_s2 + $0x9] ss:$0 sm:$0xff] }
 0x7a6   : > { %v3048_v29 = vpop.f32.mrb[86].mxu1 }
 0x7a7   : > { %v3052_v42 = vmul.f32 0.5, %v3046_v60  ;;  %v3049_v52 = vadd.f32 %v6626_v4, %v3048_v29  ;;  %v3050_v24 = vpop.f32.mrb[87].mxu1  ;;  %v8427_v4 = vld [vmem:[#allocation2 + $0x200] sm:$0xff]  }
 0x7a9   : > { %8663 = vtanh.f32 %v3052_v42  ;;  %v3053_v19 = vmul.f32 0.5, %v3049_v52 }
 0x7ab   : > { %8665 = vtanh.f32 %v3053_v19 }
 0x7b3   : > { %v8664_v18 = vpop.eup %8663 }
 0x7b4   : > { %v3056_v46 = vadd.f32 1.0, %v8664_v18 }
 0x7b5   : > { %v8666_v28 = vpop.eup %8665 }
 0x7b6   : > { %v3058_v26 = vmul.f32 0.5, %v3056_v46  ;;  %v3057_v9 = vadd.f32 1.0, %v8666_v28  ;;  %v6656_v28 = vld [vmem:[%s10867_s3 + $0x30] sm:$0xff] }
 0x7b8   : > { %v3059_v0 = vmul.f32 0.5, %v3057_v9  ;;  %v3060_v14 = vmul.f32 %v3058_v26, %v3046_v60 }
 0x7ba   : > { %v3061_v34 = vmul.f32 %v3059_v0, %v3049_v52 }
 0x7bc   : > { %v3080_v13 = vpack.c.bf16 %v3061_v34, %v3060_v14  ;;  %v3424_v14 = vrot.slane %v6656_v28, %v8908_v2 }
 0x7be   : > { %7698 = vmatmul.mubr.bf16.vlgmr.msra.gmra.mrb[96].mxu0 %v3080_v13  ;;  %v3430_v13 = vrot.slane %v6656_v28, %v10889_v36 }
 0x7bf   : > { %7722 = vmatpush3.bf16.msra.mxu0 %v8419_v16  ;;  %7737 = vmatprep.mubr.msk.bf16.mxu0 %vm8802_vm0, %v8801_v38 }
 0x7c0   : > { %7723 = vmatprep.subr.bf16.mxu0 %v8801_v38 }
 0x7c3   : > { %7724 = vmatpush3.bf16.msra.mxu0 %v8420_v1  ;;  %v3460_v1 = vrot.slane %v6656_v28, %v9382_v6 }
 0x7c4   : > { %v3304_v61 = vpop.f32.mrb[88].mxu1  ;;  %7725 = vmatprep.subr.bf16.mxu0 %v8801_v38 }
 0x7c5   : > { %v7719_v21 = vpop.f32.mrb[89].mxu1 }
 0x7c6   : > { %v3307_v59 = vpop.f32.mrb[90].mxu1  ;;  %v3442_v21 = vrot.slane %v6656_v28, %v10888_v58 }
 0x7c7   : > { %v7720_v55 = vpop.f32.mrb[91].mxu1  ;;  %7726 = vmatpush3.bf16.msra.mxu0 %v8421_v5 }
 0x7c8   : > { %7727 = vmatprep.subr.bf16.mxu0 %v8801_v38  ;;  %v3454_v55 = vrot.slane %v6656_v28, %v9291_v7 }
 0x7cb   : > { %7728 = vmatpush3.bf16.msra.mxu0 %v8422_v44 }
 0x7cc   : > { %7729 = vmatprep.subr.bf16.mxu0 %v8801_v38 }
 0x7cf   : > { %7730 = vmatpush3.bf16.msra.mxu0 %v8423_v11  ;;  %v3466_v11 = vrot.slane %v6656_v28, %v9392_v8 }
 0x7d0   : > { %7731 = vmatprep.subr.bf16.mxu0 %v8801_v38 }
 0x7d3   : > { %7732 = vmatpush3.bf16.msra.mxu0 %v8424_v43 }
 0x7d4   : > { %7733 = vmatprep.subr.bf16.mxu0 %v8801_v38 }
 0x7d7   : > { %7734 = vmatpush3.bf16.msra.mxu0 %v8425_v12 }
 0x7d8   : > { %7735 = vmatprep.subr.bf16.mxu0 %v8801_v38 }
 0x7db   : > { %7736 = vmatpush3.bf16.msra.mxu0 %v8426_v54 }
 0x7dc   : > { %7741 = vmatprep.subr.bf16.mxu0 %v8801_v38 }
 0x891   : > { %v3167_v40 = vpop.f32.mrb[96].mxu0 }
 0x892   : > { %v3168_v51 = vadd.f32 %v6630_v25, %v3167_v40  ;;  %v7699_v57 = vpop.f32.mrb[97].mxu0 }
 0x893   : > { %v3170_v45 = vpop.f32.mrb[98].mxu0 }
 0x894   : > { %v3174_v17 = vmul.f32 0.5, %v3168_v51  ;;  %v3171_v47 = vadd.f32 %v6630_v25, %v3170_v45  ;;  %v7700_v37 = vpop.f32.mrb[99].mxu0 }
 0x896   : > { %8667 = vtanh.f32 %v3174_v17  ;;  %v3175_v41 = vmul.f32 0.5, %v3171_v47 }
 0x898   : > { %8669 = vtanh.f32 %v3175_v41 }
 0x8a0   : > { %v8668_v53 = vpop.eup %8667 }
 0x8a1   : > { %v3178_v27 = vadd.f32 1.0, %v8668_v53 }
 0x8a2   : > { %v8670_v32 = vpop.eup %8669 }
 0x8a3   : > { %v3180_v35 = vmul.f32 0.5, %v3178_v27  ;;  %v3179_v10 = vadd.f32 1.0, %v8670_v32 }
 0x8a5   : > { %v3182_v56 = vmul.f32 %v3180_v35, %v3168_v51  ;;  %v3181_v3 = vmul.f32 0.5, %v3179_v10  ;;  %v6658_v10 = vld [vmem:[%s10867_s3 + $0x38] ss:$0 sm:$0xff] }
 0x8a7   : > { %v3183_v22 = vmul.f32 %v3181_v3, %v3171_v47  ;;  %v3184_v23 = vadd.f32 %v3182_v56, %v10338_v20  ;;  %v8428_v20 = vld [vmem:[#allocation2 + $0x208] sm:$0xff]  }
 0x8a9   : > { %v3185_v39 = vadd.f32 %v3183_v22, %v10340_v48 }
 0x8ab   : > { %v3186_v30 = vpack.c.bf16 %v3185_v39, %v3184_v23 }
 0x8ad   : > { %7738 = vmatmul.mubr.bf16.vlgmr.msra.gmra.mrb[100].mxu0 %v3186_v30 }
 0x8ae   : > { %7757 = vmatprep.mubr.msk.bf16.mxu0 %vm8802_vm0, %v8801_v38  ;;  %7742 = vmatpush3.bf16.msra.mxu0 %v8427_v4 }
 0x8af   : > { %7743 = vmatprep.subr.bf16.mxu0 %v8801_v38 }
 0x8b2   : > { %7744 = vmatpush3.bf16.msra.mxu0 %v8428_v20 }
 0x8b3   : > { %7745 = vmatprep.subr.bf16.mxu0 %v8801_v38 }
 0x980   : > { %v3393_v48 = vpop.f32.mrb[100].mxu0 }
 0x981   : > { %v3394_v60 = vadd.f32 %v3393_v48, %v3304_v61  ;;  %v7739_v63 = vpop.f32.mrb[101].mxu0  ;;  %v3436_v61 = vrot.slane %v6656_v28, %v9097_v50 }
 0x982   : > { %v3396_v29 = vpop.f32.mrb[102].mxu0  ;;  %v8429_v63 = vld [vmem:[#allocation2 + $0x210] sm:$0xff]  }
 0x983   : > { %v3405_v42 = vadd.f32 %v6655_v33, %v3394_v60  ;;  %v3397_v52 = vadd.f32 %v3396_v29, %v3307_v59  ;;  %v7740_v24 = vpop.f32.mrb[103].mxu0  ;;  %v3448_v59 = vrot.slane %v6656_v28, %v9284_v15  ;;  %7746 = vmatpush3.bf16.msra.mxu0 %v8429_v63  ;;  %v8430_v29 = vld [vmem:[#allocation2 + $0x218] sm:$0xff]  }
 0x984   : > { %7747 = vmatprep.subr.bf16.mxu0 %v8801_v38  ;;  %v8433_v24 = vld [vmem:[#allocation2 + $0x230] sm:$0xff]  }
 0x985   : > { %v3407_v19 = vmul.f32 0.5, %v3405_v42  ;;  %v3406_v18 = vadd.f32 %v6655_v33, %v3397_v52  ;;  %v8437_v52 = vld [vmem:[#allocation2 + $0x248] sm:$0xff]  }
 0x987   : > { %8671 = vtanh.f32 %v3407_v19  ;;  %v3408_v46 = vmul.f32 0.5, %v3406_v18  ;;  %7748 = vmatpush3.bf16.msra.mxu0 %v8430_v29  ;;  %v8434_v19 = vld [vmem:[#allocation2 + $0x238] sm:$0xff]  }
 0x988   : > { %7749 = vmatprep.subr.bf16.mxu0 %v8801_v38 }
 0x989   : > { %8673 = vtanh.f32 %v3408_v46 }
 0x991   : > { %v8672_v26 = vpop.eup %8671 }
 0x992   : > { %v3411_v9 = vadd.f32 1.0, %v8672_v26 }
 0x993   : > { %v8674_v0 = vpop.eup %8673 }
 0x994   : > { %v3413_v34 = vmul.f32 0.5, %v3411_v9  ;;  %v3412_v16 = vadd.f32 1.0, %v8674_v0 }
 0x996   : > { %v3415_v5 = vmul.f32 %v3413_v34, %v3405_v42  ;;  %v3414_v44 = vmul.f32 0.5, %v3412_v16  ;;  %v8435_v42 = vld [vmem:[#allocation2 + $0x240] sm:$0xff]  }
 0x998   : > { %v3416_v43 = vmul.f32 %v3414_v44, %v3406_v18  ;;  %v3425_v12 = vmul.f32 %v3424_v14, %v3415_v5  ;;  %v3431_v54 = vmul.f32 %v3430_v13, %v3415_v5  ;;  %v3437_v25 = vmul.f32 %v3436_v61, %v3415_v5  ;;  %v6659_v18 = vld [vmem:[%s10866_s2 + $0xa] ss:$0 sm:$0xff]  ;;  %v8441_v44 = vld [vmem:[#allocation2 + $0x258] sm:$0xff]  }
 0x999   : > { %v3443_v40 = vmul.f32 %v3442_v21, %v3415_v5  ;;  %v3449_v51 = vmul.f32 %v3448_v59, %v3415_v5  ;;  %v3455_v57 = vmul.f32 %v3454_v55, %v3415_v5  ;;  %v3461_v45 = vmul.f32 %v3460_v1, %v3415_v5 }
 0x99a   : > { %v3426_v17 = vmul.f32 %v3424_v14, %v3416_v43  ;;  %v3432_v47 = vmul.f32 %v3430_v13, %v3416_v43  ;;  %v3438_v37 = vmul.f32 %v3436_v61, %v3416_v43  ;;  %v3444_v41 = vmul.f32 %v3442_v21, %v3416_v43  ;;  %v8436_v21 = vld [vmem:[#allocation2 + $0x280] sm:$0xff]  }
 0x99b   : > { %v3450_v53 = vmul.f32 %v3448_v59, %v3416_v43  ;;  %v3456_v27 = vmul.f32 %v3454_v55, %v3416_v43  ;;  %v3462_v32 = vmul.f32 %v3460_v1, %v3416_v43  ;;  %v3467_v35 = vmul.f32 %v3466_v11, %v3415_v5  ;;  %v8438_v55 = vld [vmem:[#allocation2 + $0x288] sm:$0xff]   ;;  %v8439_v1 = vld [vmem:[#allocation2 + $0x250] sm:$0xff]  }
 0x99c   : > { %v3476_v56 = vpack.c.bf16 %v3426_v17, %v3425_v12  ;;  %v3477_v3 = vpack.c.bf16 %v3432_v47, %v3431_v54  ;;  %v3478_v22 = vpack.c.bf16 %v3438_v37, %v3437_v25  ;;  %v3479_v23 = vpack.c.bf16 %v3444_v41, %v3443_v40  ;;  %v8444_v12 = vld [vmem:[#allocation2 + $0x2a0] sm:$0xff]   ;;  %v8445_v54 = vld [vmem:[#allocation2 + $0x268] sm:$0xff]   ;;  %v8447_v40 = vld [vmem:[#allocation2 + $0x270] sm:$0xff]  }
 0x99d   : > { %v3480_v39 = vpack.c.bf16 %v3450_v53, %v3449_v51  ;;  %v3481_v30 = vpack.c.bf16 %v3456_v27, %v3455_v57  ;;  %v3482_v62 = vpack.c.bf16 %v3462_v32, %v3461_v45  ;;  %v3468_v4 = vmul.f32 %v3466_v11, %v3416_v43  ;;  %v8442_v11 = vld [vmem:[#allocation2 + $0x298] sm:$0xff]   ;;  %v8446_v25 = vld [vmem:[#allocation2 + $0x2a8] sm:$0xff]   ;;  %v8448_v51 = vld [vmem:[#allocation2 + $0x2b0] sm:$0xff]  }
 0x99e   : > { %3503 = vmatpush1.bf16.msra.mxu1 %v3476_v56  ;;  %v3473_v20 = vmul.f32 %v6658_v10, %v3415_v5  ;;  %v3474_v48 = vmul.f32 %v6658_v10, %v3416_v43  ;;  %v8440_v5 = vld [vmem:[#allocation2 + $0x290] sm:$0xff]   ;;  %v8443_v43 = vld [vmem:[#allocation2 + $0x260] sm:$0xff]   ;;  %v8449_v57 = vld [vmem:[#allocation2 + $0x278] sm:$0xff]  }
 0x99f   : > { %3504 = vmatprep.subr.bf16.mxu1 %v8803_v31  ;;  %v3483_v33 = vpack.c.bf16 %v3468_v4, %v3467_v35  ;;  %v8450_v45 = vld [vmem:[#allocation2 + $0x2b8] sm:$0xff]   ;;  %v6662_v17 = vld [vmem:[%s10866_s2 + $0xb] ss:$0 sm:$0xff]  ;;  %v8455_v4 = vld [vmem:[#allocation2 + $0x2e0] sm:$0xff]  }
 0x9a0   : > { %v3484_v60 = vpack.c.bf16 %v3474_v48, %v3473_v20  ;;  %v8456_v20 = vld [vmem:[#allocation2 + $0x2e8] sm:$0xff]   ;;  %v8457_v48 = vld [vmem:[#allocation2 + $0x2f0] sm:$0xff]  }
 0x9a2   : > { %3505 = vmatpush1.bf16.msra.mxu1 %v3477_v3 }
 0x9a3   : > { %3506 = vmatprep.subr.bf16.mxu1 %v8803_v31 }
 0x9a6   : > { %3507 = vmatpush1.bf16.msra.mxu1 %v3478_v22  ;;  %v8451_v22 = vld [vmem:[#allocation2 + $0x2c0] sm:$0xff]  }
 0x9a7   : > { %3508 = vmatprep.subr.bf16.mxu1 %v8803_v31 }
 0x9aa   : > { %3509 = vmatpush1.bf16.msra.mxu1 %v3479_v23 }
 0x9ab   : > { %3510 = vmatprep.subr.bf16.mxu1 %v8803_v31 }
 0x9ae   : > { %3511 = vmatpush1.bf16.msra.mxu1 %v3480_v39  ;;  %v8452_v39 = vld [vmem:[#allocation2 + $0x2c8] sm:$0xff]  }
 0x9af   : > { %3512 = vmatprep.subr.bf16.mxu1 %v8803_v31 }
 0x9b2   : > { %3513 = vmatpush1.bf16.msra.mxu1 %v3481_v30  ;;  %v8453_v30 = vld [vmem:[#allocation2 + $0x2d0] sm:$0xff]  }
 0x9b3   : > { %3514 = vmatprep.subr.bf16.mxu1 %v8803_v31 }
 0x9b6   : > { %3515 = vmatpush1.bf16.msra.mxu1 %v3482_v62  ;;  %v8454_v62 = vld [vmem:[#allocation2 + $0x2d8] sm:$0xff]  }
 0x9b7   : > { %3516 = vmatprep.subr.bf16.mxu1 %v8803_v31 }
 0x9ba   : > { %3517 = vmatpush1.bf16.msra.mxu1 %v3483_v33  ;;  %v8458_v33 = vld [vmem:[#allocation2 + $0x2f8] sm:$0xff]  }
 0x9bb   : > { %3518 = vmatprep.subr.bf16.mxu1 %v8803_v31  ;;  %v8431_v31 = vld [vmem:[#allocation2 + $0x220] sm:$0xff]  }
 0x9bc   : > { %7750 = vmatpush3.bf16.msra.mxu0 %v8431_v31 }
 0x9bd   : > { %7751 = vmatprep.subr.bf16.mxu0 %v8801_v38 }
 0x9be   : > { %3519 = vmatpush1.bf16.msra.mxu1 %v3484_v60  ;;  %v6673_v60 = vld [vmem:[%s10866_s2 + $0xc] ss:$0 sm:$0xff] }
 0x9bf   : > { %7761 = vmatprep.subr.bf16.mxu1 %v8801_v38 }
 0x9c1   : > { %3535 = vmatmul.mubr.bf16.vlgmr.msra.gmra.mrb[92].mxu1 %v10430_v49  ;;  %v8432_v49 = vld [vmem:[#allocation2 + $0x228] sm:$0xff]  }
 0x9c2   : > { %7777 = vmatprep.mubr.msk.bf16.mxu1 %vm8802_vm0, %v8801_v38  ;;  %7762 = vmatpush3.bf16.msra.mxu1 %v8435_v42 }
 0x9c3   : > { %7763 = vmatprep.subr.bf16.mxu1 %v8801_v38  ;;  %7752 = vmatpush3.bf16.msra.mxu0 %v8432_v49 }
 0x9c4   : > { %7753 = vmatprep.subr.bf16.mxu0 %v8801_v38 }
 0x9c6   : > { %7764 = vmatpush3.bf16.msra.mxu1 %v8437_v52 }
 0x9c7   : > { %7765 = vmatprep.subr.bf16.mxu1 %v8801_v38  ;;  %7754 = vmatpush3.bf16.msra.mxu0 %v8433_v24 }
 0x9c8   : > { %7755 = vmatprep.subr.bf16.mxu0 %v8801_v38 }
 0x9ca   : > { %7766 = vmatpush3.bf16.msra.mxu1 %v8439_v1  ;;  %v8463_v1 = vld [vmem:[#allocation2 + $0x3a0] sm:$0xff]  }
 0x9cb   : > { %7756 = vmatpush3.bf16.msra.mxu0 %v8434_v19  ;;  %7767 = vmatprep.subr.bf16.mxu1 %v8801_v38 }
 0x9cc   : > { %7781 = vmatprep.subr.bf16.mxu0 %v8801_v38 }
 0x9ce   : > { %7768 = vmatpush3.bf16.msra.mxu1 %v8441_v44  ;;  %v8464_v44 = vld [vmem:[#allocation2 + $0x3a8] sm:$0xff]  }
 0x9cf   : > { %7769 = vmatprep.subr.bf16.mxu1 %v8801_v38 }
 0x9d2   : > { %7770 = vmatpush3.bf16.msra.mxu1 %v8443_v43  ;;  %v8465_v43 = vld [vmem:[#allocation2 + $0x3b0] sm:$0xff]  }
 0x9d3   : > { %7771 = vmatprep.subr.bf16.mxu1 %v8801_v38 }
 0x9d6   : > { %7772 = vmatpush3.bf16.msra.mxu1 %v8445_v54  ;;  %v8466_v54 = vld [vmem:[#allocation2 + $0x3b8] sm:$0xff]  }
 0x9d7   : > { %7773 = vmatprep.subr.bf16.mxu1 %v8801_v38 }
 0x9da   : > { %7774 = vmatpush3.bf16.msra.mxu1 %v8447_v40 }
 0x9db   : > { %7775 = vmatprep.subr.bf16.mxu1 %v8801_v38 }
 0x9de   : > { %7776 = vmatpush3.bf16.msra.mxu1 %v8449_v57 }
 0x9df   : > { %7801 = vmatprep.subr.bf16.mxu1 %v8801_v38 }
 0xa94   : > { %v3536_v46 = vpop.f32.mrb[92].mxu1 }
 0xa95   : > { %v3537_v28 = vadd.f32 %v6659_v18, %v3536_v46  ;;  %v3538_v26 = vpop.f32.mrb[93].mxu1 }
 0xa96   : > { %v3539_v9 = vpop.f32.mrb[94].mxu1 }
 0xa97   : > { %v3542_v0 = vmul.f32 0.5, %v3537_v28  ;;  %v3540_v14 = vpop.f32.mrb[95].mxu1 }
 0xa99   : > { %8675 = vtanh.f32 %v3542_v0  ;;  %v6682_v0 = vld [vmem:[%s10866_s2 + $0xd] ss:$0 sm:$0xff] }
 0xaa3   : > { %v8676_v34 = vpop.eup %8675 }
 0xaa4   : > { %v3544_v16 = vadd.f32 1.0, %v8676_v34 }
 0xaa6   : > { %v3545_v13 = vmul.f32 0.5, %v3544_v16  ;;  %v8459_v16 = vld [vmem:[#allocation2 + $0x380] sm:$0xff]  }
 0xaa8   : > { %v3546_v61 = vmul.f32 %v3545_v13, %v3537_v28 }
 0xaaa   : > { %v3565_v59 = vpack.c.bf16 %v3546_v61, %v3546_v61 }
 0xaac   : > { %7758 = vmatmul.mubr.bf16.vlgmr.msra.gmra.mrb[104].mxu0 %v3565_v59  ;;  %v8461_v59 = vld [vmem:[#allocation2 + $0x390] sm:$0xff]  }
 0xaad   : > { %7782 = vmatpush3.bf16.msra.mxu0 %v8436_v21  ;;  %7797 = vmatprep.mubr.msk.bf16.mxu0 %vm8802_vm0, %v8801_v38  ;;  %v8460_v21 = vld [vmem:[#allocation2 + $0x388] sm:$0xff]  }
 0xaae   : > { %7783 = vmatprep.subr.bf16.mxu0 %v8801_v38 }
 0xab1   : > { %7784 = vmatpush3.bf16.msra.mxu0 %v8438_v55  ;;  %v8462_v55 = vld [vmem:[#allocation2 + $0x398] sm:$0xff]  }
 0xab2   : > { %7785 = vmatprep.subr.bf16.mxu0 %v8801_v38 }
 0xab5   : > { %7786 = vmatpush3.bf16.msra.mxu0 %v8440_v5 }
 0xab6   : > { %7787 = vmatprep.subr.bf16.mxu0 %v8801_v38 }
 0xab9   : > { %7788 = vmatpush3.bf16.msra.mxu0 %v8442_v11 }
 0xaba   : > { %7789 = vmatprep.subr.bf16.mxu0 %v8801_v38 }
 0xabd   : > { %7790 = vmatpush3.bf16.msra.mxu0 %v8444_v12 }
 0xabe   : > { %7791 = vmatprep.subr.bf16.mxu0 %v8801_v38 }
 0xac1   : > { %7792 = vmatpush3.bf16.msra.mxu0 %v8446_v25 }
 0xac2   : > { %7793 = vmatprep.subr.bf16.mxu0 %v8801_v38 }
 0xac5   : > { %7794 = vmatpush3.bf16.msra.mxu0 %v8448_v51  ;;  %v6691_v51 = vld [vmem:[%s10866_s2 + $0xe] ss:$0 sm:$0xff] }
 0xac6   : > { %7795 = vmatprep.subr.bf16.mxu0 %v8801_v38 }
 0xac9   : > { %7796 = vmatpush3.bf16.msra.mxu0 %v8450_v45 }
 0xaca   : > { %7821 = vmatprep.subr.bf16.mxu0 %v8801_v38 }
 0xb7f   : > { %v3652_v47 = vpop.f32.mrb[104].mxu0 }
 0xb80   : > { %v3653_v37 = vadd.f32 %v6662_v17, %v3652_v47  ;;  %v7759_v41 = vpop.f32.mrb[105].mxu0 }
 0xb81   : > { %v3655_v53 = vpop.f32.mrb[106].mxu0 }
 0xb82   : > { %v3658_v27 = vmul.f32 0.5, %v3653_v37  ;;  %v7760_v32 = vpop.f32.mrb[107].mxu0 }
 0xb84   : > { %8677 = vtanh.f32 %v3658_v27  ;;  %v6671_v27 = vld [vmem:[%s10867_s3 + $0x40] sm:$0xff] }
 0xb8e   : > { %v8678_v35 = vpop.eup %8677 }
 0xb8f   : > { %v3660_v10 = vadd.f32 1.0, %v8678_v35 }
 0xb91   : > { %v3661_v56 = vmul.f32 0.5, %v3660_v10  ;;  %v4022_v10 = vrot.slane %v6671_v27, %v10889_v36 }
 0xb93   : > { %v3662_v3 = vmul.f32 %v3661_v56, %v3653_v37  ;;  %v4032_v56 = vrot.slane %v6671_v27, %v10888_v58 }
 0xb95   : > { %v3684_v23 = vpack.c.bf16 %v3662_v3, %v3662_v3  ;;  %v4042_v3 = vrot.slane %v6671_v27, %v9291_v7 }
 0xb97   : > { %7778 = vmatmul.mubr.bf16.vlgmr.msra.gmra.mrb[96].mxu1 %v3684_v23  ;;  %7798 = vmatmul.mubr.bf16.vlgmr.msra.gmra.mrb[108].mxu0 %v3684_v23 }
 0xb98   : > { %7802 = vmatpush3.bf16.msra.mxu1 %v8451_v22  ;;  %7817 = vmatprep.mubr.msk.bf16.mxu1 %vm8802_vm0, %v8801_v38  ;;  %v4052_v22 = vrot.slane %v6671_v27, %v9392_v8 }
 0xb99   : > { %7803 = vmatprep.subr.bf16.mxu1 %v8801_v38  ;;  %7827 = vmatprep.mubr.msk.bf16.mxu0 %vm8802_vm0, %v8801_v38 }
 0xb9c   : > { %7804 = vmatpush3.bf16.msra.mxu1 %v8452_v39  ;;  %v4017_v39 = vrot.slane %v6671_v27, %v8908_v2 }
 0xb9d   : > { %7805 = vmatprep.subr.bf16.mxu1 %v8801_v38 }
 0xba0   : > { %7806 = vmatpush3.bf16.msra.mxu1 %v8453_v30  ;;  %v4027_v30 = vrot.slane %v6671_v27, %v9097_v50 }
 0xba1   : > { %7807 = vmatprep.subr.bf16.mxu1 %v8801_v38 }
 0xba4   : > { %7808 = vmatpush3.bf16.msra.mxu1 %v8454_v62 }
 0xba5   : > { %7809 = vmatprep.subr.bf16.mxu1 %v8801_v38 }
 0xba8   : > { %7810 = vmatpush3.bf16.msra.mxu1 %v8455_v4 }
 0xba9   : > { %7811 = vmatprep.subr.bf16.mxu1 %v8801_v38 }
 0xbac   : > { %7812 = vmatpush3.bf16.msra.mxu1 %v8456_v20  ;;  %v4037_v20 = vrot.slane %v6671_v27, %v9284_v15 }
 0xbad   : > { %7813 = vmatprep.subr.bf16.mxu1 %v8801_v38 }
 0xbb0   : > { %7814 = vmatpush3.bf16.msra.mxu1 %v8457_v48  ;;  %v4047_v48 = vrot.slane %v6671_v27, %v9382_v6 }
 0xbb1   : > { %7815 = vmatprep.subr.bf16.mxu1 %v8801_v38 }
 0xbb4   : > { %7816 = vmatpush3.bf16.msra.mxu1 %v8458_v33 }
 0xbb5   : > { %7851 = vmatprep.subr.bf16.mxu1 %v8801_v38 }
 0xc6a   : > { %v3771_v63 = vpop.f32.mrb[96].mxu1  ;;  %v3886_v29 = vpop.f32.mrb[108].mxu0 }
 0xc6b   : > { %v3772_v42 = vadd.f32 %v6673_v60, %v3771_v63  ;;  %v7779_v52 = vpop.f32.mrb[97].mxu1  ;;  %v7799_v31 = vpop.f32.mrb[109].mxu0  ;;  %v3887_v34 = vadd.f32 %v6682_v0, %v3886_v29 }
 0xc6c   : > { %v3774_v49 = vpop.f32.mrb[98].mxu1  ;;  %v3889_v24 = vpop.f32.mrb[110].mxu0 }
 0xc6d   : > { %v3777_v19 = vmul.f32 0.5, %v3772_v42  ;;  %v7780_v18 = vpop.f32.mrb[99].mxu1  ;;  %v7800_v46 = vpop.f32.mrb[111].mxu0  ;;  %v3892_v61 = vmul.f32 0.5, %v3887_v34  ;;  %v6700_v24 = vld [vmem:[%s10867_s3 + $0x48] ss:$0 sm:$0xff] }
 0xc6f   : > { %8679 = vtanh.f32 %v3777_v19 }
 0xc70   : > { %8681 = vtanh.f32 %v3892_v61 }
 0xc79   : > { %v8680_v28 = vpop.eup %8679 }
 0xc7a   : > { %v3779_v26 = vadd.f32 1.0, %v8680_v28  ;;  %v8682_v5 = vpop.eup %8681 }
 0xc7b   : > { %v3894_v11 = vadd.f32 1.0, %v8682_v5  ;;  %v4076_v5 = vld [vmem:[%s10872_s8] sm:$0x3] }
 0xc7c   : > { %v3780_v9 = vmul.f32 0.5, %v3779_v26 }
 0xc7d   : > { %v3895_v12 = vmul.f32 0.5, %v3894_v11  ;;  %v8468_v11 = vld [vmem:[#allocation2 + $0x308] sm:$0xff]  }
 0xc7e   : > { %v10514_v14 = vmul.f32 %v3780_v9, %v3772_v42 }
 0xc7f   : > { %v3896_v25 = vmul.f32 %v3895_v12, %v3887_v34  ;;  %v8470_v12 = vld [vmem:[#allocation2 + $0x318] sm:$0xff]  }
 0xc80   : > { %v3915_v13 = vpack.c.bf16 %v10514_v14, %v10514_v14 }
 0xc81   : > { %v4272_v40 = vpack.c.bf16 %v3896_v25, %v3896_v25  ;;  %v8472_v25 = vld [vmem:[#allocation2 + $0x328] sm:$0xff]  }
 0xc82   : > { %7818 = vmatmul.mubr.bf16.vlgmr.msra.gmra.mrb[100].mxu1 %v3915_v13 }
 0xc83   : > { %7852 = vmatpush3.bf16.msra.mxu1 %v8459_v16  ;;  %7867 = vmatprep.mubr.msk.bf16.mxu1 %vm8802_vm0, %v8801_v38 }
 0xc84   : > { %7853 = vmatprep.subr.bf16.mxu1 %v8801_v38 }
 0xc87   : > { %7854 = vmatpush3.bf16.msra.mxu1 %v8460_v21 }
 0xc88   : > { %7855 = vmatprep.subr.bf16.mxu1 %v8801_v38 }
 0xc8b   : > { %7856 = vmatpush3.bf16.msra.mxu1 %v8461_v59 }
 0xc8c   : > { %7857 = vmatprep.subr.bf16.mxu1 %v8801_v38 }
 0xc8f   : > { %7858 = vmatpush3.bf16.msra.mxu1 %v8462_v55 }
 0xc90   : > { %7859 = vmatprep.subr.bf16.mxu1 %v8801_v38 }
 0xc93   : > { %7860 = vmatpush3.bf16.msra.mxu1 %v8463_v1 }
 0xc94   : > { %7861 = vmatprep.subr.bf16.mxu1 %v8801_v38 }
 0xc97   : > { %7862 = vmatpush3.bf16.msra.mxu1 %v8464_v44  ;;  %v8467_v44 = vld [vmem:[#allocation2 + $0x300] sm:$0xff]  }
 0xc98   : > { %7863 = vmatprep.subr.bf16.mxu1 %v8801_v38 }
 0xc9b   : > { %7864 = vmatpush3.bf16.msra.mxu1 %v8465_v43  ;;  %v8469_v43 = vld [vmem:[#allocation2 + $0x310] sm:$0xff]  }
 0xc9c   : > { %7865 = vmatprep.subr.bf16.mxu1 %v8801_v38 }
 0xc9f   : > { %7866 = vmatpush3.bf16.msra.mxu1 %v8466_v54  ;;  %v8471_v54 = vld [vmem:[#allocation2 + $0x320] sm:$0xff]  }
 0xca0   : > { %7891 = vmatprep.subr.bf16.mxu1 %v8801_v38 }
 0xca2   : > { %7868 = vmatmul.mubr.bf16.vlgmr.msra.gmra.mrb[104].mxu1 %v4272_v40  ;;  %v8473_v40 = vld [vmem:[#allocation2 + $0x330] sm:$0xff]  }
 0xca3   : > { %7897 = vmatprep.mubr.msk.bf16.mxu1 %vm8802_vm0, %v8801_v38 }
 0xd55   : > { %v4002_v57 = vpop.f32.mrb[100].mxu1 }
 0xd56   : > { %v4003_v45 = vadd.f32 %v6691_v51, %v4002_v57  ;;  %v7819_v17 = vpop.f32.mrb[101].mxu1  ;;  %v8474_v51 = vld [vmem:[#allocation2 + $0x338] sm:$0xff]   ;;  %v6701_v57 = vld [vmem:[%s10866_s2 + $0xf] ss:$0 sm:$0xff] }
 0xd57   : > { %v4005_v47 = vpop.f32.mrb[102].mxu1 }
 0xd58   : > { %v4008_v37 = vmul.f32 0.5, %v4003_v45  ;;  %v7820_v41 = vpop.f32.mrb[103].mxu1 }
 0xd5a   : > { %8683 = vtanh.f32 %v4008_v37 }
 0xd64   : > { %v8684_v53 = vpop.eup %8683 }
 0xd65   : > { %v4010_v32 = vadd.f32 1.0, %v8684_v53 }
 0xd67   : > { %v4011_v35 = vmul.f32 0.5, %v4010_v32 }
 0xd69   : > { %v4012_v23 = vmul.f32 %v4011_v35, %v4003_v45 }
 0xd6b   : > { %v4023_v62 = vmul.f32 %v4022_v10, %v4012_v23  ;;  %v4033_v4 = vmul.f32 %v4032_v56, %v4012_v23  ;;  %v4043_v33 = vmul.f32 %v4042_v3, %v4012_v23  ;;  %v4053_v60 = vmul.f32 %v4052_v22, %v4012_v23  ;;  %v8475_v56 = vld [vmem:[#allocation2 + $0x340] sm:$0xff]   ;;  %v8476_v22 = vld [vmem:[#allocation2 + $0x348] sm:$0xff]  }
 0xd6c   : > { %v4018_v63 = vmul.f32 %v4017_v39, %v4012_v23  ;;  %v4028_v29 = vmul.f32 %v4027_v30, %v4012_v23  ;;  %v4038_v46 = vmul.f32 %v4037_v20, %v4012_v23  ;;  %v4048_v28 = vmul.f32 %v4047_v48, %v4012_v23  ;;  %v8478_v39 = vld [vmem:[#allocation2 + $0x358] sm:$0xff]   ;;  %v8479_v30 = vld [vmem:[#allocation2 + $0x360] sm:$0xff]   ;;  %v6703_v48 = vld [vmem:[%s10866_s2 + $0x10] ss:$0 sm:$0xff] }
 0xd6d   : > { %v4060_v42 = vrot.slane %v4023_v62, 4  ;;  %v4063_v52 = vrot.slane %v4033_v4, 4  ;;  %v4066_v31 = vrot.slane %v4043_v33, 4  ;;  %v4069_v49 = vrot.slane %v4053_v60, 4  ;;  %v8480_v62 = vld [vmem:[#allocation2 + $0x368] sm:$0xff]   ;;  %v8481_v4 = vld [vmem:[#allocation2 + $0x370] sm:$0xff]  }
 0xd6e   : > { %v4058_v34 = vmul.f32 %v6700_v24, %v4012_v23  ;;  %v8477_v23 = vld [vmem:[#allocation2 + $0x350] sm:$0xff]   ;;  %v8482_v20 = vld [vmem:[#allocation2 + $0x378] sm:$0xff]  }
 0xd6f   : > { %v4072_v19 = vsel %vm4071_vm3, %v4018_v63, %v4060_v42  ;;  %v4073_v18 = vsel %vm4071_vm3, %v4028_v29, %v4063_v52  ;;  %v4074_v9 = vsel %vm4071_vm3, %v4038_v46, %v4066_v31  ;;  %v4075_v0 = vsel %vm4071_vm3, %v4048_v28, %v4069_v49 }
 0xd70   : > { %v4077_v26 = vpack.c.bf16 %v4073_v18, %v4072_v19  ;;  %v4078_v16 = vpack.c.bf16 %v4075_v0, %v4074_v9  ;;  %v4079_v61 = vpack.c.bf16 %v4058_v34, %v4058_v34 }
 0xd72   : > { %7822 = vmatpush3.bf16.msra.mxu0 %v4077_v26  ;;  %v4090_v1 = vsel %vm4088_vm4, %v4079_v61, 0  ;;  %v6728_v26 = vld [vmem:[%s10866_s2 + $0x11] ss:$0 sm:$0xff] }
 0xd73   : > { %7823 = vmatprep.subr.bf16.mxu0 %v8801_v38 }
 0xd75   : > { %v10552_v13 = vpop.f32.mrb[104].mxu1 }
 0xd76   : > { %v7869_v21 = vpop.f32.mrb[105].mxu1  ;;  %7824 = vmatpush3.bf16.msra.mxu0 %v4078_v16 }
 0xd77   : > { %v4375_v59 = vpop.f32.mrb[106].mxu1  ;;  %7825 = vmatprep.subr.bf16.mxu0 %v8801_v38 }
 0xd78   : > { %v7870_v55 = vpop.f32.mrb[107].mxu1 }
 0xd7a   : > { %7826 = vmatpush3.bf16.msra.mxu0 %v4090_v1 }
 0xd7b   : > { %7831 = vmatprep.subr.bf16.mxu0 %v8801_v38 }
 0xd7d   : > { %7828 = vmatmul.mubr.msk.bf16.vlgmr.msra.gmra.mrb[112].mxu0 %vm4084_vm5, %v4076_v5 }
 0xd7e   : > { %7832 = vmatpush3.bf16.msra.mxu0 %v8467_v44  ;;  %7847 = vmatprep.mubr.msk.bf16.mxu0 %vm8802_vm0, %v8801_v38 }
 0xd7f   : > { %7833 = vmatprep.subr.bf16.mxu0 %v8801_v38 }
 0xd82   : > { %7834 = vmatpush3.bf16.msra.mxu0 %v8468_v11 }
 0xd83   : > { %7835 = vmatprep.subr.bf16.mxu0 %v8801_v38 }
 0xd86   : > { %7836 = vmatpush3.bf16.msra.mxu0 %v8469_v43 }
 0xd87   : > { %7837 = vmatprep.subr.bf16.mxu0 %v8801_v38 }
 0xd8a   : > { %7838 = vmatpush3.bf16.msra.mxu0 %v8470_v12 }
 0xd8b   : > { %7839 = vmatprep.subr.bf16.mxu0 %v8801_v38 }
 0xd8e   : > { %7840 = vmatpush3.bf16.msra.mxu0 %v8471_v54 }
 0xd8f   : > { %7841 = vmatprep.subr.bf16.mxu0 %v8801_v38 }
 0xd92   : > { %7842 = vmatpush3.bf16.msra.mxu0 %v8472_v25 }
 0xd93   : > { %7843 = vmatprep.subr.bf16.mxu0 %v8801_v38 }
 0xd96   : > { %7844 = vmatpush3.bf16.msra.mxu0 %v8473_v40 }
 0xd97   : > { %7845 = vmatprep.subr.bf16.mxu0 %v8801_v38 }
 0xd9a   : > { %7846 = vmatpush3.bf16.msra.mxu0 %v8474_v51 }
 0xd9b   : > { %7871 = vmatprep.subr.bf16.mxu0 %v8801_v38 }
 0xe50   : > { %v4126_v45 = vpop.f32.mrb[112].mxu0 }
 0xe51   : > { %v4127_v17 = vadd.f32 %v6701_v57, %v4126_v45  ;;  %v7829_v47 = vpop.f32.mrb[113].mxu0 }
 0xe52   : > { %v4129_v37 = vpop.f32.mrb[114].mxu0 }
 0xe53   : > { %v4132_v41 = vmul.f32 0.5, %v4127_v17  ;;  %v7830_v53 = vpop.f32.mrb[115].mxu0 }
 0xe55   : > { %8685 = vtanh.f32 %v4132_v41 }
 0xe5f   : > { %v8686_v27 = vpop.eup %8685 }
 0xe60   : > { %v4134_v32 = vadd.f32 1.0, %v8686_v27 }
 0xe62   : > { %v4135_v35 = vmul.f32 0.5, %v4134_v32 }
 0xe64   : > { %v4136_v10 = vmul.f32 %v4135_v35, %v4127_v17 }
 0xe66   : > { %v4155_v3 = vpack.c.bf16 %v4136_v10, %v4136_v10 }
 0xe68   : > { %7848 = vmatmul.mubr.bf16.vlgmr.msra.gmra.mrb[116].mxu0 %v4155_v3 }
 0xe69   : > { %7872 = vmatpush3.bf16.msra.mxu0 %v8475_v56  ;;  %7887 = vmatprep.mubr.msk.bf16.mxu0 %vm8802_vm0, %v8801_v38 }
 0xe6a   : > { %7873 = vmatprep.subr.bf16.mxu0 %v8801_v38 }
 0xe6d   : > { %7874 = vmatpush3.bf16.msra.mxu0 %v8476_v22 }
 0xe6e   : > { %7875 = vmatprep.subr.bf16.mxu0 %v8801_v38 }
 0xe71   : > { %7876 = vmatpush3.bf16.msra.mxu0 %v8477_v23  ;;  %v4542_v23 = vld [vmem:[%s10873_s9] sm:$0x1] }
 0xe72   : > { %7877 = vmatprep.subr.bf16.mxu0 %v8801_v38 }
 0xe75   : > { %7878 = vmatpush3.bf16.msra.mxu0 %v8478_v39  ;;  %v8483_v39 = vld [vmem:[#allocation2 + $0x3c0] sm:$0xff]  }
 0xe76   : > { %7879 = vmatprep.subr.bf16.mxu0 %v8801_v38 }
 0xe79   : > { %7880 = vmatpush3.bf16.msra.mxu0 %v8479_v30  ;;  %v8484_v30 = vld [vmem:[#allocation2 + $0x3c8] sm:$0xff]  }
 0xe7a   : > { %7881 = vmatprep.subr.bf16.mxu0 %v8801_v38 }
 0xe7d   : > { %7882 = vmatpush3.bf16.msra.mxu0 %v8480_v62  ;;  %v8485_v62 = vld [vmem:[#allocation2 + $0x3d0] sm:$0xff]  }
 0xe7e   : > { %7883 = vmatprep.subr.bf16.mxu0 %v8801_v38 }
 0xe81   : > { %7884 = vmatpush3.bf16.msra.mxu0 %v8481_v4  ;;  %v8486_v4 = vld [vmem:[#allocation2 + $0x3d8] sm:$0xff]  }
 0xe82   : > { %7885 = vmatprep.subr.bf16.mxu0 %v8801_v38 }
 0xe85   : > { %7886 = vmatpush3.bf16.msra.mxu0 %v8482_v20  ;;  %v8491_v20 = vld [vmem:[#allocation2 + $0x400] sm:$0xff]  }
 0xe86   : > { %7921 = vmatprep.subr.bf16.mxu0 %v8801_v38 }
 0xf3b   : > { %v4242_v33 = vpop.f32.mrb[116].mxu0 }
 0xf3c   : > { %v4243_v60 = vadd.f32 %v6703_v48, %v4242_v33  ;;  %v7849_v63 = vpop.f32.mrb[117].mxu0  ;;  %v8493_v48 = vld [vmem:[#allocation2 + $0x408] sm:$0xff]   ;;  %v8487_v33 = vld [vmem:[#allocation2 + $0x3e0] sm:$0xff]  }
 0xf3d   : > { %v4245_v29 = vpop.f32.mrb[118].mxu0  ;;  %v8489_v63 = vld [vmem:[#allocation2 + $0x3f0] sm:$0xff]  }
 0xf3e   : > { %v4248_v42 = vmul.f32 0.5, %v4243_v60  ;;  %v7850_v52 = vpop.f32.mrb[119].mxu0  ;;  %v8490_v29 = vld [vmem:[#allocation2 + $0x3f8] sm:$0xff]  }
 0xf40   : > { %8687 = vtanh.f32 %v4248_v42  ;;  %v4480_v42 = vld [vmem:[%s10866_s2 + $0x12] sm:$0x1] }
 0xf4a   : > { %v8688_v31 = vpop.eup %8687 }
 0xf4b   : > { %v4250_v49 = vadd.f32 1.0, %v8688_v31 }
 0xf4d   : > { %v4251_v24 = vmul.f32 0.5, %v4250_v49 }
 0xf4f   : > { %v4252_v19 = vmul.f32 %v4251_v24, %v4243_v60  ;;  %v8488_v60 = vld [vmem:[#allocation2 + $0x3e8] sm:$0xff]  }
 0xf51   : > { %v4253_v18 = vadd.f32 %v4252_v19, %v10514_v14  ;;  %v6729_v14 = vld [vmem:[%s10867_s3 + $0x50] sm:$0xff] }
 0xf52   : > { %v4489_v5 = vrot.slane %v6729_v14, %v10889_v36  ;;  %v4499_v44 = vrot.slane %v6729_v14, %v10888_v58  ;;  %v4509_v11 = vrot.slane %v6729_v14, %v9291_v7  ;;  %v4484_v12 = vrot.slane %v6729_v14, %v8908_v2 }
 0xf53   : > { %v4254_v46 = vpack.c.bf16 %v4253_v18, %v4253_v18  ;;  %v4494_v54 = vrot.slane %v6729_v14, %v9097_v50  ;;  %v4504_v51 = vrot.slane %v6729_v14, %v9284_v15  ;;  %v4514_v57 = vrot.slane %v6729_v14, %v9382_v6 }
 0xf55   : > { %7888 = vmatmul.mubr.bf16.vlgmr.msra.gmra.mrb[120].mxu0 %v4254_v46 }
 0xf56   : > { %7937 = vmatprep.mubr.msk.bf16.mxu0 %vm8802_vm0, %v8801_v38  ;;  %7922 = vmatpush3.bf16.msra.mxu0 %v8491_v20 }
 0xf57   : > { %7923 = vmatprep.subr.bf16.mxu0 %v8801_v38 }
 0xf5a   : > { %7924 = vmatpush3.bf16.msra.mxu0 %v8493_v48 }
 0xf5b   : > { %7925 = vmatprep.subr.bf16.mxu0 %v8801_v38 }
0x1028   : > { %v4460_v28 = vpop.f32.mrb[120].mxu0 }
0x1029   : > { %v4461_v9 = vadd.f32 %v4460_v28, %v10552_v13  ;;  %v7889_v0 = vpop.f32.mrb[121].mxu0  ;;  %v4519_v13 = vrot.slane %v6729_v14, %v9392_v8  ;;  %v6731_v8 = vld [vmem:[%s10867_s3 + $0x58] ss:$0 sm:$0xff] }
0x102a   : > { %v4463_v34 = vpop.f32.mrb[122].mxu0  ;;  %v8492_v0 = vld [vmem:[#allocation2 + $0x440] sm:$0xff]   ;;  %v8498_v14 = vld [vmem:[#allocation2 + $0x458] sm:$0xff]  }
0x102b   : > { %v4471_v16 = vadd.f32 %v6728_v26, %v4461_v9  ;;  %v7890_v61 = vpop.f32.mrb[123].mxu0 }
0x102c   : > { %v8495_v61 = vld [vmem:[#allocation2 + $0x410] sm:$0xff]  }
0x102d   : > { %v4472_v21 = vmul.f32 0.5, %v4471_v16  ;;  %7926 = vmatpush3.bf16.msra.mxu0 %v8495_v61 }
0x102e   : > { %7927 = vmatprep.subr.bf16.mxu0 %v8801_v38 }
0x102f   : > { %8689 = vtanh.f32 %v4472_v21  ;;  %v8496_v21 = vld [vmem:[#allocation2 + $0x450] sm:$0xff]  }
0x1039   : > { %v8690_v59 = vpop.eup %8689 }
0x103a   : > { %v4474_v55 = vadd.f32 1.0, %v8690_v59  ;;  %v8497_v59 = vld [vmem:[#allocation2 + $0x418] sm:$0xff]  }
0x103b   : > { %7928 = vmatpush3.bf16.msra.mxu0 %v8497_v59  ;;  %v8523_v59 = vld [vmem:[#allocation2 + $0x4c0] sm:$0xff]  }
0x103c   : > { %v4475_v1 = vmul.f32 0.5, %v4474_v55  ;;  %v8499_v55 = vld [vmem:[#allocation2 + $0x420] sm:$0xff]   ;;  %7929 = vmatprep.subr.bf16.mxu0 %v8801_v38 }
0x103e   : > { %v4476_v43 = vmul.f32 %v4475_v1, %v4471_v16  ;;  %v8494_v16 = vld [vmem:[#allocation2 + $0x448] sm:$0xff]   ;;  %v8500_v1 = vld [vmem:[#allocation2 + $0x460] sm:$0xff]  }
0x103f   : > { %7930 = vmatpush3.bf16.msra.mxu0 %v8499_v55  ;;  %v8525_v55 = vld [vmem:[#allocation2 + $0x4d0] sm:$0xff]  }
0x1040   : > { %v4490_v25 = vmul.f32 %v4489_v5, %v4476_v43  ;;  %v4500_v40 = vmul.f32 %v4499_v44, %v4476_v43  ;;  %v4510_v45 = vmul.f32 %v4509_v11, %v4476_v43  ;;  %v4520_v17 = vmul.f32 %v4519_v13, %v4476_v43  ;;  %v8501_v5 = vld [vmem:[#allocation2 + $0x428] sm:$0xff]   ;;  %7931 = vmatprep.subr.bf16.mxu0 %v8801_v38  ;;  %v8503_v11 = vld [vmem:[#allocation2 + $0x430] sm:$0xff]  }
0x1041   : > { %v4485_v36 = vmul.f32 %v4484_v12, %v4476_v43  ;;  %v4495_v47 = vmul.f32 %v4494_v54, %v4476_v43  ;;  %v4505_v27 = vmul.f32 %v4504_v51, %v4476_v43  ;;  %v4515_v15 = vmul.f32 %v4514_v57, %v4476_v43  ;;  %v8502_v44 = vld [vmem:[#allocation2 + $0x468] sm:$0xff]   ;;  %v8504_v13 = vld [vmem:[#allocation2 + $0x470] sm:$0xff]   ;;  %v8506_v12 = vld [vmem:[#allocation2 + $0x478] sm:$0xff]  }
0x1042   : > { %v4527_v58 = vrot.slane %v4490_v25, 4  ;;  %v4530_v37 = vrot.slane %v4500_v40, 4  ;;  %v4533_v7 = vrot.slane %v4510_v45, 4  ;;  %v4536_v41 = vrot.slane %v4520_v17, 4  ;;  %v4614_v54 = vld [vmem:[%s10866_s2 + $0x13] sm:$0x1] }
0x1043   : > { %v4525_v10 = vmul.f32 %v6731_v8, %v4476_v43  ;;  %7932 = vmatpush3.bf16.msra.mxu0 %v8501_v5  ;;  %v8505_v43 = vld [vmem:[#allocation2 + $0x438] sm:$0xff]   ;;  %v8508_v8 = vld [vmem:[#allocation2 + $0x488] sm:$0xff]   ;;  %v8527_v5 = vld [vmem:[#allocation2 + $0x4e0] sm:$0xff]  }
0x1044   : > { %v4538_v50 = vsel %vm4071_vm3, %v4485_v36, %v4527_v58  ;;  %v4539_v53 = vsel %vm4071_vm3, %v4495_v47, %v4530_v37  ;;  %v4540_v6 = vsel %vm4071_vm3, %v4505_v27, %v4533_v7  ;;  %v4541_v35 = vsel %vm4071_vm3, %v4515_v15, %v4536_v41  ;;  %7933 = vmatprep.subr.bf16.mxu0 %v8801_v38  ;;  %v8507_v7 = vld [vmem:[#allocation2 + $0x480] sm:$0xff]   ;;  %v8512_v15 = vld [vmem:[#allocation2 + $0x4a8] sm:$0xff]  }
0x1045   : > { %v4543_v32 = vpack.c.bf16 %v4539_v53, %v4538_v50  ;;  %v4544_v56 = vpack.c.bf16 %v4541_v35, %v4540_v6  ;;  %v4545_v3 = vpack.c.bf16 %v4525_v10, %v4525_v10  ;;  %v8509_v50 = vld [vmem:[#allocation2 + $0x490] sm:$0xff]   ;;  %v8510_v53 = vld [vmem:[#allocation2 + $0x498] sm:$0xff]   ;;  %v8511_v27 = vld [vmem:[#allocation2 + $0x4a0] sm:$0xff]  }
0x1046   : > { %v8514_v6 = vld [vmem:[#allocation2 + $0x4b8] sm:$0xff]   ;;  %v4728_v35 = vld [vmem:[%s10866_s2 + $0x14] sm:$0x1] }
0x1047   : > { %7892 = vmatpush3.bf16.msra.mxu1 %v4543_v32  ;;  %v4550_v22 = vsel %vm4088_vm4, %v4545_v3, 0  ;;  %7934 = vmatpush3.bf16.msra.mxu0 %v8503_v11  ;;  %v8513_v32 = vld [vmem:[#allocation2 + $0x4b0] sm:$0xff]  }
0x1048   : > { %7893 = vmatprep.subr.bf16.mxu1 %v8801_v38  ;;  %7935 = vmatprep.subr.bf16.mxu0 %v8801_v38  ;;  %v8529_v11 = vld [vmem:[#allocation2 + $0x4f0] sm:$0xff]  }
0x104b   : > { %7894 = vmatpush3.bf16.msra.mxu1 %v4544_v56  ;;  %7936 = vmatpush3.bf16.msra.mxu0 %v8505_v43  ;;  %v4951_v43 = vld [vmem:[%s10866_s2 + $0x16] sm:$0x1] }
0x104c   : > { %7895 = vmatprep.subr.bf16.mxu1 %v8801_v38  ;;  %7961 = vmatprep.subr.bf16.mxu0 %v8801_v38 }
0x104f   : > { %7896 = vmatpush3.bf16.msra.mxu1 %v4550_v22 }
0x1050   : > { %7901 = vmatprep.subr.bf16.mxu1 %v8801_v38 }
0x1052   : > { %7898 = vmatmul.mubr.msk.bf16.vlgmr.msra.gmra.mrb[108].mxu1 %vm4084_vm5, %v4542_v23 }
0x1053   : > { %7902 = vmatpush3.bf16.msra.mxu1 %v8483_v39  ;;  %7917 = vmatprep.mubr.msk.bf16.mxu1 %vm8802_vm0, %v8801_v38 }
0x1054   : > { %7903 = vmatprep.subr.bf16.mxu1 %v8801_v38 }
0x1057   : > { %7904 = vmatpush3.bf16.msra.mxu1 %v8484_v30 }
0x1058   : > { %7905 = vmatprep.subr.bf16.mxu1 %v8801_v38 }
0x105b   : > { %7906 = vmatpush3.bf16.msra.mxu1 %v8485_v62 }
0x105c   : > { %7907 = vmatprep.subr.bf16.mxu1 %v8801_v38 }
0x105f   : > { %7908 = vmatpush3.bf16.msra.mxu1 %v8486_v4 }
0x1060   : > { %7909 = vmatprep.subr.bf16.mxu1 %v8801_v38 }
0x1063   : > { %7910 = vmatpush3.bf16.msra.mxu1 %v8487_v33 }
0x1064   : > { %7911 = vmatprep.subr.bf16.mxu1 %v8801_v38 }
0x1067   : > { %7912 = vmatpush3.bf16.msra.mxu1 %v8488_v60 }
0x1068   : > { %7913 = vmatprep.subr.bf16.mxu1 %v8801_v38 }
0x106b   : > { %7914 = vmatpush3.bf16.msra.mxu1 %v8489_v63  ;;  %v4840_v63 = vld [vmem:[%s10866_s2 + $0x15] sm:$0x1] }
0x106c   : > { %7915 = vmatprep.subr.bf16.mxu1 %v8801_v38 }
0x106f   : > { %7916 = vmatpush3.bf16.msra.mxu1 %v8490_v29 }
0x1070   : > { %7941 = vmatprep.subr.bf16.mxu1 %v8801_v38 }
0x1125   : > { %v4586_v52 = vpop.f32.mrb[108].mxu1 }
0x1126   : > { %v4587_v31 = vadd.f32 %v4586_v52, %v4480_v42  ;;  %v7899_v49 = vpop.f32.mrb[109].mxu1  ;;  %v8515_v52 = vld [vmem:[#allocation2 + $0x540] sm:$0xff]  }
0x1127   : > { %v4589_v24 = vpop.f32.mrb[110].mxu1 }
0x1128   : > { %v4592_v19 = vmul.f32 0.5, %v4587_v31  ;;  %v7900_v18 = vpop.f32.mrb[111].mxu1  ;;  %v8516_v24 = vld [vmem:[#allocation2 + $0x548] sm:$0xff]  }
0x1129   : > { %v8518_v18 = vld [vmem:[#allocation2 + $0x558] sm:$0xff]  }
0x112a   : > { %8691 = vtanh.f32 %v4592_v19  ;;  %v8517_v19 = vld [vmem:[#allocation2 + $0x550] sm:$0xff]  }
0x1134   : > { %v8692_v46 = vpop.eup %8691 }
0x1135   : > { %v4594_v28 = vadd.f32 1.0, %v8692_v46  ;;  %v8519_v46 = vld [vmem:[#allocation2 + $0x560] sm:$0xff]  }
0x1137   : > { %v4595_v26 = vmul.f32 0.5, %v4594_v28 }
0x1139   : > { %v4596_v9 = vmul.f32 %v4595_v26, %v4587_v31  ;;  %v8520_v26 = vld [vmem:[#allocation2 + $0x568] sm:$0xff]  }
0x113b   : > { %v4615_v34 = vpack.c.bf16 %v4596_v9, %v4596_v9 }
0x113d   : > { %7918 = vmatmul.mubr.bf16.vlgmr.msra.gmra.mrb[112].mxu1 %v4615_v34 }
0x113e   : > { %7942 = vmatpush3.bf16.msra.mxu1 %v8492_v0  ;;  %7957 = vmatprep.mubr.msk.bf16.mxu1 %vm8802_vm0, %v8801_v38  ;;  %v8521_v0 = vld [vmem:[#allocation2 + $0x570] sm:$0xff]  }
0x113f   : > { %7943 = vmatprep.subr.bf16.mxu1 %v8801_v38 }
0x1142   : > { %7944 = vmatpush3.bf16.msra.mxu1 %v8494_v16  ;;  %v8522_v16 = vld [vmem:[#allocation2 + $0x578] sm:$0xff]  }
0x1143   : > { %7945 = vmatprep.subr.bf16.mxu1 %v8801_v38 }
0x1146   : > { %7946 = vmatpush3.bf16.msra.mxu1 %v8496_v21 }
0x1147   : > { %7947 = vmatprep.subr.bf16.mxu1 %v8801_v38 }
0x114a   : > { %7948 = vmatpush3.bf16.msra.mxu1 %v8498_v14  ;;  %v8524_v14 = vld [vmem:[#allocation2 + $0x4c8] sm:$0xff]  }
0x114b   : > { %7949 = vmatprep.subr.bf16.mxu1 %v8801_v38 }
0x114e   : > { %7950 = vmatpush3.bf16.msra.mxu1 %v8500_v1  ;;  %v8526_v1 = vld [vmem:[#allocation2 + $0x4d8] sm:$0xff]  }
0x114f   : > { %7951 = vmatprep.subr.bf16.mxu1 %v8801_v38 }
0x1152   : > { %7952 = vmatpush3.bf16.msra.mxu1 %v8502_v44  ;;  %v8528_v44 = vld [vmem:[#allocation2 + $0x4e8] sm:$0xff]  }
0x1153   : > { %7953 = vmatprep.subr.bf16.mxu1 %v8801_v38 }
0x1156   : > { %7954 = vmatpush3.bf16.msra.mxu1 %v8504_v13  ;;  %v8530_v13 = vld [vmem:[#allocation2 + $0x4f8] sm:$0xff]  }
0x1157   : > { %7955 = vmatprep.subr.bf16.mxu1 %v8801_v38 }
0x115a   : > { %7956 = vmatpush3.bf16.msra.mxu1 %v8506_v12 }
0x115b   : > { %7981 = vmatprep.subr.bf16.mxu1 %v8801_v38 }
0x1210   : > { %v4698_v25 = vpop.f32.mrb[112].mxu1 }
0x1211   : > { %v4699_v40 = vadd.f32 %v4698_v25, %v4614_v54  ;;  %v7919_v51 = vpop.f32.mrb[113].mxu1 }
0x1212   : > { %v4701_v57 = vpop.f32.mrb[114].mxu1 }
0x1213   : > { %v4704_v45 = vmul.f32 0.5, %v4699_v40  ;;  %v7920_v17 = vpop.f32.mrb[115].mxu1 }
0x1214   : > { %v6741_v17 = vld [vmem:[%s10867_s3 + $0x60] sm:$0xff] }
0x1215   : > { %8693 = vtanh.f32 %v4704_v45 }
0x121f   : > { %v8694_v36 = vpop.eup %8693 }
0x1220   : > { %v4706_v47 = vadd.f32 1.0, %v8694_v36 }
0x1222   : > { %v4707_v58 = vmul.f32 0.5, %v4706_v47 }
0x1224   : > { %v4708_v37 = vmul.f32 %v4707_v58, %v4699_v40  ;;  %v5048_v58 = vrot.slane %v6741_v17, 4 }
0x1226   : > { %v4729_v41 = vpack.c.bf16 %v4708_v37, %v4708_v37 }
0x1228   : > { %7938 = vmatmul.mubr.bf16.vlgmr.msra.gmra.mrb[124].mxu0 %v4729_v41  ;;  %7958 = vmatmul.mubr.bf16.vlgmr.msra.gmra.mrb[116].mxu1 %v4729_v41 }
0x1229   : > { %7962 = vmatpush3.bf16.msra.mxu0 %v8507_v7  ;;  %7977 = vmatprep.mubr.msk.bf16.mxu0 %vm8802_vm0, %v8801_v38  ;;  %v5046_v7 = vld [vmem:[%s10866_s2 + $0x17] sm:$0x1] }
0x122a   : > { %7963 = vmatprep.subr.bf16.mxu0 %v8801_v38  ;;  %7997 = vmatprep.mubr.msk.bf16.mxu1 %vm8802_vm0, %v8801_v38 }
0x122b   : > { %7982 = vmatpush3.bf16.msra.mxu1 %v8523_v59  ;;  %v8549_v59 = vld [vmem:[#allocation2 + $0x5c8] sm:$0xff]  }
0x122c   : > { %7983 = vmatprep.subr.bf16.mxu1 %v8801_v38 }
0x122d   : > { %7964 = vmatpush3.bf16.msra.mxu0 %v8508_v8 }
0x122e   : > { %7965 = vmatprep.subr.bf16.mxu0 %v8801_v38 }
0x122f   : > { %7984 = vmatpush3.bf16.msra.mxu1 %v8524_v14  ;;  %v8545_v14 = vld [vmem:[#allocation2 + $0x5b0] sm:$0xff]  }
0x1230   : > { %7985 = vmatprep.subr.bf16.mxu1 %v8801_v38 }
0x1231   : > { %7966 = vmatpush3.bf16.msra.mxu0 %v8509_v50 }
0x1232   : > { %7967 = vmatprep.subr.bf16.mxu0 %v8801_v38 }
0x1233   : > { %7986 = vmatpush3.bf16.msra.mxu1 %v8525_v55  ;;  %v8546_v55 = vld [vmem:[#allocation2 + $0x5b8] sm:$0xff]  }
0x1234   : > { %7987 = vmatprep.subr.bf16.mxu1 %v8801_v38 }
0x1235   : > { %7968 = vmatpush3.bf16.msra.mxu0 %v8510_v53 }
0x1236   : > { %7969 = vmatprep.subr.bf16.mxu0 %v8801_v38 }
0x1237   : > { %7988 = vmatpush3.bf16.msra.mxu1 %v8526_v1 }
0x1238   : > { %7989 = vmatprep.subr.bf16.mxu1 %v8801_v38 }
0x1239   : > { %7970 = vmatpush3.bf16.msra.mxu0 %v8511_v27 }
0x123a   : > { %7971 = vmatprep.subr.bf16.mxu0 %v8801_v38 }
0x123b   : > { %7990 = vmatpush3.bf16.msra.mxu1 %v8527_v5  ;;  %v5382_v5 = vld [vmem:[%s10866_s2 + $0x19] sm:$0x1] }
0x123c   : > { %7991 = vmatprep.subr.bf16.mxu1 %v8801_v38 }
0x123d   : > { %7972 = vmatpush3.bf16.msra.mxu0 %v8512_v15 }
0x123e   : > { %7973 = vmatprep.subr.bf16.mxu0 %v8801_v38 }
0x123f   : > { %7992 = vmatpush3.bf16.msra.mxu1 %v8528_v44 }
0x1240   : > { %7993 = vmatprep.subr.bf16.mxu1 %v8801_v38 }
0x1241   : > { %7974 = vmatpush3.bf16.msra.mxu0 %v8513_v32 }
0x1242   : > { %7975 = vmatprep.subr.bf16.mxu0 %v8801_v38 }
0x1243   : > { %7994 = vmatpush3.bf16.msra.mxu1 %v8529_v11 }
0x1244   : > { %7995 = vmatprep.subr.bf16.mxu1 %v8801_v38 }
0x1245   : > { %7976 = vmatpush3.bf16.msra.mxu0 %v8514_v6 }
0x1246   : > { %8001 = vmatprep.subr.bf16.mxu0 %v8801_v38 }
0x1247   : > { %7996 = vmatpush3.bf16.msra.mxu1 %v8530_v13 }
0x1248   : > { %8021 = vmatprep.subr.bf16.mxu1 %v8801_v38 }
0x12fb   : > { %v4812_v10 = vpop.f32.mrb[124].mxu0  ;;  %v4923_v56 = vpop.f32.mrb[116].mxu1 }
0x12fc   : > { %v4813_v3 = vadd.f32 %v4812_v10, %v4728_v35  ;;  %v7939_v22 = vpop.f32.mrb[125].mxu0  ;;  %v7959_v23 = vpop.f32.mrb[117].mxu1  ;;  %v4924_v42 = vadd.f32 %v4923_v56, %v4840_v63 }
0x12fd   : > { %v4815_v39 = vpop.f32.mrb[126].mxu0  ;;  %v4926_v30 = vpop.f32.mrb[118].mxu1  ;;  %v8532_v23 = vld [vmem:[#allocation2 + $0x508] sm:$0xff]  }
0x12fe   : > { %v4818_v62 = vmul.f32 0.5, %v4813_v3  ;;  %v7940_v4 = vpop.f32.mrb[127].mxu0  ;;  %v7960_v20 = vpop.f32.mrb[119].mxu1  ;;  %v4929_v49 = vmul.f32 0.5, %v4924_v42  ;;  %v8533_v39 = vld [vmem:[#allocation2 + $0x510] sm:$0xff]   ;;  %v8534_v30 = vld [vmem:[#allocation2 + $0x518] sm:$0xff]  }
0x12ff   : > { %v8536_v4 = vld [vmem:[#allocation2 + $0x528] sm:$0xff]   ;;  %v8537_v20 = vld [vmem:[#allocation2 + $0x530] sm:$0xff]  }
0x1300   : > { %8695 = vtanh.f32 %v4818_v62  ;;  %v8535_v62 = vld [vmem:[#allocation2 + $0x520] sm:$0xff]  }
0x1301   : > { %8697 = vtanh.f32 %v4929_v49 }
0x130a   : > { %v8696_v48 = vpop.eup %8695 }
0x130b   : > { %v4820_v33 = vadd.f32 1.0, %v8696_v48  ;;  %v8698_v28 = vpop.eup %8697  ;;  %v8538_v48 = vld [vmem:[#allocation2 + $0x538] sm:$0xff]  }
0x130c   : > { %v4931_v9 = vadd.f32 1.0, %v8698_v28 }
0x130d   : > { %v4821_v60 = vmul.f32 0.5, %v4820_v33  ;;  %v5074_v33 = vld [vmem:[%s10866_s2 + $0x18] sm:$0x1] }
0x130e   : > { %v4932_v34 = vmul.f32 0.5, %v4931_v9  ;;  %v8539_v9 = vld [vmem:[#allocation2 + $0x580] sm:$0xff]  }
0x130f   : > { %v10672_v29 = vmul.f32 %v4821_v60, %v4813_v3  ;;  %v8531_v3 = vld [vmem:[#allocation2 + $0x500] sm:$0xff]  }
0x1310   : > { %v4933_v61 = vmul.f32 %v4932_v34, %v4924_v42  ;;  %v8541_v34 = vld [vmem:[#allocation2 + $0x590] sm:$0xff]  }
0x1311   : > { %v4952_v31 = vpack.c.bf16 %v10672_v29, %v10672_v29 }
0x1312   : > { %v5188_v21 = vpack.c.bf16 %v4933_v61, %v4933_v61  ;;  %v8544_v61 = vld [vmem:[#allocation2 + $0x5a8] sm:$0xff]  }
0x1313   : > { %7978 = vmatmul.mubr.bf16.vlgmr.msra.gmra.mrb[128].mxu0 %v4952_v31 }
0x1314   : > { %8002 = vmatpush3.bf16.msra.mxu0 %v8515_v52  ;;  %8017 = vmatprep.mubr.msk.bf16.mxu0 %vm8802_vm0, %v8801_v38 }
0x1315   : > { %8003 = vmatprep.subr.bf16.mxu0 %v8801_v38 }
0x1318   : > { %8004 = vmatpush3.bf16.msra.mxu0 %v8516_v24 }
0x1319   : > { %8005 = vmatprep.subr.bf16.mxu0 %v8801_v38 }
0x131c   : > { %8006 = vmatpush3.bf16.msra.mxu0 %v8517_v19 }
0x131d   : > { %8007 = vmatprep.subr.bf16.mxu0 %v8801_v38 }
0x1320   : > { %8008 = vmatpush3.bf16.msra.mxu0 %v8518_v18 }
0x1321   : > { %8009 = vmatprep.subr.bf16.mxu0 %v8801_v38 }
0x1324   : > { %8010 = vmatpush3.bf16.msra.mxu0 %v8519_v46 }
0x1325   : > { %8011 = vmatprep.subr.bf16.mxu0 %v8801_v38 }
0x1328   : > { %8012 = vmatpush3.bf16.msra.mxu0 %v8520_v26 }
0x1329   : > { %8013 = vmatprep.subr.bf16.mxu0 %v8801_v38 }
0x132c   : > { %8014 = vmatpush3.bf16.msra.mxu0 %v8521_v0  ;;  %v8540_v0 = vld [vmem:[#allocation2 + $0x588] sm:$0xff]  }
0x132d   : > { %8015 = vmatprep.subr.bf16.mxu0 %v8801_v38 }
0x1330   : > { %8016 = vmatpush3.bf16.msra.mxu0 %v8522_v16  ;;  %v8542_v16 = vld [vmem:[#allocation2 + $0x598] sm:$0xff]  }
0x1331   : > { %8041 = vmatprep.subr.bf16.mxu0 %v8801_v38 }
0x1333   : > { %8018 = vmatmul.mubr.bf16.vlgmr.msra.gmra.mrb[132].mxu0 %v5188_v21  ;;  %v8547_v21 = vld [vmem:[#allocation2 + $0x5c0] sm:$0xff]  }
0x1334   : > { %8057 = vmatprep.mubr.msk.bf16.mxu0 %vm8802_vm0, %v8801_v38  ;;  %8042 = vmatpush3.bf16.msra.mxu0 %v8539_v9  ;;  %v8566_v9 = vld [vmem:[#allocation2 + $0x658] sm:$0xff]  }
0x1335   : > { %8043 = vmatprep.subr.bf16.mxu0 %v8801_v38 }
0x1338   : > { %8044 = vmatpush3.bf16.msra.mxu0 %v8540_v0  ;;  %v8567_v0 = vld [vmem:[#allocation2 + $0x660] sm:$0xff]  }
0x1339   : > { %8045 = vmatprep.subr.bf16.mxu0 %v8801_v38 }
0x133c   : > { %8046 = vmatpush3.bf16.msra.mxu0 %v8541_v34  ;;  %v8568_v34 = vld [vmem:[#allocation2 + $0x668] sm:$0xff]  }
0x133d   : > { %8047 = vmatprep.subr.bf16.mxu0 %v8801_v38 }
0x1340   : > { %8048 = vmatpush3.bf16.msra.mxu0 %v8542_v16  ;;  %v8569_v16 = vld [vmem:[#allocation2 + $0x670] sm:$0xff]  }
0x1341   : > { %8049 = vmatprep.subr.bf16.mxu0 %v8801_v38 }
0x13e6   : > { %v5035_v12 = vpop.f32.mrb[128].mxu0 }
0x13e7   : > { %v5036_v54 = vadd.f32 %v5035_v12, %v4951_v43  ;;  %v7979_v25 = vpop.f32.mrb[129].mxu0 }
0x13e8   : > { %v5038_v40 = vpop.f32.mrb[130].mxu0 }
0x13e9   : > { %v5041_v51 = vmul.f32 0.5, %v5036_v54  ;;  %v7980_v57 = vpop.f32.mrb[131].mxu0  ;;  %v6790_v40 = vld [vmem:[%s10867_s3 + $0x70] sm:$0xff] }
0x13eb   : > { %8699 = vtanh.f32 %v5041_v51 }
0x13f5   : > { %v8700_v45 = vpop.eup %8699 }
0x13f6   : > { %v5043_v36 = vadd.f32 1.0, %v8700_v45  ;;  %v5393_v45 = vrot.slane %v6790_v40, 4  ;;  %v5645_v40 = vld [vmem:[%s10866_s2 + $0x1d] sm:$0x1] }
0x13f8   : > { %v5044_v47 = vmul.f32 0.5, %v5043_v36  ;;  %v5391_v36 = vld [vmem:[%s10866_s2 + $0x1a] sm:$0x1] }
0x13fa   : > { %v5045_v37 = vmul.f32 %v5044_v47, %v5036_v54 }
0x13fc   : > { %v5050_v41 = vmul.f32 %v5048_v58, %v5045_v37 }
0x13fe   : > { %v5051_v8 = vadd.f32 %v5050_v41, %v5046_v7 }
0x1400   : > { %v5052_v50 = vmul.f32 0.5, %v5051_v8 }
0x1402   : > { %8701 = vtanh.f32 %v5052_v50 }
0x1406   : > { %v10705_v53 = vpop.f32.mrb[132].mxu0 }
0x1407   : > { %v8019_v27 = vpop.f32.mrb[133].mxu0 }
0x1408   : > { %v5291_v15 = vpop.f32.mrb[134].mxu0 }
0x1409   : > { %v8020_v32 = vpop.f32.mrb[135].mxu0  ;;  %v8550_v15 = vld [vmem:[#allocation2 + $0x608] sm:$0xff]  }
0x140a   : > { %v8551_v32 = vld [vmem:[#allocation2 + $0x5d0] sm:$0xff]  }
0x140c   : > { %v8702_v6 = vpop.eup %8701 }
0x140d   : > { %v5054_v35 = vadd.f32 1.0, %v8702_v6  ;;  %v8552_v6 = vld [vmem:[#allocation2 + $0x610] sm:$0xff]  }
0x140f   : > { %v5055_v10 = vmul.f32 0.5, %v5054_v35  ;;  %v8553_v35 = vld [vmem:[#allocation2 + $0x5d8] sm:$0xff]  }
0x1411   : > { %v5056_v56 = vmul.f32 %v5055_v10, %v5051_v8  ;;  %v8554_v10 = vld [vmem:[#allocation2 + $0x618] sm:$0xff]  }
0x1413   : > { %v5075_v22 = vpack.c.bf16 %v5056_v56, %v5056_v56  ;;  %v8555_v56 = vld [vmem:[#allocation2 + $0x5e0] sm:$0xff]  }
0x1415   : > { %7998 = vmatmul.mubr.bf16.vlgmr.msra.gmra.mrb[120].mxu1 %v5075_v22  ;;  %v8557_v22 = vld [vmem:[#allocation2 + $0x5e8] sm:$0xff]  }
0x1416   : > { %8022 = vmatpush3.bf16.msra.mxu1 %v8531_v3  ;;  %8037 = vmatprep.mubr.msk.bf16.mxu1 %vm8802_vm0, %v8801_v38  ;;  %v8556_v3 = vld [vmem:[#allocation2 + $0x620] sm:$0xff]  }
0x1417   : > { %8023 = vmatprep.subr.bf16.mxu1 %v8801_v38 }
0x141a   : > { %8024 = vmatpush3.bf16.msra.mxu1 %v8532_v23  ;;  %v8558_v23 = vld [vmem:[#allocation2 + $0x628] sm:$0xff]  }
0x141b   : > { %8025 = vmatprep.subr.bf16.mxu1 %v8801_v38 }
0x141e   : > { %8026 = vmatpush3.bf16.msra.mxu1 %v8533_v39  ;;  %v8559_v39 = vld [vmem:[#allocation2 + $0x5f0] sm:$0xff]  }
0x141f   : > { %8027 = vmatprep.subr.bf16.mxu1 %v8801_v38 }
0x1422   : > { %8028 = vmatpush3.bf16.msra.mxu1 %v8534_v30  ;;  %v8560_v30 = vld [vmem:[#allocation2 + $0x630] sm:$0xff]  }
0x1423   : > { %8029 = vmatprep.subr.bf16.mxu1 %v8801_v38 }
0x1426   : > { %8030 = vmatpush3.bf16.msra.mxu1 %v8535_v62  ;;  %v8561_v62 = vld [vmem:[#allocation2 + $0x5f8] sm:$0xff]  }
0x1427   : > { %8031 = vmatprep.subr.bf16.mxu1 %v8801_v38 }
0x142a   : > { %8032 = vmatpush3.bf16.msra.mxu1 %v8536_v4  ;;  %v8562_v4 = vld [vmem:[#allocation2 + $0x638] sm:$0xff]  }
0x142b   : > { %8033 = vmatprep.subr.bf16.mxu1 %v8801_v38 }
0x142e   : > { %8034 = vmatpush3.bf16.msra.mxu1 %v8537_v20  ;;  %v5419_v20 = vld [vmem:[%s10866_s2 + $0x1b] sm:$0x1] }
0x142f   : > { %8035 = vmatprep.subr.bf16.mxu1 %v8801_v38 }
0x1432   : > { %8036 = vmatpush3.bf16.msra.mxu1 %v8538_v48 }
0x1433   : > { %8061 = vmatprep.subr.bf16.mxu1 %v8801_v38 }
0x14e8   : > { %v5158_v60 = vpop.f32.mrb[120].mxu1 }
0x14e9   : > { %v5159_v63 = vadd.f32 %v5158_v60, %v5074_v33  ;;  %v7999_v42 = vpop.f32.mrb[121].mxu1 }
0x14ea   : > { %v5161_v52 = vpop.f32.mrb[122].mxu1 }
0x14eb   : > { %v5164_v31 = vmul.f32 0.5, %v5159_v63  ;;  %v8000_v49 = vpop.f32.mrb[123].mxu1 }
0x14ed   : > { %8703 = vtanh.f32 %v5164_v31 }
0x14f7   : > { %v8704_v24 = vpop.eup %8703 }
0x14f8   : > { %v5166_v19 = vadd.f32 1.0, %v8704_v24 }
0x14fa   : > { %v5167_v18 = vmul.f32 0.5, %v5166_v19 }
0x14fc   : > { %v5168_v46 = vmul.f32 %v5167_v18, %v5159_v63  ;;  %v8563_v18 = vld [vmem:[#allocation2 + $0x640] sm:$0xff]  }
0x14fe   : > { %v5169_v28 = vadd.f32 %v5168_v46, %v10672_v29  ;;  %v8543_v29 = vld [vmem:[#allocation2 + $0x5a0] sm:$0xff]  }
0x14ff   : > { %8050 = vmatpush3.bf16.msra.mxu0 %v8543_v29  ;;  %v8570_v29 = vld [vmem:[#allocation2 + $0x678] sm:$0xff]  }
0x1500   : > { %v5170_v26 = vpack.c.bf16 %v5169_v28, %v5169_v28  ;;  %8051 = vmatprep.subr.bf16.mxu0 %v8801_v38  ;;  %v8564_v28 = vld [vmem:[#allocation2 + $0x648] sm:$0xff]  }
0x1502   : > { %8038 = vmatmul.mubr.bf16.vlgmr.msra.gmra.mrb[124].mxu1 %v5170_v26  ;;  %v8565_v26 = vld [vmem:[#allocation2 + $0x650] sm:$0xff]  }
0x1503   : > { %8077 = vmatprep.mubr.msk.bf16.mxu1 %vm8802_vm0, %v8801_v38  ;;  %8062 = vmatpush3.bf16.msra.mxu1 %v8547_v21 }
0x1504   : > { %8052 = vmatpush3.bf16.msra.mxu0 %v8544_v61  ;;  %8063 = vmatprep.subr.bf16.mxu1 %v8801_v38  ;;  %v5533_v61 = vld [vmem:[%s10866_s2 + $0x1c] sm:$0x1] }
0x1505   : > { %8053 = vmatprep.subr.bf16.mxu0 %v8801_v38 }
0x1507   : > { %8064 = vmatpush3.bf16.msra.mxu1 %v8549_v59 }
0x1508   : > { %8054 = vmatpush3.bf16.msra.mxu0 %v8545_v14  ;;  %8065 = vmatprep.subr.bf16.mxu1 %v8801_v38 }
0x1509   : > { %8055 = vmatprep.subr.bf16.mxu0 %v8801_v38 }
0x150b   : > { %8066 = vmatpush3.bf16.msra.mxu1 %v8551_v32 }
0x150c   : > { %8056 = vmatpush3.bf16.msra.mxu0 %v8546_v55  ;;  %8067 = vmatprep.subr.bf16.mxu1 %v8801_v38 }
0x150d   : > { %8081 = vmatprep.subr.bf16.mxu0 %v8801_v38 }
0x150f   : > { %8068 = vmatpush3.bf16.msra.mxu1 %v8553_v35  ;;  %v8579_v35 = vld [vmem:[#allocation2 + $0x680] sm:$0xff]  }
0x1510   : > { %8069 = vmatprep.subr.bf16.mxu1 %v8801_v38 }
0x1513   : > { %8070 = vmatpush3.bf16.msra.mxu1 %v8555_v56  ;;  %v8581_v56 = vld [vmem:[#allocation2 + $0x690] sm:$0xff]  }
0x1514   : > { %8071 = vmatprep.subr.bf16.mxu1 %v8801_v38 }
0x1517   : > { %8072 = vmatpush3.bf16.msra.mxu1 %v8557_v22  ;;  %v8583_v22 = vld [vmem:[#allocation2 + $0x6a0] sm:$0xff]  }
0x1518   : > { %8073 = vmatprep.subr.bf16.mxu1 %v8801_v38 }
0x151b   : > { %8074 = vmatpush3.bf16.msra.mxu1 %v8559_v39  ;;  %v8585_v39 = vld [vmem:[#allocation2 + $0x6b0] sm:$0xff]  }
0x151c   : > { %8075 = vmatprep.subr.bf16.mxu1 %v8801_v38 }
0x151f   : > { %8076 = vmatpush3.bf16.msra.mxu1 %v8561_v62  ;;  %v5756_v62 = vld [vmem:[%s10866_s2 + $0x1e] sm:$0x1] }
0x1520   : > { %8101 = vmatprep.subr.bf16.mxu1 %v8801_v38 }
0x15d5   : > { %v5376_v1 = vpop.f32.mrb[124].mxu1 }
0x15d6   : > { %v5377_v44 = vadd.f32 %v5376_v1, %v10705_v53  ;;  %v8039_v11 = vpop.f32.mrb[125].mxu1  ;;  %v8548_v53 = vld [vmem:[#allocation2 + $0x600] sm:$0xff]  }
0x15d7   : > { %v5379_v13 = vpop.f32.mrb[126].mxu1 }
0x15d8   : > { %v5383_v43 = vadd.f32 %v5382_v5, %v5377_v44  ;;  %v8040_v12 = vpop.f32.mrb[127].mxu1 }
0x15da   : > { %v5384_v54 = vmul.f32 0.5, %v5383_v43 }
0x15dc   : > { %8705 = vtanh.f32 %v5384_v54 }
0x15e6   : > { %v8706_v25 = vpop.eup %8705 }
0x15e7   : > { %v5386_v51 = vadd.f32 1.0, %v8706_v25 }
0x15e9   : > { %v5387_v57 = vmul.f32 0.5, %v5386_v51 }
0x15eb   : > { %v5388_v17 = vmul.f32 %v5387_v57, %v5383_v43 }
0x15ed   : > { %v5395_v47 = vmul.f32 %v5393_v45, %v5388_v17  ;;  %v8571_v45 = vld [vmem:[#allocation2 + $0x700] sm:$0xff]  }
0x15ef   : > { %v5396_v58 = vadd.f32 %v5395_v47, %v5391_v36  ;;  %v8572_v47 = vld [vmem:[#allocation2 + $0x708] sm:$0xff]  }
0x15f1   : > { %v5397_v37 = vmul.f32 0.5, %v5396_v58 }
0x15f3   : > { %8707 = vtanh.f32 %v5397_v37  ;;  %v8574_v37 = vld [vmem:[#allocation2 + $0x718] sm:$0xff]  }
0x15fd   : > { %v8708_v7 = vpop.eup %8707 }
0x15fe   : > { %v5399_v41 = vadd.f32 1.0, %v8708_v7  ;;  %v8575_v7 = vld [vmem:[#allocation2 + $0x720] sm:$0xff]  }
0x1600   : > { %v5400_v8 = vmul.f32 0.5, %v5399_v41 }
0x1602   : > { %v5401_v50 = vmul.f32 %v5400_v8, %v5396_v58  ;;  %v8573_v58 = vld [vmem:[#allocation2 + $0x710] sm:$0xff]   ;;  %v8576_v8 = vld [vmem:[#allocation2 + $0x728] sm:$0xff]  }
0x1604   : > { %v5420_v27 = vpack.c.bf16 %v5401_v50, %v5401_v50 }
0x1606   : > { %8058 = vmatmul.mubr.bf16.vlgmr.msra.gmra.mrb[136].mxu0 %v5420_v27 }
0x1607   : > { %8082 = vmatpush3.bf16.msra.mxu0 %v8548_v53  ;;  %8097 = vmatprep.mubr.msk.bf16.mxu0 %vm8802_vm0, %v8801_v38  ;;  %v8577_v53 = vld [vmem:[#allocation2 + $0x730] sm:$0xff]  }
0x1608   : > { %8083 = vmatprep.subr.bf16.mxu0 %v8801_v38 }
0x160b   : > { %8084 = vmatpush3.bf16.msra.mxu0 %v8550_v15  ;;  %v8578_v15 = vld [vmem:[#allocation2 + $0x738] sm:$0xff]  }
0x160c   : > { %8085 = vmatprep.subr.bf16.mxu0 %v8801_v38 }
0x160f   : > { %8086 = vmatpush3.bf16.msra.mxu0 %v8552_v6 }
0x1610   : > { %8087 = vmatprep.subr.bf16.mxu0 %v8801_v38 }
0x1613   : > { %8088 = vmatpush3.bf16.msra.mxu0 %v8554_v10  ;;  %v8580_v10 = vld [vmem:[#allocation2 + $0x688] sm:$0xff]  }
0x1614   : > { %8089 = vmatprep.subr.bf16.mxu0 %v8801_v38 }
0x1617   : > { %8090 = vmatpush3.bf16.msra.mxu0 %v8556_v3  ;;  %v8582_v3 = vld [vmem:[#allocation2 + $0x698] sm:$0xff]  }
0x1618   : > { %8091 = vmatprep.subr.bf16.mxu0 %v8801_v38 }
0x161b   : > { %8092 = vmatpush3.bf16.msra.mxu0 %v8558_v23  ;;  %v8584_v23 = vld [vmem:[#allocation2 + $0x6a8] sm:$0xff]  }
0x161c   : > { %8093 = vmatprep.subr.bf16.mxu0 %v8801_v38 }
0x161f   : > { %8094 = vmatpush3.bf16.msra.mxu0 %v8560_v30  ;;  %v8586_v30 = vld [vmem:[#allocation2 + $0x6b8] sm:$0xff]  }
0x1620   : > { %8095 = vmatprep.subr.bf16.mxu0 %v8801_v38 }
0x1623   : > { %8096 = vmatpush3.bf16.msra.mxu0 %v8562_v4 }
0x1624   : > { %8121 = vmatprep.subr.bf16.mxu0 %v8801_v38 }
0x16d9   : > { %v5503_v48 = vpop.f32.mrb[136].mxu0 }
0x16da   : > { %v5504_v33 = vadd.f32 %v5503_v48, %v5419_v20  ;;  %v8059_v60 = vpop.f32.mrb[137].mxu0 }
0x16db   : > { %v5506_v63 = vpop.f32.mrb[138].mxu0 }
0x16dc   : > { %v5509_v42 = vmul.f32 0.5, %v5504_v33  ;;  %v8060_v52 = vpop.f32.mrb[139].mxu0 }
0x16dd   : > { %v6799_v52 = vld [vmem:[%s10867_s3 + $0x80] sm:$0xff] }
0x16de   : > { %8709 = vtanh.f32 %v5509_v42 }
0x16e8   : > { %v8710_v31 = vpop.eup %8709 }
0x16e9   : > { %v5511_v49 = vadd.f32 1.0, %v8710_v31 }
0x16eb   : > { %v5512_v24 = vmul.f32 0.5, %v5511_v49 }
0x16ed   : > { %v5513_v19 = vmul.f32 %v5512_v24, %v5504_v33  ;;  %v5853_v24 = vrot.slane %v6799_v52, 4  ;;  %v8605_v52 = vld [vmem:[#allocation2 + $0x790] sm:$0xff]  }
0x16ef   : > { %v5534_v46 = vpack.c.bf16 %v5513_v19, %v5513_v19 }
0x16f1   : > { %8078 = vmatmul.mubr.bf16.vlgmr.msra.gmra.mrb[128].mxu1 %v5534_v46  ;;  %8098 = vmatmul.mubr.bf16.vlgmr.msra.gmra.mrb[140].mxu0 %v5534_v46 }
0x16f2   : > { %8102 = vmatpush3.bf16.msra.mxu1 %v8563_v18  ;;  %8117 = vmatprep.mubr.msk.bf16.mxu1 %vm8802_vm0, %v8801_v38  ;;  %v5851_v18 = vld [vmem:[%s10866_s2 + $0x1f] sm:$0x1] }
0x16f3   : > { %8103 = vmatprep.subr.bf16.mxu1 %v8801_v38  ;;  %8137 = vmatprep.mubr.msk.bf16.mxu0 %vm8802_vm0, %v8801_v38 }
0x16f4   : > { %8122 = vmatpush3.bf16.msra.mxu0 %v8579_v35  ;;  %v8599_v35 = vld [vmem:[#allocation2 + $0x760] sm:$0xff]  }
0x16f5   : > { %8123 = vmatprep.subr.bf16.mxu0 %v8801_v38 }
0x16f6   : > { %8104 = vmatpush3.bf16.msra.mxu1 %v8564_v28 }
0x16f7   : > { %8105 = vmatprep.subr.bf16.mxu1 %v8801_v38 }
0x16f8   : > { %8124 = vmatpush3.bf16.msra.mxu0 %v8580_v10  ;;  %v8601_v10 = vld [vmem:[#allocation2 + $0x770] sm:$0xff]  }
0x16f9   : > { %8125 = vmatprep.subr.bf16.mxu0 %v8801_v38 }
0x16fa   : > { %8106 = vmatpush3.bf16.msra.mxu1 %v8565_v26 }
0x16fb   : > { %8107 = vmatprep.subr.bf16.mxu1 %v8801_v38 }
0x16fc   : > { %8126 = vmatpush3.bf16.msra.mxu0 %v8581_v56  ;;  %v8602_v56 = vld [vmem:[#allocation2 + $0x778] sm:$0xff]  }
0x16fd   : > { %8127 = vmatprep.subr.bf16.mxu0 %v8801_v38 }
0x16fe   : > { %8108 = vmatpush3.bf16.msra.mxu1 %v8566_v9 }
0x16ff   : > { %8109 = vmatprep.subr.bf16.mxu1 %v8801_v38 }
0x1700   : > { %8128 = vmatpush3.bf16.msra.mxu0 %v8582_v3 }
0x1701   : > { %8129 = vmatprep.subr.bf16.mxu0 %v8801_v38 }
0x1702   : > { %8110 = vmatpush3.bf16.msra.mxu1 %v8567_v0 }
0x1703   : > { %8111 = vmatprep.subr.bf16.mxu1 %v8801_v38 }
0x1704   : > { %8130 = vmatpush3.bf16.msra.mxu0 %v8583_v22  ;;  %v6187_v22 = vld [vmem:[%s10866_s2 + $0x21] sm:$0x1] }
0x1705   : > { %8131 = vmatprep.subr.bf16.mxu0 %v8801_v38 }
0x1706   : > { %8112 = vmatpush3.bf16.msra.mxu1 %v8568_v34 }
0x1707   : > { %8113 = vmatprep.subr.bf16.mxu1 %v8801_v38 }
0x1708   : > { %8132 = vmatpush3.bf16.msra.mxu0 %v8584_v23 }
0x1709   : > { %8133 = vmatprep.subr.bf16.mxu0 %v8801_v38 }
0x170a   : > { %8114 = vmatpush3.bf16.msra.mxu1 %v8569_v16 }
0x170b   : > { %8115 = vmatprep.subr.bf16.mxu1 %v8801_v38 }
0x170c   : > { %8134 = vmatpush3.bf16.msra.mxu0 %v8585_v39 }
0x170d   : > { %8135 = vmatprep.subr.bf16.mxu0 %v8801_v38 }
0x170e   : > { %8116 = vmatpush3.bf16.msra.mxu1 %v8570_v29 }
0x170f   : > { %8141 = vmatprep.subr.bf16.mxu1 %v8801_v38 }
0x1710   : > { %8136 = vmatpush3.bf16.msra.mxu0 %v8586_v30 }
0x1711   : > { %8161 = vmatprep.subr.bf16.mxu0 %v8801_v38 }
0x17c4   : > { %v5617_v21 = vpop.f32.mrb[128].mxu1  ;;  %v5728_v59 = vpop.f32.mrb[140].mxu0 }
0x17c5   : > { %v5618_v14 = vadd.f32 %v5617_v21, %v5533_v61  ;;  %v8079_v55 = vpop.f32.mrb[129].mxu1  ;;  %v8099_v1 = vpop.f32.mrb[141].mxu0  ;;  %v5729_v57 = vadd.f32 %v5728_v59, %v5645_v40  ;;  %v5879_v40 = vld [vmem:[%s10866_s2 + $0x20] sm:$0x1] }
0x17c6   : > { %v5620_v5 = vpop.f32.mrb[130].mxu1  ;;  %v5731_v44 = vpop.f32.mrb[142].mxu0  ;;  %v8588_v1 = vld [vmem:[#allocation2 + $0x6c8] sm:$0xff]  }
0x17c7   : > { %v5623_v11 = vmul.f32 0.5, %v5618_v14  ;;  %v8080_v13 = vpop.f32.mrb[131].mxu1  ;;  %v8100_v43 = vpop.f32.mrb[143].mxu0  ;;  %v5734_v36 = vmul.f32 0.5, %v5729_v57  ;;  %v8589_v5 = vld [vmem:[#allocation2 + $0x6d0] sm:$0xff]   ;;  %v8590_v44 = vld [vmem:[#allocation2 + $0x6d8] sm:$0xff]  }
0x17c8   : > { %v8596_v13 = vld [vmem:[#allocation2 + $0x748] sm:$0xff]   ;;  %v8591_v43 = vld [vmem:[#allocation2 + $0x6e0] sm:$0xff]  }
0x17c9   : > { %8711 = vtanh.f32 %v5623_v11  ;;  %v8595_v11 = vld [vmem:[#allocation2 + $0x740] sm:$0xff]  }
0x17ca   : > { %8713 = vtanh.f32 %v5734_v36 }
0x17d3   : > { %v8712_v12 = vpop.eup %8711 }
0x17d4   : > { %v5625_v54 = vadd.f32 1.0, %v8712_v12  ;;  %v8714_v41 = vpop.eup %8713  ;;  %v8592_v12 = vld [vmem:[#allocation2 + $0x6e8] sm:$0xff]  }
0x17d5   : > { %v5736_v50 = vadd.f32 1.0, %v8714_v41 }
0x17d6   : > { %v5626_v25 = vmul.f32 0.5, %v5625_v54  ;;  %v8593_v54 = vld [vmem:[#allocation2 + $0x6f0] sm:$0xff]  }
0x17d7   : > { %v5737_v27 = vmul.f32 0.5, %v5736_v50 }
0x17d8   : > { %v10780_v51 = vmul.f32 %v5626_v25, %v5618_v14  ;;  %v8587_v14 = vld [vmem:[#allocation2 + $0x6c0] sm:$0xff]   ;;  %v8594_v25 = vld [vmem:[#allocation2 + $0x6f8] sm:$0xff]  }
0x17d9   : > { %v5738_v32 = vmul.f32 %v5737_v27, %v5729_v57  ;;  %v8597_v27 = vld [vmem:[#allocation2 + $0x750] sm:$0xff]  }
0x17da   : > { %v5757_v17 = vpack.c.bf16 %v10780_v51, %v10780_v51 }
0x17db   : > { %v5993_v6 = vpack.c.bf16 %v5738_v32, %v5738_v32  ;;  %v8603_v32 = vld [vmem:[#allocation2 + $0x780] sm:$0xff]  }
0x17dc   : > { %8118 = vmatmul.mubr.bf16.vlgmr.msra.gmra.mrb[132].mxu1 %v5757_v17 }
0x17dd   : > { %8142 = vmatpush3.bf16.msra.mxu1 %v8571_v45  ;;  %8157 = vmatprep.mubr.msk.bf16.mxu1 %vm8802_vm0, %v8801_v38 }
0x17de   : > { %8143 = vmatprep.subr.bf16.mxu1 %v8801_v38 }
0x17e1   : > { %8144 = vmatpush3.bf16.msra.mxu1 %v8572_v47 }
0x17e2   : > { %8145 = vmatprep.subr.bf16.mxu1 %v8801_v38 }
0x17e5   : > { %8146 = vmatpush3.bf16.msra.mxu1 %v8573_v58 }
0x17e6   : > { %8147 = vmatprep.subr.bf16.mxu1 %v8801_v38 }
0x17e9   : > { %8148 = vmatpush3.bf16.msra.mxu1 %v8574_v37 }
0x17ea   : > { %8149 = vmatprep.subr.bf16.mxu1 %v8801_v38 }
0x17ed   : > { %8150 = vmatpush3.bf16.msra.mxu1 %v8575_v7 }
0x17ee   : > { %8151 = vmatprep.subr.bf16.mxu1 %v8801_v38 }
0x17f1   : > { %8152 = vmatpush3.bf16.msra.mxu1 %v8576_v8 }
0x17f2   : > { %8153 = vmatprep.subr.bf16.mxu1 %v8801_v38 }
0x17f5   : > { %8154 = vmatpush3.bf16.msra.mxu1 %v8577_v53 }
0x17f6   : > { %8155 = vmatprep.subr.bf16.mxu1 %v8801_v38 }
0x17f9   : > { %8156 = vmatpush3.bf16.msra.mxu1 %v8578_v15  ;;  %v8598_v15 = vld [vmem:[#allocation2 + $0x758] sm:$0xff]  }
0x17fa   : > { %8181 = vmatprep.subr.bf16.mxu1 %v8801_v38 }
0x17fc   : > { %8158 = vmatmul.mubr.bf16.vlgmr.msra.gmra.mrb[136].mxu1 %v5993_v6  ;;  %v8604_v6 = vld [vmem:[#allocation2 + $0x788] sm:$0xff]  }
0x17fd   : > { %8197 = vmatprep.mubr.msk.bf16.mxu1 %vm8802_vm0, %v8801_v38  ;;  %8182 = vmatpush3.bf16.msra.mxu1 %v8595_v11 }
0x17fe   : > { %8183 = vmatprep.subr.bf16.mxu1 %v8801_v38 }
0x1801   : > { %8184 = vmatpush3.bf16.msra.mxu1 %v8596_v13 }
0x1802   : > { %8185 = vmatprep.subr.bf16.mxu1 %v8801_v38 }
0x1805   : > { %8186 = vmatpush3.bf16.msra.mxu1 %v8597_v27 }
0x1806   : > { %8187 = vmatprep.subr.bf16.mxu1 %v8801_v38 }
0x1809   : > { %8188 = vmatpush3.bf16.msra.mxu1 %v8598_v15 }
0x180a   : > { %8189 = vmatprep.subr.bf16.mxu1 %v8801_v38 }
0x180d   : > { %8190 = vmatpush3.bf16.msra.mxu1 %v8599_v35 }
0x180e   : > { %8191 = vmatprep.subr.bf16.mxu1 %v8801_v38 }
0x18af   : > { %v5840_v4 = vpop.f32.mrb[132].mxu1 }
0x18b0   : > { %v5841_v20 = vadd.f32 %v5840_v4, %v5756_v62  ;;  %v8119_v48 = vpop.f32.mrb[133].mxu1 }
0x18b1   : > { %v5843_v33 = vpop.f32.mrb[134].mxu1 }
0x18b2   : > { %v5846_v60 = vmul.f32 0.5, %v5841_v20  ;;  %v8120_v63 = vpop.f32.mrb[135].mxu1 }
0x18b4   : > { %8715 = vtanh.f32 %v5846_v60 }
0x18be   : > { %v8716_v42 = vpop.eup %8715 }
0x18bf   : > { %v5848_v31 = vadd.f32 1.0, %v8716_v42 }
0x18c1   : > { %v5849_v49 = vmul.f32 0.5, %v5848_v31  ;;  %v8606_v31 = vld [vmem:[#allocation2 + $0x798] sm:$0xff]  }
0x18c3   : > { %v5850_v19 = vmul.f32 %v5849_v49, %v5841_v20  ;;  %v8607_v49 = vld [vmem:[#allocation2 + $0x7a0] sm:$0xff]  }
0x18c5   : > { %v5855_v46 = vmul.f32 %v5853_v24, %v5850_v19  ;;  %v8608_v24 = vld [vmem:[#allocation2 + $0x7a8] sm:$0xff]   ;;  %v8609_v19 = vld [vmem:[#allocation2 + $0x7b0] sm:$0xff]  }
0x18c7   : > { %v5856_v28 = vadd.f32 %v5855_v46, %v5851_v18  ;;  %v8610_v18 = vld [vmem:[#allocation2 + $0x7b8] sm:$0xff]   ;;  %v6211_v46 = vld [vmem:[%s10866_s2 + $0x22] sm:$0x1] }
0x18c9   : > { %v5857_v26 = vmul.f32 0.5, %v5856_v28 }
0x18cb   : > { %8717 = vtanh.f32 %v5857_v26 }
0x18cf   : > { %v10813_v9 = vpop.f32.mrb[136].mxu1 }
0x18d0   : > { %v8159_v0 = vpop.f32.mrb[137].mxu1 }
0x18d1   : > { %v6096_v34 = vpop.f32.mrb[138].mxu1 }
0x18d2   : > { %v8160_v16 = vpop.f32.mrb[139].mxu1 }
0x18d5   : > { %v8718_v29 = vpop.eup %8717 }
0x18d6   : > { %v5859_v61 = vadd.f32 1.0, %v8718_v29 }
0x18d8   : > { %v5860_v21 = vmul.f32 0.5, %v5859_v61 }
0x18da   : > { %v5861_v59 = vmul.f32 %v5860_v21, %v5856_v28 }
0x18dc   : > { %v5880_v55 = vpack.c.bf16 %v5861_v59, %v5861_v59 }
0x18de   : > { %8138 = vmatmul.mubr.bf16.vlgmr.msra.gmra.mrb[144].mxu0 %v5880_v55 }
0x18df   : > { %8162 = vmatpush3.bf16.msra.mxu0 %v8587_v14  ;;  %8177 = vmatprep.mubr.msk.bf16.mxu0 %vm8802_vm0, %v8801_v38 }
0x18e0   : > { %8163 = vmatprep.subr.bf16.mxu0 %v8801_v38 }
0x18e3   : > { %8164 = vmatpush3.bf16.msra.mxu0 %v8588_v1 }
0x18e4   : > { %8165 = vmatprep.subr.bf16.mxu0 %v8801_v38 }
0x18e7   : > { %8166 = vmatpush3.bf16.msra.mxu0 %v8589_v5 }
0x18e8   : > { %8167 = vmatprep.subr.bf16.mxu0 %v8801_v38 }
0x18eb   : > { %8168 = vmatpush3.bf16.msra.mxu0 %v8590_v44 }
0x18ec   : > { %8169 = vmatprep.subr.bf16.mxu0 %v8801_v38 }
0x18ef   : > { %8170 = vmatpush3.bf16.msra.mxu0 %v8591_v43 }
0x18f0   : > { %8171 = vmatprep.subr.bf16.mxu0 %v8801_v38 }
0x18f3   : > { %8172 = vmatpush3.bf16.msra.mxu0 %v8592_v12 }
0x18f4   : > { %8173 = vmatprep.subr.bf16.mxu0 %v8801_v38 }
0x18f7   : > { %8174 = vmatpush3.bf16.msra.mxu0 %v8593_v54 }
0x18f8   : > { %8175 = vmatprep.subr.bf16.mxu0 %v8801_v38 }
0x18fb   : > { %8176 = vmatpush3.bf16.msra.mxu0 %v8594_v25 }
0x18fc   : > { %8201 = vmatprep.subr.bf16.mxu0 %v8801_v38 }
0x19b1   : > { %v5963_v57 = vpop.f32.mrb[144].mxu0 }
0x19b2   : > { %v5964_v45 = vadd.f32 %v5963_v57, %v5879_v40  ;;  %v8139_v17 = vpop.f32.mrb[145].mxu0 }
0x19b3   : > { %v5966_v36 = vpop.f32.mrb[146].mxu0 }
0x19b4   : > { %v5969_v47 = vmul.f32 0.5, %v5964_v45  ;;  %v8140_v58 = vpop.f32.mrb[147].mxu0 }
0x19b6   : > { %8719 = vtanh.f32 %v5969_v47 }
0x19c0   : > { %v8720_v37 = vpop.eup %8719 }
0x19c1   : > { %v5971_v7 = vadd.f32 1.0, %v8720_v37 }
0x19c3   : > { %v5972_v41 = vmul.f32 0.5, %v5971_v7 }
0x19c5   : > { %v5973_v8 = vmul.f32 %v5972_v41, %v5964_v45 }
0x19c7   : > { %v5974_v50 = vadd.f32 %v5973_v8, %v10780_v51  ;;  %v8600_v51 = vld [vmem:[#allocation2 + $0x768] sm:$0xff]  }
0x19c8   : > { %8192 = vmatpush3.bf16.msra.mxu1 %v8600_v51 }
0x19c9   : > { %v5975_v53 = vpack.c.bf16 %v5974_v50, %v5974_v50  ;;  %8193 = vmatprep.subr.bf16.mxu1 %v8801_v38 }
0x19cb   : > { %8178 = vmatmul.mubr.bf16.vlgmr.msra.gmra.mrb[148].mxu0 %v5975_v53 }
0x19cc   : > { %8217 = vmatprep.mubr.msk.bf16.mxu0 %vm8802_vm0, %v8801_v38  ;;  %8202 = vmatpush3.bf16.msra.mxu0 %v8603_v32 }
0x19cd   : > { %8203 = vmatprep.subr.bf16.mxu0 %v8801_v38  ;;  %8194 = vmatpush3.bf16.msra.mxu1 %v8601_v10 }
0x19ce   : > { %8195 = vmatprep.subr.bf16.mxu1 %v8801_v38 }
0x19d0   : > { %8204 = vmatpush3.bf16.msra.mxu0 %v8604_v6 }
0x19d1   : > { %8205 = vmatprep.subr.bf16.mxu0 %v8801_v38  ;;  %8196 = vmatpush3.bf16.msra.mxu1 %v8602_v56 }
0x19d4   : > { %8206 = vmatpush3.bf16.msra.mxu0 %v8605_v52 }
0x19d5   : > { %8207 = vmatprep.subr.bf16.mxu0 %v8801_v38 }
0x19d8   : > { %8208 = vmatpush3.bf16.msra.mxu0 %v8606_v31 }
0x19d9   : > { %8209 = vmatprep.subr.bf16.mxu0 %v8801_v38 }
0x19dc   : > { %8210 = vmatpush3.bf16.msra.mxu0 %v8607_v49 }
0x19dd   : > { %8211 = vmatprep.subr.bf16.mxu0 %v8801_v38 }
0x19e0   : > { %8212 = vmatpush3.bf16.msra.mxu0 %v8608_v24 }
0x19e1   : > { %8213 = vmatprep.subr.bf16.mxu0 %v8801_v38 }
0x19e4   : > { %8214 = vmatpush3.bf16.msra.mxu0 %v8609_v19 }
0x19e5   : > { %8215 = vmatprep.subr.bf16.mxu0 %v8801_v38  ;;  %v6325_v38 = vld [vmem:[%s10866_s2 + $0x23] sm:$0x1] }
0x19e8   : > { %8216 = vmatpush3.bf16.msra.mxu0 %v8610_v18 }
0x1a9e   : > { %v6181_v3 = vpop.f32.mrb[148].mxu0 }
0x1a9f   : > { %v6182_v23 = vadd.f32 %v6181_v3, %v10813_v9  ;;  %v8179_v39 = vpop.f32.mrb[149].mxu0 }
0x1aa0   : > { %v6184_v30 = vpop.f32.mrb[150].mxu0 }
0x1aa1   : > { %v6188_v62 = vadd.f32 %v6187_v22, %v6182_v23  ;;  %v8180_v4 = vpop.f32.mrb[151].mxu0 }
0x1aa3   : > { %v6189_v20 = vmul.f32 0.5, %v6188_v62 }
0x1aa5   : > { %8721 = vtanh.f32 %v6189_v20 }
0x1aaf   : > { %v8722_v48 = vpop.eup %8721 }
0x1ab0   : > { %v6191_v33 = vadd.f32 1.0, %v8722_v48 }
0x1ab2   : > { %v6192_v60 = vmul.f32 0.5, %v6191_v33 }
0x1ab4   : > { %v6193_v63 = vmul.f32 %v6192_v60, %v6188_v62 }
0x1ab6   : > { %v6212_v42 = vpack.c.bf16 %v6193_v63, %v6193_v63 }
0x1ab8   : > { %8198 = vmatmul.mubr.bf16.vlgmr.msra.gmra.mrb[140].mxu1 %v6212_v42 }
0x1b8b   : > { %v6295_v28 = vpop.f32.mrb[140].mxu1 }
0x1b8c   : > { %v6296_v26 = vadd.f32 %v6295_v28, %v6211_v46  ;;  %v8199_v9 = vpop.f32.mrb[141].mxu1 }
0x1b8d   : > { %v6298_v0 = vpop.f32.mrb[142].mxu1 }
0x1b8e   : > { %v6301_v34 = vmul.f32 0.5, %v6296_v26  ;;  %v8200_v16 = vpop.f32.mrb[143].mxu1 }
0x1b90   : > { %8723 = vtanh.f32 %v6301_v34 }
0x1b9a   : > { %v8724_v29 = vpop.eup %8723 }
0x1b9b   : > { %v6303_v61 = vadd.f32 1.0, %v8724_v29 }
0x1b9d   : > { %v6304_v21 = vmul.f32 0.5, %v6303_v61 }
0x1b9f   : > { %v6305_v59 = vmul.f32 %v6304_v21, %v6296_v26 }
0x1ba1   : > { %v6307_v14 = vpack.c.bf16 %v6305_v59, %v6305_v59 }
0x1ba3   : > { %8218 = vmatmul.mubr.bf16.vlgmr.msra.gmra.mrb[152].mxu0 %v6307_v14 }
0x1c76   : > { %v6408_v55 = vpop.f32.mrb[152].mxu0 }
0x1c77   : > { %v6409_v1 = vadd.f32 %v6408_v55, %v6325_v38  ;;  %v8219_v5 = vpop.f32.mrb[153].mxu0 }
0x1c78   : > { %v6411_v44 = vpop.f32.mrb[154].mxu0 }
0x1c79   : > { %v6417_v11 = vrot.slane %v6409_v1, %v8908_v2  ;;  %v8220_v13 = vpop.f32.mrb[155].mxu0 }
0x1c7b   : > { %6418 = vst [vmem:[%s374_s24] sm:$0xff] %v6417_v11 }
0x1c7c PF: > { %s21_s13 = sadd.s32 1, %s8796_s13  }
0x1c7d   : > { %p18_p5 = scmp.ge.s32.totalorder %s21_s13, 4  }
0x1c7f   :  { %20 = sbr.rel (!%p18_p5) target bundleno = 1 (0x1), region = 133 }
0x1c86   :  { %6438 = vsyncpa [#allocation3], 1 }
0x1c87   :  { %6440 = vsyncpa [#allocation3 + $0x1], 1 }

</bundles_post_ra>
